<compile_context>
chip_gen: v7x
topology: tpu7x:2x2x1
jax: 0.10.0
libtpu: 0.0.40
codegen_flags: <defaults>
</compile_context>

<pallas_src>
import functools

import jax
import jax.numpy as jnp
import numpy as np
from jax import lax
from jax.experimental import pallas as pl
from jax.experimental.pallas import tpu as pltpu

# Sparse4D box-state indices
X, Y, Z, W, L, H, SIN_YAW, COS_YAW, VX, VY, VZ = range(11)

EPS_LN = 1e-5      # nn.LayerNorm default eps
EPS_NORM = 1e-12   # F.normalize default eps

# ---- packed-parameter layouts (static, shared by wrapper & kernel) ---------------
SQ_ORDER = ("w1", "w2", "w3", "w4", "cw1", "cw2", "dw1", "dw2")          # (E, E) weights
SI = {k: i for i, k in enumerate(SQ_ORDER)}

VEC_ORDER = (
    # main branch biases / LN affine
    "b1", "b2", "g1", "be1", "b3", "b4", "g2", "be2",
    # cls branch
    "cb1", "cg1", "cbe1", "cb2", "cg2", "cbe2",
    # dir branch
    "db1", "dg1", "dbe1", "db2", "dg2", "dbe2",
    # head biases / scale, pre-placed at their destination columns of the output slab
    "bo", "sc", "cbo", "dbo",
)
VI = {k: i for i, k in enumerate(VEC_ORDER)}


# ======================================================================================
# Kernel
# ======================================================================================
def refinement_kernel(inst_ref, emb_ref, aux_ref, wsq_ref, vec_ref, whead_ref, out_ref,
                      *, out_dim, d_total):
    bf16 = jnp.bfloat16
    f32 = jnp.float32

    def vrow(name, width=None):
        r = VI[name]
        v = vec_ref[r:r + 1, :]                       # (1, E), f32
        return v if width is None else v[:, :width]   # (1, width)

    def dense(x, name):
        # bf16 MXU operands, f32 accumulation
        return jnp.dot(x.astype(bf16), wsq_ref[SI[name]], preferred_element_type=f32)

    def head(x, idx):
        # (TM, E) @ (E, d_total); each head's weights occupy disjoint output columns
        return jnp.dot(x.astype(bf16), whead_ref[idx], preferred_element_type=f32)

    def layernorm(x, g_name, b_name):
        # one-pass statistics: var = E[x^2] - E[x]^2 ; rsqrt instead of divide
        mu = jnp.mean(x, axis=-1, keepdims=True)
        m2 = jnp.mean(x * x, axis=-1, keepdims=True)
        inv_sigma = lax.rsqrt(m2 - mu * mu + EPS_LN)
        return (x - mu) * inv_sigma * vrow(g_name) + vrow(b_name)

    xi = inst_ref[...]                                # (TM, E) bf16
    x = xi + emb_ref[...]                             # bf16

    # ---- main refinement branch: linear_relu_ln(E, 2, 2) + Linear + Scale ----
    h = jnp.maximum(dense(x, "w1") + vrow("b1"), 0.0)
    h = jnp.maximum(dense(h, "w2") + vrow("b2"), 0.0)
    h = layernorm(h, "g1", "be1")
    h = jnp.maximum(dense(h, "w3") + vrow("b3"), 0.0)
    h = jnp.maximum(dense(h, "w4") + vrow("b4"), 0.0)
    h = layernorm(h, "g2", "be2")
    # (TM, d_total); columns >= out_dim are exactly zero (zero-padded weights / bias / scale)
    out = (head(h, 0) + vrow("bo", d_total)) * vrow("sc", d_total)

    # ---- emulate the in-place indexed writes of the box state ----
    anchor = aux_ref[:, :d_total]                     # anchor, zero beyond out_dim
    inv_dt = aux_ref[:, d_total:d_total + 1]          # (TM, 1) = 1 / time_interval

    col = lax.broadcasted_iota(jnp.int32, out.shape, 1)
    refine_mask = col <= H                            # refine_state = [X..H] (refine_yaw=False)
    yaw_mask = (col >= SIN_YAW) & (col <= COS_YAW)
    vel_mask = (col >= VX) & (col < out_dim)          # output_dim > 8 branch

    yaw_sq = jnp.where(yaw_mask, out * out, 0.0)
    yaw_norm = jnp.maximum(jnp.sqrt(jnp.sum(yaw_sq, axis=-1, keepdims=True)), EPS_NORM)
    inv_yaw = pl.reciprocal(yaw_norm, approx=True)    # EUP, off the VALU critical path

    res = jnp.where(refine_mask, out + anchor, out)
    res = jnp.where(yaw_mask, out * inv_yaw, res)     # F.normalize over (sin, cos)
    res = jnp.where(vel_mask, out * inv_dt + anchor, res)
    res = jnp.where(col < out_dim, res, 0.0)          # keep cls/dir columns untouched

    # ---- cls branch: linear_relu_ln(E, 1, 2) + Linear(E, num_cls) ----
    hc = jnp.maximum(dense(xi, "cw1") + vrow("cb1"), 0.0)
    hc = layernorm(hc, "cg1", "cbe1")
    hc = jnp.maximum(dense(hc, "cw2") + vrow("cb2"), 0.0)
    hc = layernorm(hc, "cg2", "cbe2")
    cls = head(hc, 1) + vrow("cbo", d_total)          # nonzero only in its own columns

    # ---- dir branch: linear_relu_ln(E, 1, 2) + Linear(E, 2) ----
    hd = jnp.maximum(dense(xi, "dw1") + vrow("db1"), 0.0)
    hd = layernorm(hd, "dg1", "dbe1")
    hd = jnp.maximum(dense(hd, "dw2") + vrow("db2"), 0.0)
    hd = layernorm(hd, "dg2", "dbe2")
    dirp = head(hd, 2) + vrow("dbo", d_total)         # nonzero only in its own columns

    # single lane-combined output slab: [box | cls | dir]
    out_ref[...] = (res + cls + dirp).astype(out_ref.dtype)


# ======================================================================================
# Wrapper
# ======================================================================================
def sparse_box3d_refinement(params, instance_feature, anchor, anchor_embed, time_interval,
                            *, row_block=256):
    B, N, E = instance_feature.shape
    out_dim = params["wo"].shape[1]
    num_cls = params["cwo"].shape[1]
    num_dir = params["dwo"].shape[1]
    d_total = out_dim + num_cls + num_dir
    if d_total > E:
        raise ValueError("combined head width must fit in the E-wide vector stack")
    M = B * N

    # ---- activations: bf16 MXU operands; aux (anchor | zeros | 1/dt) stays f32 ----
    inst = instance_feature.reshape(M, E).astype(jnp.bfloat16)
    emb = anchor_embed.reshape(M, E).astype(jnp.bfloat16)
    anc = anchor.reshape(M, out_dim).astype(jnp.float32)
    inv_ti = jnp.broadcast_to(
        (1.0 / jnp.asarray(time_interval, jnp.float32)).reshape(B, 1, 1), (B, N, 1)
    ).reshape(M, 1)
    aux = jnp.concatenate(
        [anc, jnp.zeros((M, d_total - out_dim), jnp.float32), inv_ti], axis=-1
    )  # (M, d_total + 1)

    # ---- pack parameters into 3 stacked tensors ----
    wsq = jnp.stack([jnp.asarray(params[k], jnp.float32) for k in SQ_ORDER]
                    ).astype(jnp.bfloat16)                                   # (8, E, E)

    def placed(vals, start, length):
        row = jnp.zeros((d_total,), jnp.float32)
        row = row.at[start:start + length].set(jnp.asarray(vals, jnp.float32).reshape(-1))
        return jnp.pad(row, (0, E - d_total))

    head_rows = {
        "bo":  placed(params["bo"], 0, out_dim),
        "sc":  placed(params["sc"], 0, out_dim),
        "cbo": placed(params["cbo"], out_dim, num_cls),
        "dbo": placed(params["dbo"], out_dim + num_cls, num_dir),
    }
    vec_rows = []
    for k in VEC_ORDER:
        if k in head_rows:
            vec_rows.append(head_rows[k])
        else:
            vec_rows.append(jnp.asarray(params[k], jnp.float32).reshape(E))
    vecs = jnp.stack(vec_rows, axis=0)                                       # (24, E)

    whead = jnp.zeros((3, E, d_total), jnp.float32)
    whead = whead.at[0, :, :out_dim].set(jnp.asarray(params["wo"], jnp.float32))
    whead = whead.at[1, :, out_dim:out_dim + num_cls].set(jnp.asarray(params["cwo"], jnp.float32))
    whead = whead.at[2, :, out_dim + num_cls:].set(jnp.asarray(params["dwo"], jnp.float32))
    whead = whead.astype(jnp.bfloat16)                                       # (3, E, d_total)

    # ---- row tiling (TM multiple of 8, rows padded to a multiple of TM) ----
    M8 = -(-M // 8) * 8
    TM = min(-(-row_block // 8) * 8, M8)
    M_pad = -(-M // TM) * TM
    if M_pad != M:
        pad = M_pad - M
        inst = jnp.pad(inst, ((0, pad), (0, 0)))
        emb = jnp.pad(emb, ((0, pad), (0, 0)))
        aux = jnp.pad(aux, ((0, pad), (0, 0)))

    grid = (M_pad // TM,)

    def row_spec(d):
        return pl.BlockSpec((TM, d), lambda i: (i, 0))

    def const_spec(shape):
        n = len(shape)
        return pl.BlockSpec(shape, lambda i: (0,) * n)

    kernel = functools.partial(refinement_kernel, out_dim=out_dim, d_total=d_total)

    comb = pl.pallas_call(
        kernel,
        grid=grid,
        in_specs=[
            row_spec(E),                 # instance_feature (bf16)
            row_spec(E),                 # anchor_embed     (bf16)
            row_spec(d_total + 1),       # anchor | zeros | 1/dt (f32)
            const_spec(wsq.shape),       # packed (E,E) weights (bf16)
            const_spec(vecs.shape),      # packed biases / LN affine / head bias+scale (f32)
            const_spec(whead.shape),     # packed, column-placed head weights (bf16)
        ],
        out_specs=row_spec(d_total),
        out_shape=jax.ShapeDtypeStruct((M_pad, d_total), jnp.float32),
        compiler_params=pltpu.CompilerParams(dimension_semantics=("parallel",)),
    )(inst, emb, aux, wsq, vecs, whead)

    comb = comb[:M]
    out = comb[:, :out_dim].reshape(B, N, out_dim)
    cls = comb[:, out_dim:out_dim + num_cls].reshape(B, N, num_cls)
    dirp = comb[:, out_dim + num_cls:].reshape(B, N, num_dir)
    return out, cls, dirp


# ======================================================================================
# Parameter init + pure-JAX reference (mirrors the PyTorch forward; matmuls use bf16
# operands with f32 accumulation, like the kernel)
# ======================================================================================
def init_params(key, E, out_dim, num_cls):
    keys = iter(jax.random.split(key, 64))

    def w(din, dout):
        return jax.random.normal(next(keys), (din, dout), jnp.float32) / np.sqrt(din)

    def b(d):
        return jax.random.normal(next(keys), (1, d), jnp.float32) * 0.02

    ones = lambda d: jnp.ones((1, d), jnp.float32)
    zeros = lambda d: jnp.zeros((1, d), jnp.float32)

    p = {}
    # main branch: linear_relu_ln(E, 2, 2) + Linear(E, out_dim) + Scale
    p["w1"], p["b1"] = w(E, E), b(E)
    p["w2"], p["b2"] = w(E, E), b(E)
    p["g1"], p["be1"] = ones(E), zeros(E)
    p["w3"], p["b3"] = w(E, E), b(E)
    p["w4"], p["b4"] = w(E, E), b(E)
    p["g2"], p["be2"] = ones(E), zeros(E)
    p["wo"], p["bo"] = w(E, out_dim), b(out_dim)
    p["sc"] = jnp.ones((1, out_dim), jnp.float32)      # Scale([1.0]*out_dim)
    # cls branch: linear_relu_ln(E, 1, 2) + Linear(E, num_cls)
    p["cw1"], p["cb1"] = w(E, E), b(E)
    p["cg1"], p["cbe1"] = ones(E), zeros(E)
    p["cw2"], p["cb2"] = w(E, E), b(E)
    p["cg2"], p["cbe2"] = ones(E), zeros(E)
    p["cwo"], p["cbo"] = w(E, num_cls), b(num_cls)
    # dir branch: linear_relu_ln(E, 1, 2) + Linear(E, 2)
    p["dw1"], p["db1"] = w(E, E), b(E)
    p["dg1"], p["dbe1"] = ones(E), zeros(E)
    p["dw2"], p["db2"] = w(E, E), b(E)
    p["dg2"], p["dbe2"] = ones(E), zeros(E)
    p["dwo"], p["dbo"] = w(E, 2), b(2)
    return p


def ref_forward(p, inst, anchor, emb, ti):
    bf = jnp.bfloat16

    def lin(x, w_, b_):
        return jnp.dot(x.astype(bf), jnp.asarray(w_, jnp.float32).astype(bf),
                       preferred_element_type=jnp.float32) + b_

    def ln(x, g, bta):
        mu = x.mean(-1, keepdims=True)
        var = ((x - mu) ** 2).mean(-1, keepdims=True)
        return (x - mu) / jnp.sqrt(var + EPS_LN) * g + bta

    x = inst.astype(bf) + emb.astype(bf)
    h = jax.nn.relu(lin(x, p["w1"], p["b1"]))
    h = jax.nn.relu(lin(h, p["w2"], p["b2"]))
    h = ln(h, p["g1"], p["be1"])
    h = jax.nn.relu(lin(h, p["w3"], p["b3"]))
    h = jax.nn.relu(lin(h, p["w4"], p["b4"]))
    h = ln(h, p["g2"], p["be2"])
    out = lin(h, p["wo"], p["bo"]) * p["sc"]

    out = out.at[..., : H + 1].add(anchor[..., : H + 1])
    yaw = out[..., SIN_YAW: COS_YAW + 1]
    yaw = yaw / jnp.maximum(jnp.linalg.norm(yaw, axis=-1, keepdims=True), EPS_NORM)
    out = out.at[..., SIN_YAW: COS_YAW + 1].set(yaw)
    vel = out[..., VX:] / ti[:, None, None] + anchor[..., VX:]
    out = out.at[..., VX:].set(vel)

    hc = jax.nn.relu(lin(inst, p["cw1"], p["cb1"]))
    hc = ln(hc, p["cg1"], p["cbe1"])
    hc = jax.nn.relu(lin(hc, p["cw2"], p["cb2"]))
    hc = ln(hc, p["cg2"], p["cbe2"])
    cls = lin(hc, p["cwo"], p["cbo"])

    hd = jax.nn.relu(lin(inst, p["dw1"], p["db1"]))
    hd = ln(hd, p["dg1"], p["dbe1"])
    hd = jax.nn.relu(lin(hd, p["dw2"], p["db2"]))
    hd = ln(hd, p["dg2"], p["dbe2"])
    dirp = lin(hd, p["dwo"], p["dbo"])
    return out, cls, dirp


# ======================================================================================
if __name__ == "__main__":
    B, N, E = 2, 256, 32            # small shapes: 2 agents x 256 anchors, embed_dims=32
    OUT_DIM, NUM_CLS = 11, 1

    root = jax.random.PRNGKey(0)
    kp, k1, k2, k3 = jax.random.split(root, 4)

    params = init_params(kp, E, OUT_DIM, NUM_CLS)
    instance_feature = jax.random.normal(k1, (B, N, E), jnp.float32)
    anchor_embed = jax.random.normal(k2, (B, N, E), jnp.float32)
    anchor = jax.random.normal(k3, (B, N, OUT_DIM), jnp.float32)
    time_interval = jnp.array([0.5, 2.0], jnp.float32)   # per-agent dt

    out, cls, dirp = sparse_box3d_refinement(
        params, instance_feature, anchor, anchor_embed, time_interval
    )
    out, cls, dirp = jax.block_until_ready((out, cls, dirp))

    ref_out, ref_cls, ref_dir = ref_forward(
        params, instance_feature, anchor, anchor_embed, time_interval
    )
    assert np.allclose(np.asarray(out), np.asarray(ref_out), rtol=1e-2, atol=1e-2)
    assert np.allclose(np.asarray(cls), np.asarray(ref_cls), rtol=1e-2, atol=1e-2)
    assert np.allclose(np.asarray(dirp), np.asarray(ref_dir), rtol=1e-2, atol=1e-2)

    # PointEncoder tail: yaw / box decode from the refined state (pure JAX, elementwise)
    yaw = jnp.arctan2(out[..., SIN_YAW], out[..., COS_YAW])
    box = jnp.concatenate(
        [out[..., X: Z + 1], jnp.exp(out[..., W: H + 1]), yaw[..., None]], axis=-1
    )
    box = jax.block_until_ready(box)

    print("KERNEL_OK")
</pallas_src>

<mosaic_0001>
module attributes {stable_mosaic.version = 11 : i64} {
  func.func @refinement_kernel(%arg0: i32, %arg1: memref<256x32xbf16, #tpu.memory_space<vmem>>, %arg2: memref<256x32xbf16, #tpu.memory_space<vmem>>, %arg3: memref<256x15xf32, #tpu.memory_space<vmem>>, %arg4: memref<8x32x32xbf16, #tpu.memory_space<vmem>>, %arg5: memref<24x32xf32, #tpu.memory_space<vmem>>, %arg6: memref<3x32x14xbf16, #tpu.memory_space<vmem>>, %arg7: memref<256x14xf32, #tpu.memory_space<vmem>>) attributes {dimension_semantics = [#tpu.dimension_semantics<parallel>], iteration_bounds = array<i64: 2>, scalar_prefetch = 0 : i64, scratch_operands = 0 : i64, tpu.core_type = #tpu.core_type<tc>, window_params = [{transform_indices = @transform_0, window_bounds = array<i64: 256, 32>}, {transform_indices = @transform_1, window_bounds = array<i64: 256, 32>}, {transform_indices = @transform_2, window_bounds = array<i64: 256, 15>}, {pipeline_mode = #tpu.pipeline_mode<synchronous>, transform_indices = @transform_3, window_bounds = array<i64: 8, 32, 32>}, {pipeline_mode = #tpu.pipeline_mode<synchronous>, transform_indices = @transform_4, window_bounds = array<i64: 24, 32>}, {pipeline_mode = #tpu.pipeline_mode<synchronous>, transform_indices = @transform_5, window_bounds = array<i64: 3, 32, 14>}, {transform_indices = @transform_6, window_bounds = array<i64: 256, 14>}]} {
    %c0 = arith.constant 0 : index
    %c0_0 = arith.constant 0 : index
    %0 = vector.load %arg1[%c0, %c0_0] : memref<256x32xbf16, #tpu.memory_space<vmem>>, vector<256x32xbf16>
    %c0_1 = arith.constant 0 : index
    %c0_2 = arith.constant 0 : index
    %1 = vector.load %arg2[%c0_1, %c0_2] : memref<256x32xbf16, #tpu.memory_space<vmem>>, vector<256x32xbf16>
    %2 = arith.addf %0, %1 : vector<256x32xbf16>
    %c0_3 = arith.constant 0 : index
    %c0_4 = arith.constant 0 : index
    %c0_5 = arith.constant 0 : index
    %3 = vector.load %arg4[%c0_3, %c0_4, %c0_5] : memref<8x32x32xbf16, #tpu.memory_space<vmem>>, vector<1x32x32xbf16>
    %4 = vector.shape_cast %3 : vector<1x32x32xbf16> to vector<32x32xbf16>
    %cst = arith.constant dense<0.000000e+00> : vector<256x32xf32>
    %5 = tpu.matmul %2, %4, %cst {dimension_numbers = #tpu.dot_dimension_numbers<[1], [0], [0], [1], [0, 0, 1, 1], [], []>} : vector<256x32xbf16>, vector<32x32xbf16>, vector<256x32xf32> -> vector<256x32xf32>
    %c0_6 = arith.constant 0 : index
    %c0_7 = arith.constant 0 : index
    %6 = vector.load %arg5[%c0_6, %c0_7] : memref<24x32xf32, #tpu.memory_space<vmem>>, vector<1x32xf32>
    %7 = vector.broadcast %6 : vector<1x32xf32> to vector<256x32xf32>
    %8 = arith.addf %5, %7 : vector<256x32xf32>
    %cst_8 = arith.constant 0.000000e+00 : f32
    %9 = vector.broadcast %cst_8 : f32 to vector<256x32xf32>
    %10 = arith.maximumf %8, %9 : vector<256x32xf32>
    %11 = arith.truncf %10 : vector<256x32xf32> to vector<256x32xbf16>
    %c1 = arith.constant 1 : index
    %c0_9 = arith.constant 0 : index
    %c0_10 = arith.constant 0 : index
    %12 = vector.load %arg4[%c1, %c0_9, %c0_10] : memref<8x32x32xbf16, #tpu.memory_space<vmem>>, vector<1x32x32xbf16>
    %13 = vector.shape_cast %12 : vector<1x32x32xbf16> to vector<32x32xbf16>
    %cst_11 = arith.constant dense<0.000000e+00> : vector<256x32xf32>
    %14 = tpu.matmul %11, %13, %cst_11 {dimension_numbers = #tpu.dot_dimension_numbers<[1], [0], [0], [1], [0, 0, 1, 1], [], []>} : vector<256x32xbf16>, vector<32x32xbf16>, vector<256x32xf32> -> vector<256x32xf32>
    %c1_12 = arith.constant 1 : index
    %c0_13 = arith.constant 0 : index
    %15 = vector.load %arg5[%c1_12, %c0_13] : memref<24x32xf32, #tpu.memory_space<vmem>>, vector<1x32xf32>
    %16 = vector.broadcast %15 : vector<1x32xf32> to vector<256x32xf32>
    %17 = arith.addf %14, %16 : vector<256x32xf32>
    %cst_14 = arith.constant 0.000000e+00 : f32
    %18 = vector.broadcast %cst_14 : f32 to vector<256x32xf32>
    %19 = arith.maximumf %17, %18 : vector<256x32xf32>
    %cst_15 = arith.constant dense<0.000000e+00> : vector<256xf32>
    %20 = vector.multi_reduction <add>, %19, %cst_15 [1] : vector<256x32xf32> to vector<256xf32>
    %21 = vector.shape_cast %20 : vector<256xf32> to vector<256x1xf32>
    %cst_16 = arith.constant 3.200000e+01 : f32
    %22 = vector.broadcast %cst_16 : f32 to vector<256x1xf32>
    %23 = arith.divf %21, %22 : vector<256x1xf32>
    %24 = arith.mulf %19, %19 : vector<256x32xf32>
    %cst_17 = arith.constant dense<0.000000e+00> : vector<256xf32>
    %25 = vector.multi_reduction <add>, %24, %cst_17 [1] : vector<256x32xf32> to vector<256xf32>
    %26 = vector.shape_cast %25 : vector<256xf32> to vector<256x1xf32>
    %cst_18 = arith.constant 3.200000e+01 : f32
    %27 = vector.broadcast %cst_18 : f32 to vector<256x1xf32>
    %28 = arith.divf %26, %27 : vector<256x1xf32>
    %29 = arith.mulf %23, %23 : vector<256x1xf32>
    %30 = arith.subf %28, %29 : vector<256x1xf32>
    %cst_19 = arith.constant 9.99999974E-6 : f32
    %31 = vector.broadcast %cst_19 : f32 to vector<256x1xf32>
    %32 = arith.addf %30, %31 : vector<256x1xf32>
    %33 = math.rsqrt %32 : vector<256x1xf32>
    %34 = vector.broadcast %23 : vector<256x1xf32> to vector<256x32xf32>
    %35 = arith.subf %19, %34 : vector<256x32xf32>
    %36 = vector.broadcast %33 : vector<256x1xf32> to vector<256x32xf32>
    %37 = arith.mulf %35, %36 : vector<256x32xf32>
    %c2 = arith.constant 2 : index
    %c0_20 = arith.constant 0 : index
    %38 = vector.load %arg5[%c2, %c0_20] : memref<24x32xf32, #tpu.memory_space<vmem>>, vector<1x32xf32>
    %39 = vector.broadcast %38 : vector<1x32xf32> to vector<256x32xf32>
    %40 = arith.mulf %37, %39 : vector<256x32xf32>
    %c3 = arith.constant 3 : index
    %c0_21 = arith.constant 0 : index
    %41 = vector.load %arg5[%c3, %c0_21] : memref<24x32xf32, #tpu.memory_space<vmem>>, vector<1x32xf32>
    %42 = vector.broadcast %41 : vector<1x32xf32> to vector<256x32xf32>
    %43 = arith.addf %40, %42 : vector<256x32xf32>
    %44 = arith.truncf %43 : vector<256x32xf32> to vector<256x32xbf16>
    %c2_22 = arith.constant 2 : index
    %c0_23 = arith.constant 0 : index
    %c0_24 = arith.constant 0 : index
    %45 = vector.load %arg4[%c2_22, %c0_23, %c0_24] : memref<8x32x32xbf16, #tpu.memory_space<vmem>>, vector<1x32x32xbf16>
    %46 = vector.shape_cast %45 : vector<1x32x32xbf16> to vector<32x32xbf16>
    %cst_25 = arith.constant dense<0.000000e+00> : vector<256x32xf32>
    %47 = tpu.matmul %44, %46, %cst_25 {dimension_numbers = #tpu.dot_dimension_numbers<[1], [0], [0], [1], [0, 0, 1, 1], [], []>} : vector<256x32xbf16>, vector<32x32xbf16>, vector<256x32xf32> -> vector<256x32xf32>
    %c4 = arith.constant 4 : index
    %c0_26 = arith.constant 0 : index
    %48 = vector.load %arg5[%c4, %c0_26] : memref<24x32xf32, #tpu.memory_space<vmem>>, vector<1x32xf32>
    %49 = vector.broadcast %48 : vector<1x32xf32> to vector<256x32xf32>
    %50 = arith.addf %47, %49 : vector<256x32xf32>
    %cst_27 = arith.constant 0.000000e+00 : f32
    %51 = vector.broadcast %cst_27 : f32 to vector<256x32xf32>
    %52 = arith.maximumf %50, %51 : vector<256x32xf32>
    %53 = arith.truncf %52 : vector<256x32xf32> to vector<256x32xbf16>
    %c3_28 = arith.constant 3 : index
    %c0_29 = arith.constant 0 : index
    %c0_30 = arith.constant 0 : index
    %54 = vector.load %arg4[%c3_28, %c0_29, %c0_30] : memref<8x32x32xbf16, #tpu.memory_space<vmem>>, vector<1x32x32xbf16>
    %55 = vector.shape_cast %54 : vector<1x32x32xbf16> to vector<32x32xbf16>
    %cst_31 = arith.constant dense<0.000000e+00> : vector<256x32xf32>
    %56 = tpu.matmul %53, %55, %cst_31 {dimension_numbers = #tpu.dot_dimension_numbers<[1], [0], [0], [1], [0, 0, 1, 1], [], []>} : vector<256x32xbf16>, vector<32x32xbf16>, vector<256x32xf32> -> vector<256x32xf32>
    %c5 = arith.constant 5 : index
    %c0_32 = arith.constant 0 : index
    %57 = vector.load %arg5[%c5, %c0_32] : memref<24x32xf32, #tpu.memory_space<vmem>>, vector<1x32xf32>
    %58 = vector.broadcast %57 : vector<1x32xf32> to vector<256x32xf32>
    %59 = arith.addf %56, %58 : vector<256x32xf32>
    %cst_33 = arith.constant 0.000000e+00 : f32
    %60 = vector.broadcast %cst_33 : f32 to vector<256x32xf32>
    %61 = arith.maximumf %59, %60 : vector<256x32xf32>
    %cst_34 = arith.constant dense<0.000000e+00> : vector<256xf32>
    %62 = vector.multi_reduction <add>, %61, %cst_34 [1] : vector<256x32xf32> to vector<256xf32>
    %63 = vector.shape_cast %62 : vector<256xf32> to vector<256x1xf32>
    %cst_35 = arith.constant 3.200000e+01 : f32
    %64 = vector.broadcast %cst_35 : f32 to vector<256x1xf32>
    %65 = arith.divf %63, %64 : vector<256x1xf32>
    %66 = arith.mulf %61, %61 : vector<256x32xf32>
    %cst_36 = arith.constant dense<0.000000e+00> : vector<256xf32>
    %67 = vector.multi_reduction <add>, %66, %cst_36 [1] : vector<256x32xf32> to vector<256xf32>
    %68 = vector.shape_cast %67 : vector<256xf32> to vector<256x1xf32>
    %cst_37 = arith.constant 3.200000e+01 : f32
    %69 = vector.broadcast %cst_37 : f32 to vector<256x1xf32>
    %70 = arith.divf %68, %69 : vector<256x1xf32>
    %71 = arith.mulf %65, %65 : vector<256x1xf32>
    %72 = arith.subf %70, %71 : vector<256x1xf32>
    %cst_38 = arith.constant 9.99999974E-6 : f32
    %73 = vector.broadcast %cst_38 : f32 to vector<256x1xf32>
    %74 = arith.addf %72, %73 : vector<256x1xf32>
    %75 = math.rsqrt %74 : vector<256x1xf32>
    %76 = vector.broadcast %65 : vector<256x1xf32> to vector<256x32xf32>
    %77 = arith.subf %61, %76 : vector<256x32xf32>
    %78 = vector.broadcast %75 : vector<256x1xf32> to vector<256x32xf32>
    %79 = arith.mulf %77, %78 : vector<256x32xf32>
    %c6 = arith.constant 6 : index
    %c0_39 = arith.constant 0 : index
    %80 = vector.load %arg5[%c6, %c0_39] : memref<24x32xf32, #tpu.memory_space<vmem>>, vector<1x32xf32>
    %81 = vector.broadcast %80 : vector<1x32xf32> to vector<256x32xf32>
    %82 = arith.mulf %79, %81 : vector<256x32xf32>
    %c7 = arith.constant 7 : index
    %c0_40 = arith.constant 0 : index
    %83 = vector.load %arg5[%c7, %c0_40] : memref<24x32xf32, #tpu.memory_space<vmem>>, vector<1x32xf32>
    %84 = vector.broadcast %83 : vector<1x32xf32> to vector<256x32xf32>
    %85 = arith.addf %82, %84 : vector<256x32xf32>
    %86 = arith.truncf %85 : vector<256x32xf32> to vector<256x32xbf16>
    %c0_41 = arith.constant 0 : index
    %c0_42 = arith.constant 0 : index
    %c0_43 = arith.constant 0 : index
    %87 = vector.load %arg6[%c0_41, %c0_42, %c0_43] : memref<3x32x14xbf16, #tpu.memory_space<vmem>>, vector<1x32x14xbf16>
    %88 = vector.shape_cast %87 : vector<1x32x14xbf16> to vector<32x14xbf16>
    %cst_44 = arith.constant dense<0.000000e+00> : vector<256x14xf32>
    %89 = tpu.matmul %86, %88, %cst_44 {dimension_numbers = #tpu.dot_dimension_numbers<[1], [0], [0], [1], [0, 0, 1, 1], [], []>} : vector<256x32xbf16>, vector<32x14xbf16>, vector<256x14xf32> -> vector<256x14xf32>
    %c20 = arith.constant 20 : index
    %c0_45 = arith.constant 0 : index
    %90 = vector.load %arg5[%c20, %c0_45] : memref<24x32xf32, #tpu.memory_space<vmem>>, vector<1x32xf32>
    %91 = vector.extract_strided_slice %90 {offsets = [0, 0], sizes = [1, 14], strides = [1, 1]} : vector<1x32xf32> to vector<1x14xf32>
    %92 = vector.broadcast %91 : vector<1x14xf32> to vector<256x14xf32>
    %93 = arith.addf %89, %92 : vector<256x14xf32>
    %c21 = arith.constant 21 : index
    %c0_46 = arith.constant 0 : index
    %94 = vector.load %arg5[%c21, %c0_46] : memref<24x32xf32, #tpu.memory_space<vmem>>, vector<1x32xf32>
    %95 = vector.extract_strided_slice %94 {offsets = [0, 0], sizes = [1, 14], strides = [1, 1]} : vector<1x32xf32> to vector<1x14xf32>
    %96 = vector.broadcast %95 : vector<1x14xf32> to vector<256x14xf32>
    %97 = arith.mulf %93, %96 : vector<256x14xf32>
    %c0_47 = arith.constant 0 : index
    %c0_48 = arith.constant 0 : index
    %98 = vector.load %arg3[%c0_47, %c0_48] : memref<256x15xf32, #tpu.memory_space<vmem>>, vector<256x14xf32>
    %c0_49 = arith.constant 0 : index
    %c14 = arith.constant 14 : index
    %99 = vector.load %arg3[%c0_49, %c14] : memref<256x15xf32, #tpu.memory_space<vmem>>, vector<256x1xf32>
    %100 = tpu.iota {dimensions = array<i32: 1>} : vector<256x14xi32>
    %c5_i32 = arith.constant 5 : i32
    %101 = vector.broadcast %c5_i32 : i32 to vector<256x14xi32>
    %102 = arith.cmpi sle, %100, %101 : vector<256x14xi32>
    %c6_i32 = arith.constant 6 : i32
    %103 = vector.broadcast %c6_i32 : i32 to vector<256x14xi32>
    %104 = arith.cmpi sge, %100, %103 : vector<256x14xi32>
    %c7_i32 = arith.constant 7 : i32
    %105 = vector.broadcast %c7_i32 : i32 to vector<256x14xi32>
    %106 = arith.cmpi sle, %100, %105 : vector<256x14xi32>
    %107 = arith.andi %104, %106 : vector<256x14xi1>
    %c8_i32 = arith.constant 8 : i32
    %108 = vector.broadcast %c8_i32 : i32 to vector<256x14xi32>
    %109 = arith.cmpi sge, %100, %108 : vector<256x14xi32>
    %c11_i32 = arith.constant 11 : i32
    %110 = vector.broadcast %c11_i32 : i32 to vector<256x14xi32>
    %111 = arith.cmpi slt, %100, %110 : vector<256x14xi32>
    %112 = arith.andi %109, %111 : vector<256x14xi1>
    %113 = arith.mulf %97, %97 : vector<256x14xf32>
    %cst_50 = arith.constant 0.000000e+00 : f32
    %114 = vector.broadcast %cst_50 : f32 to vector<256x14xf32>
    %115 = arith.select %107, %113, %114 : vector<256x14xi1>, vector<256x14xf32>
    %cst_51 = arith.constant dense<0.000000e+00> : vector<256xf32>
    %116 = vector.multi_reduction <add>, %115, %cst_51 [1] : vector<256x14xf32> to vector<256xf32>
    %117 = vector.shape_cast %116 : vector<256xf32> to vector<256x1xf32>
    %118 = math.sqrt %117 : vector<256x1xf32>
    %cst_52 = arith.constant 9.99999996E-13 : f32
    %119 = vector.broadcast %cst_52 : f32 to vector<256x1xf32>
    %120 = arith.maximumf %118, %119 : vector<256x1xf32>
    %121 = tpu.reciprocal %120 {approx = true} : vector<256x1xf32> -> vector<256x1xf32>
    %122 = arith.addf %97, %98 : vector<256x14xf32>
    %123 = arith.select %102, %122, %97 : vector<256x14xi1>, vector<256x14xf32>
    %124 = vector.broadcast %121 : vector<256x1xf32> to vector<256x14xf32>
    %125 = arith.mulf %97, %124 : vector<256x14xf32>
    %126 = arith.select %107, %125, %123 : vector<256x14xi1>, vector<256x14xf32>
    %127 = vector.broadcast %99 : vector<256x1xf32> to vector<256x14xf32>
    %128 = arith.mulf %97, %127 : vector<256x14xf32>
    %129 = arith.addf %128, %98 : vector<256x14xf32>
    %130 = arith.select %112, %129, %126 : vector<256x14xi1>, vector<256x14xf32>
    %c11_i32_53 = arith.constant 11 : i32
    %131 = vector.broadcast %c11_i32_53 : i32 to vector<256x14xi32>
    %132 = arith.cmpi slt, %100, %131 : vector<256x14xi32>
    %cst_54 = arith.constant 0.000000e+00 : f32
    %133 = vector.broadcast %cst_54 : f32 to vector<256x14xf32>
    %134 = arith.select %132, %130, %133 : vector<256x14xi1>, vector<256x14xf32>
    %c4_55 = arith.constant 4 : index
    %c0_56 = arith.constant 0 : index
    %c0_57 = arith.constant 0 : index
    %135 = vector.load %arg4[%c4_55, %c0_56, %c0_57] : memref<8x32x32xbf16, #tpu.memory_space<vmem>>, vector<1x32x32xbf16>
    %136 = vector.shape_cast %135 : vector<1x32x32xbf16> to vector<32x32xbf16>
    %cst_58 = arith.constant dense<0.000000e+00> : vector<256x32xf32>
    %137 = tpu.matmul %0, %136, %cst_58 {dimension_numbers = #tpu.dot_dimension_numbers<[1], [0], [0], [1], [0, 0, 1, 1], [], []>} : vector<256x32xbf16>, vector<32x32xbf16>, vector<256x32xf32> -> vector<256x32xf32>
    %c8 = arith.constant 8 : index
    %c0_59 = arith.constant 0 : index
    %138 = vector.load %arg5[%c8, %c0_59] : memref<24x32xf32, #tpu.memory_space<vmem>>, vector<1x32xf32>
    %139 = vector.broadcast %138 : vector<1x32xf32> to vector<256x32xf32>
    %140 = arith.addf %137, %139 : vector<256x32xf32>
    %cst_60 = arith.constant 0.000000e+00 : f32
    %141 = vector.broadcast %cst_60 : f32 to vector<256x32xf32>
    %142 = arith.maximumf %140, %141 : vector<256x32xf32>
    %cst_61 = arith.constant dense<0.000000e+00> : vector<256xf32>
    %143 = vector.multi_reduction <add>, %142, %cst_61 [1] : vector<256x32xf32> to vector<256xf32>
    %144 = vector.shape_cast %143 : vector<256xf32> to vector<256x1xf32>
    %cst_62 = arith.constant 3.200000e+01 : f32
    %145 = vector.broadcast %cst_62 : f32 to vector<256x1xf32>
    %146 = arith.divf %144, %145 : vector<256x1xf32>
    %147 = arith.mulf %142, %142 : vector<256x32xf32>
    %cst_63 = arith.constant dense<0.000000e+00> : vector<256xf32>
    %148 = vector.multi_reduction <add>, %147, %cst_63 [1] : vector<256x32xf32> to vector<256xf32>
    %149 = vector.shape_cast %148 : vector<256xf32> to vector<256x1xf32>
    %cst_64 = arith.constant 3.200000e+01 : f32
    %150 = vector.broadcast %cst_64 : f32 to vector<256x1xf32>
    %151 = arith.divf %149, %150 : vector<256x1xf32>
    %152 = arith.mulf %146, %146 : vector<256x1xf32>
    %153 = arith.subf %151, %152 : vector<256x1xf32>
    %cst_65 = arith.constant 9.99999974E-6 : f32
    %154 = vector.broadcast %cst_65 : f32 to vector<256x1xf32>
    %155 = arith.addf %153, %154 : vector<256x1xf32>
    %156 = math.rsqrt %155 : vector<256x1xf32>
    %157 = vector.broadcast %146 : vector<256x1xf32> to vector<256x32xf32>
    %158 = arith.subf %142, %157 : vector<256x32xf32>
    %159 = vector.broadcast %156 : vector<256x1xf32> to vector<256x32xf32>
    %160 = arith.mulf %158, %159 : vector<256x32xf32>
    %c9 = arith.constant 9 : index
    %c0_66 = arith.constant 0 : index
    %161 = vector.load %arg5[%c9, %c0_66] : memref<24x32xf32, #tpu.memory_space<vmem>>, vector<1x32xf32>
    %162 = vector.broadcast %161 : vector<1x32xf32> to vector<256x32xf32>
    %163 = arith.mulf %160, %162 : vector<256x32xf32>
    %c10 = arith.constant 10 : index
    %c0_67 = arith.constant 0 : index
    %164 = vector.load %arg5[%c10, %c0_67] : memref<24x32xf32, #tpu.memory_space<vmem>>, vector<1x32xf32>
    %165 = vector.broadcast %164 : vector<1x32xf32> to vector<256x32xf32>
    %166 = arith.addf %163, %165 : vector<256x32xf32>
    %167 = arith.truncf %166 : vector<256x32xf32> to vector<256x32xbf16>
    %c5_68 = arith.constant 5 : index
    %c0_69 = arith.constant 0 : index
    %c0_70 = arith.constant 0 : index
    %168 = vector.load %arg4[%c5_68, %c0_69, %c0_70] : memref<8x32x32xbf16, #tpu.memory_space<vmem>>, vector<1x32x32xbf16>
    %169 = vector.shape_cast %168 : vector<1x32x32xbf16> to vector<32x32xbf16>
    %cst_71 = arith.constant dense<0.000000e+00> : vector<256x32xf32>
    %170 = tpu.matmul %167, %169, %cst_71 {dimension_numbers = #tpu.dot_dimension_numbers<[1], [0], [0], [1], [0, 0, 1, 1], [], []>} : vector<256x32xbf16>, vector<32x32xbf16>, vector<256x32xf32> -> vector<256x32xf32>
    %c11 = arith.constant 11 : index
    %c0_72 = arith.constant 0 : index
    %171 = vector.load %arg5[%c11, %c0_72] : memref<24x32xf32, #tpu.memory_space<vmem>>, vector<1x32xf32>
    %172 = vector.broadcast %171 : vector<1x32xf32> to vector<256x32xf32>
    %173 = arith.addf %170, %172 : vector<256x32xf32>
    %cst_73 = arith.constant 0.000000e+00 : f32
    %174 = vector.broadcast %cst_73 : f32 to vector<256x32xf32>
    %175 = arith.maximumf %173, %174 : vector<256x32xf32>
    %cst_74 = arith.constant dense<0.000000e+00> : vector<256xf32>
    %176 = vector.multi_reduction <add>, %175, %cst_74 [1] : vector<256x32xf32> to vector<256xf32>
    %177 = vector.shape_cast %176 : vector<256xf32> to vector<256x1xf32>
    %cst_75 = arith.constant 3.200000e+01 : f32
    %178 = vector.broadcast %cst_75 : f32 to vector<256x1xf32>
    %179 = arith.divf %177, %178 : vector<256x1xf32>
    %180 = arith.mulf %175, %175 : vector<256x32xf32>
    %cst_76 = arith.constant dense<0.000000e+00> : vector<256xf32>
    %181 = vector.multi_reduction <add>, %180, %cst_76 [1] : vector<256x32xf32> to vector<256xf32>
    %182 = vector.shape_cast %181 : vector<256xf32> to vector<256x1xf32>
    %cst_77 = arith.constant 3.200000e+01 : f32
    %183 = vector.broadcast %cst_77 : f32 to vector<256x1xf32>
    %184 = arith.divf %182, %183 : vector<256x1xf32>
    %185 = arith.mulf %179, %179 : vector<256x1xf32>
    %186 = arith.subf %184, %185 : vector<256x1xf32>
    %cst_78 = arith.constant 9.99999974E-6 : f32
    %187 = vector.broadcast %cst_78 : f32 to vector<256x1xf32>
    %188 = arith.addf %186, %187 : vector<256x1xf32>
    %189 = math.rsqrt %188 : vector<256x1xf32>
    %190 = vector.broadcast %179 : vector<256x1xf32> to vector<256x32xf32>
    %191 = arith.subf %175, %190 : vector<256x32xf32>
    %192 = vector.broadcast %189 : vector<256x1xf32> to vector<256x32xf32>
    %193 = arith.mulf %191, %192 : vector<256x32xf32>
    %c12 = arith.constant 12 : index
    %c0_79 = arith.constant 0 : index
    %194 = vector.load %arg5[%c12, %c0_79] : memref<24x32xf32, #tpu.memory_space<vmem>>, vector<1x32xf32>
    %195 = vector.broadcast %194 : vector<1x32xf32> to vector<256x32xf32>
    %196 = arith.mulf %193, %195 : vector<256x32xf32>
    %c13 = arith.constant 13 : index
    %c0_80 = arith.constant 0 : index
    %197 = vector.load %arg5[%c13, %c0_80] : memref<24x32xf32, #tpu.memory_space<vmem>>, vector<1x32xf32>
    %198 = vector.broadcast %197 : vector<1x32xf32> to vector<256x32xf32>
    %199 = arith.addf %196, %198 : vector<256x32xf32>
    %200 = arith.truncf %199 : vector<256x32xf32> to vector<256x32xbf16>
    %c1_81 = arith.constant 1 : index
    %c0_82 = arith.constant 0 : index
    %c0_83 = arith.constant 0 : index
    %201 = vector.load %arg6[%c1_81, %c0_82, %c0_83] : memref<3x32x14xbf16, #tpu.memory_space<vmem>>, vector<1x32x14xbf16>
    %202 = vector.shape_cast %201 : vector<1x32x14xbf16> to vector<32x14xbf16>
    %cst_84 = arith.constant dense<0.000000e+00> : vector<256x14xf32>
    %203 = tpu.matmul %200, %202, %cst_84 {dimension_numbers = #tpu.dot_dimension_numbers<[1], [0], [0], [1], [0, 0, 1, 1], [], []>} : vector<256x32xbf16>, vector<32x14xbf16>, vector<256x14xf32> -> vector<256x14xf32>
    %c22 = arith.constant 22 : index
    %c0_85 = arith.constant 0 : index
    %204 = vector.load %arg5[%c22, %c0_85] : memref<24x32xf32, #tpu.memory_space<vmem>>, vector<1x32xf32>
    %205 = vector.extract_strided_slice %204 {offsets = [0, 0], sizes = [1, 14], strides = [1, 1]} : vector<1x32xf32> to vector<1x14xf32>
    %206 = vector.broadcast %205 : vector<1x14xf32> to vector<256x14xf32>
    %207 = arith.addf %203, %206 : vector<256x14xf32>
    %c6_86 = arith.constant 6 : index
    %c0_87 = arith.constant 0 : index
    %c0_88 = arith.constant 0 : index
    %208 = vector.load %arg4[%c6_86, %c0_87, %c0_88] : memref<8x32x32xbf16, #tpu.memory_space<vmem>>, vector<1x32x32xbf16>
    %209 = vector.shape_cast %208 : vector<1x32x32xbf16> to vector<32x32xbf16>
    %cst_89 = arith.constant dense<0.000000e+00> : vector<256x32xf32>
    %210 = tpu.matmul %0, %209, %cst_89 {dimension_numbers = #tpu.dot_dimension_numbers<[1], [0], [0], [1], [0, 0, 1, 1], [], []>} : vector<256x32xbf16>, vector<32x32xbf16>, vector<256x32xf32> -> vector<256x32xf32>
    %c14_90 = arith.constant 14 : index
    %c0_91 = arith.constant 0 : index
    %211 = vector.load %arg5[%c14_90, %c0_91] : memref<24x32xf32, #tpu.memory_space<vmem>>, vector<1x32xf32>
    %212 = vector.broadcast %211 : vector<1x32xf32> to vector<256x32xf32>
    %213 = arith.addf %210, %212 : vector<256x32xf32>
    %cst_92 = arith.constant 0.000000e+00 : f32
    %214 = vector.broadcast %cst_92 : f32 to vector<256x32xf32>
    %215 = arith.maximumf %213, %214 : vector<256x32xf32>
    %cst_93 = arith.constant dense<0.000000e+00> : vector<256xf32>
    %216 = vector.multi_reduction <add>, %215, %cst_93 [1] : vector<256x32xf32> to vector<256xf32>
    %217 = vector.shape_cast %216 : vector<256xf32> to vector<256x1xf32>
    %cst_94 = arith.constant 3.200000e+01 : f32
    %218 = vector.broadcast %cst_94 : f32 to vector<256x1xf32>
    %219 = arith.divf %217, %218 : vector<256x1xf32>
    %220 = arith.mulf %215, %215 : vector<256x32xf32>
    %cst_95 = arith.constant dense<0.000000e+00> : vector<256xf32>
    %221 = vector.multi_reduction <add>, %220, %cst_95 [1] : vector<256x32xf32> to vector<256xf32>
    %222 = vector.shape_cast %221 : vector<256xf32> to vector<256x1xf32>
    %cst_96 = arith.constant 3.200000e+01 : f32
    %223 = vector.broadcast %cst_96 : f32 to vector<256x1xf32>
    %224 = arith.divf %222, %223 : vector<256x1xf32>
    %225 = arith.mulf %219, %219 : vector<256x1xf32>
    %226 = arith.subf %224, %225 : vector<256x1xf32>
    %cst_97 = arith.constant 9.99999974E-6 : f32
    %227 = vector.broadcast %cst_97 : f32 to vector<256x1xf32>
    %228 = arith.addf %226, %227 : vector<256x1xf32>
    %229 = math.rsqrt %228 : vector<256x1xf32>
    %230 = vector.broadcast %219 : vector<256x1xf32> to vector<256x32xf32>
    %231 = arith.subf %215, %230 : vector<256x32xf32>
    %232 = vector.broadcast %229 : vector<256x1xf32> to vector<256x32xf32>
    %233 = arith.mulf %231, %232 : vector<256x32xf32>
    %c15 = arith.constant 15 : index
    %c0_98 = arith.constant 0 : index
    %234 = vector.load %arg5[%c15, %c0_98] : memref<24x32xf32, #tpu.memory_space<vmem>>, vector<1x32xf32>
    %235 = vector.broadcast %234 : vector<1x32xf32> to vector<256x32xf32>
    %236 = arith.mulf %233, %235 : vector<256x32xf32>
    %c16 = arith.constant 16 : index
    %c0_99 = arith.constant 0 : index
    %237 = vector.load %arg5[%c16, %c0_99] : memref<24x32xf32, #tpu.memory_space<vmem>>, vector<1x32xf32>
    %238 = vector.broadcast %237 : vector<1x32xf32> to vector<256x32xf32>
    %239 = arith.addf %236, %238 : vector<256x32xf32>
    %240 = arith.truncf %239 : vector<256x32xf32> to vector<256x32xbf16>
    %c7_100 = arith.constant 7 : index
    %c0_101 = arith.constant 0 : index
    %c0_102 = arith.constant 0 : index
    %241 = vector.load %arg4[%c7_100, %c0_101, %c0_102] : memref<8x32x32xbf16, #tpu.memory_space<vmem>>, vector<1x32x32xbf16>
    %242 = vector.shape_cast %241 : vector<1x32x32xbf16> to vector<32x32xbf16>
    %cst_103 = arith.constant dense<0.000000e+00> : vector<256x32xf32>
    %243 = tpu.matmul %240, %242, %cst_103 {dimension_numbers = #tpu.dot_dimension_numbers<[1], [0], [0], [1], [0, 0, 1, 1], [], []>} : vector<256x32xbf16>, vector<32x32xbf16>, vector<256x32xf32> -> vector<256x32xf32>
    %c17 = arith.constant 17 : index
    %c0_104 = arith.constant 0 : index
    %244 = vector.load %arg5[%c17, %c0_104] : memref<24x32xf32, #tpu.memory_space<vmem>>, vector<1x32xf32>
    %245 = vector.broadcast %244 : vector<1x32xf32> to vector<256x32xf32>
    %246 = arith.addf %243, %245 : vector<256x32xf32>
    %cst_105 = arith.constant 0.000000e+00 : f32
    %247 = vector.broadcast %cst_105 : f32 to vector<256x32xf32>
    %248 = arith.maximumf %246, %247 : vector<256x32xf32>
    %cst_106 = arith.constant dense<0.000000e+00> : vector<256xf32>
    %249 = vector.multi_reduction <add>, %248, %cst_106 [1] : vector<256x32xf32> to vector<256xf32>
    %250 = vector.shape_cast %249 : vector<256xf32> to vector<256x1xf32>
    %cst_107 = arith.constant 3.200000e+01 : f32
    %251 = vector.broadcast %cst_107 : f32 to vector<256x1xf32>
    %252 = arith.divf %250, %251 : vector<256x1xf32>
    %253 = arith.mulf %248, %248 : vector<256x32xf32>
    %cst_108 = arith.constant dense<0.000000e+00> : vector<256xf32>
    %254 = vector.multi_reduction <add>, %253, %cst_108 [1] : vector<256x32xf32> to vector<256xf32>
    %255 = vector.shape_cast %254 : vector<256xf32> to vector<256x1xf32>
    %cst_109 = arith.constant 3.200000e+01 : f32
    %256 = vector.broadcast %cst_109 : f32 to vector<256x1xf32>
    %257 = arith.divf %255, %256 : vector<256x1xf32>
    %258 = arith.mulf %252, %252 : vector<256x1xf32>
    %259 = arith.subf %257, %258 : vector<256x1xf32>
    %cst_110 = arith.constant 9.99999974E-6 : f32
    %260 = vector.broadcast %cst_110 : f32 to vector<256x1xf32>
    %261 = arith.addf %259, %260 : vector<256x1xf32>
    %262 = math.rsqrt %261 : vector<256x1xf32>
    %263 = vector.broadcast %252 : vector<256x1xf32> to vector<256x32xf32>
    %264 = arith.subf %248, %263 : vector<256x32xf32>
    %265 = vector.broadcast %262 : vector<256x1xf32> to vector<256x32xf32>
    %266 = arith.mulf %264, %265 : vector<256x32xf32>
    %c18 = arith.constant 18 : index
    %c0_111 = arith.constant 0 : index
    %267 = vector.load %arg5[%c18, %c0_111] : memref<24x32xf32, #tpu.memory_space<vmem>>, vector<1x32xf32>
    %268 = vector.broadcast %267 : vector<1x32xf32> to vector<256x32xf32>
    %269 = arith.mulf %266, %268 : vector<256x32xf32>
    %c19 = arith.constant 19 : index
    %c0_112 = arith.constant 0 : index
    %270 = vector.load %arg5[%c19, %c0_112] : memref<24x32xf32, #tpu.memory_space<vmem>>, vector<1x32xf32>
    %271 = vector.broadcast %270 : vector<1x32xf32> to vector<256x32xf32>
    %272 = arith.addf %269, %271 : vector<256x32xf32>
    %273 = arith.truncf %272 : vector<256x32xf32> to vector<256x32xbf16>
    %c2_113 = arith.constant 2 : index
    %c0_114 = arith.constant 0 : index
    %c0_115 = arith.constant 0 : index
    %274 = vector.load %arg6[%c2_113, %c0_114, %c0_115] : memref<3x32x14xbf16, #tpu.memory_space<vmem>>, vector<1x32x14xbf16>
    %275 = vector.shape_cast %274 : vector<1x32x14xbf16> to vector<32x14xbf16>
    %cst_116 = arith.constant dense<0.000000e+00> : vector<256x14xf32>
    %276 = tpu.matmul %273, %275, %cst_116 {dimension_numbers = #tpu.dot_dimension_numbers<[1], [0], [0], [1], [0, 0, 1, 1], [], []>} : vector<256x32xbf16>, vector<32x14xbf16>, vector<256x14xf32> -> vector<256x14xf32>
    %c23 = arith.constant 23 : index
    %c0_117 = arith.constant 0 : index
    %277 = vector.load %arg5[%c23, %c0_117] : memref<24x32xf32, #tpu.memory_space<vmem>>, vector<1x32xf32>
    %278 = vector.extract_strided_slice %277 {offsets = [0, 0], sizes = [1, 14], strides = [1, 1]} : vector<1x32xf32> to vector<1x14xf32>
    %279 = vector.broadcast %278 : vector<1x14xf32> to vector<256x14xf32>
    %280 = arith.addf %276, %279 : vector<256x14xf32>
    %281 = arith.addf %134, %207 : vector<256x14xf32>
    %282 = arith.addf %281, %280 : vector<256x14xf32>
    %c0_118 = arith.constant 0 : index
    %c0_119 = arith.constant 0 : index
    %283 = vector.load %arg7[%c0_118, %c0_119] : memref<256x14xf32, #tpu.memory_space<vmem>>, vector<256x14xf32>
    tpu.vector_store %arg7[%c0_118, %c0_119], %282 {strides = array<i32>} : memref<256x14xf32, #tpu.memory_space<vmem>>, vector<256x14xf32>,
    return
  }
  func.func @transform_0(%arg0: i32) -> (i32, i32) {
    %c0_i32 = arith.constant 0 : i32
    %c0_i32_0 = arith.constant 0 : i32
    return %arg0, %c0_i32 : i32, i32
  }
  func.func @transform_1(%arg0: i32) -> (i32, i32) {
    %c0_i32 = arith.constant 0 : i32
    %c0_i32_0 = arith.constant 0 : i32
    return %arg0, %c0_i32 : i32, i32
  }
  func.func @transform_2(%arg0: i32) -> (i32, i32) {
    %c0_i32 = arith.constant 0 : i32
    %c0_i32_0 = arith.constant 0 : i32
    return %arg0, %c0_i32 : i32, i32
  }
  func.func @transform_3(%arg0: i32) -> (i32, i32, i32) {
    %c0_i32 = arith.constant 0 : i32
    %c0_i32_0 = arith.constant 0 : i32
    %c0_i32_1 = arith.constant 0 : i32
    %c0_i32_2 = arith.constant 0 : i32
    return %c0_i32, %c0_i32_0, %c0_i32_1 : i32, i32, i32
  }
  func.func @transform_4(%arg0: i32) -> (i32, i32) {
    %c0_i32 = arith.constant 0 : i32
    %c0_i32_0 = arith.constant 0 : i32
    %c0_i32_1 = arith.constant 0 : i32
    return %c0_i32, %c0_i32_0 : i32, i32
  }
  func.func @transform_5(%arg0: i32) -> (i32, i32, i32) {
    %c0_i32 = arith.constant 0 : i32
    %c0_i32_0 = arith.constant 0 : i32
    %c0_i32_1 = arith.constant 0 : i32
    %c0_i32_2 = arith.constant 0 : i32
    return %c0_i32, %c0_i32_0, %c0_i32_1 : i32, i32, i32
  }
  func.func @transform_6(%arg0: i32) -> (i32, i32) {
    %c0_i32 = arith.constant 0 : i32
    %c0_i32_0 = arith.constant 0 : i32
    return %arg0, %c0_i32 : i32, i32
  }
}

</mosaic_0001>

<bundles_post_ra>
// kernel: tpu_custom_call.1
= control target key start
LH: loop header
LB: loop body
LE: loop exit
PB: predicated region body
PF: predicated region fallthrough
CT: control target
= control target key end

     0   :  { %s9580_s21 = smov 0   ;;  %s15253_s0 = inlined_call_operand.vmem [shape: bf16[512,32], index: 0, kind: input, shape index: {}]   ;;  %s15254_s1 = inlined_call_operand.vmem [shape: bf16[512,32], index: 1, kind: input, shape index: {}]   ;;  %s15255_s2 = inlined_call_operand.vmem [shape: f32[512,15], index: 2, kind: input, shape index: {}]   ;;  %s15256_s3 = inlined_call_operand.vmem [shape: bf16[8,32,32], index: 3, kind: input, shape index: {}]   ;;  %s15257_s4 = inlined_call_operand.vmem [shape: f32[24,32], index: 4, kind: input, shape index: {}]   ;;  %s15258_s5 = inlined_call_operand.vmem [shape: bf16[3,32,14], index: 5, kind: input, shape index: {}]   ;;  %s15259_s6 = inlined_call_operand.vmem [shape: f32[512,14], index: 6, kind: output, shape index: {}]  }
   0x1 LB: > { %s7876_s22 = sadd.s32 4294967295, %s9542_s21   ;;  %p7880_p0 = scmp.ge.s32.totalorder %s9542_s21, 1  ;;  %s9542_s21 = sphi %s9580_s21, %s16_s21  }
   0x2   : > { %p235_p1 = scmp.lt.s32.totalorder %s9542_s21, 3 }
   0x4   : > { %p236_p2 = pnand %p7880_p0, %p235_p1 }
   0x6   : > { %239 = sbr.rel (%p236_p2) target bundleno = 2660 (0xa64), region = 44 }
   0xd   : > { %v8918_v0 = vld [vmem:[%s15256_s3] sm:$0xff]   ;;  %s7881_s25 = sshll.u32 %s7876_s22, 5  ;;  %v8919_v1 = vld [vmem:[%s15256_s3 + $0x8] sm:$0xff]   ;;  %v8922_v2 = vld [vmem:[%s15256_s3 + $0x10] sm:$0xff]   ;;  %vm497_vm0 = vcmask 261120   ;;  %vm3073_vm4 = vcmask 113664  }
   0xe   : > { %p276_p3 = scmp.lt.s32.totalorder %s7881_s25, 63  ;;  %8379 = vmatprep.subr.bf16.mxu0 %v8918_v0  ;;  %v8923_v3 = vld [vmem:[%s15256_s3 + $0x18] sm:$0xff]   ;;  %8775 = vmatprep.subr.bf16.mxu1 %v8922_v2 }
   0xf   : > { %8380 = vmatpush3.bf16.msra.mxu0 %v8918_v0  ;;  %8777 = vmatpush3.bf16.msra.mxu1 %v8922_v2 }
  0x10   : > { %s15828_s25 = smov (!%p276_p3, %s7881_s25), 63  ;;  %8381 = vmatprep.subr.bf16.mxu0 %v8919_v1  ;;  %8776 = vmatprep.subr.bf16.mxu1 %v8923_v3 }
  0x11   : > { %s7882_s8 = sshll.u32 %s15828_s25, 2  ;;  %s7886_s19 = sshll.u32 %s15828_s25, 3 }
  0x12   : > { %s9606_s11 = scalar_lea.vmem %s15253_s0, %s7882_s8  ;;  %s9611_s14 = scalar_lea.vmem %s15254_s1, %s7882_s8 }
  0x13   : > { %8382 = vmatpush3.bf16.msra.mxu0 %v8919_v1  ;;  %v300_v4 = vld [vmem:[%s9606_s11] sm:$0xf]  ;;  %v301_v5 = vld [vmem:[%s9606_s11 + $0x4] sm:$0xf]  ;;  %v302_v10 = vld [vmem:[%s9606_s11 + $0x8] sm:$0xf]  ;;  %8778 = vmatpush3.bf16.msra.mxu1 %v8923_v3  ;;  %s13660_s23 = scalar_lea.vmem %s15255_s2, %s7886_s19  ;;  %s14845_s12 = scalar_lea.vmem %s15259_s6, %s7886_s19 }
  0x14   : > { %v332_v6 = vld [vmem:[%s9611_s14] sm:$0xf]  ;;  %v333_v7 = vld [vmem:[%s9611_s14 + $0x4] sm:$0xf]  ;;  %v9617_v9 = vcombine.low %v300_v4, %v301_v5  ;;  %v303_v11 = vld [vmem:[%s9606_s11 + $0xc] sm:$0xf]  ;;  %8415 = vmatprep.subr.bf16.mxu0 %v8922_v2 }
  0x15   : > { %v364_v8 = vadd.bf16 %v332_v6, %v300_v4  ;;  %v365_v12 = vadd.bf16 %v333_v7, %v301_v5  ;;  %v334_v13 = vld [vmem:[%s9611_s14 + $0x8] sm:$0xf]  ;;  %v335_v14 = vld [vmem:[%s9611_s14 + $0xc] sm:$0xf]  ;;  %v9623_v15 = vcombine.low %v302_v10, %v303_v11  ;;  %v304_v16 = vld [vmem:[%s9606_s11 + $0x10] sm:$0xf] }
  0x16   : > { %15425 = vst [vmem:[#allocation2_spill] sm:$0xff] %v9617_v9  ;;  %v366_v17 = vadd.bf16 %v334_v13, %v302_v10  ;;  %v367_v18 = vadd.bf16 %v335_v14, %v303_v11  ;;  %v305_v19 = vld [vmem:[%s9606_s11 + $0x14] sm:$0xf]  ;;  %v336_v20 = vld [vmem:[%s9611_s14 + $0x10] sm:$0xf] }
  0x17   : > { %15426 = vst [vmem:[#allocation3_spill] sm:$0xff] %v9623_v15  ;;  %v337_v21 = vld [vmem:[%s9611_s14 + $0x14] sm:$0xf]  ;;  %v7890_v22 = vcombine.low %v364_v8, %v365_v12  ;;  %v368_v23 = vadd.bf16 %v336_v20, %v304_v16  ;;  %v306_v25 = vld [vmem:[%s9606_s11 + $0x18] sm:$0xf] }
  0x18   : > { %v369_v24 = vadd.bf16 %v337_v21, %v305_v19  ;;  %v307_v26 = vld [vmem:[%s9606_s11 + $0x1c] sm:$0xf]  ;;  %v338_v27 = vld [vmem:[%s9611_s14 + $0x18] sm:$0xf]  ;;  %v7891_v28 = vcombine.low %v366_v17, %v367_v18  ;;  %v308_v30 = vld [vmem:[%s9606_s11 + $0x20] sm:$0xf] }
  0x19   : > { %v339_v29 = vld [vmem:[%s9611_s14 + $0x1c] sm:$0xf]  ;;  %v309_v31 = vld [vmem:[%s9606_s11 + $0x24] sm:$0xf]  ;;  %8383 = vmatprep.mubr.msk.bf16.mxu0 %vm497_vm0, %v7890_v22  ;;  %v340_v33 = vld [vmem:[%s9611_s14 + $0x20] sm:$0xf]  ;;  %v370_v35 = vadd.bf16 %v338_v27, %v306_v25 }
  0x1a   : > { %v7892_v32 = vcombine.low %v368_v23, %v369_v24  ;;  %v341_v34 = vld [vmem:[%s9611_s14 + $0x24] sm:$0xf]  ;;  %8384 = vmatmul.mubr.msk.bf16.vlgmr.msra.gmra.mrb[0].mxu0 %vm497_vm0, %v7891_v28  ;;  %v371_v36 = vadd.bf16 %v339_v29, %v307_v26  ;;  %v372_v37 = vadd.bf16 %v340_v33, %v308_v30  ;;  %v310_v40 = vld [vmem:[%s9606_s11 + $0x28] sm:$0xf]  ;;  %v311_v41 = vld [vmem:[%s9606_s11 + $0x2c] sm:$0xf] }
  0x1b   : > { %v373_v38 = vadd.bf16 %v341_v34, %v309_v31  ;;  %8416 = vmatpush3.bf16.msra.mxu0 %v8922_v2  ;;  %v342_v43 = vld [vmem:[%s9611_s14 + $0x28] sm:$0xf]  ;;  %v343_v44 = vld [vmem:[%s9611_s14 + $0x2c] sm:$0xf]  ;;  %v312_v45 = vld [vmem:[%s9606_s11 + $0x30] sm:$0xf] }
  0x1c   : > { %8387 = vmatprep.mubr.msk.bf16.mxu0 %vm497_vm0, %v7892_v32  ;;  %8417 = vmatprep.subr.bf16.mxu0 %v8923_v3  ;;  %v7893_v39 = vcombine.low %v370_v35, %v371_v36  ;;  %v313_v46 = vld [vmem:[%s9606_s11 + $0x34] sm:$0xf]  ;;  %v344_v47 = vld [vmem:[%s9611_s14 + $0x30] sm:$0xf]  ;;  %v374_v49 = vadd.bf16 %v342_v43, %v310_v40  ;;  %v375_v50 = vadd.bf16 %v343_v44, %v311_v41  ;;  %v314_v53 = vld [vmem:[%s9606_s11 + $0x38] sm:$0xf] }
  0x1d   : > { %v7894_v42 = vcombine.low %v372_v37, %v373_v38  ;;  %v345_v48 = vld [vmem:[%s9611_s14 + $0x34] sm:$0xf]  ;;  %v376_v51 = vadd.bf16 %v344_v47, %v312_v45  ;;  %v315_v55 = vld [vmem:[%s9606_s11 + $0x3c] sm:$0xf]  ;;  %v346_v56 = vld [vmem:[%s9611_s14 + $0x38] sm:$0xf] }
  0x1e   : > { %v377_v52 = vadd.bf16 %v345_v48, %v313_v46  ;;  %v7895_v54 = vcombine.low %v374_v49, %v375_v50  ;;  %v347_v57 = vld [vmem:[%s9611_s14 + $0x3c] sm:$0xf]  ;;  %v316_v59 = vld [vmem:[%s9606_s11 + $0x40] sm:$0xf]  ;;  %v317_v60 = vld [vmem:[%s9606_s11 + $0x44] sm:$0xf]  ;;  %v378_v63 = vadd.bf16 %v346_v56, %v314_v53 }
  0x1f   : > { %8418 = vmatpush3.bf16.msra.mxu0 %v8923_v3  ;;  %v348_v61 = vld [vmem:[%s9611_s14 + $0x40] sm:$0xf]  ;;  %v349_v62 = vld [vmem:[%s9611_s14 + $0x44] sm:$0xf]  ;;  %v379_v0 = vadd.bf16 %v347_v57, %v315_v55  ;;  %v318_v3 = vld [vmem:[%s9606_s11 + $0x48] sm:$0xf] }
  0x20   : > { %v7896_v58 = vcombine.low %v376_v51, %v377_v52  ;;  %v380_v1 = vadd.bf16 %v348_v61, %v316_v59  ;;  %v381_v2 = vadd.bf16 %v349_v62, %v317_v60  ;;  %v319_v4 = vld [vmem:[%s9606_s11 + $0x4c] sm:$0xf]  ;;  %v350_v5 = vld [vmem:[%s9611_s14 + $0x48] sm:$0xf]  ;;  %v320_v8 = vld [vmem:[%s9606_s11 + $0x50] sm:$0xf] }
  0x21   : > { %v351_v6 = vld [vmem:[%s9611_s14 + $0x4c] sm:$0xf]  ;;  %v7897_v7 = vcombine.low %v378_v63, %v379_v0  ;;  %v321_v10 = vld [vmem:[%s9606_s11 + $0x54] sm:$0xf]  ;;  %v352_v11 = vld [vmem:[%s9611_s14 + $0x50] sm:$0xf]  ;;  %v382_v14 = vadd.bf16 %v350_v5, %v318_v3 }
  0x22   : > { %8388 = vmatmul.mubr.msk.bf16.gmra.mrb[4].mxu0 %vm497_vm0, %v7893_v39  ;;  %v353_v12 = vld [vmem:[%s9611_s14 + $0x54] sm:$0xf]  ;;  %v7898_v13 = vcombine.low %v380_v1, %v381_v2  ;;  %v383_v16 = vadd.bf16 %v351_v6, %v319_v4  ;;  %v384_v17 = vadd.bf16 %v352_v11, %v320_v8  ;;  %v322_v20 = vld [vmem:[%s9606_s11 + $0x58] sm:$0xf]  ;;  %v323_v21 = vld [vmem:[%s9606_s11 + $0x5c] sm:$0xf] }
  0x23   : > { %8391 = vmatprep.mubr.msk.bf16.mxu0 %vm497_vm0, %v7894_v42  ;;  %v385_v18 = vadd.bf16 %v353_v12, %v321_v10  ;;  %v354_v23 = vld [vmem:[%s9611_s14 + $0x58] sm:$0xf]  ;;  %v355_v24 = vld [vmem:[%s9611_s14 + $0x5c] sm:$0xf]  ;;  %v324_v25 = vld [vmem:[%s9606_s11 + $0x60] sm:$0xf] }
  0x24   : > { %v7899_v19 = vcombine.low %v382_v14, %v383_v16  ;;  %v325_v26 = vld [vmem:[%s9606_s11 + $0x64] sm:$0xf]  ;;  %v356_v27 = vld [vmem:[%s9611_s14 + $0x60] sm:$0xf]  ;;  %v386_v29 = vadd.bf16 %v354_v23, %v322_v20  ;;  %v387_v30 = vadd.bf16 %v355_v24, %v323_v21  ;;  %v326_v34 = vld [vmem:[%s9606_s11 + $0x68] sm:$0xf] }
  0x25   : > { %v7900_v22 = vcombine.low %v384_v17, %v385_v18  ;;  %v357_v28 = vld [vmem:[%s9611_s14 + $0x64] sm:$0xf]  ;;  %v388_v31 = vadd.bf16 %v356_v27, %v324_v25  ;;  %v327_v35 = vld [vmem:[%s9606_s11 + $0x6c] sm:$0xf]  ;;  %v358_v37 = vld [vmem:[%s9611_s14 + $0x68] sm:$0xf] }
  0x26   : > { %v389_v32 = vadd.bf16 %v357_v28, %v325_v26  ;;  %v7901_v33 = vcombine.low %v386_v29, %v387_v30  ;;  %v359_v38 = vld [vmem:[%s9611_s14 + $0x6c] sm:$0xf]  ;;  %v328_v39 = vld [vmem:[%s9606_s11 + $0x70] sm:$0xf]  ;;  %v329_v40 = vld [vmem:[%s9606_s11 + $0x74] sm:$0xf]  ;;  %v390_v43 = vadd.bf16 %v358_v37, %v326_v34 }
  0x27   : > { %v360_v41 = vld [vmem:[%s9611_s14 + $0x70] sm:$0xf]  ;;  %v361_v42 = vld [vmem:[%s9611_s14 + $0x74] sm:$0xf]  ;;  %v391_v44 = vadd.bf16 %v359_v38, %v327_v35  ;;  %v330_v48 = vld [vmem:[%s9606_s11 + $0x78] sm:$0xf] }
  0x28   : > { %v7902_v36 = vcombine.low %v388_v31, %v389_v32  ;;  %v392_v45 = vadd.bf16 %v360_v41, %v328_v39  ;;  %v393_v46 = vadd.bf16 %v361_v42, %v329_v40  ;;  %v331_v50 = vld [vmem:[%s9606_s11 + $0x7c] sm:$0xf]  ;;  %v362_v51 = vld [vmem:[%s9611_s14 + $0x78] sm:$0xf]  ;;  %v9700_v56 = vld [vmem:[%s15257_s4] ss:$0 sm:$0xff] }
  0x29   : > { %v7903_v47 = vcombine.low %v390_v43, %v391_v44  ;;  %v363_v52 = vld [vmem:[%s9611_s14 + $0x7c] sm:$0xf]  ;;  %v394_v53 = vadd.bf16 %v362_v51, %v330_v48 }
  0x2a   : > { %8392 = vmatmul.mubr.msk.bf16.gmra.mrb[8].mxu0 %vm497_vm0, %v7895_v54  ;;  %v7904_v49 = vcombine.low %v392_v45, %v393_v46  ;;  %v395_v54 = vadd.bf16 %v363_v52, %v331_v50 }
  0x2b   : > { %8395 = vmatprep.mubr.msk.bf16.mxu0 %vm497_vm0, %v7896_v58 }
  0x2c   : > { %v7905_v55 = vcombine.low %v394_v53, %v395_v54 }
  0x32   : > { %8396 = vmatmul.mubr.msk.bf16.gmra.mrb[12].mxu0 %vm497_vm0, %v7897_v7 }
  0x33   : > { %8399 = vmatprep.mubr.msk.bf16.mxu0 %vm497_vm0, %v7898_v13 }
  0x3a   : > { %8400 = vmatmul.mubr.msk.bf16.gmra.mrb[16].mxu0 %vm497_vm0, %v7899_v19 }
  0x3b   : > { %8403 = vmatprep.mubr.msk.bf16.mxu0 %vm497_vm0, %v7900_v22 }
  0x42   : > { %8404 = vmatmul.mubr.msk.bf16.gmra.mrb[20].mxu0 %vm497_vm0, %v7901_v33 }
  0x43   : > { %8407 = vmatprep.mubr.msk.bf16.mxu0 %vm497_vm0, %v7902_v36 }
  0x4a   : > { %8408 = vmatmul.mubr.msk.bf16.gmra.mrb[24].mxu0 %vm497_vm0, %v7903_v47 }
  0x4b   : > { %8411 = vmatprep.mubr.msk.bf16.mxu0 %vm497_vm0, %v7904_v49 }
  0x52   : > { %8412 = vmatmul.mubr.msk.bf16.gmra.mrb[28].mxu0 %vm497_vm0, %v7905_v55 }
  0xed   : > { %v8385_v57 = vpop.f32.mrb[0].mxu0 }
  0xee   : > { %v589_v58 = vadd.f32 %v8385_v57, %v9700_v56  ;;  %v580_v59 = vpop.f32.mrb[1].mxu0 }
  0xef   : > { %v581_v60 = vadd.f32 %v9700_v56, %v580_v59  ;;  %v8386_v61 = vpop.f32.mrb[2].mxu0 }
  0xf0   : > { %v592_v62 = vadd.f32 %v8386_v61, %v9700_v56  ;;  %v583_v63 = vpop.f32.mrb[3].mxu0  ;;  %v709_v1 = vmax.f32 %v589_v58, 0.0 }
  0xf1   : > { %v584_v0 = vadd.f32 %v9700_v56, %v583_v63  ;;  %v707_v3 = vmax.f32 %v581_v60, 0.0 }
  0xf2   : > { %v710_v2 = vmax.f32 %v592_v62, 0.0 }
  0xf3   : > { %v708_v4 = vmax.f32 %v584_v0, 0.0 }
  0xf4   : > { %v740_v5 = vpack.c.bf16 %v710_v2, %v709_v1 }
  0xf5   : > { %v739_v6 = vpack.c.bf16 %v708_v4, %v707_v3  ;;  %v8389_v7 = vpop.f32.mrb[4].mxu0 }
  0xf6   : > { %v605_v8 = vadd.f32 %v8389_v7, %v9700_v56  ;;  %v596_v10 = vpop.f32.mrb[5].mxu0 }
  0xf7   : > { %v597_v11 = vadd.f32 %v9700_v56, %v596_v10  ;;  %v8390_v12 = vpop.f32.mrb[6].mxu0  ;;  %8419 = vmatprep.mubr.msk.bf16.mxu0 %vm497_vm0, %v739_v6 }
  0xf8   : > { %v713_v13 = vmax.f32 %v605_v8, 0.0  ;;  %v608_v14 = vadd.f32 %v8390_v12, %v9700_v56  ;;  %v599_v16 = vpop.f32.mrb[7].mxu0  ;;  %8420 = vmatmul.mubr.msk.bf16.vlgmr.msra.gmra.mrb[32].mxu0 %vm497_vm0, %v740_v5 }
  0xf9   : > { %v711_v17 = vmax.f32 %v597_v11, 0.0  ;;  %v600_v18 = vadd.f32 %v9700_v56, %v599_v16 }
  0xfa   : > { %v714_v19 = vmax.f32 %v608_v14, 0.0 }
  0xfb   : > { %v712_v20 = vmax.f32 %v600_v18, 0.0 }
  0xfc   : > { %v742_v21 = vpack.c.bf16 %v714_v19, %v713_v13 }
  0xfd   : > { %v741_v22 = vpack.c.bf16 %v712_v20, %v711_v17  ;;  %v8393_v23 = vpop.f32.mrb[8].mxu0 }
  0xfe   : > { %v621_v24 = vadd.f32 %v8393_v23, %v9700_v56  ;;  %v612_v25 = vpop.f32.mrb[9].mxu0 }
  0xff   : > { %8423 = vmatprep.mubr.msk.bf16.mxu0 %vm497_vm0, %v741_v22  ;;  %v613_v26 = vadd.f32 %v9700_v56, %v612_v25  ;;  %v8394_v27 = vpop.f32.mrb[10].mxu0 }
 0x100   : > { %8424 = vmatmul.mubr.msk.bf16.gmra.mrb[36].mxu0 %vm497_vm0, %v742_v21  ;;  %v717_v28 = vmax.f32 %v621_v24, 0.0  ;;  %v624_v29 = vadd.f32 %v8394_v27, %v9700_v56  ;;  %v615_v30 = vpop.f32.mrb[11].mxu0 }
 0x101   : > { %v715_v31 = vmax.f32 %v613_v26, 0.0  ;;  %v616_v32 = vadd.f32 %v9700_v56, %v615_v30 }
 0x102   : > { %v718_v33 = vmax.f32 %v624_v29, 0.0 }
 0x103   : > { %v716_v34 = vmax.f32 %v616_v32, 0.0 }
 0x104   : > { %v744_v35 = vpack.c.bf16 %v718_v33, %v717_v28 }
 0x105   : > { %v743_v36 = vpack.c.bf16 %v716_v34, %v715_v31  ;;  %v8397_v37 = vpop.f32.mrb[12].mxu0 }
 0x106   : > { %v637_v38 = vadd.f32 %v8397_v37, %v9700_v56  ;;  %v628_v39 = vpop.f32.mrb[13].mxu0 }
 0x107   : > { %8427 = vmatprep.mubr.msk.bf16.mxu0 %vm497_vm0, %v743_v36  ;;  %v629_v40 = vadd.f32 %v9700_v56, %v628_v39  ;;  %v8398_v41 = vpop.f32.mrb[14].mxu0 }
 0x108   : > { %8428 = vmatmul.mubr.msk.bf16.gmra.mrb[40].mxu0 %vm497_vm0, %v744_v35  ;;  %v721_v42 = vmax.f32 %v637_v38, 0.0  ;;  %v640_v43 = vadd.f32 %v8398_v41, %v9700_v56  ;;  %v631_v44 = vpop.f32.mrb[15].mxu0 }
 0x109   : > { %v719_v45 = vmax.f32 %v629_v40, 0.0  ;;  %v632_v46 = vadd.f32 %v9700_v56, %v631_v44 }
 0x10a   : > { %v722_v47 = vmax.f32 %v640_v43, 0.0 }
 0x10b   : > { %v720_v48 = vmax.f32 %v632_v46, 0.0  ;;  %v9753_v46 = vld [vmem:[%s15257_s4 + $0x1] ss:$0 sm:$0xff] }
 0x10c   : > { %v746_v49 = vpack.c.bf16 %v722_v47, %v721_v42 }
 0x10d   : > { %v745_v50 = vpack.c.bf16 %v720_v48, %v719_v45  ;;  %v8401_v51 = vpop.f32.mrb[16].mxu0 }
 0x10e   : > { %v653_v52 = vadd.f32 %v8401_v51, %v9700_v56  ;;  %v644_v53 = vpop.f32.mrb[17].mxu0 }
 0x10f   : > { %8431 = vmatprep.mubr.msk.bf16.mxu0 %vm497_vm0, %v745_v50  ;;  %v645_v54 = vadd.f32 %v9700_v56, %v644_v53  ;;  %v8402_v55 = vpop.f32.mrb[18].mxu0 }
 0x110   : > { %8432 = vmatmul.mubr.msk.bf16.gmra.mrb[44].mxu0 %vm497_vm0, %v746_v49  ;;  %v725_v57 = vmax.f32 %v653_v52, 0.0  ;;  %v656_v58 = vadd.f32 %v8402_v55, %v9700_v56  ;;  %v647_v59 = vpop.f32.mrb[19].mxu0 }
 0x111   : > { %v723_v60 = vmax.f32 %v645_v54, 0.0  ;;  %v648_v61 = vadd.f32 %v9700_v56, %v647_v59 }
 0x112   : > { %v726_v62 = vmax.f32 %v656_v58, 0.0 }
 0x113   : > { %v724_v63 = vmax.f32 %v648_v61, 0.0 }
 0x114   : > { %v748_v0 = vpack.c.bf16 %v726_v62, %v725_v57 }
 0x115   : > { %v747_v1 = vpack.c.bf16 %v724_v63, %v723_v60  ;;  %v8405_v2 = vpop.f32.mrb[20].mxu0 }
 0x116   : > { %v669_v3 = vadd.f32 %v8405_v2, %v9700_v56  ;;  %v660_v4 = vpop.f32.mrb[21].mxu0 }
 0x117   : > { %8435 = vmatprep.mubr.msk.bf16.mxu1 %vm497_vm0, %v747_v1  ;;  %v661_v5 = vadd.f32 %v9700_v56, %v660_v4  ;;  %v8406_v6 = vpop.f32.mrb[22].mxu0 }
 0x118   : > { %8436 = vmatmul.mubr.msk.bf16.vlgmr.msra.gmra.mrb[0].mxu1 %vm497_vm0, %v748_v0  ;;  %v729_v7 = vmax.f32 %v669_v3, 0.0  ;;  %v672_v8 = vadd.f32 %v8406_v6, %v9700_v56  ;;  %v663_v10 = vpop.f32.mrb[23].mxu0 }
 0x119   : > { %v727_v11 = vmax.f32 %v661_v5, 0.0  ;;  %v664_v12 = vadd.f32 %v9700_v56, %v663_v10 }
 0x11a   : > { %v730_v13 = vmax.f32 %v672_v8, 0.0 }
 0x11b   : > { %v728_v14 = vmax.f32 %v664_v12, 0.0 }
 0x11c   : > { %v750_v16 = vpack.c.bf16 %v730_v13, %v729_v7 }
 0x11d   : > { %v749_v17 = vpack.c.bf16 %v728_v14, %v727_v11  ;;  %v8409_v18 = vpop.f32.mrb[24].mxu0 }
 0x11e   : > { %v685_v19 = vadd.f32 %v8409_v18, %v9700_v56  ;;  %v676_v20 = vpop.f32.mrb[25].mxu0 }
 0x11f   : > { %8439 = vmatprep.mubr.msk.bf16.mxu1 %vm497_vm0, %v749_v17  ;;  %v677_v21 = vadd.f32 %v9700_v56, %v676_v20  ;;  %v8410_v22 = vpop.f32.mrb[26].mxu0 }
 0x120   : > { %8440 = vmatmul.mubr.msk.bf16.gmra.mrb[4].mxu1 %vm497_vm0, %v750_v16  ;;  %v733_v23 = vmax.f32 %v685_v19, 0.0  ;;  %v688_v24 = vadd.f32 %v8410_v22, %v9700_v56  ;;  %v679_v25 = vpop.f32.mrb[27].mxu0 }
 0x121   : > { %v731_v26 = vmax.f32 %v677_v21, 0.0  ;;  %v680_v27 = vadd.f32 %v9700_v56, %v679_v25 }
 0x122   : > { %v734_v28 = vmax.f32 %v688_v24, 0.0 }
 0x123   : > { %v732_v29 = vmax.f32 %v680_v27, 0.0 }
 0x124   : > { %v752_v30 = vpack.c.bf16 %v734_v28, %v733_v23 }
 0x125   : > { %v751_v31 = vpack.c.bf16 %v732_v29, %v731_v26  ;;  %v8413_v32 = vpop.f32.mrb[28].mxu0 }
 0x126   : > { %v701_v33 = vadd.f32 %v8413_v32, %v9700_v56  ;;  %v692_v34 = vpop.f32.mrb[29].mxu0 }
 0x127   : > { %8443 = vmatprep.mubr.msk.bf16.mxu1 %vm497_vm0, %v751_v31  ;;  %v693_v35 = vadd.f32 %v9700_v56, %v692_v34  ;;  %v8414_v36 = vpop.f32.mrb[30].mxu0 }
 0x128   : > { %8444 = vmatmul.mubr.msk.bf16.gmra.mrb[8].mxu1 %vm497_vm0, %v752_v30  ;;  %v737_v37 = vmax.f32 %v701_v33, 0.0  ;;  %v704_v38 = vadd.f32 %v8414_v36, %v9700_v56  ;;  %v695_v39 = vpop.f32.mrb[31].mxu0 }
 0x129   : > { %v735_v40 = vmax.f32 %v693_v35, 0.0  ;;  %v696_v41 = vadd.f32 %v9700_v56, %v695_v39 }
 0x12a   : > { %v738_v42 = vmax.f32 %v704_v38, 0.0 }
 0x12b   : > { %v736_v43 = vmax.f32 %v696_v41, 0.0 }
 0x12c   : > { %v754_v44 = vpack.c.bf16 %v738_v42, %v737_v37 }
 0x12d   : > { %v753_v45 = vpack.c.bf16 %v736_v43, %v735_v40 }
 0x12f   : > { %8447 = vmatprep.mubr.msk.bf16.mxu1 %vm497_vm0, %v753_v45 }
 0x130   : > { %8448 = vmatmul.mubr.msk.bf16.gmra.mrb[12].mxu1 %vm497_vm0, %v754_v44 }
 0x1cb   : > { %v8421_v47 = vpop.f32.mrb[32].mxu0 }
 0x1cc   : > { %v868_v48 = vadd.f32 %v8421_v47, %v9753_v46  ;;  %v859_v49 = vpop.f32.mrb[33].mxu0 }
 0x1cd   : > { %v860_v50 = vadd.f32 %v9753_v46, %v859_v49  ;;  %v8422_v56 = vpop.f32.mrb[34].mxu0 }
 0x1ce   : > { %v9757_v51 = vmax.f32 %v868_v48, 0.0  ;;  %v871_v52 = vadd.f32 %v8422_v56, %v9753_v46  ;;  %v862_v53 = vpop.f32.mrb[35].mxu0 }
 0x1cf   : > { %v9760_v54 = vmax.f32 %v860_v50, 0.0  ;;  %v863_v57 = vadd.f32 %v9753_v46, %v862_v53 }
 0x1d0   : > { %v9762_v55 = vmax.f32 %v871_v52, 0.0  ;;  %v1024_v58 = vsel %vm497_vm0, %v9757_v51, 0.0  ;;  %v1149_v60 = vmul.f32 %v9757_v51, %v9757_v51 }
 0x1d1   : > { %1025 = vadd.xlane.f32.xlu1 %v1024_v58  ;;  %v1018_v59 = vsel %vm497_vm0, %v9760_v54, 0.0  ;;  %v9771_v62 = vmax.f32 %v863_v57, 0.0  ;;  %v1147_v11 = vmul.f32 %v9760_v54, %v9760_v54 }
 0x1d2   : > { %1019 = vadd.xlane.f32.xlu0 %v1018_v59  ;;  %v1027_v0 = vsel %vm497_vm0, %v9762_v55, 0.0  ;;  %v1150_v1 = vmul.f32 %v9762_v55, %v9762_v55  ;;  %v1185_v3 = vsel %vm497_vm0, %v1149_v60, 0.0 }
 0x1d3   : > { %v8425_v61 = vpop.f32.mrb[36].mxu0  ;;  %v1148_v7 = vmul.f32 %v9771_v62, %v9771_v62  ;;  %v1021_v10 = vsel %vm497_vm0, %v9771_v62, 0.0  ;;  %v1179_v20 = vsel %vm497_vm0, %v1147_v11, 0.0 }
 0x1d4   : > { %v875_v63 = vpop.f32.mrb[37].mxu0  ;;  %v1188_v6 = vsel %vm497_vm0, %v1150_v1, 0.0  ;;  %v884_v8 = vadd.f32 %v8425_v61, %v9753_v46 }
 0x1d5   : > { %1028 = vadd.xlane.f32.xlu1 %v1027_v0  ;;  %v8426_v2 = vpop.f32.mrb[38].mxu0  ;;  %v1182_v16 = vsel %vm497_vm0, %v1148_v7, 0.0  ;;  %v876_v19 = vadd.f32 %v9753_v46, %v875_v63 }
 0x1d6   : > { %v878_v4 = vpop.f32.mrb[39].mxu0  ;;  %1186 = vadd.xlane.f32.xlu0 %v1185_v3  ;;  %v887_v5 = vadd.f32 %v8426_v2, %v9753_v46  ;;  %v9791_v18 = vmax.f32 %v884_v8, 0.0 }
 0x1d7   : > { %v879_v14 = vadd.f32 %v9753_v46, %v878_v4  ;;  %v9799_v25 = vmax.f32 %v876_v19, 0.0 }
 0x1d8   : > { %v9787_v13 = vmax.f32 %v887_v5, 0.0  ;;  %v1036_v26 = vsel %vm497_vm0, %v9791_v18, 0.0  ;;  %v1153_v32 = vmul.f32 %v9791_v18, %v9791_v18 }
 0x1d9   : > { %1189 = vadd.xlane.f32.xlu1 %v1188_v6  ;;  %v9795_v23 = vmax.f32 %v879_v14, 0.0  ;;  %v1030_v31 = vsel %vm497_vm0, %v9799_v25, 0.0  ;;  %v1151_v40 = vmul.f32 %v9799_v25, %v9799_v25  ;;  %v8924_v14 = vld [vmem:[%s15256_s3 + $0x20] sm:$0xff]  }
 0x1da   : > { %1022 = vadd.xlane.f32.xlu0 %v1021_v10  ;;  %v1039_v24 = vsel %vm497_vm0, %v9787_v13, 0.0  ;;  %v1154_v29 = vmul.f32 %v9787_v13, %v9787_v13  ;;  %v1197_v39 = vsel %vm497_vm0, %v1153_v32, 0.0  ;;  %8451 = vmatprep.subr.bf16.mxu0 %v8924_v14 }
 0x1db   : > { %v8429_v12 = vpop.f32.mrb[40].mxu0  ;;  %v1033_v28 = vsel %vm497_vm0, %v9795_v23, 0.0  ;;  %v1152_v37 = vmul.f32 %v9795_v23, %v9795_v23  ;;  %v1191_v50 = vsel %vm497_vm0, %v1151_v40, 0.0  ;;  %8452 = vmatpush3.bf16.msra.mxu0 %v8924_v14 }
 0x1dc   : > { %v891_v17 = vpop.f32.mrb[41].mxu0  ;;  %v1200_v36 = vsel %vm497_vm0, %v1154_v29, 0.0  ;;  %v900_v38 = vadd.f32 %v8429_v12, %v9753_v46 }
 0x1dd   : > { %1183 = vadd.xlane.f32.xlu1 %v1182_v16  ;;  %v8430_v21 = vpop.f32.mrb[42].mxu0  ;;  %v1194_v44 = vsel %vm497_vm0, %v1152_v37, 0.0  ;;  %v892_v49 = vadd.f32 %v9753_v46, %v891_v17 }
 0x1de   : > { %1180 = vadd.xlane.f32.xlu0 %v1179_v20  ;;  %v894_v22 = vpop.f32.mrb[43].mxu0  ;;  %v903_v35 = vadd.f32 %v8430_v21, %v9753_v46  ;;  %v9828_v48 = vmax.f32 %v900_v38, 0.0 }
 0x1df   : > { %v895_v43 = vadd.f32 %v9753_v46, %v894_v22  ;;  %v9845_v61 = vmax.f32 %v892_v49, 0.0 }
 0x1e0   : > { %v9821_v42 = vmax.f32 %v903_v35, 0.0  ;;  %v1048_v63 = vsel %vm497_vm0, %v9828_v48, 0.0  ;;  %v1157_v6 = vmul.f32 %v9828_v48, %v9828_v48 }
 0x1e1   : > { %1040 = vadd.xlane.f32.xlu1 %v1039_v24  ;;  %v9841_v59 = vmax.f32 %v895_v43, 0.0  ;;  %v1042_v5 = vsel %vm497_vm0, %v9845_v61, 0.0  ;;  %v1155_v22 = vmul.f32 %v9845_v61, %v9845_v61  ;;  %v8925_v24 = vld [vmem:[%s15256_s3 + $0x28] sm:$0xff]  }
 0x1e2   : > { %1037 = vadd.xlane.f32.xlu0 %v1036_v26  ;;  %v1051_v60 = vsel %vm497_vm0, %v9821_v42, 0.0  ;;  %v1158_v2 = vmul.f32 %v9821_v42, %v9821_v42  ;;  %v1209_v21 = vsel %vm497_vm0, %v1157_v6, 0.0  ;;  %8453 = vmatprep.subr.bf16.mxu0 %v8925_v24 }
 0x1e3   : > { %v8433_v27 = vpop.f32.mrb[44].mxu0  ;;  %v1045_v1 = vsel %vm497_vm0, %v9841_v59, 0.0  ;;  %v1156_v19 = vmul.f32 %v9841_v59, %v9841_v59  ;;  %8454 = vmatpush3.bf16.msra.mxu0 %v8925_v24 }
 0x1e4   : > { %v9807_v30 = vpop.f32.mrb[45].mxu0  ;;  %v1212_v17 = vsel %vm497_vm0, %v1158_v2, 0.0  ;;  %v916_v20 = vadd.f32 %v8433_v27, %v9753_v46 }
 0x1e5   : > { %1034 = vadd.xlane.f32.xlu1 %v1033_v28  ;;  %v8434_v33 = vpop.f32.mrb[46].mxu0  ;;  %v1206_v27 = vsel %vm497_vm0, %v1156_v19, 0.0  ;;  %v908_v35 = vadd.f32 %v9753_v46, %v9807_v30 }
 0x1e6   : > { %1031 = vadd.xlane.f32.xlu0 %v1030_v31  ;;  %v910_v34 = vpop.f32.mrb[47].mxu0  ;;  %v919_v16 = vadd.f32 %v8434_v33, %v9753_v46  ;;  %v9890_v33 = vmax.f32 %v916_v20, 0.0 }
 0x1e7   : > { %v911_v29 = vadd.f32 %v9753_v46, %v910_v34  ;;  %v9908_v43 = vmax.f32 %v908_v35, 0.0 }
 0x1e8   : > { %v9883_v28 = vmax.f32 %v919_v16, 0.0 }
 0x1e9   : > { %1201 = vadd.xlane.f32.xlu1 %v1200_v36  ;;  %v1203_v36 = vsel %vm497_vm0, %v1155_v22, 0.0  ;;  %v1159_v14 = vmul.f32 %v9908_v43, %v9908_v43 }
 0x1ea   : > { %1198 = vadd.xlane.f32.xlu0 %v1197_v39  ;;  %v1063_v30 = vsel %vm497_vm0, %v9883_v28, 0.0 }
 0x1eb   : > { %v8437_v41 = vpop.f32.mrb[0].mxu1  ;;  %v1215_v19 = vsel %vm497_vm0, %v1159_v14, 0.0 }
 0x1ec   : > { %v9826_v45 = vadd.f32 %v8437_v41, %v9753_v46  ;;  %v923_v47 = vpop.f32.mrb[1].mxu1  ;;  %v9904_v41 = vmax.f32 %v911_v29, 0.0 }
 0x1ed   : > { %1195 = vadd.xlane.f32.xlu1 %v1194_v44  ;;  %v9833_v56 = vadd.f32 %v9753_v46, %v923_v47  ;;  %v8438_v52 = vpop.f32.mrb[2].mxu1  ;;  %v1060_v44 = vsel %vm497_vm0, %v9890_v33, 0.0 }
 0x1ee   : > { %1192 = vadd.xlane.f32.xlu0 %v1191_v50  ;;  %v9836_v53 = vadd.f32 %v8438_v52, %v9753_v46  ;;  %v926_v57 = vpop.f32.mrb[3].mxu1  ;;  %v1057_v49 = vsel %vm497_vm0, %v9904_v41, 0.0  ;;  %v1162_v50 = vmul.f32 %v9883_v28, %v9883_v28 }
 0x1ef   : > { %v9839_v58 = vadd.f32 %v9753_v46, %v926_v57  ;;  %v9952_v22 = vmax.f32 %v9833_v56, 0.0 }
 0x1f0   : > { %v1224_v6 = vsel %vm497_vm0, %v1162_v50, 0.0  ;;  %v9939_v16 = vmax.f32 %v9836_v53, 0.0 }
 0x1f1   : > { %1052 = vadd.xlane.f32.xlu1 %v1051_v60  ;;  %v1054_v60 = vsel %vm497_vm0, %v9908_v43, 0.0  ;;  %v9947_v20 = vmax.f32 %v9839_v58, 0.0  ;;  %v1066_v58 = vsel %vm497_vm0, %v9952_v22, 0.0 }
 0x1f2   : > { %1049 = vadd.xlane.f32.xlu0 %v1048_v63  ;;  %v1161_v63 = vmul.f32 %v9890_v33, %v9890_v33  ;;  %v1166_v24 = vmul.f32 %v9939_v16, %v9939_v16 }
 0x1f3   : > { %v8441_v0 = vpop.f32.mrb[4].mxu1  ;;  %v1164_v29 = vmul.f32 %v9947_v20, %v9947_v20 }
 0x1f4   : > { %v9854_v3 = vadd.f32 %v8441_v0, %v9753_v46  ;;  %v939_v4 = vpop.f32.mrb[5].mxu1  ;;  %v1236_v56 = vsel %vm497_vm0, %v1166_v24, 0.0 }
 0x1f5   : > { %1046 = vadd.xlane.f32.xlu1 %v1045_v1  ;;  %v9861_v7 = vadd.f32 %v9753_v46, %v939_v4  ;;  %v8442_v8 = vpop.f32.mrb[6].mxu1 }
 0x1f6   : > { %1043 = vadd.xlane.f32.xlu0 %v1042_v5  ;;  %v9864_v10 = vadd.f32 %v8442_v8, %v9753_v46  ;;  %v942_v11 = vpop.f32.mrb[7].mxu1  ;;  %v1160_v8 = vmul.f32 %v9904_v41, %v9904_v41 }
 0x1f7   : > { %v9867_v12 = vadd.f32 %v9753_v46, %v942_v11  ;;  %v1221_v11 = vsel %vm497_vm0, %v1161_v63, 0.0 }
 0x1f8   : > { %v9971_v35 = vmax.f32 %v9864_v10, 0.0 }
 0x1f9   : > { %1213 = vadd.xlane.f32.xlu1 %v1212_v17  ;;  %v1218_v17 = vsel %vm497_vm0, %v1160_v8, 0.0 }
 0x1fa   : > { %1210 = vadd.xlane.f32.xlu0 %v1209_v21  ;;  %v1075_v21 = vsel %vm497_vm0, %v9939_v16, 0.0 }
 0x1fb   : > { %v8445_v26 = vpop.f32.mrb[8].mxu1 }
 0x1fc   : > { %v9888_v31 = vadd.f32 %v8445_v26, %v9753_v46  ;;  %v955_v32 = vpop.f32.mrb[9].mxu1 }
 0x1fd   : > { %1207 = vadd.xlane.f32.xlu1 %v1206_v27  ;;  %v9896_v37 = vadd.f32 %v9753_v46, %v955_v32  ;;  %v8446_v38 = vpop.f32.mrb[10].mxu1  ;;  %v1163_v32 = vmul.f32 %v9952_v22, %v9952_v22 }
 0x1fe   : > { %1204 = vadd.xlane.f32.xlu0 %v1203_v36  ;;  %v9899_v34 = vadd.f32 %v8446_v38, %v9753_v46  ;;  %v958_v39 = vpop.f32.mrb[11].mxu1  ;;  %v1230_v36 = vsel %vm497_vm0, %v1164_v29, 0.0  ;;  %v9975_v38 = vmax.f32 %v9854_v3, 0.0 }
 0x1ff   : > { %v9902_v40 = vadd.f32 %v9753_v46, %v958_v39  ;;  %v1227_v39 = vsel %vm497_vm0, %v1163_v32, 0.0 }
 0x200   : > { %v1084_v10 = vsel %vm497_vm0, %v9975_v38, 0.0  ;;  %v1169_v50 = vmul.f32 %v9975_v38, %v9975_v38 }
 0x201   : > { %1064 = vadd.xlane.f32.xlu1 %v1063_v30  ;;  %v9979_v30 = vmax.f32 %v9867_v12, 0.0 }
 0x202   : > { %1061 = vadd.xlane.f32.xlu0 %v1060_v44  ;;  %v1087_v44 = vsel %vm497_vm0, %v9971_v35, 0.0 }
 0x203   : > { %v8449_v47 = vpop.f32.mrb[12].mxu1  ;;  %v1081_v3 = vsel %vm497_vm0, %v9979_v30, 0.0 }
 0x204   : > { %v9917_v52 = vadd.f32 %v8449_v47, %v9753_v46  ;;  %v971_v57 = vpop.f32.mrb[13].mxu1  ;;  %v9984_v47 = vmax.f32 %v9861_v7, 0.0 }
 0x205   : > { %1058 = vadd.xlane.f32.xlu1 %v1057_v49  ;;  %v9924_v0 = vadd.f32 %v9753_v46, %v971_v57  ;;  %v8450_v1 = vpop.f32.mrb[14].mxu1  ;;  %v1170_v49 = vmul.f32 %v9971_v35, %v9971_v35  ;;  %v1168_v57 = vmul.f32 %v9979_v30, %v9979_v30 }
 0x206   : > { %1055 = vadd.xlane.f32.xlu0 %v1054_v60  ;;  %v9927_v2 = vadd.f32 %v8450_v1, %v9753_v46  ;;  %v974_v4 = vpop.f32.mrb[15].mxu1  ;;  %v1078_v12 = vsel %vm497_vm0, %v9984_v47, 0.0  ;;  %v1245_v60 = vsel %vm497_vm0, %v1169_v50, 0.0  ;;  %v1167_v63 = vmul.f32 %v9984_v47, %v9984_v47 }
 0x207   : > { %v9930_v5 = vadd.f32 %v9753_v46, %v974_v4  ;;  %v9943_v46 = vmax.f32 %v9826_v45, 0.0  ;;  %v1069_v45 = vsel %vm497_vm0, %v9947_v20, 0.0  ;;  %v1248_v7 = vsel %vm497_vm0, %v1170_v49, 0.0 }
 0x208   : > { %v10003_v1 = vmax.f32 %v9899_v34, 0.0  ;;  %v1242_v4 = vsel %vm497_vm0, %v1168_v57, 0.0  ;;  %v1239_v8 = vsel %vm497_vm0, %v1167_v63, 0.0 }
 0x209   : > { %1225 = vadd.xlane.f32.xlu1 %v1224_v6  ;;  %v1072_v53 = vsel %vm497_vm0, %v9943_v46, 0.0  ;;  %v1165_v26 = vmul.f32 %v9943_v46, %v9943_v46  ;;  %v10007_v6 = vmax.f32 %v9888_v31, 0.0 }
 0x20a   : > { %1222 = vadd.xlane.f32.xlu0 %v1221_v11  ;;  %v10011_v11 = vmax.f32 %v9902_v40, 0.0  ;;  %v1099_v14 = vsel %vm497_vm0, %v10003_v1, 0.0 }
 0x20b   : > { %v1233_v27 = vsel %vm497_vm0, %v1165_v26, 0.0  ;;  %v1096_v34 = vsel %vm497_vm0, %v10007_v6, 0.0 }
 0x20c   : > { %v1093_v31 = vsel %vm497_vm0, %v10011_v11, 0.0 }
 0x20d   : > { %1219 = vadd.xlane.f32.xlu1 %v1218_v17  ;;  %v10016_v17 = vmax.f32 %v9896_v37, 0.0 }
 0x20e   : > { %1216 = vadd.xlane.f32.xlu0 %v1215_v19  ;;  %v1174_v19 = vmul.f32 %v10003_v1, %v10003_v1 }
 0x20f   : > { %v1090_v40 = vsel %vm497_vm0, %v10016_v17, 0.0  ;;  %v1171_v24 = vmul.f32 %v10016_v17, %v10016_v17 }
 0x210   : > { %v1260_v37 = vsel %vm497_vm0, %v1174_v19, 0.0 }
 0x211   : > { %1076 = vadd.xlane.f32.xlu1 %v1075_v21  ;;  %v1173_v21 = vmul.f32 %v10007_v6, %v10007_v6  ;;  %v1251_v29 = vsel %vm497_vm0, %v1171_v24, 0.0 }
 0x212   : > { %1073 = vadd.xlane.f32.xlu0 %v1072_v53  ;;  %v1172_v53 = vmul.f32 %v10011_v11, %v10011_v11 }
 0x214   : > { %v1254_v26 = vsel %vm497_vm0, %v1172_v53, 0.0 }
 0x215   : > { %1070 = vadd.xlane.f32.xlu1 %v1069_v45  ;;  %v1257_v45 = vsel %vm497_vm0, %v1173_v21, 0.0 }
 0x216   : > { %1067 = vadd.xlane.f32.xlu0 %v1066_v58  ;;  %v10035_v58 = vmax.f32 %v9927_v2, 0.0 }
 0x218   : > { %v1111_v32 = vsel %vm497_vm0, %v10035_v58, 0.0 }
 0x219   : > { %1237 = vadd.xlane.f32.xlu1 %v1236_v56  ;;  %v10039_v56 = vmax.f32 %v9917_v52, 0.0 }
 0x21a   : > { %1234 = vadd.xlane.f32.xlu0 %v1233_v27  ;;  %v10043_v27 = vmax.f32 %v9930_v5, 0.0 }
 0x21b   : > { %v1108_v2 = vsel %vm497_vm0, %v10039_v56, 0.0  ;;  %v1177_v49 = vmul.f32 %v10039_v56, %v10039_v56 }
 0x21c   : > { %v1105_v52 = vsel %vm497_vm0, %v10043_v27, 0.0 }
 0x21d   : > { %1231 = vadd.xlane.f32.xlu1 %v1230_v36  ;;  %v10048_v36 = vmax.f32 %v9924_v0, 0.0  ;;  %v1269_v50 = vsel %vm497_vm0, %v1177_v49, 0.0 }
 0x21e   : > { %1228 = vadd.xlane.f32.xlu0 %v1227_v39  ;;  %v1176_v39 = vmul.f32 %v10043_v27, %v10043_v27 }
 0x21f   : > { %v1102_v5 = vsel %vm497_vm0, %v10048_v36, 0.0 }
 0x220   : > { %v1266_v0 = vsel %vm497_vm0, %v1176_v39, 0.0 }
 0x221   : > { %1088 = vadd.xlane.f32.xlu1 %v1087_v44  ;;  %v1175_v44 = vmul.f32 %v10048_v36, %v10048_v36 }
 0x222   : > { %1085 = vadd.xlane.f32.xlu0 %v1084_v10  ;;  %v1178_v10 = vmul.f32 %v10035_v58, %v10035_v58 }
 0x225   : > { %1082 = vadd.xlane.f32.xlu1 %v1081_v3  ;;  %v1263_v3 = vsel %vm497_vm0, %v1175_v44, 0.0 }
 0x226   : > { %1079 = vadd.xlane.f32.xlu0 %v1078_v12  ;;  %v1272_v12 = vsel %vm497_vm0, %v1178_v10, 0.0 }
 0x229   : > { %1249 = vadd.xlane.f32.xlu1 %v1248_v7 }
 0x22a   : > { %1246 = vadd.xlane.f32.xlu0 %v1245_v60 }
 0x22d   : > { %1243 = vadd.xlane.f32.xlu1 %v1242_v4 }
 0x22e   : > { %1240 = vadd.xlane.f32.xlu0 %v1239_v8 }
 0x231   : > { %1100 = vadd.xlane.f32.xlu1 %v1099_v14 }
 0x232   : > { %1097 = vadd.xlane.f32.xlu0 %v1096_v34 }
 0x235   : > { %1094 = vadd.xlane.f32.xlu1 %v1093_v31 }
 0x236   : > { %1091 = vadd.xlane.f32.xlu0 %v1090_v40 }
 0x239   : > { %1261 = vadd.xlane.f32.xlu1 %v1260_v37 }
 0x23a   : > { %1258 = vadd.xlane.f32.xlu0 %v1257_v45 }
 0x23d   : > { %1255 = vadd.xlane.f32.xlu1 %v1254_v26 }
 0x23e   : > { %1252 = vadd.xlane.f32.xlu0 %v1251_v29 }
 0x241   : > { %1112 = vadd.xlane.f32.xlu1 %v1111_v32 }
 0x242   : > { %1109 = vadd.xlane.f32.xlu0 %v1108_v2 }
 0x245   : > { %1106 = vadd.xlane.f32.xlu1 %v1105_v52 }
 0x246   : > { %1103 = vadd.xlane.f32.xlu0 %v1102_v5 }
 0x249   : > { %1267 = vadd.xlane.f32.xlu1 %v1266_v0 }
 0x24a   : > { %1264 = vadd.xlane.f32.xlu0 %v1263_v3 }
 0x24d   : > { %1273 = vadd.xlane.f32.xlu1 %v1272_v12 }
 0x24e   : > { %1270 = vadd.xlane.f32.xlu0 %v1269_v50 }
 0x25e   : > { %v1026_v7 = vpop.xlane.xlu1 %1025 }
 0x25f   : > { %v1020_v57 = vpop.xlane.xlu0 %1019  ;;  %v1117_v60 = vmul.f32 0.03125, %v1026_v7 }
 0x260   : > { %v10068_v53 = vmul.f32 0.03125, %v1020_v57 }
 0x261   : > { %v1309_v14 = vmul.f32 %v1117_v60, %v1117_v60 }
 0x262   : > { %v1029_v63 = vpop.xlane.xlu1 %1028  ;;  %v1307_v5 = vmul.f32 %v10068_v53, %v10068_v53 }
 0x263   : > { %v1118_v4 = vmul.f32 0.03125, %v1029_v63  ;;  %v1187_v8 = vpop.xlane.xlu0 %1186 }
 0x264   : > { %v1277_v34 = vmul.f32 0.03125, %v1187_v8 }
 0x265   : > { %v1310_v40 = vmul.f32 %v1118_v4, %v1118_v4 }
 0x266   : > { %v1341_v31 = vsub.f32 %v1277_v34, %v1309_v14  ;;  %v1190_v19 = vpop.xlane.xlu1 %1189  ;;  %v8926_v14 = vld [vmem:[%s15256_s3 + $0x30] sm:$0xff]   ;;  %v8927_v34 = vld [vmem:[%s15256_s3 + $0x38] sm:$0xff]  }
 0x267   : > { %v1278_v21 = vmul.f32 0.03125, %v1190_v19  ;;  %v1023_v37 = vpop.xlane.xlu0 %1022  ;;  %v1438_v19 = vsub.f32 %v9762_v55, %v1118_v4  ;;  %8487 = vmatprep.subr.bf16.mxu1 %v8926_v14  ;;  %v1435_v4 = vsub.f32 %v9760_v54, %v10068_v53 }
 0x268   : > { %v1373_v45 = vadd.f32 1e-05, %v1341_v31  ;;  %v1116_v24 = vmul.f32 0.03125, %v1023_v37  ;;  %8488 = vmatpush3.bf16.msra.mxu1 %v8926_v14 }
 0x269   : > { %v1342_v26 = vsub.f32 %v1278_v21, %v1310_v40  ;;  %8489 = vmatprep.subr.bf16.mxu1 %v8927_v34 }
 0x26a   : > { %v1308_v29 = vmul.f32 %v1116_v24, %v1116_v24  ;;  %v1184_v32 = vpop.xlane.xlu1 %1183  ;;  %8956 = vrsqrt.f32 %v1373_v45 }
 0x26b   : > { %v1374_v2 = vadd.f32 1e-05, %v1342_v26  ;;  %v1276_v52 = vmul.f32 0.03125, %v1184_v32  ;;  %v1181_v39 = vpop.xlane.xlu0 %1180 }
 0x26c   : > { %v1275_v44 = vmul.f32 0.03125, %v1181_v39  ;;  %8490 = vmatpush3.bf16.msra.mxu1 %v8927_v34 }
 0x26d   : > { %8958 = vrsqrt.f32 %v1374_v2  ;;  %v1340_v0 = vsub.f32 %v1276_v52, %v1308_v29  ;;  %v1437_v2 = vsub.f32 %v9757_v51, %v1117_v60  ;;  %v10098_v51 = vld [vmem:[%s15257_s4 + $0x2] ss:$0 sm:$0xff] }
 0x26e   : > { %v1339_v10 = vsub.f32 %v1275_v44, %v1307_v5  ;;  %v1041_v3 = vpop.xlane.xlu1 %1040 }
 0x26f   : > { %v1372_v49 = vadd.f32 1e-05, %v1340_v0  ;;  %v1038_v12 = vpop.xlane.xlu0 %1037  ;;  %v10072_v57 = vmul.f32 0.03125, %v1041_v3  ;;  %v1436_v0 = vsub.f32 %v9771_v62, %v1116_v24 }
 0x270   : > { %v1371_v50 = vadd.f32 1e-05, %v1339_v10  ;;  %v10074_v8 = vmul.f32 0.03125, %v1038_v12 }
 0x271   : > { %8960 = vrsqrt.f32 %v1372_v49  ;;  %v1314_v37 = vmul.f32 %v10072_v57, %v10072_v57 }
 0x272   : > { %8962 = vrsqrt.f32 %v1371_v50  ;;  %v1035_v7 = vpop.xlane.xlu1 %1034  ;;  %v1313_v39 = vmul.f32 %v10074_v8, %v10074_v8 }
 0x273   : > { %v1032_v63 = vpop.xlane.xlu0 %1031  ;;  %v10085_v45 = vmul.f32 0.03125, %v1035_v7 }
 0x274   : > { %v8957_v31 = vpop.eup %8956  ;;  %v10087_v26 = vmul.f32 0.03125, %v1032_v63 }
 0x275   : > { %v1469_v44 = vmul.f32 %v8957_v31, %v1437_v2  ;;  %v1312_v60 = vmul.f32 %v10085_v45, %v10085_v45 }
 0x276   : > { %v1202_v40 = vpop.xlane.xlu1 %1201  ;;  %v1311_v12 = vmul.f32 %v10087_v26, %v10087_v26 }
 0x277   : > { %v8959_v21 = vpop.eup %8958  ;;  %v1282_v29 = vmul.f32 0.03125, %v1202_v40  ;;  %v1199_v32 = vpop.xlane.xlu0 %1198  ;;  %v1506_v40 = vmul.f32 %v10098_v51, %v1469_v44 }
 0x278   : > { %v1470_v52 = vmul.f32 %v8959_v21, %v1438_v19  ;;  %v1281_v5 = vmul.f32 0.03125, %v1199_v32 }
 0x279   : > { %v1346_v55 = vsub.f32 %v1282_v29, %v1314_v37 }
 0x27a   : > { %v1345_v10 = vsub.f32 %v1281_v5, %v1313_v39  ;;  %v1196_v3 = vpop.xlane.xlu1 %1195  ;;  %v1507_v62 = vmul.f32 %v10098_v51, %v1470_v52  ;;  %v10111_v52 = vld [vmem:[%s15257_s4 + $0x3] ss:$0 sm:$0xff] }
 0x27b   : > { %v8961_v49 = vpop.eup %8960  ;;  %v1378_v50 = vadd.f32 1e-05, %v1346_v55  ;;  %v1280_v7 = vmul.f32 0.03125, %v1196_v3  ;;  %v1193_v54 = vpop.xlane.xlu0 %1192 }
 0x27c   : > { %v8963_v53 = vpop.eup %8962  ;;  %v1377_v24 = vadd.f32 1e-05, %v1345_v10  ;;  %v1279_v63 = vmul.f32 0.03125, %v1193_v54  ;;  %v1468_v14 = vmul.f32 %v8961_v49, %v1436_v0  ;;  %v1544_v55 = vadd.f32 %v10111_v52, %v1507_v62 }
 0x27d   : > { %8964 = vrsqrt.f32 %v1378_v50  ;;  %v1344_v31 = vsub.f32 %v1280_v7, %v1312_v60  ;;  %v1467_v19 = vmul.f32 %v8963_v53, %v1435_v4  ;;  %v1543_v0 = vadd.f32 %v10111_v52, %v1506_v40 }
 0x27e   : > { %8966 = vrsqrt.f32 %v1377_v24  ;;  %v1343_v21 = vsub.f32 %v1279_v63, %v1311_v12  ;;  %v1053_v37 = vpop.xlane.xlu1 %1052  ;;  %v1505_v29 = vmul.f32 %v10098_v51, %v1468_v14  ;;  %v1442_v50 = vsub.f32 %v9787_v13, %v10072_v57 }
 0x27f   : > { %v1376_v32 = vadd.f32 1e-05, %v1344_v31  ;;  %v1050_v2 = vpop.xlane.xlu0 %1049  ;;  %v1504_v39 = vmul.f32 %v10098_v51, %v1467_v19  ;;  %v10117_v10 = vmul.f32 0.03125, %v1053_v37  ;;  %v1574_v12 = vpack.c.bf16 %v1544_v55, %v1543_v0 }
 0x280   : > { %v1375_v34 = vadd.f32 1e-05, %v1343_v21  ;;  %v1542_v5 = vadd.f32 %v10111_v52, %v1505_v29  ;;  %v10119_v60 = vmul.f32 0.03125, %v1050_v2  ;;  %v1441_v62 = vsub.f32 %v9791_v18, %v10074_v8 }
 0x281   : > { %8968 = vrsqrt.f32 %v1376_v32  ;;  %v1541_v4 = vadd.f32 %v10111_v52, %v1504_v39  ;;  %v1318_v24 = vmul.f32 %v10117_v10, %v10117_v10  ;;  %v1440_v29 = vsub.f32 %v9795_v23, %v10085_v45 }
 0x282   : > { %8970 = vrsqrt.f32 %v1375_v34  ;;  %v1047_v44 = vpop.xlane.xlu1 %1046  ;;  %v1317_v13 = vmul.f32 %v10119_v60, %v10119_v60  ;;  %v1439_v18 = vsub.f32 %v9799_v25, %v10087_v26 }
 0x283   : > { %v1044_v3 = vpop.xlane.xlu0 %1043  ;;  %v1573_v49 = vpack.c.bf16 %v1542_v5, %v1541_v4  ;;  %v10124_v7 = vmul.f32 0.03125, %v1047_v44 }
 0x284   : > { %v10131_v63 = vmul.f32 0.03125, %v1044_v3 }
 0x285   : > { %8455 = vmatprep.mubr.msk.bf16.mxu0 %vm497_vm0, %v1573_v49  ;;  %v1316_v8 = vmul.f32 %v10124_v7, %v10124_v7 }
 0x286   : > { %v1214_v54 = vpop.xlane.xlu1 %1213  ;;  %8456 = vmatmul.mubr.msk.bf16.vlgmr.msra.gmra.mrb[48].mxu0 %vm497_vm0, %v1574_v12  ;;  %v1315_v34 = vmul.f32 %v10131_v63, %v10131_v63 }
 0x287   : > { %v8965_v53 = vpop.eup %8964  ;;  %v1286_v14 = vmul.f32 0.03125, %v1214_v54  ;;  %v1211_v31 = vpop.xlane.xlu0 %1210 }
 0x288   : > { %v8967_v19 = vpop.eup %8966  ;;  %v1285_v57 = vmul.f32 0.03125, %v1211_v31  ;;  %v1474_v40 = vmul.f32 %v8965_v53, %v1442_v50 }
 0x289   : > { %v1350_v21 = vsub.f32 %v1286_v14, %v1318_v24  ;;  %v1473_v37 = vmul.f32 %v8967_v19, %v1441_v62 }
 0x28a   : > { %v1349_v32 = vsub.f32 %v1285_v57, %v1317_v13  ;;  %v1208_v2 = vpop.xlane.xlu1 %1207  ;;  %v1511_v44 = vmul.f32 %v10098_v51, %v1474_v40 }
 0x28b   : > { %v8969_v39 = vpop.eup %8968  ;;  %v1382_v5 = vadd.f32 1e-05, %v1350_v21  ;;  %v1284_v55 = vmul.f32 0.03125, %v1208_v2  ;;  %v1205_v4 = vpop.xlane.xlu0 %1204  ;;  %v1510_v25 = vmul.f32 %v10098_v51, %v1473_v37 }
 0x28c   : > { %v8971_v0 = vpop.eup %8970  ;;  %v1381_v3 = vadd.f32 1e-05, %v1349_v32  ;;  %v1283_v23 = vmul.f32 0.03125, %v1205_v4  ;;  %v1472_v45 = vmul.f32 %v8969_v39, %v1440_v29  ;;  %v1548_v13 = vadd.f32 %v10111_v52, %v1511_v44 }
 0x28d   : > { %8972 = vrsqrt.f32 %v1382_v5  ;;  %v1348_v26 = vsub.f32 %v1284_v55, %v1316_v8  ;;  %v1471_v49 = vmul.f32 %v8971_v0, %v1439_v18  ;;  %v1547_v19 = vadd.f32 %v10111_v52, %v1510_v25 }
 0x28e   : > { %8974 = vrsqrt.f32 %v1381_v3  ;;  %v1347_v12 = vsub.f32 %v1283_v23, %v1315_v34  ;;  %v1065_v50 = vpop.xlane.xlu1 %1064  ;;  %v1509_v54 = vmul.f32 %v10098_v51, %v1472_v45  ;;  %v1446_v32 = vsub.f32 %v9821_v42, %v10117_v10 }
 0x28f   : > { %v1380_v53 = vadd.f32 1e-05, %v1348_v26  ;;  %v1062_v62 = vpop.xlane.xlu0 %1061  ;;  %v1508_v24 = vmul.f32 %v10098_v51, %v1471_v49  ;;  %v10151_v21 = vmul.f32 0.03125, %v1065_v50  ;;  %v1576_v8 = vpack.c.bf16 %v1548_v13, %v1547_v19 }
 0x290   : > { %v1379_v14 = vadd.f32 1e-05, %v1347_v12  ;;  %v1546_v31 = vadd.f32 %v10111_v52, %v1509_v54  ;;  %v10153_v18 = vmul.f32 0.03125, %v1062_v62  ;;  %v1445_v5 = vsub.f32 %v9828_v48, %v10119_v60 }
 0x291   : > { %8976 = vrsqrt.f32 %v1380_v53  ;;  %v1545_v57 = vadd.f32 %v10111_v52, %v1508_v24  ;;  %v1322_v55 = vmul.f32 %v10151_v21, %v10151_v21  ;;  %v1444_v26 = vsub.f32 %v9841_v59, %v10124_v7 }
 0x292   : > { %8978 = vrsqrt.f32 %v1379_v14  ;;  %v1059_v40 = vpop.xlane.xlu1 %1058  ;;  %v1321_v42 = vmul.f32 %v10153_v18, %v10153_v18  ;;  %v1443_v48 = vsub.f32 %v9845_v61, %v10131_v63 }
 0x293   : > { %v1056_v37 = vpop.xlane.xlu0 %1055  ;;  %v1575_v29 = vpack.c.bf16 %v1546_v31, %v1545_v57  ;;  %v10158_v2 = vmul.f32 0.03125, %v1059_v40 }
 0x294   : > { %v10165_v4 = vmul.f32 0.03125, %v1056_v37 }
 0x295   : > { %8459 = vmatprep.mubr.msk.bf16.mxu0 %vm497_vm0, %v1575_v29  ;;  %v1320_v60 = vmul.f32 %v10158_v2, %v10158_v2 }
 0x296   : > { %v1226_v39 = vpop.xlane.xlu1 %1225  ;;  %8460 = vmatmul.mubr.msk.bf16.gmra.mrb[52].mxu0 %vm497_vm0, %v1576_v8  ;;  %v1319_v54 = vmul.f32 %v10165_v4, %v10165_v4 }
 0x297   : > { %v8973_v34 = vpop.eup %8972  ;;  %v1290_v44 = vmul.f32 0.03125, %v1226_v39  ;;  %v1223_v0 = vpop.xlane.xlu0 %1222 }
 0x298   : > { %v8975_v3 = vpop.eup %8974  ;;  %v1289_v10 = vmul.f32 0.03125, %v1223_v0  ;;  %v1478_v23 = vmul.f32 %v8973_v34, %v1446_v32 }
 0x299   : > { %v1354_v45 = vsub.f32 %v1290_v44, %v1322_v55  ;;  %v1477_v25 = vmul.f32 %v8975_v3, %v1445_v5 }
 0x29a   : > { %v1353_v49 = vsub.f32 %v1289_v10, %v1321_v42  ;;  %v1220_v12 = vpop.xlane.xlu1 %1219  ;;  %v1515_v14 = vmul.f32 %v10098_v51, %v1478_v23 }
 0x29b   : > { %v8977_v50 = vpop.eup %8976  ;;  %v1386_v53 = vadd.f32 1e-05, %v1354_v45  ;;  %v1288_v62 = vmul.f32 0.03125, %v1220_v12  ;;  %v1217_v24 = vpop.xlane.xlu0 %1216  ;;  %v1514_v61 = vmul.f32 %v10098_v51, %v1477_v25  ;;  %v1450_v25 = vsub.f32 %v9883_v28, %v10151_v21 }
 0x29c   : > { %v8979_v31 = vpop.eup %8978  ;;  %v1385_v19 = vadd.f32 1e-05, %v1353_v49  ;;  %v1287_v59 = vmul.f32 0.03125, %v1217_v24  ;;  %v1476_v7 = vmul.f32 %v8977_v50, %v1444_v26  ;;  %v1552_v55 = vadd.f32 %v10111_v52, %v1515_v14 }
 0x29d   : > { %8980 = vrsqrt.f32 %v1386_v53  ;;  %v1352_v63 = vsub.f32 %v1288_v62, %v1320_v60  ;;  %v1475_v13 = vmul.f32 %v8979_v31, %v1443_v48  ;;  %v1551_v5 = vadd.f32 %v10111_v52, %v1514_v61 }
 0x29e   : > { %8982 = vrsqrt.f32 %v1385_v19  ;;  %v1351_v57 = vsub.f32 %v1287_v59, %v1319_v54  ;;  %v1077_v40 = vpop.xlane.xlu1 %1076  ;;  %v1513_v37 = vmul.f32 %v10098_v51, %v1476_v7  ;;  %v1449_v49 = vsub.f32 %v9890_v33, %v10153_v18 }
 0x29f   : > { %v1384_v29 = vadd.f32 1e-05, %v1352_v63  ;;  %v1074_v8 = vpop.xlane.xlu0 %1073  ;;  %v1512_v32 = vmul.f32 %v10098_v51, %v1475_v13  ;;  %v10185_v3 = vmul.f32 0.03125, %v1077_v40  ;;  %v1578_v45 = vpack.c.bf16 %v1552_v55, %v1551_v5 }
 0x2a0   : > { %v1383_v39 = vadd.f32 1e-05, %v1351_v57  ;;  %v1550_v34 = vadd.f32 %v10111_v52, %v1513_v37  ;;  %v10187_v23 = vmul.f32 0.03125, %v1074_v8  ;;  %v1448_v19 = vsub.f32 %v9904_v41, %v10158_v2 }
 0x2a1   : > { %8984 = vrsqrt.f32 %v1384_v29  ;;  %v1549_v44 = vadd.f32 %v10111_v52, %v1512_v32  ;;  %v1326_v12 = vmul.f32 %v10185_v3, %v10185_v3  ;;  %v1447_v33 = vsub.f32 %v9908_v43, %v10165_v4 }
 0x2a2   : > { %8986 = vrsqrt.f32 %v1383_v39  ;;  %v1071_v0 = vpop.xlane.xlu1 %1070  ;;  %v1325_v28 = vmul.f32 %v10187_v23, %v10187_v23 }
 0x2a3   : > { %v1068_v42 = vpop.xlane.xlu0 %1067  ;;  %v1577_v10 = vpack.c.bf16 %v1550_v34, %v1549_v44  ;;  %v10192_v26 = vmul.f32 0.03125, %v1071_v0 }
 0x2a4   : > { %v10199_v50 = vmul.f32 0.03125, %v1068_v42 }
 0x2a5   : > { %8463 = vmatprep.mubr.msk.bf16.mxu0 %vm497_vm0, %v1577_v10  ;;  %v1324_v18 = vmul.f32 %v10192_v26, %v10192_v26 }
 0x2a6   : > { %v1238_v48 = vpop.xlane.xlu1 %1237  ;;  %8464 = vmatmul.mubr.msk.bf16.gmra.mrb[56].mxu0 %vm497_vm0, %v1578_v45  ;;  %v1323_v63 = vmul.f32 %v10199_v50, %v10199_v50 }
 0x2a7   : > { %v8981_v60 = vpop.eup %8980  ;;  %v1294_v54 = vmul.f32 0.03125, %v1238_v48  ;;  %v1235_v53 = vpop.xlane.xlu0 %1234 }
 0x2a8   : > { %v8983_v62 = vpop.eup %8982  ;;  %v1293_v21 = vmul.f32 0.03125, %v1235_v53  ;;  %v1482_v24 = vmul.f32 %v8981_v60, %v1450_v25 }
 0x2a9   : > { %v1358_v14 = vsub.f32 %v1294_v54, %v1326_v12  ;;  %v1481_v31 = vmul.f32 %v8983_v62, %v1449_v49 }
 0x2aa   : > { %v1357_v59 = vsub.f32 %v1293_v21, %v1325_v28  ;;  %v1232_v7 = vpop.xlane.xlu1 %1231  ;;  %v1519_v37 = vmul.f32 %v10098_v51, %v1482_v24  ;;  %v1454_v28 = vsub.f32 %v9939_v16, %v10185_v3 }
 0x2ab   : > { %v8985_v61 = vpop.eup %8984  ;;  %v1390_v13 = vadd.f32 1e-05, %v1358_v14  ;;  %v1292_v57 = vmul.f32 0.03125, %v1232_v7  ;;  %v1229_v40 = vpop.xlane.xlu0 %1228  ;;  %v1518_v43 = vmul.f32 %v10098_v51, %v1481_v31  ;;  %v1453_v31 = vsub.f32 %v9943_v46, %v10187_v23 }
 0x2ac   : > { %v8987_v29 = vpop.eup %8986  ;;  %v1389_v8 = vadd.f32 1e-05, %v1357_v59  ;;  %v1291_v41 = vmul.f32 0.03125, %v1229_v40  ;;  %v1480_v2 = vmul.f32 %v8985_v61, %v1448_v19  ;;  %v1556_v25 = vadd.f32 %v10111_v52, %v1519_v37 }
 0x2ad   : > { %8988 = vrsqrt.f32 %v1390_v13  ;;  %v1356_v4 = vsub.f32 %v1292_v57, %v1324_v18  ;;  %v1479_v32 = vmul.f32 %v8987_v29, %v1447_v33  ;;  %v1555_v45 = vadd.f32 %v10111_v52, %v1518_v43 }
 0x2ae   : > { %8990 = vrsqrt.f32 %v1389_v8  ;;  %v1355_v39 = vsub.f32 %v1291_v41, %v1323_v63  ;;  %v1089_v34 = vpop.xlane.xlu1 %1088  ;;  %v1517_v5 = vmul.f32 %v10098_v51, %v1480_v2  ;;  %v1452_v57 = vsub.f32 %v9947_v20, %v10192_v26 }
 0x2af   : > { %v1388_v55 = vadd.f32 1e-05, %v1356_v4  ;;  %v1086_v44 = vpop.xlane.xlu0 %1085  ;;  %v1516_v0 = vmul.f32 %v10098_v51, %v1479_v32  ;;  %v10219_v49 = vmul.f32 0.03125, %v1089_v34  ;;  %v1580_v62 = vpack.c.bf16 %v1556_v25, %v1555_v45 }
 0x2b0   : > { %v1387_v42 = vadd.f32 1e-05, %v1355_v39  ;;  %v1554_v10 = vadd.f32 %v10111_v52, %v1517_v5  ;;  %v10221_v53 = vmul.f32 0.03125, %v1086_v44  ;;  %v1451_v46 = vsub.f32 %v9952_v22, %v10199_v50 }
 0x2b1   : > { %8992 = vrsqrt.f32 %v1388_v55  ;;  %v1553_v48 = vadd.f32 %v10111_v52, %v1516_v0  ;;  %v1330_v19 = vmul.f32 %v10219_v49, %v10219_v49 }
 0x2b2   : > { %8994 = vrsqrt.f32 %v1387_v42  ;;  %v1083_v60 = vpop.xlane.xlu1 %1082  ;;  %v1329_v16 = vmul.f32 %v10221_v53, %v10221_v53 }
 0x2b3   : > { %v1080_v12 = vpop.xlane.xlu0 %1079  ;;  %v1579_v54 = vpack.c.bf16 %v1554_v10, %v1553_v48  ;;  %v10226_v21 = vmul.f32 0.03125, %v1083_v60 }
 0x2b4   : > { %v10233_v33 = vmul.f32 0.03125, %v1080_v12 }
 0x2b5   : > { %8467 = vmatprep.mubr.msk.bf16.mxu0 %vm497_vm0, %v1579_v54  ;;  %v1328_v23 = vmul.f32 %v10226_v21, %v10226_v21 }
 0x2b6   : > { %v1250_v24 = vpop.xlane.xlu1 %1249  ;;  %8468 = vmatmul.mubr.msk.bf16.gmra.mrb[60].mxu0 %vm497_vm0, %v1580_v62  ;;  %v1327_v8 = vmul.f32 %v10233_v33, %v10233_v33 }
 0x2b7   : > { %v8989_v14 = vpop.eup %8988  ;;  %v1298_v18 = vmul.f32 0.03125, %v1250_v24  ;;  %v1247_v59 = vpop.xlane.xlu0 %1246 }
 0x2b8   : > { %v8991_v7 = vpop.eup %8990  ;;  %v1297_v3 = vmul.f32 0.03125, %v1247_v59  ;;  %v1486_v61 = vmul.f32 %v8989_v14, %v1454_v28 }
 0x2b9   : > { %v1362_v63 = vsub.f32 %v1298_v18, %v1330_v19  ;;  %v1485_v13 = vmul.f32 %v8991_v7, %v1453_v31  ;;  %v1458_v19 = vsub.f32 %v9971_v35, %v10219_v49 }
 0x2ba   : > { %v1361_v40 = vsub.f32 %v1297_v3, %v1329_v16  ;;  %v1244_v37 = vpop.xlane.xlu1 %1243  ;;  %v1523_v4 = vmul.f32 %v10098_v51, %v1486_v61  ;;  %v1457_v16 = vsub.f32 %v9975_v38, %v10221_v53  ;;  %v1455_v38 = vsub.f32 %v9984_v47, %v10233_v33 }
 0x2bb   : > { %v8993_v29 = vpop.eup %8992  ;;  %v1394_v41 = vadd.f32 1e-05, %v1362_v63  ;;  %v1296_v2 = vmul.f32 0.03125, %v1244_v37  ;;  %v1241_v43 = vpop.xlane.xlu0 %1240  ;;  %v1522_v22 = vmul.f32 %v10098_v51, %v1485_v13  ;;  %v1456_v37 = vsub.f32 %v9979_v30, %v10226_v21 }
 0x2bc   : > { %v8995_v32 = vpop.eup %8994  ;;  %v1393_v39 = vadd.f32 1e-05, %v1361_v40  ;;  %v1295_v20 = vmul.f32 0.03125, %v1241_v43  ;;  %v1484_v26 = vmul.f32 %v8993_v29, %v1452_v57  ;;  %v1560_v60 = vadd.f32 %v10111_v52, %v1523_v4 }
 0x2bd   : > { %8996 = vrsqrt.f32 %v1394_v41  ;;  %v1360_v50 = vsub.f32 %v1296_v2, %v1328_v23  ;;  %v1483_v34 = vmul.f32 %v8995_v32, %v1451_v46  ;;  %v1559_v48 = vadd.f32 %v10111_v52, %v1522_v22 }
 0x2be   : > { %8998 = vrsqrt.f32 %v1393_v39  ;;  %v1359_v5 = vsub.f32 %v1295_v20, %v1327_v8  ;;  %v1101_v55 = vpop.xlane.xlu1 %1100  ;;  %v1521_v44 = vmul.f32 %v10098_v51, %v1484_v26 }
 0x2bf   : > { %v1392_v0 = vadd.f32 1e-05, %v1360_v50  ;;  %v1098_v42 = vpop.xlane.xlu0 %1097  ;;  %v1520_v10 = vmul.f32 %v10098_v51, %v1483_v34  ;;  %v10253_v62 = vmul.f32 0.03125, %v1101_v55  ;;  %v1582_v31 = vpack.c.bf16 %v1560_v60, %v1559_v48 }
 0x2c0   : > { %v1391_v45 = vadd.f32 1e-05, %v1359_v5  ;;  %v1558_v25 = vadd.f32 %v10111_v52, %v1521_v44  ;;  %v10255_v14 = vmul.f32 0.03125, %v1098_v42 }
 0x2c1   : > { %9000 = vrsqrt.f32 %v1392_v0  ;;  %v1557_v12 = vadd.f32 %v10111_v52, %v1520_v10  ;;  %v1334_v3 = vmul.f32 %v10253_v62, %v10253_v62 }
 0x2c2   : > { %9002 = vrsqrt.f32 %v1391_v45  ;;  %v1095_v54 = vpop.xlane.xlu1 %1094  ;;  %v1333_v35 = vmul.f32 %v10255_v14, %v10255_v14 }
 0x2c3   : > { %v1092_v28 = vpop.xlane.xlu0 %1091  ;;  %v1581_v24 = vpack.c.bf16 %v1558_v25, %v1557_v12  ;;  %v10260_v18 = vmul.f32 0.03125, %v1095_v54 }
 0x2c4   : > { %v10267_v61 = vmul.f32 0.03125, %v1092_v28 }
 0x2c5   : > { %8471 = vmatprep.mubr.msk.bf16.mxu0 %vm497_vm0, %v1581_v24  ;;  %v1332_v53 = vmul.f32 %v10260_v18, %v10260_v18 }
 0x2c6   : > { %v1262_v59 = vpop.xlane.xlu1 %1261  ;;  %8472 = vmatmul.mubr.msk.bf16.gmra.mrb[64].mxu0 %vm497_vm0, %v1582_v31  ;;  %v1331_v2 = vmul.f32 %v10267_v61, %v10267_v61 }
 0x2c7   : > { %v8997_v7 = vpop.eup %8996  ;;  %v1302_v63 = vmul.f32 0.03125, %v1262_v59  ;;  %v1259_v13 = vpop.xlane.xlu0 %1258 }
 0x2c8   : > { %v8999_v57 = vpop.eup %8998  ;;  %v1301_v49 = vmul.f32 0.03125, %v1259_v13  ;;  %v1490_v46 = vmul.f32 %v8997_v7, %v1458_v19  ;;  %v1462_v19 = vsub.f32 %v10003_v1, %v10253_v62  ;;  %v1460_v1 = vsub.f32 %v10011_v11, %v10260_v18 }
 0x2c9   : > { %v1366_v23 = vsub.f32 %v1302_v63, %v1334_v3  ;;  %v1489_v40 = vmul.f32 %v8999_v57, %v1457_v16  ;;  %v1461_v3 = vsub.f32 %v10007_v6, %v10255_v14  ;;  %v1459_v62 = vsub.f32 %v10016_v17, %v10267_v61 }
 0x2ca   : > { %v1365_v29 = vsub.f32 %v1301_v49, %v1333_v35  ;;  %v1256_v8 = vpop.xlane.xlu1 %1255  ;;  %v1527_v39 = vmul.f32 %v10098_v51, %v1490_v46 }
 0x2cb   : > { %v9001_v41 = vpop.eup %9000  ;;  %v1398_v43 = vadd.f32 1e-05, %v1366_v23  ;;  %v1300_v4 = vmul.f32 0.03125, %v1256_v8  ;;  %v1253_v32 = vpop.xlane.xlu0 %1252  ;;  %v1526_v47 = vmul.f32 %v10098_v51, %v1489_v40 }
 0x2cc   : > { %v9003_v20 = vpop.eup %9002  ;;  %v1397_v26 = vadd.f32 1e-05, %v1365_v29  ;;  %v1299_v30 = vmul.f32 0.03125, %v1253_v32  ;;  %v1488_v21 = vmul.f32 %v9001_v41, %v1456_v37  ;;  %v1564_v25 = vadd.f32 %v10111_v52, %v1527_v39 }
 0x2cd   : > { %9004 = vrsqrt.f32 %v1398_v43  ;;  %v1364_v33 = vsub.f32 %v1300_v4, %v1332_v53  ;;  %v1487_v22 = vmul.f32 %v9003_v20, %v1455_v38  ;;  %v1563_v45 = vadd.f32 %v10111_v52, %v1526_v47 }
 0x2ce   : > { %9006 = vrsqrt.f32 %v1397_v26  ;;  %v1363_v50 = vsub.f32 %v1299_v30, %v1331_v2  ;;  %v1113_v34 = vpop.xlane.xlu1 %1112  ;;  %v1525_v5 = vmul.f32 %v10098_v51, %v1488_v21 }
 0x2cf   : > { %v1396_v55 = vadd.f32 1e-05, %v1364_v33  ;;  %v1110_v44 = vpop.xlane.xlu0 %1109  ;;  %v1524_v0 = vmul.f32 %v10098_v51, %v1487_v22  ;;  %v1584_v31 = vpack.c.bf16 %v1564_v25, %v1563_v45  ;;  %v10290_v59 = vmul.f32 0.03125, %v1113_v34 }
 0x2d0   : > { %v1395_v42 = vadd.f32 1e-05, %v1363_v50  ;;  %v1562_v10 = vadd.f32 %v10111_v52, %v1525_v5  ;;  %v1145_v63 = vmul.f32 0.03125, %v1110_v44 }
 0x2d1   : > { %9008 = vrsqrt.f32 %v1396_v55  ;;  %v1561_v48 = vadd.f32 %v10111_v52, %v1524_v0  ;;  %v1338_v53 = vmul.f32 %v10290_v59, %v10290_v59 }
 0x2d2   : > { %9010 = vrsqrt.f32 %v1395_v42  ;;  %v1107_v60 = vpop.xlane.xlu1 %1106  ;;  %v1337_v8 = vmul.f32 %v1145_v63, %v1145_v63 }
 0x2d3   : > { %v1144_v12 = vmul.f32 0.03125, %v1107_v60  ;;  %v1104_v54 = vpop.xlane.xlu0 %1103  ;;  %v1583_v28 = vpack.c.bf16 %v1562_v10, %v1561_v48  ;;  %v1466_v60 = vsub.f32 %v10035_v58, %v10290_v59 }
 0x2d4   : > { %v1143_v24 = vmul.f32 0.03125, %v1104_v54 }
 0x2d5   : > { %8475 = vmatprep.mubr.msk.bf16.mxu0 %vm497_vm0, %v1583_v28  ;;  %v1336_v13 = vmul.f32 %v1144_v12, %v1144_v12  ;;  %v1464_v0 = vsub.f32 %v10043_v27, %v1144_v12 }
 0x2d6   : > { %v1268_v7 = vpop.xlane.xlu1 %1267  ;;  %8476 = vmatmul.mubr.msk.bf16.gmra.mrb[68].mxu0 %vm497_vm0, %v1584_v31  ;;  %v1335_v46 = vmul.f32 %v1143_v24, %v1143_v24  ;;  %v1463_v10 = vsub.f32 %v10048_v36, %v1143_v24  ;;  %v1465_v31 = vsub.f32 %v10039_v56, %v1145_v63  ;;  %v8928_v63 = vld [vmem:[%s15256_s3 + $0x40] sm:$0xff]  }
 0x2d7   : > { %v9005_v16 = vpop.eup %9004  ;;  %v1304_v57 = vmul.f32 0.03125, %v1268_v7  ;;  %v1265_v35 = vpop.xlane.xlu0 %1264  ;;  %8559 = vmatprep.subr.bf16.mxu1 %v8928_v63 }
 0x2d8   : > { %v9007_v49 = vpop.eup %9006  ;;  %v1303_v23 = vmul.f32 0.03125, %v1265_v35  ;;  %v1494_v40 = vmul.f32 %v9005_v16, %v1462_v19 }
 0x2d9   : > { %v1368_v37 = vsub.f32 %v1304_v57, %v1336_v13  ;;  %v1493_v38 = vmul.f32 %v9007_v49, %v1461_v3  ;;  %v10332_v57 = vld [vmem:[%s15257_s4 + $0x4] ss:$0 sm:$0xff] }
 0x2da   : > { %v1367_v6 = vsub.f32 %v1303_v23, %v1335_v46  ;;  %v1274_v14 = vpop.xlane.xlu1 %1273  ;;  %v1531_v4 = vmul.f32 %v10098_v51, %v1494_v40 }
 0x2db   : > { %v9009_v29 = vpop.eup %9008  ;;  %v1400_v41 = vadd.f32 1e-05, %v1368_v37  ;;  %v1306_v2 = vmul.f32 0.03125, %v1274_v14  ;;  %v1271_v43 = vpop.xlane.xlu0 %1270  ;;  %v1530_v11 = vmul.f32 %v10098_v51, %v1493_v38 }
 0x2dc   : > { %v9011_v32 = vpop.eup %9010  ;;  %v1399_v39 = vadd.f32 1e-05, %v1367_v6  ;;  %v1305_v20 = vmul.f32 0.03125, %v1271_v43  ;;  %v1492_v26 = vmul.f32 %v9009_v29, %v1460_v1  ;;  %v1568_v34 = vadd.f32 %v10111_v52, %v1531_v4  ;;  %v8929_v29 = vld [vmem:[%s15256_s3 + $0x48] sm:$0xff]  }
 0x2dd   : > { %9012 = vrsqrt.f32 %v1400_v41  ;;  %v1370_v17 = vsub.f32 %v1306_v2, %v1338_v53  ;;  %v1491_v18 = vmul.f32 %v9011_v32, %v1459_v62  ;;  %v1567_v50 = vadd.f32 %v10111_v52, %v1530_v11 }
 0x2de   : > { %9014 = vrsqrt.f32 %v1399_v39  ;;  %v1369_v61 = vsub.f32 %v1305_v20, %v1337_v8  ;;  %v1529_v30 = vmul.f32 %v10098_v51, %v1492_v26 }
 0x2df   : > { %v1402_v21 = vadd.f32 1e-05, %v1370_v17  ;;  %v1528_v47 = vmul.f32 %v10098_v51, %v1491_v18  ;;  %v1586_v44 = vpack.c.bf16 %v1568_v34, %v1567_v50 }
 0x2e0   : > { %v1401_v33 = vadd.f32 1e-05, %v1369_v61  ;;  %v1566_v22 = vadd.f32 %v10111_v52, %v1529_v30 }
 0x2e1   : > { %9016 = vrsqrt.f32 %v1402_v21  ;;  %v1565_v5 = vadd.f32 %v10111_v52, %v1528_v47 }
 0x2e2   : > { %9018 = vrsqrt.f32 %v1401_v33 }
 0x2e3   : > { %v1585_v55 = vpack.c.bf16 %v1566_v22, %v1565_v5 }
 0x2e5   : > { %8479 = vmatprep.mubr.msk.bf16.mxu0 %vm497_vm0, %v1585_v55 }
 0x2e6   : > { %8480 = vmatmul.mubr.msk.bf16.gmra.mrb[72].mxu0 %vm497_vm0, %v1586_v44 }
 0x2e7   : > { %v9013_v42 = vpop.eup %9012 }
 0x2e8   : > { %v9015_v45 = vpop.eup %9014  ;;  %v1496_v25 = vmul.f32 %v9013_v42, %v1464_v0 }
 0x2e9   : > { %v1495_v48 = vmul.f32 %v9015_v45, %v1463_v10 }
 0x2ea   : > { %v1533_v54 = vmul.f32 %v10098_v51, %v1496_v25 }
 0x2eb   : > { %v9017_v28 = vpop.eup %9016  ;;  %v1532_v19 = vmul.f32 %v10098_v51, %v1495_v48 }
 0x2ec   : > { %v9019_v7 = vpop.eup %9018  ;;  %v1570_v27 = vadd.f32 %v10111_v52, %v1533_v54  ;;  %v1498_v12 = vmul.f32 %v9017_v28, %v1466_v60 }
 0x2ed   : > { %v1569_v16 = vadd.f32 %v10111_v52, %v1532_v19  ;;  %v1497_v36 = vmul.f32 %v9019_v7, %v1465_v31 }
 0x2ee   : > { %v1535_v24 = vmul.f32 %v10098_v51, %v1498_v12 }
 0x2ef   : > { %v1587_v3 = vpack.c.bf16 %v1570_v27, %v1569_v16  ;;  %v1534_v13 = vmul.f32 %v10098_v51, %v1497_v36 }
 0x2f0   : > { %v1572_v58 = vadd.f32 %v10111_v52, %v1535_v24 }
 0x2f1   : > { %8483 = vmatprep.mubr.msk.bf16.mxu0 %vm497_vm0, %v1587_v3  ;;  %v1571_v56 = vadd.f32 %v10111_v52, %v1534_v13 }
 0x2f3   : > { %v1588_v59 = vpack.c.bf16 %v1572_v58, %v1571_v56 }
 0x2f5   : > { %8484 = vmatmul.mubr.msk.bf16.gmra.mrb[76].mxu0 %vm497_vm0, %v1588_v59 }
 0x359   : > { %v8457_v51 = vpop.f32.mrb[48].mxu0 }
 0x35a   : > { %v1702_v35 = vadd.f32 %v8457_v51, %v10332_v57  ;;  %v1693_v49 = vpop.f32.mrb[49].mxu0 }
 0x35b   : > { %v1694_v46 = vadd.f32 %v10332_v57, %v1693_v49  ;;  %v8458_v52 = vpop.f32.mrb[50].mxu0 }
 0x35c   : > { %v1705_v23 = vadd.f32 %v8458_v52, %v10332_v57  ;;  %v1696_v40 = vpop.f32.mrb[51].mxu0  ;;  %v1822_v38 = vmax.f32 %v1702_v35, 0.0 }
 0x35d   : > { %v1697_v37 = vadd.f32 %v10332_v57, %v1696_v40  ;;  %v1820_v62 = vmax.f32 %v1694_v46, 0.0 }
 0x35e   : > { %v1823_v1 = vmax.f32 %v1705_v23, 0.0 }
 0x35f   : > { %v1821_v53 = vmax.f32 %v1697_v37, 0.0 }
 0x360   : > { %v1853_v6 = vpack.c.bf16 %v1823_v1, %v1822_v38 }
 0x361   : > { %v1852_v14 = vpack.c.bf16 %v1821_v53, %v1820_v62 }
 0x363   : > { %8491 = vmatprep.mubr.msk.bf16.mxu1 %vm497_vm0, %v1852_v14 }
 0x364   : > { %8492 = vmatmul.mubr.msk.bf16.vlgmr.msra.gmra.mrb[16].mxu1 %vm497_vm0, %v1853_v6 }
 0x365   : > { %8560 = vmatpush3.bf16.msra.mxu1 %v8928_v63 }
 0x366   : > { %8561 = vmatprep.subr.bf16.mxu1 %v8929_v29 }
 0x369   : > { %v8461_v8 = vpop.f32.mrb[52].mxu0  ;;  %8562 = vmatpush3.bf16.msra.mxu1 %v8929_v29 }
 0x36a   : > { %v1718_v41 = vadd.f32 %v8461_v8, %v10332_v57  ;;  %v1709_v2 = vpop.f32.mrb[53].mxu0 }
 0x36b   : > { %v1710_v43 = vadd.f32 %v10332_v57, %v1709_v2  ;;  %v8462_v4 = vpop.f32.mrb[54].mxu0 }
 0x36c   : > { %v1721_v32 = vadd.f32 %v8462_v4, %v10332_v57  ;;  %v1712_v39 = vpop.f32.mrb[55].mxu0  ;;  %v1826_v26 = vmax.f32 %v1718_v41, 0.0 }
 0x36d   : > { %v1713_v20 = vadd.f32 %v10332_v57, %v1712_v39  ;;  %v1824_v17 = vmax.f32 %v1710_v43, 0.0 }
 0x36e   : > { %v1827_v11 = vmax.f32 %v1721_v32, 0.0 }
 0x36f   : > { %v1825_v18 = vmax.f32 %v1713_v20, 0.0 }
 0x370   : > { %v1855_v61 = vpack.c.bf16 %v1827_v11, %v1826_v26 }
 0x371   : > { %v1854_v30 = vpack.c.bf16 %v1825_v18, %v1824_v17 }
 0x373   : > { %8495 = vmatprep.mubr.msk.bf16.mxu1 %vm497_vm0, %v1854_v30 }
 0x374   : > { %8496 = vmatmul.mubr.msk.bf16.gmra.mrb[20].mxu1 %vm497_vm0, %v1855_v61 }
 0x379   : > { %v8465_v21 = vpop.f32.mrb[56].mxu0 }
 0x37a   : > { %v1734_v47 = vadd.f32 %v8465_v21, %v10332_v57  ;;  %v1725_v33 = vpop.f32.mrb[57].mxu0 }
 0x37b   : > { %v1726_v22 = vadd.f32 %v10332_v57, %v1725_v33  ;;  %v8466_v50 = vpop.f32.mrb[58].mxu0 }
 0x37c   : > { %v1737_v34 = vadd.f32 %v8466_v50, %v10332_v57  ;;  %v1728_v5 = vpop.f32.mrb[59].mxu0  ;;  %v1830_v44 = vmax.f32 %v1734_v47, 0.0 }
 0x37d   : > { %v1729_v55 = vadd.f32 %v10332_v57, %v1728_v5  ;;  %v1828_v42 = vmax.f32 %v1726_v22, 0.0 }
 0x37e   : > { %v1831_v0 = vmax.f32 %v1737_v34, 0.0 }
 0x37f   : > { %v1829_v10 = vmax.f32 %v1729_v55, 0.0 }
 0x380   : > { %v1857_v45 = vpack.c.bf16 %v1831_v0, %v1830_v44 }
 0x381   : > { %v1856_v25 = vpack.c.bf16 %v1829_v10, %v1828_v42 }
 0x383   : > { %8499 = vmatprep.mubr.msk.bf16.mxu1 %vm497_vm0, %v1856_v25 }
 0x384   : > { %8500 = vmatmul.mubr.msk.bf16.gmra.mrb[24].mxu1 %vm497_vm0, %v1857_v45 }
 0x389   : > { %v8469_v48 = vpop.f32.mrb[60].mxu0 }
 0x38a   : > { %v1750_v60 = vadd.f32 %v8469_v48, %v10332_v57  ;;  %v1741_v54 = vpop.f32.mrb[61].mxu0 }
 0x38b   : > { %v1742_v28 = vadd.f32 %v10332_v57, %v1741_v54  ;;  %v8470_v31 = vpop.f32.mrb[62].mxu0 }
 0x38c   : > { %v1753_v19 = vadd.f32 %v8470_v31, %v10332_v57  ;;  %v1744_v7 = vpop.f32.mrb[63].mxu0  ;;  %v1834_v12 = vmax.f32 %v1750_v60, 0.0 }
 0x38d   : > { %v1745_v27 = vadd.f32 %v10332_v57, %v1744_v7  ;;  %v1832_v36 = vmax.f32 %v1742_v28, 0.0 }
 0x38e   : > { %v1835_v16 = vmax.f32 %v1753_v19, 0.0 }
 0x38f   : > { %v1833_v24 = vmax.f32 %v1745_v27, 0.0 }
 0x390   : > { %v1859_v3 = vpack.c.bf16 %v1835_v16, %v1834_v12  ;;  %v9468_v16 = vld [vmem:[%s9606_s11 + $0x10] sm:$0xf] }
 0x391   : > { %v1858_v13 = vpack.c.bf16 %v1833_v24, %v1832_v36  ;;  %v9470_v24 = vld [vmem:[%s9606_s11 + $0x18] sm:$0xf] }
 0x393   : > { %8503 = vmatprep.mubr.msk.bf16.mxu1 %vm497_vm0, %v1858_v13 }
 0x394   : > { %8504 = vmatmul.mubr.msk.bf16.gmra.mrb[28].mxu1 %vm497_vm0, %v1859_v3  ;;  %v9471_v3 = vld [vmem:[%s9606_s11 + $0x1c] sm:$0xf] }
 0x395   : > { %v10397_v13 = vcombine.low %v9470_v24, %v9471_v3 }
 0x397   : > { %15428 = vst [vmem:[#allocation5_spill] sm:$0xff] %v10397_v13 }
 0x399   : > { %v8473_v58 = vpop.f32.mrb[64].mxu0 }
 0x39a   : > { %v1766_v56 = vadd.f32 %v8473_v58, %v10332_v57  ;;  %v1757_v59 = vpop.f32.mrb[65].mxu0  ;;  %v9472_v58 = vld [vmem:[%s9606_s11 + $0x20] sm:$0xf] }
 0x39b   : > { %v1758_v63 = vadd.f32 %v10332_v57, %v1757_v59  ;;  %v8474_v51 = vpop.f32.mrb[66].mxu0 }
 0x39c   : > { %v1769_v35 = vadd.f32 %v8474_v51, %v10332_v57  ;;  %v1760_v49 = vpop.f32.mrb[67].mxu0  ;;  %v1838_v52 = vmax.f32 %v1766_v56, 0.0  ;;  %v9473_v56 = vld [vmem:[%s9606_s11 + $0x24] sm:$0xf]  ;;  %v9475_v51 = vld [vmem:[%s9606_s11 + $0x2c] sm:$0xf] }
 0x39d   : > { %v1761_v46 = vadd.f32 %v10332_v57, %v1760_v49  ;;  %v1836_v40 = vmax.f32 %v1758_v63, 0.0  ;;  %v10401_v59 = vcombine.low %v9472_v58, %v9473_v56  ;;  %v9474_v63 = vld [vmem:[%s9606_s11 + $0x28] sm:$0xf]  ;;  %v9476_v49 = vld [vmem:[%s9606_s11 + $0x30] sm:$0xf] }
 0x39e   : > { %v1839_v23 = vmax.f32 %v1769_v35, 0.0  ;;  %v10409_v35 = vcombine.low %v9474_v63, %v9475_v51 }
 0x39f   : > { %v1837_v37 = vmax.f32 %v1761_v46, 0.0  ;;  %15429 = vst [vmem:[#allocation6_spill] sm:$0xff] %v10401_v59  ;;  %v9477_v46 = vld [vmem:[%s9606_s11 + $0x34] sm:$0xf] }
 0x3a0   : > { %v1861_v38 = vpack.c.bf16 %v1839_v23, %v1838_v52  ;;  %15430 = vst [vmem:[#allocation7_spill] sm:$0xff] %v10409_v35  ;;  %v10413_v52 = vcombine.low %v9476_v49, %v9477_v46  ;;  %v9478_v23 = vld [vmem:[%s9606_s11 + $0x38] sm:$0xf] }
 0x3a1   : > { %v1860_v1 = vpack.c.bf16 %v1837_v37, %v1836_v40  ;;  %v9479_v40 = vld [vmem:[%s9606_s11 + $0x3c] sm:$0xf] }
 0x3a2   : > { %15431 = vst [vmem:[#allocation8_spill] sm:$0xff] %v10413_v52  ;;  %v10421_v37 = vcombine.low %v9478_v23, %v9479_v40 }
 0x3a3   : > { %8507 = vmatprep.mubr.msk.bf16.mxu1 %vm497_vm0, %v1860_v1  ;;  %v9481_v1 = vld [vmem:[%s9606_s11 + $0x44] sm:$0xf] }
 0x3a4   : > { %8508 = vmatmul.mubr.msk.bf16.gmra.mrb[32].mxu1 %vm497_vm0, %v1861_v38  ;;  %15432 = vst [vmem:[#allocation9_spill] sm:$0xff] %v10421_v37  ;;  %v9480_v38 = vld [vmem:[%s9606_s11 + $0x40] sm:$0xf] }
 0x3a9   : > { %v8477_v62 = vpop.f32.mrb[68].mxu0 }
 0x3aa   : > { %v1782_v53 = vadd.f32 %v8477_v62, %v10332_v57  ;;  %v1773_v6 = vpop.f32.mrb[69].mxu0  ;;  %v10425_v62 = vcombine.low %v9480_v38, %v9481_v1 }
 0x3ab   : > { %v1774_v14 = vadd.f32 %v10332_v57, %v1773_v6  ;;  %v8478_v29 = vpop.f32.mrb[70].mxu0  ;;  %v9483_v6 = vld [vmem:[%s9606_s11 + $0x4c] sm:$0xf] }
 0x3ac   : > { %v1785_v8 = vadd.f32 %v8478_v29, %v10332_v57  ;;  %v1776_v41 = vpop.f32.mrb[71].mxu0  ;;  %v1842_v43 = vmax.f32 %v1782_v53, 0.0  ;;  %15433 = vst [vmem:[#allocation10_spill] sm:$0xff] %v10425_v62  ;;  %v9482_v53 = vld [vmem:[%s9606_s11 + $0x48] sm:$0xf] }
 0x3ad   : > { %v1777_v2 = vadd.f32 %v10332_v57, %v1776_v41  ;;  %v1840_v32 = vmax.f32 %v1774_v14, 0.0  ;;  %v10433_v14 = vcombine.low %v9482_v53, %v9483_v6  ;;  %v9484_v29 = vld [vmem:[%s9606_s11 + $0x50] sm:$0xf] }
 0x3ae   : > { %v1843_v4 = vmax.f32 %v1785_v8, 0.0  ;;  %v9485_v8 = vld [vmem:[%s9606_s11 + $0x54] sm:$0xf] }
 0x3af   : > { %v1841_v39 = vmax.f32 %v1777_v2, 0.0  ;;  %15434 = vst [vmem:[#allocation11_spill] sm:$0xff] %v10433_v14  ;;  %v10437_v41 = vcombine.low %v9484_v29, %v9485_v8  ;;  %v9486_v2 = vld [vmem:[%s9606_s11 + $0x58] sm:$0xf] }
 0x3b0   : > { %v1863_v20 = vpack.c.bf16 %v1843_v4, %v1842_v43  ;;  %v9487_v43 = vld [vmem:[%s9606_s11 + $0x5c] sm:$0xf] }
 0x3b1   : > { %v1862_v26 = vpack.c.bf16 %v1841_v39, %v1840_v32  ;;  %15435 = vst [vmem:[#allocation12_spill] sm:$0xff] %v10437_v41  ;;  %v10445_v4 = vcombine.low %v9486_v2, %v9487_v43  ;;  %v9488_v32 = vld [vmem:[%s9606_s11 + $0x60] sm:$0xf]  ;;  %v9489_v39 = vld [vmem:[%s9606_s11 + $0x64] sm:$0xf] }
 0x3b3   : > { %8511 = vmatprep.mubr.msk.bf16.mxu1 %vm497_vm0, %v1862_v26  ;;  %15436 = vst [vmem:[#allocation13_spill] sm:$0xff] %v10445_v4  ;;  %v9490_v26 = vld [vmem:[%s9606_s11 + $0x68] sm:$0xf] }
 0x3b4   : > { %8512 = vmatmul.mubr.msk.bf16.gmra.mrb[36].mxu1 %vm497_vm0, %v1863_v20  ;;  %v10449_v20 = vcombine.low %v9488_v32, %v9489_v39 }
 0x3b6   : > { %15437 = vst [vmem:[#allocation14_spill] sm:$0xff] %v10449_v20 }
 0x3b9   : > { %v8481_v11 = vpop.f32.mrb[72].mxu0 }
 0x3ba   : > { %v1798_v17 = vadd.f32 %v8481_v11, %v10332_v57  ;;  %v1789_v18 = vpop.f32.mrb[73].mxu0  ;;  %v9491_v11 = vld [vmem:[%s9606_s11 + $0x6c] sm:$0xf] }
 0x3bb   : > { %v1790_v61 = vadd.f32 %v10332_v57, %v1789_v18  ;;  %v8482_v30 = vpop.f32.mrb[74].mxu0  ;;  %v9492_v18 = vld [vmem:[%s9606_s11 + $0x70] sm:$0xf] }
 0x3bc   : > { %v1801_v21 = vadd.f32 %v8482_v30, %v10332_v57  ;;  %v1792_v47 = vpop.f32.mrb[75].mxu0  ;;  %v1846_v22 = vmax.f32 %v1798_v17, 0.0  ;;  %v10457_v17 = vcombine.low %v9490_v26, %v9491_v11 }
 0x3bd   : > { %v1793_v33 = vadd.f32 %v10332_v57, %v1792_v47  ;;  %v1844_v34 = vmax.f32 %v1790_v61, 0.0  ;;  %v9493_v61 = vld [vmem:[%s9606_s11 + $0x74] sm:$0xf]  ;;  %v9495_v47 = vld [vmem:[%s9606_s11 + $0x7c] sm:$0xf] }
 0x3be   : > { %v1847_v50 = vmax.f32 %v1801_v21, 0.0  ;;  %15438 = vst [vmem:[#allocation15_spill] sm:$0xff] %v10457_v17  ;;  %v10461_v30 = vcombine.low %v9492_v18, %v9493_v61  ;;  %v9494_v21 = vld [vmem:[%s9606_s11 + $0x78] sm:$0xf] }
 0x3bf   : > { %v1845_v5 = vmax.f32 %v1793_v33, 0.0  ;;  %v10469_v33 = vcombine.low %v9494_v21, %v9495_v47 }
 0x3c0   : > { %v1865_v55 = vpack.c.bf16 %v1847_v50, %v1846_v22  ;;  %15439 = vst [vmem:[#allocation16_spill] sm:$0xff] %v10461_v30  ;;  %v10476_v22 = vld [vmem:[%s15257_s4 + $0x5] ss:$0 sm:$0xff] }
 0x3c1   : > { %v1864_v44 = vpack.c.bf16 %v1845_v5, %v1844_v34  ;;  %15440 = vst [vmem:[#allocation17_spill] sm:$0xff] %v10469_v33 }
 0x3c3   : > { %8515 = vmatprep.mubr.msk.bf16.mxu1 %vm497_vm0, %v1864_v44 }
 0x3c4   : > { %8516 = vmatmul.mubr.msk.bf16.gmra.mrb[40].mxu1 %vm497_vm0, %v1865_v55 }
 0x3c8   : > { %v8485_v0 = vpop.f32.mrb[76].mxu0 }
 0x3c9   : > { %v1814_v42 = vadd.f32 %v8485_v0, %v10332_v57  ;;  %v1805_v10 = vpop.f32.mrb[77].mxu0 }
 0x3ca   : > { %v1806_v45 = vadd.f32 %v10332_v57, %v1805_v10  ;;  %v8486_v25 = vpop.f32.mrb[78].mxu0 }
 0x3cb   : > { %v1817_v48 = vadd.f32 %v8486_v25, %v10332_v57  ;;  %v1808_v60 = vpop.f32.mrb[79].mxu0  ;;  %v1850_v28 = vmax.f32 %v1814_v42, 0.0 }
 0x3cc   : > { %v1809_v54 = vadd.f32 %v10332_v57, %v1808_v60  ;;  %v1848_v19 = vmax.f32 %v1806_v45, 0.0  ;;  %v9469_v57 = vld [vmem:[%s9606_s11 + $0x14] sm:$0xf] }
 0x3cd   : > { %v1851_v31 = vmax.f32 %v1817_v48, 0.0  ;;  %v10389_v36 = vcombine.low %v9468_v16, %v9469_v57 }
 0x3ce   : > { %v1849_v7 = vmax.f32 %v1809_v54, 0.0 }
 0x3cf   : > { %v1867_v27 = vpack.c.bf16 %v1851_v31, %v1850_v28  ;;  %15427 = vst [vmem:[#allocation4_spill] sm:$0xff] %v10389_v36 }
 0x3d0   : > { %v1866_v12 = vpack.c.bf16 %v1849_v7, %v1848_v19 }
 0x3d2   : > { %8519 = vmatprep.mubr.msk.bf16.mxu1 %vm497_vm0, %v1866_v12 }
 0x3d3   : > { %8520 = vmatmul.mubr.msk.bf16.gmra.mrb[44].mxu1 %vm497_vm0, %v1867_v27 }
 0x3d4   : > { %8563 = vmatprep.mubr.msk.bf16.mxu1 %vm497_vm0, %v9617_v9 }
 0x3db   : > { %8564 = vmatmul.mubr.msk.bf16.vlgmr.msra.gmra.mrb[48].mxu1 %vm497_vm0, %v9623_v15 }
 0x3dc   : > { %8567 = vmatprep.mubr.msk.bf16.mxu1 %vm497_vm0, %v10389_v36 }
 0x3e3   : > { %8568 = vmatmul.mubr.msk.bf16.gmra.mrb[52].mxu1 %vm497_vm0, %v10397_v13 }
 0x3e4   : > { %8571 = vmatprep.mubr.msk.bf16.mxu1 %vm497_vm0, %v10401_v59 }
 0x3eb   : > { %8572 = vmatmul.mubr.msk.bf16.gmra.mrb[56].mxu1 %vm497_vm0, %v10409_v35 }
 0x3ec   : > { %8575 = vmatprep.mubr.msk.bf16.mxu1 %vm497_vm0, %v10413_v52 }
 0x3f3   : > { %8576 = vmatmul.mubr.msk.bf16.gmra.mrb[60].mxu1 %vm497_vm0, %v10421_v37 }
 0x3f4   : > { %8579 = vmatprep.mubr.msk.bf16.mxu1 %vm497_vm0, %v10425_v62 }
 0x3fb   : > { %8580 = vmatmul.mubr.msk.bf16.gmra.mrb[64].mxu1 %vm497_vm0, %v10433_v14 }
 0x3fc   : > { %8583 = vmatprep.mubr.msk.bf16.mxu1 %vm497_vm0, %v10437_v41 }
 0x403   : > { %8584 = vmatmul.mubr.msk.bf16.gmra.mrb[68].mxu1 %vm497_vm0, %v10445_v4 }
 0x404   : > { %8587 = vmatprep.mubr.msk.bf16.mxu1 %vm497_vm0, %v10449_v20 }
 0x40b   : > { %8588 = vmatmul.mubr.msk.bf16.gmra.mrb[72].mxu1 %vm497_vm0, %v10457_v17 }
 0x40c   : > { %8591 = vmatprep.mubr.msk.bf16.mxu1 %vm497_vm0, %v10461_v30 }
 0x413   : > { %8592 = vmatmul.mubr.msk.bf16.gmra.mrb[76].mxu1 %vm497_vm0, %v10469_v33 }
 0x437   : > { %v8493_v50 = vpop.f32.mrb[16].mxu1 }
 0x438   : > { %v1981_v34 = vadd.f32 %v8493_v50, %v10476_v22  ;;  %v1972_v5 = vpop.f32.mrb[17].mxu1 }
 0x439   : > { %v1973_v55 = vadd.f32 %v10476_v22, %v1972_v5  ;;  %v8494_v44 = vpop.f32.mrb[18].mxu1 }
 0x43a   : > { %v10480_v0 = vmax.f32 %v1981_v34, 0.0  ;;  %v1984_v42 = vadd.f32 %v8494_v44, %v10476_v22  ;;  %v1975_v10 = vpop.f32.mrb[19].mxu1 }
 0x43b   : > { %v1976_v45 = vadd.f32 %v10476_v22, %v1975_v10  ;;  %v10484_v25 = vmax.f32 %v1973_v55, 0.0 }
 0x43c   : > { %v10486_v48 = vmax.f32 %v1984_v42, 0.0  ;;  %v2137_v60 = vsel %vm497_vm0, %v10480_v0, 0.0  ;;  %v2261_v19 = vmul.f32 %v10480_v0, %v10480_v0 }
 0x43d   : > { %2138 = vadd.xlane.f32.xlu0 %v2137_v60  ;;  %v10490_v54 = vmax.f32 %v1976_v45, 0.0  ;;  %v2131_v31 = vsel %vm497_vm0, %v10484_v25, 0.0  ;;  %v2259_v16 = vmul.f32 %v10484_v25, %v10484_v25 }
 0x43e   : > { %v2140_v28 = vsel %vm497_vm0, %v10486_v48, 0.0  ;;  %v2262_v27 = vmul.f32 %v10486_v48, %v10486_v48  ;;  %v2297_v12 = vsel %vm497_vm0, %v2261_v19, 0.0 }
 0x43f   : > { %2141 = vadd.xlane.f32.xlu1 %v2140_v28  ;;  %v2134_v7 = vsel %vm497_vm0, %v10490_v54, 0.0  ;;  %v2260_v24 = vmul.f32 %v10490_v54, %v10490_v54  ;;  %v2291_v63 = vsel %vm497_vm0, %v2259_v16, 0.0 }
 0x440   : > { %v2300_v57 = vsel %vm497_vm0, %v2262_v27, 0.0 }
 0x441   : > { %2132 = vadd.xlane.f32.xlu0 %v2131_v31  ;;  %v2294_v38 = vsel %vm497_vm0, %v2260_v24, 0.0 }
 0x443   : > { %2135 = vadd.xlane.f32.xlu1 %v2134_v7 }
 0x445   : > { %2298 = vadd.xlane.f32.xlu0 %v2297_v12 }
 0x447   : > { %2301 = vadd.xlane.f32.xlu1 %v2300_v57  ;;  %v8497_v3 = vpop.f32.mrb[20].mxu1 }
 0x448   : > { %v1997_v58 = vadd.f32 %v8497_v3, %v10476_v22  ;;  %v1988_v56 = vpop.f32.mrb[21].mxu1 }
 0x449   : > { %v1989_v51 = vadd.f32 %v10476_v22, %v1988_v56  ;;  %2292 = vadd.xlane.f32.xlu0 %v2291_v63  ;;  %v8498_v49 = vpop.f32.mrb[22].mxu1 }
 0x44a   : > { %v10511_v46 = vmax.f32 %v1997_v58, 0.0  ;;  %v2000_v23 = vadd.f32 %v8498_v49, %v10476_v22  ;;  %v1991_v40 = vpop.f32.mrb[23].mxu1 }
 0x44b   : > { %v1992_v1 = vadd.f32 %v10476_v22, %v1991_v40  ;;  %2295 = vadd.xlane.f32.xlu1 %v2294_v38  ;;  %v10516_v53 = vmax.f32 %v1989_v51, 0.0 }
 0x44c   : > { %v10518_v6 = vmax.f32 %v2000_v23, 0.0  ;;  %v2149_v29 = vsel %vm497_vm0, %v10511_v46, 0.0  ;;  %v2265_v32 = vmul.f32 %v10511_v46, %v10511_v46 }
 0x44d   : > { %2150 = vadd.xlane.f32.xlu0 %v2149_v29  ;;  %v10522_v8 = vmax.f32 %v1992_v1, 0.0  ;;  %v2143_v43 = vsel %vm497_vm0, %v10516_v53, 0.0  ;;  %v2263_v18 = vmul.f32 %v10516_v53, %v10516_v53 }
 0x44e   : > { %v2152_v2 = vsel %vm497_vm0, %v10518_v6, 0.0  ;;  %v2266_v26 = vmul.f32 %v10518_v6, %v10518_v6  ;;  %v2309_v11 = vsel %vm497_vm0, %v2265_v32, 0.0 }
 0x44f   : > { %2153 = vadd.xlane.f32.xlu1 %v2152_v2  ;;  %v2146_v39 = vsel %vm497_vm0, %v10522_v8, 0.0  ;;  %v2264_v21 = vmul.f32 %v10522_v8, %v10522_v8  ;;  %v2303_v5 = vsel %vm497_vm0, %v2263_v18, 0.0 }
 0x450   : > { %v2312_v61 = vsel %vm497_vm0, %v2266_v26, 0.0  ;;  %v8944_v26 = vld [vmem:[%s15258_s5] sm:$0xff]  }
 0x451   : > { %2144 = vadd.xlane.f32.xlu0 %v2143_v43  ;;  %v2306_v60 = vsel %vm497_vm0, %v2264_v21, 0.0  ;;  %8523 = vmatprep.subr.bf16.mxu0 %v8944_v26 }
 0x452   : > { %8524 = vmatpush3.bf16.msra.mxu0 %v8944_v26 }
 0x453   : > { %2147 = vadd.xlane.f32.xlu1 %v2146_v39 }
 0x455   : > { %2310 = vadd.xlane.f32.xlu0 %v2309_v11 }
 0x457   : > { %2313 = vadd.xlane.f32.xlu1 %v2312_v61  ;;  %v8501_v47 = vpop.f32.mrb[24].mxu1 }
 0x458   : > { %v2013_v50 = vadd.f32 %v8501_v47, %v10476_v22  ;;  %v2004_v34 = vpop.f32.mrb[25].mxu1 }
 0x459   : > { %v2005_v55 = vadd.f32 %v10476_v22, %v2004_v34  ;;  %2304 = vadd.xlane.f32.xlu0 %v2303_v5  ;;  %v8502_v44 = vpop.f32.mrb[26].mxu1  ;;  %v8945_v34 = vld [vmem:[%s15258_s5 + $0x8] sm:$0xff]  }
 0x45a   : > { %v10543_v42 = vmax.f32 %v2013_v50, 0.0  ;;  %v2016_v10 = vadd.f32 %v8502_v44, %v10476_v22  ;;  %v2007_v45 = vpop.f32.mrb[27].mxu1  ;;  %8525 = vmatprep.subr.bf16.mxu0 %v8945_v34 }
 0x45b   : > { %v2008_v28 = vadd.f32 %v10476_v22, %v2007_v45  ;;  %2307 = vadd.xlane.f32.xlu1 %v2306_v60  ;;  %v10548_v31 = vmax.f32 %v2005_v55, 0.0  ;;  %8526 = vmatpush3.bf16.msra.mxu0 %v8945_v34 }
 0x45c   : > { %v10550_v19 = vmax.f32 %v2016_v10, 0.0  ;;  %v2161_v7 = vsel %vm497_vm0, %v10543_v42, 0.0  ;;  %v2269_v57 = vmul.f32 %v10543_v42, %v10543_v42 }
 0x45d   : > { %2162 = vadd.xlane.f32.xlu0 %v2161_v7  ;;  %v10554_v27 = vmax.f32 %v2008_v28, 0.0  ;;  %v2155_v16 = vsel %vm497_vm0, %v10548_v31, 0.0  ;;  %v2267_v56 = vmul.f32 %v10548_v31, %v10548_v31 }
 0x45e   : > { %v2164_v12 = vsel %vm497_vm0, %v10550_v19, 0.0  ;;  %v2270_v3 = vmul.f32 %v10550_v19, %v10550_v19  ;;  %v2321_v58 = vsel %vm497_vm0, %v2269_v57, 0.0 }
 0x45f   : > { %2165 = vadd.xlane.f32.xlu1 %v2164_v12  ;;  %v2158_v24 = vsel %vm497_vm0, %v10554_v27, 0.0  ;;  %v2268_v51 = vmul.f32 %v10554_v27, %v10554_v27  ;;  %v2315_v38 = vsel %vm497_vm0, %v2267_v56, 0.0 }
 0x460   : > { %v2324_v63 = vsel %vm497_vm0, %v2270_v3, 0.0 }
 0x461   : > { %2156 = vadd.xlane.f32.xlu0 %v2155_v16  ;;  %v2318_v39 = vsel %vm497_vm0, %v2268_v51, 0.0 }
 0x463   : > { %2159 = vadd.xlane.f32.xlu1 %v2158_v24 }
 0x465   : > { %2322 = vadd.xlane.f32.xlu0 %v2321_v58 }
 0x467   : > { %2325 = vadd.xlane.f32.xlu1 %v2324_v63  ;;  %v8505_v49 = vpop.f32.mrb[28].mxu1 }
 0x468   : > { %v2029_v23 = vadd.f32 %v8505_v49, %v10476_v22  ;;  %v2020_v40 = vpop.f32.mrb[29].mxu1 }
 0x469   : > { %v2021_v1 = vadd.f32 %v10476_v22, %v2020_v40  ;;  %2316 = vadd.xlane.f32.xlu0 %v2315_v38  ;;  %v8506_v29 = vpop.f32.mrb[30].mxu1 }
 0x46a   : > { %v10575_v2 = vmax.f32 %v2029_v23, 0.0  ;;  %v2032_v43 = vadd.f32 %v8506_v29, %v10476_v22  ;;  %v2023_v32 = vpop.f32.mrb[31].mxu1 }
 0x46b   : > { %v2024_v11 = vadd.f32 %v10476_v22, %v2023_v32  ;;  %2319 = vadd.xlane.f32.xlu1 %v2318_v39  ;;  %v10583_v18 = vmax.f32 %v2021_v1, 0.0 }
 0x46c   : > { %v10585_v61 = vmax.f32 %v2032_v43, 0.0  ;;  %v2173_v21 = vsel %vm497_vm0, %v10575_v2, 0.0  ;;  %v2273_v55 = vmul.f32 %v10575_v2, %v10575_v2 }
 0x46d   : > { %2174 = vadd.xlane.f32.xlu0 %v2173_v21  ;;  %v10589_v47 = vmax.f32 %v2024_v11, 0.0  ;;  %v2167_v5 = vsel %vm497_vm0, %v10583_v18, 0.0  ;;  %v2271_v60 = vmul.f32 %v10583_v18, %v10583_v18 }
 0x46e   : > { %v2176_v50 = vsel %vm497_vm0, %v10585_v61, 0.0  ;;  %v2274_v10 = vmul.f32 %v10585_v61, %v10585_v61  ;;  %v2333_v45 = vsel %vm497_vm0, %v2273_v55, 0.0 }
 0x46f   : > { %2177 = vadd.xlane.f32.xlu1 %v2176_v50  ;;  %v2170_v44 = vsel %vm497_vm0, %v10589_v47, 0.0  ;;  %v2272_v7 = vmul.f32 %v10589_v47, %v10589_v47  ;;  %v2327_v24 = vsel %vm497_vm0, %v2271_v60, 0.0 }
 0x470   : > { %v2336_v28 = vsel %vm497_vm0, %v2274_v10, 0.0 }
 0x471   : > { %2168 = vadd.xlane.f32.xlu0 %v2167_v5  ;;  %v2330_v49 = vsel %vm497_vm0, %v2272_v7, 0.0 }
 0x473   : > { %2171 = vadd.xlane.f32.xlu1 %v2170_v44 }
 0x475   : > { %2334 = vadd.xlane.f32.xlu0 %v2333_v45 }
 0x477   : > { %2337 = vadd.xlane.f32.xlu1 %v2336_v28  ;;  %v8509_v12 = vpop.f32.mrb[32].mxu1 }
 0x478   : > { %v2045_v16 = vadd.f32 %v8509_v12, %v10476_v22  ;;  %v2036_v57 = vpop.f32.mrb[33].mxu1 }
 0x479   : > { %v2037_v3 = vadd.f32 %v10476_v22, %v2036_v57  ;;  %2328 = vadd.xlane.f32.xlu0 %v2327_v24  ;;  %v8510_v58 = vpop.f32.mrb[34].mxu1 }
 0x47a   : > { %v10613_v56 = vmax.f32 %v2045_v16, 0.0  ;;  %v2048_v63 = vadd.f32 %v8510_v58, %v10476_v22  ;;  %v2039_v51 = vpop.f32.mrb[35].mxu1 }
 0x47b   : > { %v2040_v23 = vadd.f32 %v10476_v22, %v2039_v51  ;;  %2331 = vadd.xlane.f32.xlu1 %v2330_v49  ;;  %v10618_v40 = vmax.f32 %v2037_v3, 0.0 }
 0x47c   : > { %15441 = vst [vmem:[#allocation18_spill] sm:$0xff] %v10613_v56  ;;  %v10620_v38 = vmax.f32 %v2048_v63, 0.0  ;;  %v2185_v1 = vsel %vm497_vm0, %v10613_v56, 0.0  ;;  %v2277_v39 = vmul.f32 %v10613_v56, %v10613_v56 }
 0x47d   : > { %15442 = vst [vmem:[#allocation19_spill] sm:$0xff] %v10618_v40  ;;  %2186 = vadd.xlane.f32.xlu0 %v2185_v1  ;;  %v10624_v29 = vmax.f32 %v2040_v23, 0.0  ;;  %v2179_v32 = vsel %vm497_vm0, %v10618_v40, 0.0  ;;  %v2275_v50 = vmul.f32 %v10618_v40, %v10618_v40 }
 0x47e   : > { %v2188_v43 = vsel %vm497_vm0, %v10620_v38, 0.0  ;;  %v2278_v11 = vmul.f32 %v10620_v38, %v10620_v38  ;;  %v2345_v21 = vsel %vm497_vm0, %v2277_v39, 0.0 }
 0x47f   : > { %15443 = vst [vmem:[#allocation20_spill] sm:$0xff] %v10624_v29  ;;  %2189 = vadd.xlane.f32.xlu1 %v2188_v43  ;;  %v2182_v26 = vsel %vm497_vm0, %v10624_v29, 0.0  ;;  %v2276_v5 = vmul.f32 %v10624_v29, %v10624_v29  ;;  %v2339_v45 = vsel %vm497_vm0, %v2275_v50, 0.0 }
 0x480   : > { %v2348_v34 = vsel %vm497_vm0, %v2278_v11, 0.0 }
 0x481   : > { %2180 = vadd.xlane.f32.xlu0 %v2179_v32  ;;  %v2342_v57 = vsel %vm497_vm0, %v2276_v5, 0.0 }
 0x483   : > { %2183 = vadd.xlane.f32.xlu1 %v2182_v26 }
 0x485   : > { %2346 = vadd.xlane.f32.xlu0 %v2345_v21 }
 0x487   : > { %2349 = vadd.xlane.f32.xlu1 %v2348_v34  ;;  %v8513_v55 = vpop.f32.mrb[36].mxu1 }
 0x488   : > { %v2061_v44 = vadd.f32 %v8513_v55, %v10476_v22  ;;  %v2052_v10 = vpop.f32.mrb[37].mxu1 }
 0x489   : > { %v2053_v60 = vadd.f32 %v10476_v22, %v2052_v10  ;;  %2340 = vadd.xlane.f32.xlu0 %v2339_v45  ;;  %v8514_v28 = vpop.f32.mrb[38].mxu1 }
 0x48a   : > { %v10645_v7 = vmax.f32 %v2061_v44, 0.0  ;;  %v2064_v12 = vadd.f32 %v8514_v28, %v10476_v22  ;;  %v2055_v16 = vpop.f32.mrb[39].mxu1 }
 0x48b   : > { %v2056_v24 = vadd.f32 %v10476_v22, %v2055_v16  ;;  %2343 = vadd.xlane.f32.xlu1 %v2342_v57  ;;  %v10650_v3 = vmax.f32 %v2053_v60, 0.0 }
 0x48c   : > { %15444 = vst [vmem:[#allocation21_spill] sm:$0xff] %v10645_v7  ;;  %v10652_v58 = vmax.f32 %v2064_v12, 0.0  ;;  %v2197_v63 = vsel %vm497_vm0, %v10645_v7, 0.0  ;;  %v2281_v1 = vmul.f32 %v10645_v7, %v10645_v7 }
 0x48d   : > { %15445 = vst [vmem:[#allocation22_spill] sm:$0xff] %v10650_v3  ;;  %2198 = vadd.xlane.f32.xlu0 %v2197_v63  ;;  %v10656_v51 = vmax.f32 %v2056_v24, 0.0  ;;  %v2191_v23 = vsel %vm497_vm0, %v10650_v3, 0.0  ;;  %v2279_v26 = vmul.f32 %v10650_v3, %v10650_v3 }
 0x48e   : > { %15446 = vst [vmem:[#allocation23_spill] sm:$0xff] %v10652_v58  ;;  %v2200_v49 = vsel %vm497_vm0, %v10652_v58, 0.0  ;;  %v2282_v32 = vmul.f32 %v10652_v58, %v10652_v58  ;;  %v2357_v39 = vsel %vm497_vm0, %v2281_v1, 0.0 }
 0x48f   : > { %15447 = vst [vmem:[#allocation24_spill] sm:$0xff] %v10656_v51  ;;  %2201 = vadd.xlane.f32.xlu1 %v2200_v49  ;;  %v2194_v43 = vsel %vm497_vm0, %v10656_v51, 0.0  ;;  %v2280_v21 = vmul.f32 %v10656_v51, %v10656_v51  ;;  %v2351_v55 = vsel %vm497_vm0, %v2279_v26, 0.0 }
 0x490   : > { %v2360_v11 = vsel %vm497_vm0, %v2282_v32, 0.0 }
 0x491   : > { %2192 = vadd.xlane.f32.xlu0 %v2191_v23  ;;  %v2354_v12 = vsel %vm497_vm0, %v2280_v21, 0.0 }
 0x493   : > { %2195 = vadd.xlane.f32.xlu1 %v2194_v43 }
 0x495   : > { %2358 = vadd.xlane.f32.xlu0 %v2357_v39 }
 0x497   : > { %2361 = vadd.xlane.f32.xlu1 %v2360_v11  ;;  %v8517_v50 = vpop.f32.mrb[40].mxu1 }
 0x498   : > { %v2077_v34 = vadd.f32 %v8517_v50, %v10476_v22  ;;  %v2068_v5 = vpop.f32.mrb[41].mxu1 }
 0x499   : > { %v2069_v44 = vadd.f32 %v10476_v22, %v2068_v5  ;;  %2352 = vadd.xlane.f32.xlu0 %v2351_v55  ;;  %v8518_v10 = vpop.f32.mrb[42].mxu1 }
 0x49a   : > { %v10677_v45 = vmax.f32 %v2077_v34, 0.0  ;;  %v2080_v60 = vadd.f32 %v8518_v10, %v10476_v22  ;;  %v2071_v28 = vpop.f32.mrb[43].mxu1 }
 0x49b   : > { %v2072_v16 = vadd.f32 %v10476_v22, %v2071_v28  ;;  %2355 = vadd.xlane.f32.xlu1 %v2354_v12  ;;  %v10682_v57 = vmax.f32 %v2069_v44, 0.0 }
 0x49c   : > { %15448 = vst [vmem:[#allocation25_spill] sm:$0xff] %v10677_v45  ;;  %v10684_v24 = vmax.f32 %v2080_v60, 0.0  ;;  %v2209_v63 = vsel %vm497_vm0, %v10677_v45, 0.0  ;;  %v2285_v43 = vmul.f32 %v10677_v45, %v10677_v45 }
 0x49d   : > { %15449 = vst [vmem:[#allocation26_spill] sm:$0xff] %v10682_v57  ;;  %2210 = vadd.xlane.f32.xlu0 %v2209_v63  ;;  %v10688_v49 = vmax.f32 %v2072_v16, 0.0  ;;  %v2203_v1 = vsel %vm497_vm0, %v10682_v57, 0.0  ;;  %v2283_v11 = vmul.f32 %v10682_v57, %v10682_v57 }
 0x49e   : > { %15450 = vst [vmem:[#allocation27_spill] sm:$0xff] %v10684_v24  ;;  %v2212_v23 = vsel %vm497_vm0, %v10684_v24, 0.0  ;;  %v2286_v39 = vmul.f32 %v10684_v24, %v10684_v24  ;;  %v2369_v26 = vsel %vm497_vm0, %v2285_v43, 0.0 }
 0x49f   : > { %15451 = vst [vmem:[#allocation28_spill] sm:$0xff] %v10688_v49  ;;  %2213 = vadd.xlane.f32.xlu1 %v2212_v23  ;;  %v2206_v32 = vsel %vm497_vm0, %v10688_v49, 0.0  ;;  %v2284_v34 = vmul.f32 %v10688_v49, %v10688_v49  ;;  %v2363_v60 = vsel %vm497_vm0, %v2283_v11, 0.0 }
 0x4a0   : > { %v2372_v50 = vsel %vm497_vm0, %v2286_v39, 0.0 }
 0x4a1   : > { %2204 = vadd.xlane.f32.xlu0 %v2203_v1  ;;  %v2366_v23 = vsel %vm497_vm0, %v2284_v34, 0.0 }
 0x4a3   : > { %2207 = vadd.xlane.f32.xlu1 %v2206_v32 }
 0x4a5   : > { %2370 = vadd.xlane.f32.xlu0 %v2369_v26 }
 0x4a6   : > { %v8521_v21 = vpop.f32.mrb[44].mxu1 }
 0x4a7   : > { %v2093_v5 = vadd.f32 %v8521_v21, %v10476_v22  ;;  %2373 = vadd.xlane.f32.xlu1 %v2372_v50  ;;  %v2084_v55 = vpop.f32.mrb[45].mxu1 }
 0x4a8   : > { %v2085_v44 = vadd.f32 %v10476_v22, %v2084_v55  ;;  %v8522_v10 = vpop.f32.mrb[46].mxu1 }
 0x4a9   : > { %v10709_v28 = vmax.f32 %v2093_v5, 0.0  ;;  %v2096_v12 = vadd.f32 %v8522_v10, %v10476_v22  ;;  %2364 = vadd.xlane.f32.xlu0 %v2363_v60  ;;  %v2087_v16 = vpop.f32.mrb[47].mxu1 }
 0x4aa   : > { %v2088_v63 = vadd.f32 %v10476_v22, %v2087_v16  ;;  %v10718_v32 = vmax.f32 %v2085_v44, 0.0  ;;  %v10727_v22 = vld [vmem:[%s15257_s4 + $0x8] ss:$0 sm:$0xff] }
 0x4ab   : > { %15452 = vst [vmem:[#allocation29_spill] sm:$0xff] %v10709_v28  ;;  %v10714_v1 = vmax.f32 %v2096_v12, 0.0  ;;  %2367 = vadd.xlane.f32.xlu1 %v2366_v23  ;;  %v2221_v43 = vsel %vm497_vm0, %v10709_v28, 0.0  ;;  %v2289_v34 = vmul.f32 %v10709_v28, %v10709_v28  ;;  %v10741_v12 = vld [vmem:[%s15256_s3 + $0x50] sm:$0xff]  }
 0x4ac   : > { %15454 = vst [vmem:[#allocation31_spill] sm:$0xff] %v10718_v32  ;;  %v10722_v26 = vmax.f32 %v2088_v63, 0.0  ;;  %v2215_v50 = vsel %vm497_vm0, %v10718_v32, 0.0  ;;  %v2287_v63 = vmul.f32 %v10718_v32, %v10718_v32  ;;  %8595 = vmatprep.subr.bf16.mxu0 %v10741_v12 }
 0x4ad   : > { %15453 = vst [vmem:[#allocation30_spill] sm:$0xff] %v10714_v1  ;;  %2222 = vadd.xlane.f32.xlu0 %v2221_v43  ;;  %v2224_v39 = vsel %vm497_vm0, %v10714_v1, 0.0  ;;  %v2290_v60 = vmul.f32 %v10714_v1, %v10714_v1  ;;  %v2381_v16 = vsel %vm497_vm0, %v2289_v34, 0.0 }
 0x4ae   : > { %15455 = vst [vmem:[#allocation32_spill] sm:$0xff] %v10722_v26  ;;  %v8565_v11 = vpop.f32.mrb[48].mxu1  ;;  %v2218_v44 = vsel %vm497_vm0, %v10722_v26, 0.0  ;;  %v2375_v33 = vsel %vm497_vm0, %v2287_v63, 0.0 }
 0x4af   : > { %2225 = vadd.xlane.f32.xlu1 %v2224_v39  ;;  %v4058_v21 = vpop.f32.mrb[49].mxu1  ;;  %v4067_v10 = vadd.f32 %v8565_v11, %v10727_v22  ;;  %v2384_v39 = vsel %vm497_vm0, %v2290_v60, 0.0  ;;  %v2288_v11 = vmul.f32 %v10722_v26, %v10722_v26 }
 0x4b0   : > { %v8566_v5 = vpop.f32.mrb[50].mxu1  ;;  %v4059_v34 = vadd.f32 %v10727_v22, %v4058_v21 }
 0x4b1   : > { %2216 = vadd.xlane.f32.xlu0 %v2215_v50  ;;  %v4061_v55 = vpop.f32.mrb[51].mxu1  ;;  %v10747_v23 = vmax.f32 %v4067_v10, 0.0  ;;  %v4070_v43 = vadd.f32 %v8566_v5, %v10727_v22  ;;  %v2378_v5 = vsel %vm497_vm0, %v2288_v11, 0.0 }
 0x4b2   : > { %v4062_v10 = vadd.f32 %v10727_v22, %v4061_v55  ;;  %v10761_v20 = vmax.f32 %v4059_v34, 0.0 }
 0x4b3   : > { %2219 = vadd.xlane.f32.xlu1 %v2218_v44  ;;  %15456 = vst [vmem:[#allocation33_spill] sm:$0xff] %v10747_v23  ;;  %v10755_v17 = vmax.f32 %v4070_v43, 0.0  ;;  %v4223_v60 = vsel %vm497_vm0, %v10747_v23, 0.0  ;;  %v4347_v43 = vmul.f32 %v10747_v23, %v10747_v23 }
 0x4b4   : > { %15458 = vst [vmem:[#allocation35_spill] sm:$0xff] %v10761_v20  ;;  %v4217_v55 = vsel %vm497_vm0, %v10761_v20, 0.0  ;;  %v4345_v4 = vmul.f32 %v10761_v20, %v10761_v20 }
 0x4b5   : > { %2382 = vadd.xlane.f32.xlu0 %v2381_v16  ;;  %15457 = vst [vmem:[#allocation34_spill] sm:$0xff] %v10755_v17  ;;  %v4226_v21 = vsel %vm497_vm0, %v10755_v17, 0.0 }
 0x4b6   : > { %v8569_v50 = vpop.f32.mrb[52].mxu1 }
 0x4b7   : > { %2385 = vadd.xlane.f32.xlu1 %v2384_v39  ;;  %v4074_v44 = vpop.f32.mrb[53].mxu1  ;;  %v10763_v39 = vmax.f32 %v4062_v10, 0.0 }
 0x4b8   : > { %v8570_v30 = vpop.f32.mrb[54].mxu1 }
 0x4b9   : > { %2376 = vadd.xlane.f32.xlu0 %v2375_v33  ;;  %v4077_v16 = vpop.f32.mrb[55].mxu1  ;;  %15459 = vst [vmem:[#allocation36_spill] sm:$0xff] %v10763_v39  ;;  %v4220_v10 = vsel %vm497_vm0, %v10763_v39, 0.0  ;;  %v4346_v62 = vmul.f32 %v10763_v39, %v10763_v39 }
 0x4bb   : > { %2379 = vadd.xlane.f32.xlu1 %v2378_v5  ;;  %v4083_v5 = vadd.f32 %v8569_v50, %v10727_v22  ;;  %v4380_v35 = vsel %vm497_vm0, %v4346_v62, 0.0 }
 0x4bd   : > { %4224 = vadd.xlane.f32.xlu0 %v4223_v60  ;;  %v4348_v60 = vmul.f32 %v10755_v17, %v10755_v17  ;;  %v10785_v41 = vmax.f32 %v4083_v5, 0.0 }
 0x4be   : > { %v8573_v33 = vpop.f32.mrb[56].mxu1 }
 0x4bf   : > { %4227 = vadd.xlane.f32.xlu1 %v4226_v21  ;;  %v10767_v63 = vpop.f32.mrb[57].mxu1  ;;  %v4383_v21 = vsel %vm497_vm0, %v4347_v43, 0.0  ;;  %15460 = vst [vmem:[#allocation37_spill] sm:$0xff] %v10785_v41  ;;  %v4386_v14 = vsel %vm497_vm0, %v4348_v60, 0.0  ;;  %v4075_v43 = vadd.f32 %v10727_v22, %v4074_v44  ;;  %v4078_v60 = vadd.f32 %v10727_v22, %v4077_v16 }
 0x4c0   : > { %v10773_v11 = vpop.f32.mrb[58].mxu1  ;;  %v4099_v39 = vadd.f32 %v8573_v33, %v10727_v22 }
 0x4c1   : > { %4218 = vadd.xlane.f32.xlu0 %v4217_v55  ;;  %v10775_v34 = vpop.f32.mrb[59].mxu1  ;;  %v4086_v55 = vadd.f32 %v8570_v30, %v10727_v22  ;;  %v10807_v59 = vmax.f32 %v4075_v43, 0.0  ;;  %v4351_v43 = vmul.f32 %v10785_v41, %v10785_v41 }
 0x4c3   : > { %4221 = vadd.xlane.f32.xlu1 %v4220_v10  ;;  %v4377_v10 = vsel %vm497_vm0, %v4345_v4, 0.0  ;;  %v10801_v30 = vmax.f32 %v4086_v55, 0.0  ;;  %15462 = vst [vmem:[#allocation39_spill] sm:$0xff] %v10807_v59  ;;  %v10809_v4 = vmax.f32 %v4078_v60, 0.0  ;;  %v4349_v17 = vmul.f32 %v10807_v59, %v10807_v59 }
 0x4c5   : > { %4384 = vadd.xlane.f32.xlu0 %v4383_v21  ;;  %15461 = vst [vmem:[#allocation38_spill] sm:$0xff] %v10801_v30  ;;  %15463 = vst [vmem:[#allocation40_spill] sm:$0xff] %v10809_v4  ;;  %v4238_v55 = vsel %vm497_vm0, %v10801_v30, 0.0  ;;  %v4352_v60 = vmul.f32 %v10801_v30, %v10801_v30  ;;  %v4232_v9 = vsel %vm497_vm0, %v10809_v4, 0.0  ;;  %v4350_v26 = vmul.f32 %v10809_v4, %v10809_v4 }
 0x4c6   : > { %v10791_v50 = vpop.f32.mrb[60].mxu1  ;;  %v4094_v4 = vadd.f32 %v10727_v22, %v10775_v34 }
 0x4c7   : > { %4387 = vadd.xlane.f32.xlu1 %v4386_v14  ;;  %v10793_v37 = vpop.f32.mrb[61].mxu1  ;;  %v4235_v14 = vsel %vm497_vm0, %v10785_v41, 0.0 }
 0x4c8   : > { %v10797_v52 = vpop.f32.mrb[62].mxu1 }
 0x4c9   : > { %4378 = vadd.xlane.f32.xlu0 %v4377_v10  ;;  %v10799_v5 = vpop.f32.mrb[63].mxu1 }
 0x4ca   : > { %v2139_v21 = vpop.xlane.xlu0 %2138 }
 0x4cb   : > { %4381 = vadd.xlane.f32.xlu1 %v4380_v35  ;;  %v10815_v16 = vmul.f32 0.03125, %v2139_v21  ;;  %v4229_v35 = vsel %vm497_vm0, %v10807_v59, 0.0 }
 0x4cc   : > { %v2142_v44 = vpop.xlane.xlu1 %2141 }
 0x4cd   : > { %4236 = vadd.xlane.f32.xlu0 %v4235_v14  ;;  %v10827_v15 = vmul.f32 0.03125, %v2142_v44  ;;  %v2421_v20 = vmul.f32 %v10815_v16, %v10815_v16  ;;  %v4395_v44 = vsel %vm497_vm0, %v4351_v43, 0.0  ;;  %v4091_v43 = vadd.f32 %v10727_v22, %v10767_v63 }
 0x4ce   : > { %v2133_v10 = vpop.xlane.xlu0 %2132  ;;  %v10813_v13 = vpop.f32.mrb[64].mxu1  ;;  %v4389_v63 = vsel %vm497_vm0, %v4349_v17, 0.0 }
 0x4cf   : > { %4239 = vadd.xlane.f32.xlu1 %v4238_v55  ;;  %v10817_v62 = vpop.f32.mrb[65].mxu1  ;;  %v10836_v41 = vmul.f32 0.03125, %v2133_v10  ;;  %v2422_v33 = vmul.f32 %v10827_v15, %v10827_v15 }
 0x4d0   : > { %v2136_v36 = vpop.xlane.xlu1 %2135  ;;  %v10825_v14 = vpop.f32.mrb[66].mxu1 }
 0x4d1   : > { %4230 = vadd.xlane.f32.xlu0 %v4229_v35  ;;  %v10829_v21 = vpop.f32.mrb[67].mxu1  ;;  %v4398_v35 = vsel %vm497_vm0, %v4352_v60, 0.0  ;;  %v10846_v32 = vmul.f32 0.03125, %v2136_v36  ;;  %v4102_v60 = vadd.f32 %v10773_v11, %v10727_v22  ;;  %v2419_v36 = vmul.f32 %v10836_v41, %v10836_v41 }
 0x4d2   : > { %v2299_v55 = vpop.xlane.xlu0 %2298  ;;  %v4392_v11 = vsel %vm497_vm0, %v4350_v26, 0.0 }
 0x4d3   : > { %v2389_v23 = vmul.f32 0.03125, %v2299_v55  ;;  %4233 = vadd.xlane.f32.xlu1 %v4232_v9  ;;  %v10848_v9 = vmax.f32 %v4099_v39, 0.0  ;;  %v2420_v34 = vmul.f32 %v10846_v32, %v10846_v32 }
 0x4d4   : > { %v2302_v30 = vpop.xlane.xlu1 %2301 }
 0x4d5   : > { %v2453_v10 = vsub.f32 %v2389_v23, %v2421_v20  ;;  %v2390_v28 = vmul.f32 0.03125, %v2302_v30  ;;  %4396 = vadd.xlane.f32.xlu0 %v4395_v44  ;;  %15464 = vst [vmem:[#allocation41_spill] sm:$0xff] %v10848_v9  ;;  %v4247_v17 = vsel %vm497_vm0, %v10848_v9, 0.0 }
 0x4d6   : > { %v2293_v55 = vpop.xlane.xlu0 %2292  ;;  %v10856_v59 = vpop.f32.mrb[68].mxu1 }
 0x4d7   : > { %v2485_v20 = vadd.f32 1e-05, %v2453_v10  ;;  %v2454_v23 = vsub.f32 %v2390_v28, %v2422_v33  ;;  %v2387_v30 = vmul.f32 0.03125, %v2293_v55  ;;  %4399 = vadd.xlane.f32.xlu1 %v4398_v35  ;;  %v10860_v39 = vpop.f32.mrb[69].mxu1  ;;  %v10870_v28 = vmax.f32 %v4091_v43, 0.0 }
 0x4d8   : > { %v2296_v44 = vpop.xlane.xlu1 %2295  ;;  %v10864_v1 = vpop.f32.mrb[70].mxu1  ;;  %v10872_v35 = vmax.f32 %v4102_v60, 0.0  ;;  %v10876_v55 = vmax.f32 %v4094_v4, 0.0  ;;  %v4355_v43 = vmul.f32 %v10848_v9, %v10848_v9 }
 0x4d9   : > { %v2486_v49 = vadd.f32 1e-05, %v2454_v23  ;;  %v2451_v57 = vsub.f32 %v2387_v30, %v2419_v36  ;;  %v2388_v45 = vmul.f32 0.03125, %v2296_v44  ;;  %4390 = vadd.xlane.f32.xlu0 %v4389_v63  ;;  %v10868_v10 = vpop.f32.mrb[71].mxu1  ;;  %9020 = vrsqrt.f32 %v2485_v20  ;;  %15465 = vst [vmem:[#allocation42_spill] sm:$0xff] %v10870_v28 }
 0x4da   : > { %15466 = vst [vmem:[#allocation43_spill] sm:$0xff] %v10872_v35  ;;  %v2151_v33 = vpop.xlane.xlu0 %2150  ;;  %15467 = vst [vmem:[#allocation44_spill] sm:$0xff] %v10876_v55  ;;  %v4250_v60 = vsel %vm497_vm0, %v10872_v35, 0.0  ;;  %v4356_v30 = vmul.f32 %v10872_v35, %v10872_v35  ;;  %v4354_v4 = vmul.f32 %v10876_v55, %v10876_v55  ;;  %v4244_v9 = vsel %vm497_vm0, %v10876_v55, 0.0 }
 0x4db   : > { %9022 = vrsqrt.f32 %v2486_v49  ;;  %v2483_v26 = vadd.f32 1e-05, %v2451_v57  ;;  %v2452_v24 = vsub.f32 %v2388_v45, %v2420_v34  ;;  %4393 = vadd.xlane.f32.xlu1 %v4392_v11  ;;  %v4353_v57 = vmul.f32 %v10870_v28, %v10870_v28 }
 0x4dc   : > { %v2154_v36 = vpop.xlane.xlu1 %2153  ;;  %v10888_v45 = vmul.f32 0.03125, %v2151_v33  ;;  %v4241_v11 = vsel %vm497_vm0, %v10870_v28, 0.0  ;;  %v4107_v34 = vadd.f32 %v10727_v22, %v10793_v37  ;;  %v4410_v28 = vsel %vm497_vm0, %v4356_v30, 0.0 }
 0x4dd   : > { %9024 = vrsqrt.f32 %v2483_v26  ;;  %v2484_v23 = vadd.f32 1e-05, %v2452_v24  ;;  %4248 = vadd.xlane.f32.xlu0 %v4247_v17  ;;  %v4115_v24 = vadd.f32 %v10791_v50, %v10727_v22  ;;  %v10902_v33 = vmul.f32 0.03125, %v2154_v36 }
 0x4de   : > { %v2145_v20 = vpop.xlane.xlu0 %2144  ;;  %v10886_v49 = vpop.f32.mrb[72].mxu1  ;;  %v4407_v26 = vsel %vm497_vm0, %v4355_v43, 0.0  ;;  %v4401_v35 = vsel %vm497_vm0, %v4353_v57, 0.0  ;;  %v2425_v37 = vmul.f32 %v10888_v45, %v10888_v45  ;;  %v4404_v43 = vsel %vm497_vm0, %v4354_v4, 0.0 }
 0x4df   : > { %9026 = vrsqrt.f32 %v2484_v23  ;;  %4251 = vadd.xlane.f32.xlu1 %v4250_v60  ;;  %v10894_v44 = vpop.f32.mrb[73].mxu1  ;;  %v10907_v23 = vmul.f32 0.03125, %v2145_v20  ;;  %v2550_v20 = vsub.f32 %v10486_v48, %v10827_v15  ;;  %v10922_v7 = vmax.f32 %v4107_v34, 0.0 }
 0x4e0   : > { %v2148_v63 = vpop.xlane.xlu1 %2147  ;;  %v10900_v17 = vpop.f32.mrb[74].mxu1  ;;  %v4118_v30 = vadd.f32 %v10797_v52, %v10727_v22  ;;  %v2547_v15 = vsub.f32 %v10484_v25, %v10836_v41  ;;  %v4110_v52 = vadd.f32 %v10727_v22, %v10799_v5  ;;  %v2548_v41 = vsub.f32 %v10490_v54, %v10846_v32  ;;  %v10945_v25 = vld [vmem:[%s15257_s4 + $0x6] ss:$0 sm:$0xff] }
 0x4e1   : > { %4242 = vadd.xlane.f32.xlu0 %v4241_v11  ;;  %v10905_v50 = vpop.f32.mrb[75].mxu1  ;;  %v10915_v11 = vmax.f32 %v4115_v24, 0.0  ;;  %v10920_v3 = vmul.f32 0.03125, %v2148_v63  ;;  %v2426_v24 = vmul.f32 %v10902_v33, %v10902_v33  ;;  %v2423_v63 = vmul.f32 %v10907_v23, %v10907_v23 }
 0x4e2   : > { %v2311_v60 = vpop.xlane.xlu0 %2310 }
 0x4e3   : > { %v2393_v36 = vmul.f32 0.03125, %v2311_v60  ;;  %4245 = vadd.xlane.f32.xlu1 %v4244_v9  ;;  %v9021_v51 = vpop.eup %9020  ;;  %v2549_v9 = vsub.f32 %v10480_v0, %v10815_v16  ;;  %v2424_v5 = vmul.f32 %v10920_v3, %v10920_v3 }
 0x4e4   : > { %v2314_v55 = vpop.xlane.xlu1 %2313 }
 0x4e5   : > { %v9023_v57 = vpop.eup %9022  ;;  %v2457_v4 = vsub.f32 %v2393_v36, %v2425_v37  ;;  %v2394_v60 = vmul.f32 0.03125, %v2314_v55  ;;  %4408 = vadd.xlane.f32.xlu0 %v4407_v26  ;;  %v2581_v16 = vmul.f32 %v9021_v51, %v2549_v9  ;;  %v10949_v26 = vmax.f32 %v4118_v30, 0.0 }
 0x4e6   : > { %v2582_v48 = vmul.f32 %v9023_v57, %v2550_v20  ;;  %v2305_v34 = vpop.xlane.xlu0 %2304  ;;  %v10936_v58 = vpop.f32.mrb[76].mxu1 }
 0x4e7   : > { %v9025_v0 = vpop.eup %9024  ;;  %v2489_v29 = vadd.f32 1e-05, %v2457_v4  ;;  %v2458_v40 = vsub.f32 %v2394_v60, %v2426_v24  ;;  %v2391_v37 = vmul.f32 0.03125, %v2305_v34  ;;  %4411 = vadd.xlane.f32.xlu1 %v4410_v28  ;;  %v10938_v55 = vpop.f32.mrb[77].mxu1  ;;  %v4259_v60 = vsel %vm497_vm0, %v10915_v11, 0.0 }
 0x4e8   : > { %v2308_v51 = vpop.xlane.xlu1 %2307  ;;  %v2579_v36 = vmul.f32 %v9025_v0, %v2547_v15  ;;  %v10951_v20 = vpop.f32.mrb[78].mxu1  ;;  %v2619_v57 = vmul.f32 %v10945_v25, %v2582_v48  ;;  %v2618_v15 = vmul.f32 %v10945_v25, %v2581_v16  ;;  %v4357_v16 = vmul.f32 %v10922_v7, %v10922_v7 }
 0x4e9   : > { %v9027_v28 = vpop.eup %9026  ;;  %v2490_v9 = vadd.f32 1e-05, %v2458_v40  ;;  %v2455_v24 = vsub.f32 %v2391_v37, %v2423_v63  ;;  %v2392_v54 = vmul.f32 0.03125, %v2308_v51  ;;  %4402 = vadd.xlane.f32.xlu0 %v4401_v35  ;;  %v10954_v32 = vpop.f32.mrb[79].mxu1  ;;  %9028 = vrsqrt.f32 %v2489_v29  ;;  %v10966_v29 = vld [vmem:[%s15257_s4 + $0x7] ss:$0 sm:$0xff] }
 0x4ea   : > { %v2163_v4 = vpop.xlane.xlu0 %2162  ;;  %v2580_v30 = vmul.f32 %v9027_v28, %v2548_v41  ;;  %v2616_v34 = vmul.f32 %v10945_v25, %v2579_v36  ;;  %v10960_v40 = vmax.f32 %v4110_v52, 0.0  ;;  %v4359_v63 = vmul.f32 %v10915_v11, %v10915_v11 }
 0x4eb   : > { %9030 = vrsqrt.f32 %v2490_v9  ;;  %v2487_v0 = vadd.f32 1e-05, %v2455_v24  ;;  %v2456_v56 = vsub.f32 %v2392_v54, %v2424_v5  ;;  %4405 = vadd.xlane.f32.xlu1 %v4404_v43  ;;  %v4262_v43 = vsel %vm497_vm0, %v10949_v26, 0.0 }
 0x4ec   : > { %15468 = vst [vmem:[#allocation45_spill] sm:$0xff] %v10960_v40  ;;  %v2166_v48 = vpop.xlane.xlu1 %2165  ;;  %v2617_v35 = vmul.f32 %v10945_v25, %v2580_v30  ;;  %v2656_v52 = vadd.f32 %v10966_v29, %v2619_v57  ;;  %v2653_v5 = vadd.f32 %v10966_v29, %v2616_v34  ;;  %v4131_v36 = vadd.f32 %v10813_v13, %v10727_v22 }
 0x4ed   : > { %9032 = vrsqrt.f32 %v2487_v0  ;;  %v2488_v37 = vadd.f32 1e-05, %v2456_v56  ;;  %4260 = vadd.xlane.f32.xlu0 %v4259_v60  ;;  %v4360_v28 = vmul.f32 %v10949_v26, %v10949_v26  ;;  %v10981_v9 = vmul.f32 0.03125, %v2163_v4 }
 0x4ee   : > { %v2157_v41 = vpop.xlane.xlu0 %2156  ;;  %v2654_v51 = vadd.f32 %v10966_v29, %v2617_v35  ;;  %v2655_v56 = vadd.f32 %v10966_v29, %v2618_v15  ;;  %v4123_v57 = vadd.f32 %v10727_v22, %v10817_v62  ;;  %v4253_v54 = vsel %vm497_vm0, %v10922_v7, 0.0  ;;  %v8947_v15 = vld [vmem:[%s15256_s3 + $0x58] sm:$0xff]  }
 0x4ef   : > { %9034 = vrsqrt.f32 %v2488_v37  ;;  %4263 = vadd.xlane.f32.xlu1 %v4262_v43  ;;  %v10988_v30 = vmul.f32 0.03125, %v2166_v48  ;;  %v4256_v13 = vsel %vm497_vm0, %v10960_v40, 0.0  ;;  %v4419_v4 = vsel %vm497_vm0, %v4359_v63, 0.0 }
 0x4f0   : > { %v2160_v24 = vpop.xlane.xlu1 %2159  ;;  %v2685_v60 = vpack.c.bf16 %v2654_v51, %v2653_v5  ;;  %v2686_v34 = vpack.c.bf16 %v2656_v52, %v2655_v56  ;;  %v10996_v0 = vmul.f32 0.03125, %v2157_v41  ;;  %v4422_v35 = vsel %vm497_vm0, %v4360_v28, 0.0 }
 0x4f1   : > { %4254 = vadd.xlane.f32.xlu0 %v4253_v54  ;;  %v4413_v48 = vsel %vm497_vm0, %v4357_v16, 0.0  ;;  %v4358_v37 = vmul.f32 %v10960_v40, %v10960_v40  ;;  %v2429_v43 = vmul.f32 %v10981_v9, %v10981_v9  ;;  %v11006_v52 = vmax.f32 %v4131_v36, 0.0 }
 0x4f2   : > { %8527 = vmatprep.mubr.msk.bf16.mxu0 %vm497_vm0, %v2685_v60  ;;  %v2323_v62 = vpop.xlane.xlu0 %2322  ;;  %v11008_v41 = vmax.f32 %v4123_v57, 0.0  ;;  %v2554_v51 = vsub.f32 %v10518_v6, %v10902_v33  ;;  %v11012_v28 = vmul.f32 0.03125, %v2160_v24  ;;  %v4134_v56 = vadd.f32 %v10825_v14, %v10727_v22 }
 0x4f3   : > { %v2397_v63 = vmul.f32 0.03125, %v2323_v62  ;;  %4257 = vadd.xlane.f32.xlu1 %v4256_v13  ;;  %8528 = vmatmul.mubr.msk.bf16.vlgmr.msra.gmra.mrb[80].mxu0 %vm497_vm0, %v2686_v34  ;;  %v9029_v5 = vpop.eup %9028  ;;  %v4126_v54 = vadd.f32 %v10727_v22, %v10829_v21  ;;  %v2553_v36 = vsub.f32 %v10511_v46, %v10888_v45  ;;  %v2430_v57 = vmul.f32 %v10988_v30, %v10988_v30 }
 0x4f4   : > { %v2326_v16 = vpop.xlane.xlu1 %2325  ;;  %8596 = vmatpush3.bf16.msra.mxu0 %v10741_v12  ;;  %v2551_v33 = vsub.f32 %v10516_v53, %v10907_v23  ;;  %v2427_v14 = vmul.f32 %v10996_v0, %v10996_v0  ;;  %v4416_v12 = vsel %vm497_vm0, %v4358_v37, 0.0  ;;  %v4271_v23 = vsel %vm497_vm0, %v11006_v52, 0.0 }
 0x4f5   : > { %v9031_v60 = vpop.eup %9030  ;;  %v2461_v13 = vsub.f32 %v2397_v63, %v2429_v43  ;;  %v2398_v6 = vmul.f32 0.03125, %v2326_v16  ;;  %4420 = vadd.xlane.f32.xlu0 %v4419_v4  ;;  %8597 = vmatprep.subr.bf16.mxu0 %v8947_v15  ;;  %v2585_v40 = vmul.f32 %v9029_v5, %v2553_v36  ;;  %v2552_v4 = vsub.f32 %v10522_v8, %v10920_v3 }
 0x4f6   : > { %v2317_v21 = vpop.xlane.xlu0 %2316  ;;  %v2586_v24 = vmul.f32 %v9031_v60, %v2554_v51  ;;  %v2428_v43 = vmul.f32 %v11012_v28, %v11012_v28  ;;  %v11035_v5 = vmax.f32 %v4134_v56, 0.0 }
 0x4f7   : > { %v9033_v34 = vpop.eup %9032  ;;  %v2493_v62 = vadd.f32 1e-05, %v2461_v13  ;;  %v2462_v46 = vsub.f32 %v2398_v6, %v2430_v57  ;;  %v2395_v45 = vmul.f32 0.03125, %v2317_v21  ;;  %4423 = vadd.xlane.f32.xlu1 %v4422_v35  ;;  %v11039_v6 = vmax.f32 %v4126_v54, 0.0 }
 0x4f8   : > { %v2320_v53 = vpop.xlane.xlu1 %2319  ;;  %v2583_v63 = vmul.f32 %v9033_v34, %v2551_v33  ;;  %8598 = vmatpush3.bf16.msra.mxu0 %v8947_v15  ;;  %v2623_v35 = vmul.f32 %v10945_v25, %v2586_v24  ;;  %v2622_v15 = vmul.f32 %v10945_v25, %v2585_v40  ;;  %v4363_v21 = vmul.f32 %v11006_v52, %v11006_v52 }
 0x4f9   : > { %v9035_v37 = vpop.eup %9034  ;;  %v2494_v51 = vadd.f32 1e-05, %v2462_v46  ;;  %v2459_v16 = vsub.f32 %v2395_v45, %v2427_v14  ;;  %v2396_v60 = vmul.f32 0.03125, %v2320_v53  ;;  %4414 = vadd.xlane.f32.xlu0 %v4413_v48  ;;  %9036 = vrsqrt.f32 %v2493_v62 }
 0x4fa   : > { %v2175_v8 = vpop.xlane.xlu0 %2174  ;;  %v2584_v3 = vmul.f32 %v9035_v37, %v2552_v4  ;;  %v2620_v36 = vmul.f32 %v10945_v25, %v2583_v63  ;;  %v2660_v56 = vadd.f32 %v10966_v29, %v2623_v35  ;;  %v4274_v34 = vsel %vm497_vm0, %v11035_v5, 0.0 }
 0x4fb   : > { %9038 = vrsqrt.f32 %v2494_v51  ;;  %v2491_v57 = vadd.f32 1e-05, %v2459_v16  ;;  %v2460_v13 = vsub.f32 %v2396_v60, %v2428_v43  ;;  %4417 = vadd.xlane.f32.xlu1 %v4416_v12  ;;  %v4364_v54 = vmul.f32 %v11035_v5, %v11035_v5 }
 0x4fc   : > { %v2178_v33 = vpop.xlane.xlu1 %2177  ;;  %v2621_v48 = vmul.f32 %v10945_v25, %v2584_v3  ;;  %v2657_v12 = vadd.f32 %v10966_v29, %v2620_v36  ;;  %v11051_v62 = vmul.f32 0.03125, %v2175_v8  ;;  %v2659_v46 = vadd.f32 %v10966_v29, %v2622_v15 }
 0x4fd   : > { %9040 = vrsqrt.f32 %v2491_v57  ;;  %v2492_v14 = vadd.f32 1e-05, %v2460_v13  ;;  %4272 = vadd.xlane.f32.xlu0 %v4271_v23  ;;  %v4361_v45 = vmul.f32 %v11008_v41, %v11008_v41  ;;  %v4265_v43 = vsel %vm497_vm0, %v11008_v41, 0.0 }
 0x4fe   : > { %v2169_v24 = vpop.xlane.xlu0 %2168  ;;  %v2658_v40 = vadd.f32 %v10966_v29, %v2621_v48  ;;  %v4147_v23 = vadd.f32 %v10856_v59, %v10727_v22  ;;  %v11060_v63 = vmul.f32 0.03125, %v2178_v33  ;;  %v4268_v37 = vsel %vm497_vm0, %v11039_v6, 0.0 }
 0x4ff   : > { %9042 = vrsqrt.f32 %v2492_v14  ;;  %4275 = vadd.xlane.f32.xlu1 %v4274_v34  ;;  %v2688_v51 = vpack.c.bf16 %v2660_v56, %v2659_v46  ;;  %v4431_v16 = vsel %vm497_vm0, %v4363_v21, 0.0  ;;  %v11065_v60 = vmul.f32 0.03125, %v2169_v24 }
 0x500   : > { %v2172_v4 = vpop.xlane.xlu1 %2171  ;;  %v2687_v53 = vpack.c.bf16 %v2658_v40, %v2657_v12  ;;  %v4139_v8 = vadd.f32 %v10727_v22, %v10860_v39  ;;  %v4150_v59 = vadd.f32 %v10864_v1, %v10727_v22  ;;  %v4434_v3 = vsel %vm497_vm0, %v4364_v54, 0.0 }
 0x501   : > { %4266 = vadd.xlane.f32.xlu0 %v4265_v43  ;;  %v2433_v36 = vmul.f32 %v11051_v62, %v11051_v62  ;;  %v4425_v13 = vsel %vm497_vm0, %v4361_v45, 0.0  ;;  %v4362_v15 = vmul.f32 %v11039_v6, %v11039_v6  ;;  %v2558_v39 = vsub.f32 %v10550_v19, %v10988_v30 }
 0x502   : > { %8531 = vmatprep.mubr.msk.bf16.mxu0 %vm497_vm0, %v2687_v53  ;;  %v2335_v35 = vpop.xlane.xlu0 %2334  ;;  %v11081_v48 = vmul.f32 0.03125, %v2172_v4  ;;  %v11083_v14 = vmax.f32 %v4147_v23, 0.0  ;;  %v4142_v56 = vadd.f32 %v10727_v22, %v10868_v10  ;;  %v2557_v24 = vsub.f32 %v10543_v42, %v10981_v9 }
 0x503   : > { %v2401_v57 = vmul.f32 0.03125, %v2335_v35  ;;  %4269 = vadd.xlane.f32.xlu1 %v4268_v37  ;;  %8532 = vmatmul.mubr.msk.bf16.gmra.mrb[84].mxu0 %vm497_vm0, %v2688_v51  ;;  %v9037_v33 = vpop.eup %9036  ;;  %v2434_v34 = vmul.f32 %v11060_v63, %v11060_v63  ;;  %v2555_v19 = vsub.f32 %v10548_v31, %v10996_v0  ;;  %v2431_v30 = vmul.f32 %v11065_v60, %v11065_v60 }
 0x504   : > { %v2338_v1 = vpop.xlane.xlu1 %2337  ;;  %v11095_v54 = vmax.f32 %v4150_v59, 0.0  ;;  %v2589_v9 = vmul.f32 %v9037_v33, %v2557_v24  ;;  %v2556_v53 = vsub.f32 %v10554_v27, %v11012_v28  ;;  %v2432_v23 = vmul.f32 %v11081_v48, %v11081_v48 }
 0x505   : > { %v9039_v21 = vpop.eup %9038  ;;  %v2465_v12 = vsub.f32 %v2401_v57, %v2433_v36  ;;  %v2402_v40 = vmul.f32 0.03125, %v2338_v1  ;;  %4432 = vadd.xlane.f32.xlu0 %v4431_v16  ;;  %v4428_v0 = vsel %vm497_vm0, %v4362_v15, 0.0  ;;  %v4283_v57 = vsel %vm497_vm0, %v11083_v14, 0.0 }
 0x506   : > { %v2329_v46 = vpop.xlane.xlu0 %2328  ;;  %v2590_v10 = vmul.f32 %v9039_v21, %v2558_v39  ;;  %v2626_v15 = vmul.f32 %v10945_v25, %v2589_v9  ;;  %v11107_v1 = vmax.f32 %v4139_v8, 0.0  ;;  %v11109_v21 = vmax.f32 %v4142_v56, 0.0 }
 0x507   : > { %v9041_v45 = vpop.eup %9040  ;;  %v2497_v4 = vadd.f32 1e-05, %v2465_v12  ;;  %v2466_v43 = vsub.f32 %v2402_v40, %v2434_v34  ;;  %v2399_v42 = vmul.f32 0.03125, %v2329_v46  ;;  %4435 = vadd.xlane.f32.xlu1 %v4434_v3  ;;  %v4286_v24 = vsel %vm497_vm0, %v11095_v54, 0.0 }
 0x508   : > { %v2332_v31 = vpop.xlane.xlu1 %2331  ;;  %v2587_v37 = vmul.f32 %v9041_v45, %v2555_v19  ;;  %v2627_v36 = vmul.f32 %v10945_v25, %v2590_v10  ;;  %v4163_v19 = vadd.f32 %v10886_v49, %v10727_v22  ;;  %v4367_v46 = vmul.f32 %v11083_v14, %v11083_v14 }
 0x509   : > { %v9043_v51 = vpop.eup %9042  ;;  %v2498_v16 = vadd.f32 1e-05, %v2466_v43  ;;  %v2463_v35 = vsub.f32 %v2399_v42, %v2431_v30  ;;  %v2400_v59 = vmul.f32 0.03125, %v2332_v31  ;;  %4426 = vadd.xlane.f32.xlu0 %v4425_v13  ;;  %9044 = vrsqrt.f32 %v2497_v4 }
 0x50a   : > { %v2187_v3 = vpop.xlane.xlu0 %2186  ;;  %v2588_v27 = vmul.f32 %v9043_v51, %v2556_v53  ;;  %v2624_v28 = vmul.f32 %v10945_v25, %v2587_v37  ;;  %v2664_v40 = vadd.f32 %v10966_v29, %v2627_v36  ;;  %v4368_v10 = vmul.f32 %v11095_v54, %v11095_v54 }
 0x50b   : > { %9046 = vrsqrt.f32 %v2498_v16  ;;  %v2495_v33 = vadd.f32 1e-05, %v2463_v35  ;;  %v2464_v39 = vsub.f32 %v2400_v59, %v2432_v23  ;;  %4429 = vadd.xlane.f32.xlu1 %v4428_v0  ;;  %v11123_v45 = vmul.f32 0.03125, %v2187_v3 }
 0x50c   : > { %v2190_v13 = vpop.xlane.xlu1 %2189  ;;  %v2625_v34 = vmul.f32 %v10945_v25, %v2588_v27  ;;  %v2661_v8 = vadd.f32 %v10966_v29, %v2624_v28  ;;  %v2663_v4 = vadd.f32 %v10966_v29, %v2626_v15  ;;  %v4166_v49 = vadd.f32 %v10900_v17, %v10727_v22 }
 0x50d   : > { %9048 = vrsqrt.f32 %v2495_v33  ;;  %v2496_v12 = vadd.f32 1e-05, %v2464_v39  ;;  %4284 = vadd.xlane.f32.xlu0 %v4283_v57  ;;  %v4277_v42 = vsel %vm497_vm0, %v11107_v1, 0.0  ;;  %v11130_v53 = vmul.f32 0.03125, %v2190_v13 }
 0x50e   : > { %v2181_v30 = vpop.xlane.xlu0 %2180  ;;  %v2662_v56 = vadd.f32 %v10966_v29, %v2625_v34  ;;  %v4280_v23 = vsel %vm497_vm0, %v11109_v21, 0.0  ;;  %v2690_v31 = vpack.c.bf16 %v2664_v40, %v2663_v4  ;;  %v4155_v0 = vadd.f32 %v10727_v22, %v10894_v44 }
 0x50f   : > { %9050 = vrsqrt.f32 %v2496_v12  ;;  %4287 = vadd.xlane.f32.xlu1 %v4286_v24  ;;  %v11136_v37 = vmul.f32 0.03125, %v2181_v30  ;;  %v11139_v51 = vmax.f32 %v4163_v19, 0.0  ;;  %v4443_v16 = vsel %vm497_vm0, %v4367_v46, 0.0 }
 0x510   : > { %v2184_v43 = vpop.xlane.xlu1 %2183  ;;  %v2689_v9 = vpack.c.bf16 %v2662_v56, %v2661_v8  ;;  %v4158_v35 = vadd.f32 %v10727_v22, %v10905_v50  ;;  %v2437_v59 = vmul.f32 %v11123_v45, %v11123_v45  ;;  %v11147_v44 = vmax.f32 %v4166_v49, 0.0 }
 0x511   : > { %4278 = vadd.xlane.f32.xlu0 %v4277_v42  ;;  %v4446_v3 = vsel %vm497_vm0, %v4368_v10, 0.0  ;;  %v2562_v27 = vsub.f32 %v10585_v61, %v11060_v63  ;;  %v11152_v28 = vmul.f32 0.03125, %v2184_v43  ;;  %v4365_v50 = vmul.f32 %v11107_v1, %v11107_v1 }
 0x512   : > { %8535 = vmatprep.mubr.msk.bf16.mxu0 %vm497_vm0, %v2689_v9  ;;  %v2347_v17 = vpop.xlane.xlu0 %2346  ;;  %v4366_v39 = vmul.f32 %v11109_v21, %v11109_v21  ;;  %v2561_v13 = vsub.f32 %v10575_v2, %v11051_v62  ;;  %v2438_v24 = vmul.f32 %v11130_v53, %v11130_v53  ;;  %v2559_v61 = vsub.f32 %v10583_v18, %v11065_v60 }
 0x513   : > { %v2405_v36 = vmul.f32 0.03125, %v2347_v17  ;;  %4281 = vadd.xlane.f32.xlu1 %v4280_v23  ;;  %8536 = vmatmul.mubr.msk.bf16.gmra.mrb[88].mxu0 %vm497_vm0, %v2690_v31  ;;  %v9045_v57 = vpop.eup %9044  ;;  %v2435_v63 = vmul.f32 %v11136_v37, %v11136_v37  ;;  %v4295_v19 = vsel %vm497_vm0, %v11139_v51, 0.0  ;;  %v2560_v10 = vsub.f32 %v10589_v47, %v11081_v48 }
 0x514   : > { %v2350_v33 = vpop.xlane.xlu1 %2349  ;;  %v2593_v46 = vmul.f32 %v9045_v57, %v2561_v13  ;;  %v2436_v18 = vmul.f32 %v11152_v28, %v11152_v28  ;;  %v4437_v4 = vsel %vm497_vm0, %v4365_v50, 0.0  ;;  %v11177_v57 = vmax.f32 %v4155_v0, 0.0 }
 0x515   : > { %v9047_v15 = vpop.eup %9046  ;;  %v2469_v34 = vsub.f32 %v2405_v36, %v2437_v59  ;;  %v2406_v12 = vmul.f32 0.03125, %v2350_v33  ;;  %4444 = vadd.xlane.f32.xlu0 %v4443_v16  ;;  %v4440_v16 = vsel %vm497_vm0, %v4366_v39, 0.0  ;;  %v4298_v50 = vsel %vm497_vm0, %v11147_v44, 0.0 }
 0x516   : > { %v2341_v40 = vpop.xlane.xlu0 %2340  ;;  %v2594_v30 = vmul.f32 %v9047_v15, %v2562_v27  ;;  %v11179_v27 = vmax.f32 %v4158_v35, 0.0 }
 0x517   : > { %v9049_v8 = vpop.eup %9048  ;;  %v2501_v56 = vadd.f32 1e-05, %v2469_v34  ;;  %v2470_v2 = vsub.f32 %v2406_v12, %v2438_v24  ;;  %v2403_v62 = vmul.f32 0.03125, %v2341_v40  ;;  %4447 = vadd.xlane.f32.xlu1 %v4446_v3  ;;  %v2630_v3 = vmul.f32 %v10945_v25, %v2593_v46 }
 0x518   : > { %v2344_v60 = vpop.xlane.xlu1 %2343  ;;  %v2591_v49 = vmul.f32 %v9049_v8, %v2559_v61  ;;  %v2631_v31 = vmul.f32 %v10945_v25, %v2594_v30  ;;  %v4179_v24 = vadd.f32 %v10936_v58, %v10727_v22  ;;  %v4371_v12 = vmul.f32 %v11139_v51, %v11139_v51 }
 0x519   : > { %v9051_v43 = vpop.eup %9050  ;;  %v2502_v42 = vadd.f32 1e-05, %v2470_v2  ;;  %v2467_v9 = vsub.f32 %v2403_v62, %v2435_v63  ;;  %v2404_v23 = vmul.f32 0.03125, %v2344_v60  ;;  %4438 = vadd.xlane.f32.xlu0 %v4437_v4  ;;  %9052 = vrsqrt.f32 %v2501_v56 }
 0x51a   : > { %v2199_v17 = vpop.xlane.xlu0 %2198  ;;  %v2592_v59 = vmul.f32 %v9051_v43, %v2560_v10  ;;  %v2628_v47 = vmul.f32 %v10945_v25, %v2591_v49  ;;  %v2668_v13 = vadd.f32 %v10966_v29, %v2631_v31  ;;  %v4171_v61 = vadd.f32 %v10727_v22, %v10938_v55 }
 0x51b   : > { %9054 = vrsqrt.f32 %v2502_v42  ;;  %v2499_v48 = vadd.f32 1e-05, %v2467_v9  ;;  %v2468_v36 = vsub.f32 %v2404_v23, %v2436_v18  ;;  %4441 = vadd.xlane.f32.xlu1 %v4440_v16  ;;  %v11193_v63 = vmul.f32 0.03125, %v2199_v17  ;;  %v9496_v42 = vld [vmem:[%s15257_s4 + $0x8] ss:$0 sm:$0xff] }
 0x51c   : > { %v2202_v33 = vpop.xlane.xlu1 %2201  ;;  %v2629_v15 = vmul.f32 %v10945_v25, %v2592_v59  ;;  %v2665_v0 = vadd.f32 %v10966_v29, %v2628_v47  ;;  %v2667_v40 = vadd.f32 %v10966_v29, %v2630_v3  ;;  %v4182_v58 = vadd.f32 %v10951_v20, %v10727_v22 }
 0x51d   : > { %9056 = vrsqrt.f32 %v2499_v48  ;;  %v2500_v39 = vadd.f32 1e-05, %v2468_v36  ;;  %4296 = vadd.xlane.f32.xlu0 %v4295_v19  ;;  %v4289_v30 = vsel %vm497_vm0, %v11177_v57, 0.0  ;;  %v4372_v56 = vmul.f32 %v11147_v44, %v11147_v44  ;;  %v15469_v36 = vld [vmem:[#allocation18_spill] sm:$0xff] }
 0x51e   : > { %v2193_v34 = vpop.xlane.xlu0 %2192  ;;  %v2666_v35 = vadd.f32 %v10966_v29, %v2629_v15  ;;  %v11202_v2 = vmul.f32 0.03125, %v2202_v33  ;;  %v4292_v55 = vsel %vm497_vm0, %v11179_v27, 0.0  ;;  %v2692_v62 = vpack.c.bf16 %v2668_v13, %v2667_v40 }
 0x51f   : > { %9058 = vrsqrt.f32 %v2500_v39  ;;  %4299 = vadd.xlane.f32.xlu1 %v4298_v50  ;;  %v11206_v46 = vmax.f32 %v4179_v24, 0.0  ;;  %v11208_v10 = vmul.f32 0.03125, %v2193_v34  ;;  %v4455_v20 = vsel %vm497_vm0, %v4371_v12, 0.0 }
 0x520   : > { %v2196_v19 = vpop.xlane.xlu1 %2195  ;;  %v2691_v8 = vpack.c.bf16 %v2666_v35, %v2665_v0  ;;  %v11212_v18 = vmax.f32 %v4171_v61, 0.0  ;;  %v4369_v60 = vmul.f32 %v11177_v57, %v11177_v57  ;;  %v2441_v4 = vmul.f32 %v11193_v63, %v11193_v63  ;;  %v15471_v61 = vld [vmem:[#allocation20_spill] sm:$0xff] }
 0x521   : > { %4290 = vadd.xlane.f32.xlu0 %v4289_v30  ;;  %v11219_v43 = vmax.f32 %v4182_v58, 0.0  ;;  %v4174_v9 = vadd.f32 %v9496_v42, %v10954_v32  ;;  %v2566_v31 = vsub.f32 %v10620_v38, %v11130_v53  ;;  %v11227_v17 = vmul.f32 0.03125, %v2196_v19  ;;  %v15470_v38 = vld [vmem:[#allocation19_spill] sm:$0xff] }
 0x522   : > { %8539 = vmatprep.mubr.msk.bf16.mxu0 %vm497_vm0, %v2691_v8  ;;  %v2359_v22 = vpop.xlane.xlu0 %2358  ;;  %v4458_v59 = vsel %vm497_vm0, %v4372_v56, 0.0  ;;  %v4370_v47 = vmul.f32 %v11179_v27, %v11179_v27  ;;  %v2565_v3 = vsub.f32 %v15469_v36, %v11123_v45  ;;  %v2442_v33 = vmul.f32 %v11202_v2, %v11202_v2 }
 0x523   : > { %v2409_v49 = vmul.f32 0.03125, %v2359_v22  ;;  %4293 = vadd.xlane.f32.xlu1 %v4292_v55  ;;  %8540 = vmatmul.mubr.msk.bf16.gmra.mrb[92].mxu0 %vm497_vm0, %v2692_v62  ;;  %v9053_v23 = vpop.eup %9052  ;;  %v2563_v53 = vsub.f32 %v15470_v38, %v11136_v37  ;;  %v2439_v15 = vmul.f32 %v11208_v10, %v11208_v10  ;;  %v4449_v13 = vsel %vm497_vm0, %v4369_v60, 0.0 }
 0x524   : > { %v2362_v16 = vpop.xlane.xlu1 %2361  ;;  %v2597_v12 = vmul.f32 %v9053_v23, %v2565_v3  ;;  %v2564_v40 = vsub.f32 %v15471_v61, %v11152_v28  ;;  %v2440_v58 = vmul.f32 %v11227_v17, %v11227_v17  ;;  %v4452_v19 = vsel %vm497_vm0, %v4370_v47, 0.0 }
 0x525   : > { %v9055_v48 = vpop.eup %9054  ;;  %v2473_v32 = vsub.f32 %v2409_v49, %v2441_v4  ;;  %v2410_v50 = vmul.f32 0.03125, %v2362_v16  ;;  %4456 = vadd.xlane.f32.xlu0 %v4455_v20  ;;  %v4307_v60 = vsel %vm497_vm0, %v11206_v46, 0.0  ;;  %v4373_v38 = vmul.f32 %v11212_v18, %v11212_v18 }
 0x526   : > { %v2353_v39 = vpop.xlane.xlu0 %2352  ;;  %v2598_v24 = vmul.f32 %v9055_v48, %v2566_v31  ;;  %v2634_v23 = vmul.f32 %v10945_v25, %v2597_v12  ;;  %v11251_v31 = vmax.f32 %v4174_v9, 0.0 }
 0x527   : > { %v9057_v34 = vpop.eup %9056  ;;  %v2505_v0 = vadd.f32 1e-05, %v2473_v32  ;;  %v2474_v35 = vsub.f32 %v2410_v50, %v2442_v33  ;;  %v2407_v45 = vmul.f32 0.03125, %v2353_v39  ;;  %4459 = vadd.xlane.f32.xlu1 %v4458_v59  ;;  %v4310_v59 = vsel %vm497_vm0, %v11219_v43, 0.0 }
 0x528   : > { %v2356_v37 = vpop.xlane.xlu1 %2355  ;;  %v2595_v30 = vmul.f32 %v9057_v34, %v2563_v53  ;;  %v2635_v22 = vmul.f32 %v10945_v25, %v2598_v24  ;;  %v2671_v9 = vadd.f32 %v10966_v29, %v2634_v23 }
 0x529   : > { %v9059_v8 = vpop.eup %9058  ;;  %v2506_v56 = vadd.f32 1e-05, %v2474_v35  ;;  %v2471_v55 = vsub.f32 %v2407_v45, %v2439_v15  ;;  %v2408_v62 = vmul.f32 0.03125, %v2356_v37  ;;  %4450 = vadd.xlane.f32.xlu0 %v4449_v13  ;;  %9060 = vrsqrt.f32 %v2505_v0 }
 0x52a   : > { %v2211_v20 = vpop.xlane.xlu0 %2210  ;;  %v2596_v28 = vmul.f32 %v9059_v8, %v2564_v40  ;;  %v2632_v4 = vmul.f32 %v10945_v25, %v2595_v30  ;;  %v2672_v36 = vadd.f32 %v10966_v29, %v2635_v22  ;;  %v4301_v15 = vsel %vm497_vm0, %v11212_v18, 0.0 }
 0x52b   : > { %9062 = vrsqrt.f32 %v2506_v56  ;;  %v2503_v49 = vadd.f32 1e-05, %v2471_v55  ;;  %v2472_v42 = vsub.f32 %v2408_v62, %v2440_v58  ;;  %4453 = vadd.xlane.f32.xlu1 %v4452_v19  ;;  %v11259_v50 = vmul.f32 0.03125, %v2211_v20  ;;  %v11282_v58 = vld [vmem:[%s15256_s3 + $0x60] sm:$0xff]   ;;  %v15472_v19 = vld [vmem:[#allocation23_spill] sm:$0xff]  ;;  %v15473_v20 = vld [vmem:[#allocation21_spill] sm:$0xff] }
 0x52c   : > { %v2214_v16 = vpop.xlane.xlu1 %2213  ;;  %v2633_v47 = vmul.f32 %v10945_v25, %v2596_v28  ;;  %v2669_v33 = vadd.f32 %v10966_v29, %v2632_v4  ;;  %v4374_v13 = vmul.f32 %v11251_v31, %v11251_v31  ;;  %v2694_v34 = vpack.c.bf16 %v2672_v36, %v2671_v9  ;;  %8667 = vmatprep.subr.bf16.mxu0 %v11282_v58 }
 0x52d   : > { %9064 = vrsqrt.f32 %v2503_v49  ;;  %v2504_v48 = vadd.f32 1e-05, %v2472_v42  ;;  %4308 = vadd.xlane.f32.xlu0 %v4307_v60  ;;  %v11268_v24 = vmul.f32 0.03125, %v2214_v16  ;;  %v4304_v45 = vsel %vm497_vm0, %v11251_v31, 0.0 }
 0x52e   : > { %v2205_v3 = vpop.xlane.xlu0 %2204  ;;  %v2670_v32 = vadd.f32 %v10966_v29, %v2633_v47  ;;  %v2445_v12 = vmul.f32 %v11259_v50, %v11259_v50  ;;  %v4461_v40 = vsel %vm497_vm0, %v4373_v38, 0.0  ;;  %v2570_v30 = vsub.f32 %v15472_v19, %v11202_v2  ;;  %v15474_v2 = vld [vmem:[#allocation22_spill] sm:$0xff] }
 0x52f   : > { %9066 = vrsqrt.f32 %v2504_v48  ;;  %4311 = vadd.xlane.f32.xlu1 %v4310_v59  ;;  %v11270_v0 = vmul.f32 0.03125, %v2205_v3  ;;  %v4464_v55 = vsel %vm497_vm0, %v4374_v13, 0.0  ;;  %v4375_v62 = vmul.f32 %v11206_v46, %v11206_v46 }
 0x530   : > { %v2208_v53 = vpop.xlane.xlu1 %2207  ;;  %v2693_v39 = vpack.c.bf16 %v2670_v32, %v2669_v33  ;;  %v2569_v60 = vsub.f32 %v15473_v20, %v11193_v63  ;;  %v2446_v28 = vmul.f32 %v11268_v24, %v11268_v24  ;;  %v2567_v42 = vsub.f32 %v15474_v2, %v11208_v10  ;;  %v15475_v32 = vld [vmem:[#allocation24_spill] sm:$0xff] }
 0x531   : > { %4302 = vadd.xlane.f32.xlu0 %v4301_v15  ;;  %v11286_v8 = vmul.f32 0.03125, %v2208_v53  ;;  %v2443_v23 = vmul.f32 %v11270_v0, %v11270_v0  ;;  %v4376_v59 = vmul.f32 %v11219_v43, %v11219_v43  ;;  %v2568_v9 = vsub.f32 %v15475_v32, %v11227_v17 }
 0x532   : > { %8543 = vmatprep.mubr.msk.bf16.mxu0 %vm497_vm0, %v2693_v39  ;;  %v2371_v35 = vpop.xlane.xlu0 %2370  ;;  %v4467_v53 = vsel %vm497_vm0, %v4375_v62, 0.0 }
 0x533   : > { %v2413_v61 = vmul.f32 0.03125, %v2371_v35  ;;  %4305 = vadd.xlane.f32.xlu1 %v4304_v45  ;;  %8544 = vmatmul.mubr.msk.bf16.gmra.mrb[96].mxu0 %vm497_vm0, %v2694_v34  ;;  %v9061_v37 = vpop.eup %9060  ;;  %v2444_v10 = vmul.f32 %v11286_v8, %v11286_v8 }
 0x534   : > { %v2374_v56 = vpop.xlane.xlu1 %2373  ;;  %v2601_v33 = vmul.f32 %v9061_v37, %v2569_v60 }
 0x535   : > { %v9063_v22 = vpop.eup %9062  ;;  %v2477_v4 = vsub.f32 %v2413_v61, %v2445_v12  ;;  %v2414_v49 = vmul.f32 0.03125, %v2374_v56  ;;  %4462 = vadd.xlane.f32.xlu0 %v4461_v40  ;;  %v4470_v61 = vsel %vm497_vm0, %v4376_v59, 0.0 }
 0x536   : > { %v2365_v16 = vpop.xlane.xlu0 %2364  ;;  %v2602_v47 = vmul.f32 %v9063_v22, %v2570_v30  ;;  %v2638_v30 = vmul.f32 %v10945_v25, %v2601_v33 }
 0x537   : > { %v9065_v63 = vpop.eup %9064  ;;  %v2509_v48 = vadd.f32 1e-05, %v2477_v4  ;;  %v2478_v36 = vsub.f32 %v2414_v49, %v2446_v28  ;;  %v2411_v3 = vmul.f32 0.03125, %v2365_v16  ;;  %4465 = vadd.xlane.f32.xlu1 %v4464_v55 }
 0x538   : > { %v2368_v38 = vpop.xlane.xlu1 %2367  ;;  %v2599_v15 = vmul.f32 %v9065_v63, %v2567_v42  ;;  %v2639_v45 = vmul.f32 %v10945_v25, %v2602_v47  ;;  %v2675_v49 = vadd.f32 %v10966_v29, %v2638_v30 }
 0x539   : > { %v9067_v39 = vpop.eup %9066  ;;  %v2510_v13 = vadd.f32 1e-05, %v2478_v36  ;;  %v2475_v34 = vsub.f32 %v2411_v3, %v2443_v23  ;;  %v2412_v35 = vmul.f32 0.03125, %v2368_v38  ;;  %4468 = vadd.xlane.f32.xlu0 %v4467_v53  ;;  %9068 = vrsqrt.f32 %v2509_v48  ;;  %v15476_v3 = vld [vmem:[#allocation27_spill] sm:$0xff]  ;;  %v15477_v38 = vld [vmem:[#allocation25_spill] sm:$0xff] }
 0x53a   : > { %v2223_v12 = vpop.xlane.xlu0 %2222  ;;  %v2600_v40 = vmul.f32 %v9067_v39, %v2568_v9  ;;  %v2636_v17 = vmul.f32 %v10945_v25, %v2599_v15  ;;  %v2676_v22 = vadd.f32 %v10966_v29, %v2639_v45  ;;  %v2574_v33 = vsub.f32 %v15476_v3, %v11268_v24 }
 0x53b   : > { %9070 = vrsqrt.f32 %v2510_v13  ;;  %v2507_v37 = vadd.f32 1e-05, %v2475_v34  ;;  %v2476_v19 = vsub.f32 %v2412_v35, %v2444_v10  ;;  %4471 = vadd.xlane.f32.xlu1 %v4470_v61  ;;  %v11315_v4 = vmul.f32 0.03125, %v2223_v12  ;;  %v15478_v34 = vld [vmem:[#allocation26_spill] sm:$0xff] }
 0x53c   : > { %v2226_v56 = vpop.xlane.xlu1 %2225  ;;  %v2637_v55 = vmul.f32 %v10945_v25, %v2600_v40  ;;  %v2673_v60 = vadd.f32 %v10966_v29, %v2636_v17  ;;  %v2696_v16 = vpack.c.bf16 %v2676_v22, %v2675_v49  ;;  %v2573_v53 = vsub.f32 %v15477_v38, %v11259_v50  ;;  %v15479_v50 = vld [vmem:[#allocation28_spill] sm:$0xff] }
 0x53d   : > { %9072 = vrsqrt.f32 %v2507_v37  ;;  %v2508_v62 = vadd.f32 1e-05, %v2476_v19  ;;  %v11318_v23 = vmul.f32 0.03125, %v2226_v56  ;;  %v2449_v63 = vmul.f32 %v11315_v4, %v11315_v4 }
 0x53e   : > { %v2217_v20 = vpop.xlane.xlu0 %2216  ;;  %v2674_v28 = vadd.f32 %v10966_v29, %v2637_v55  ;;  %v2571_v35 = vsub.f32 %v15478_v34, %v11270_v0  ;;  %v2572_v30 = vsub.f32 %v15479_v50, %v11286_v8 }
 0x53f   : > { %9074 = vrsqrt.f32 %v2508_v62  ;;  %v11320_v59 = vmul.f32 0.03125, %v2217_v20  ;;  %v2450_v15 = vmul.f32 %v11318_v23, %v11318_v23 }
 0x540   : > { %v2220_v2 = vpop.xlane.xlu1 %2219  ;;  %v2695_v42 = vpack.c.bf16 %v2674_v28, %v2673_v60 }
 0x541   : > { %v11328_v32 = vmul.f32 0.03125, %v2220_v2  ;;  %v2447_v45 = vmul.f32 %v11320_v59, %v11320_v59 }
 0x542   : > { %8547 = vmatprep.mubr.msk.bf16.mxu0 %vm497_vm0, %v2695_v42  ;;  %v2383_v47 = vpop.xlane.xlu0 %2382 }
 0x543   : > { %v2417_v48 = vmul.f32 0.03125, %v2383_v47  ;;  %8548 = vmatmul.mubr.msk.bf16.gmra.mrb[100].mxu0 %vm497_vm0, %v2696_v16  ;;  %v9069_v36 = vpop.eup %9068  ;;  %v2448_v56 = vmul.f32 %v11328_v32, %v11328_v32 }
 0x544   : > { %v2386_v9 = vpop.xlane.xlu1 %2385  ;;  %v2605_v19 = vmul.f32 %v9069_v36, %v2573_v53 }
 0x545   : > { %v9071_v10 = vpop.eup %9070  ;;  %v2481_v39 = vsub.f32 %v2417_v48, %v2449_v63  ;;  %v2418_v13 = vmul.f32 0.03125, %v2386_v9 }
 0x546   : > { %v2377_v12 = vpop.xlane.xlu0 %2376  ;;  %v2606_v24 = vmul.f32 %v9071_v10, %v2574_v33  ;;  %v2642_v8 = vmul.f32 %v10945_v25, %v2605_v19  ;;  %v15481_v19 = vld [vmem:[#allocation29_spill] sm:$0xff] }
 0x547   : > { %v9073_v61 = vpop.eup %9072  ;;  %v2513_v40 = vadd.f32 1e-05, %v2481_v39  ;;  %v2482_v17 = vsub.f32 %v2418_v13, %v2450_v15  ;;  %v2415_v37 = vmul.f32 0.03125, %v2377_v12  ;;  %v2577_v50 = vsub.f32 %v15481_v19, %v11315_v4  ;;  %v15483_v4 = vld [vmem:[#allocation32_spill] sm:$0xff] }
 0x548   : > { %v2380_v55 = vpop.xlane.xlu1 %2379  ;;  %v2603_v62 = vmul.f32 %v9073_v61, %v2571_v35  ;;  %v2643_v28 = vmul.f32 %v10945_v25, %v2606_v24  ;;  %v2679_v53 = vadd.f32 %v10966_v29, %v2642_v8  ;;  %v15480_v61 = vld [vmem:[#allocation30_spill] sm:$0xff] }
 0x549   : > { %v9075_v22 = vpop.eup %9074  ;;  %v2514_v0 = vadd.f32 1e-05, %v2482_v17  ;;  %v2479_v20 = vsub.f32 %v2415_v37, %v2447_v45  ;;  %v2416_v60 = vmul.f32 0.03125, %v2380_v55  ;;  %9076 = vrsqrt.f32 %v2513_v40 }
 0x54a   : > { %v4225_v49 = vpop.xlane.xlu0 %4224  ;;  %v2604_v2 = vmul.f32 %v9075_v22, %v2572_v30  ;;  %v2640_v42 = vmul.f32 %v10945_v25, %v2603_v62  ;;  %v2680_v3 = vadd.f32 %v10966_v29, %v2643_v28  ;;  %v15482_v62 = vld [vmem:[#allocation31_spill] sm:$0xff] }
 0x54b   : > { %9078 = vrsqrt.f32 %v2514_v0  ;;  %v2511_v16 = vadd.f32 1e-05, %v2479_v20  ;;  %v2480_v47 = vsub.f32 %v2416_v60, %v2448_v56  ;;  %v11349_v38 = vmul.f32 0.03125, %v4225_v49 }
 0x54c   : > { %v4228_v63 = vpop.xlane.xlu1 %4227  ;;  %v2641_v48 = vmul.f32 %v10945_v25, %v2604_v2  ;;  %v2677_v9 = vadd.f32 %v10966_v29, %v2640_v42  ;;  %v2698_v34 = vpack.c.bf16 %v2680_v3, %v2679_v53  ;;  %v2575_v22 = vsub.f32 %v15482_v62, %v11320_v59 }
 0x54d   : > { %9080 = vrsqrt.f32 %v2511_v16  ;;  %v2512_v36 = vadd.f32 1e-05, %v2480_v47  ;;  %v11352_v13 = vmul.f32 0.03125, %v4228_v63  ;;  %v4507_v45 = vmul.f32 %v11349_v38, %v11349_v38 }
 0x54e   : > { %v4219_v33 = vpop.xlane.xlu0 %4218  ;;  %v2678_v10 = vadd.f32 %v10966_v29, %v2641_v48  ;;  %v2578_v29 = vsub.f32 %v15480_v61, %v11318_v23  ;;  %v2576_v16 = vsub.f32 %v15483_v4, %v11328_v32 }
 0x54f   : > { %9082 = vrsqrt.f32 %v2512_v36  ;;  %v11354_v25 = vmul.f32 0.03125, %v4219_v33  ;;  %v4508_v30 = vmul.f32 %v11352_v13, %v11352_v13  ;;  %v9497_v33 = vld [vmem:[%s15257_s4 + $0x6] ss:$0 sm:$0xff] }
 0x550   : > { %v4222_v15 = vpop.xlane.xlu1 %4221  ;;  %v2697_v39 = vpack.c.bf16 %v2678_v10, %v2677_v9 }
 0x551   : > { %v11362_v40 = vmul.f32 0.03125, %v4222_v15  ;;  %v4505_v0 = vmul.f32 %v11354_v25, %v11354_v25 }
 0x552   : > { %8551 = vmatprep.mubr.msk.bf16.mxu0 %vm497_vm0, %v2697_v39  ;;  %v4385_v35 = vpop.xlane.xlu0 %4384 }
 0x553   : > { %v4475_v12 = vmul.f32 0.03125, %v4385_v35  ;;  %8552 = vmatmul.mubr.msk.bf16.gmra.mrb[104].mxu0 %vm497_vm0, %v2698_v34  ;;  %v9077_v24 = vpop.eup %9076  ;;  %v4506_v47 = vmul.f32 %v11362_v40, %v11362_v40 }
 0x554   : > { %v4388_v17 = vpop.xlane.xlu1 %4387  ;;  %v2609_v42 = vmul.f32 %v9077_v24, %v2577_v50  ;;  %v9498_v24 = vld [vmem:[%s15257_s4 + $0x7] ss:$0 sm:$0xff] }
 0x555   : > { %v9079_v37 = vpop.eup %9078  ;;  %v4539_v56 = vsub.f32 %v4475_v12, %v4507_v45  ;;  %v4476_v55 = vmul.f32 0.03125, %v4388_v17 }
 0x556   : > { %v4379_v20 = vpop.xlane.xlu0 %4378  ;;  %v2610_v23 = vmul.f32 %v9079_v37, %v2578_v29  ;;  %v2646_v34 = vmul.f32 %v9497_v33, %v2609_v42 }
 0x557   : > { %v9081_v60 = vpop.eup %9080  ;;  %v4571_v28 = vadd.f32 1e-05, %v4539_v56  ;;  %v4540_v49 = vsub.f32 %v4476_v55, %v4508_v30  ;;  %v4473_v2 = vmul.f32 0.03125, %v4379_v20 }
 0x558   : > { %v4382_v8 = vpop.xlane.xlu1 %4381  ;;  %v2607_v63 = vmul.f32 %v9081_v60, %v2575_v22  ;;  %v2647_v9 = vmul.f32 %v9497_v33, %v2610_v23  ;;  %v2683_v50 = vadd.f32 %v9498_v24, %v2646_v34  ;;  %v11409_v34 = vld [vmem:[%s15257_s4 + $0x9] ss:$0 sm:$0xff] }
 0x559   : > { %v9083_v48 = vpop.eup %9082  ;;  %v4572_v59 = vadd.f32 1e-05, %v4540_v49  ;;  %v4537_v36 = vsub.f32 %v4473_v2, %v4505_v0  ;;  %v4474_v3 = vmul.f32 0.03125, %v4382_v8  ;;  %9084 = vrsqrt.f32 %v4571_v28  ;;  %v15484_v28 = vld [vmem:[#allocation34_spill] sm:$0xff] }
 0x55a   : > { %v4237_v10 = vpop.xlane.xlu0 %4236  ;;  %v2608_v53 = vmul.f32 %v9083_v48, %v2576_v16  ;;  %v2644_v15 = vmul.f32 %v9497_v33, %v2607_v63  ;;  %v2684_v61 = vadd.f32 %v9498_v24, %v2647_v9  ;;  %v4636_v49 = vsub.f32 %v15484_v28, %v11352_v13  ;;  %v15485_v16 = vld [vmem:[#allocation33_spill] sm:$0xff] }
 0x55b   : > { %9086 = vrsqrt.f32 %v4572_v59  ;;  %v4569_v32 = vadd.f32 1e-05, %v4537_v36  ;;  %v4538_v39 = vsub.f32 %v4474_v3, %v4506_v47  ;;  %v11382_v19 = vmul.f32 0.03125, %v4237_v10  ;;  %v15486_v59 = vld [vmem:[#allocation35_spill] sm:$0xff] }
 0x55c   : > { %v4240_v35 = vpop.xlane.xlu1 %4239  ;;  %v2645_v45 = vmul.f32 %v9497_v33, %v2608_v53  ;;  %v2681_v17 = vadd.f32 %v9498_v24, %v2644_v15  ;;  %v2700_v62 = vpack.c.bf16 %v2684_v61, %v2683_v50  ;;  %v4635_v47 = vsub.f32 %v15485_v16, %v11349_v38  ;;  %v15487_v38 = vld [vmem:[#allocation36_spill] sm:$0xff] }
 0x55d   : > { %9088 = vrsqrt.f32 %v4569_v32  ;;  %v4570_v12 = vadd.f32 1e-05, %v4538_v39  ;;  %v11384_v55 = vmul.f32 0.03125, %v4240_v35  ;;  %v4511_v20 = vmul.f32 %v11382_v19, %v11382_v19 }
 0x55e   : > { %v4231_v29 = vpop.xlane.xlu0 %4230  ;;  %v2682_v37 = vadd.f32 %v9498_v24, %v2645_v45  ;;  %v4633_v36 = vsub.f32 %v15486_v59, %v11354_v25  ;;  %v4634_v39 = vsub.f32 %v15487_v38, %v11362_v40 }
 0x55f   : > { %9090 = vrsqrt.f32 %v4570_v12  ;;  %v11386_v22 = vmul.f32 0.03125, %v4231_v29  ;;  %v4512_v8 = vmul.f32 %v11384_v55, %v11384_v55 }
 0x560   : > { %v4234_v30 = vpop.xlane.xlu1 %4233  ;;  %v2699_v56 = vpack.c.bf16 %v2682_v37, %v2681_v17 }
 0x561   : > { %v11394_v2 = vmul.f32 0.03125, %v4234_v30  ;;  %v4509_v33 = vmul.f32 %v11386_v22, %v11386_v22 }
 0x562   : > { %8555 = vmatprep.mubr.msk.bf16.mxu0 %vm497_vm0, %v2699_v56  ;;  %v4397_v0 = vpop.xlane.xlu0 %4396 }
 0x563   : > { %v4479_v23 = vmul.f32 0.03125, %v4397_v0  ;;  %8556 = vmatmul.mubr.msk.bf16.gmra.mrb[108].mxu0 %vm497_vm0, %v2700_v62  ;;  %v9085_v60 = vpop.eup %9084  ;;  %v4510_v25 = vmul.f32 %v11394_v2, %v11394_v2 }
 0x564   : > { %v4400_v42 = vpop.xlane.xlu1 %4399  ;;  %v4667_v10 = vmul.f32 %v9085_v60, %v4635_v47 }
 0x565   : > { %v9087_v4 = vpop.eup %9086  ;;  %v4543_v63 = vsub.f32 %v4479_v23, %v4511_v20  ;;  %v4480_v48 = vmul.f32 0.03125, %v4400_v42  ;;  %v11420_v23 = vld [vmem:[%s15257_s4 + $0xa] ss:$0 sm:$0xff] }
 0x566   : > { %v4668_v3 = vmul.f32 %v9087_v4, %v4636_v49  ;;  %v4391_v13 = vpop.xlane.xlu0 %4390  ;;  %v4704_v30 = vmul.f32 %v11409_v34, %v4667_v10 }
 0x567   : > { %v9089_v9 = vpop.eup %9088  ;;  %v4575_v53 = vadd.f32 1e-05, %v4543_v63  ;;  %v4544_v15 = vsub.f32 %v4480_v48, %v4512_v8  ;;  %v4477_v32 = vmul.f32 0.03125, %v4391_v13 }
 0x568   : > { %v4394_v35 = vpop.xlane.xlu1 %4393  ;;  %v4665_v45 = vmul.f32 %v9089_v9, %v4633_v36  ;;  %v4705_v24 = vmul.f32 %v11409_v34, %v4668_v3  ;;  %v4741_v47 = vadd.f32 %v11420_v23, %v4704_v30  ;;  %v8949_v36 = vld [vmem:[%s15256_s3 + $0x68] sm:$0xff]  }
 0x569   : > { %v9091_v12 = vpop.eup %9090  ;;  %v4576_v61 = vadd.f32 1e-05, %v4544_v15  ;;  %v4541_v29 = vsub.f32 %v4477_v32, %v4509_v33  ;;  %v4478_v17 = vmul.f32 0.03125, %v4394_v35  ;;  %9092 = vrsqrt.f32 %v4575_v53  ;;  %v15488_v53 = vld [vmem:[#allocation38_spill] sm:$0xff] }
 0x56a   : > { %v4249_v37 = vpop.xlane.xlu0 %4248  ;;  %v4666_v50 = vmul.f32 %v9091_v12, %v4634_v39  ;;  %v4702_v40 = vmul.f32 %v11409_v34, %v4665_v45  ;;  %v4742_v28 = vadd.f32 %v11420_v23, %v4705_v24  ;;  %v4640_v15 = vsub.f32 %v15488_v53, %v11384_v55 }
 0x56b   : > { %9094 = vrsqrt.f32 %v4576_v61  ;;  %v4573_v56 = vadd.f32 1e-05, %v4541_v29  ;;  %v4542_v62 = vsub.f32 %v4478_v17, %v4510_v25  ;;  %v11425_v16 = vmul.f32 0.03125, %v4249_v37  ;;  %v15489_v25 = vld [vmem:[#allocation37_spill] sm:$0xff]  ;;  %v15490_v61 = vld [vmem:[#allocation39_spill] sm:$0xff] }
 0x56c   : > { %v4252_v0 = vpop.xlane.xlu1 %4251  ;;  %v4703_v20 = vmul.f32 %v11409_v34, %v4666_v50  ;;  %v4739_v42 = vadd.f32 %v11420_v23, %v4702_v40  ;;  %v4772_v59 = vpack.c.bf16 %v4742_v28, %v4741_v47  ;;  %v4639_v35 = vsub.f32 %v15489_v25, %v11382_v19  ;;  %v15491_v19 = vld [vmem:[#allocation40_spill] sm:$0xff] }
 0x56d   : > { %9096 = vrsqrt.f32 %v4573_v56  ;;  %v4574_v60 = vadd.f32 1e-05, %v4542_v62  ;;  %v11428_v48 = vmul.f32 0.03125, %v4252_v0  ;;  %v4515_v13 = vmul.f32 %v11425_v16, %v11425_v16 }
 0x56e   : > { %v4243_v49 = vpop.xlane.xlu0 %4242  ;;  %v4740_v4 = vadd.f32 %v11420_v23, %v4703_v20  ;;  %v4637_v29 = vsub.f32 %v15490_v61, %v11386_v22  ;;  %v4638_v62 = vsub.f32 %v15491_v19, %v11394_v2  ;;  %v15493_v19 = vld [vmem:[#allocation41_spill] sm:$0xff] }
 0x56f   : > { %9098 = vrsqrt.f32 %v4574_v60  ;;  %v11433_v3 = vmul.f32 0.03125, %v4243_v49  ;;  %v4516_v45 = vmul.f32 %v11428_v48, %v11428_v48 }
 0x570   : > { %v4246_v8 = vpop.xlane.xlu1 %4245  ;;  %v4771_v63 = vpack.c.bf16 %v4740_v4, %v4739_v42 }
 0x571   : > { %v11441_v32 = vmul.f32 0.03125, %v4246_v8  ;;  %v4513_v55 = vmul.f32 %v11433_v3, %v11433_v3 }
 0x572   : > { %8599 = vmatprep.mubr.msk.bf16.mxu0 %vm497_vm0, %v4771_v63  ;;  %v4409_v33 = vpop.xlane.xlu0 %4408 }
 0x573   : > { %v4483_v9 = vmul.f32 0.03125, %v4409_v33  ;;  %8600 = vmatmul.mubr.msk.bf16.vlgmr.msra.gmra.mrb[112].mxu0 %vm497_vm0, %v4772_v59  ;;  %v9093_v10 = vpop.eup %9092  ;;  %v4514_v0 = vmul.f32 %v11441_v32, %v11441_v32 }
 0x574   : > { %v4412_v38 = vpop.xlane.xlu1 %4411  ;;  %8668 = vmatpush3.bf16.msra.mxu0 %v11282_v58  ;;  %v4671_v56 = vmul.f32 %v9093_v10, %v4639_v35 }
 0x575   : > { %v9095_v39 = vpop.eup %9094  ;;  %v4547_v12 = vsub.f32 %v4483_v9, %v4515_v13  ;;  %v4484_v24 = vmul.f32 0.03125, %v4412_v38  ;;  %8669 = vmatprep.subr.bf16.mxu0 %v8949_v36 }
 0x576   : > { %v4403_v17 = vpop.xlane.xlu0 %4402  ;;  %v4672_v37 = vmul.f32 %v9095_v39, %v4640_v15  ;;  %v4708_v33 = vmul.f32 %v11409_v34, %v4671_v56 }
 0x577   : > { %v9097_v50 = vpop.eup %9096  ;;  %v4579_v58 = vadd.f32 1e-05, %v4547_v12  ;;  %v4548_v40 = vsub.f32 %v4484_v24, %v4516_v45  ;;  %v4481_v30 = vmul.f32 0.03125, %v4403_v17 }
 0x578   : > { %v4406_v20 = vpop.xlane.xlu1 %4405  ;;  %v4669_v60 = vmul.f32 %v9097_v50, %v4637_v29  ;;  %8670 = vmatpush3.bf16.msra.mxu0 %v8949_v36  ;;  %v4709_v4 = vmul.f32 %v11409_v34, %v4672_v37  ;;  %v4745_v25 = vadd.f32 %v11420_v23, %v4708_v33  ;;  %v15492_v50 = vld [vmem:[#allocation43_spill] sm:$0xff] }
 0x579   : > { %v9099_v22 = vpop.eup %9098  ;;  %v4580_v28 = vadd.f32 1e-05, %v4548_v40  ;;  %v4545_v49 = vsub.f32 %v4481_v30, %v4513_v55  ;;  %v4482_v42 = vmul.f32 0.03125, %v4406_v20  ;;  %9100 = vrsqrt.f32 %v4579_v58 }
 0x57a   : > { %v4261_v47 = vpop.xlane.xlu0 %4260  ;;  %v4670_v8 = vmul.f32 %v9099_v22, %v4638_v62  ;;  %v4706_v63 = vmul.f32 %v11409_v34, %v4669_v60  ;;  %v4746_v10 = vadd.f32 %v11420_v23, %v4709_v4  ;;  %v4644_v58 = vsub.f32 %v15492_v50, %v11428_v48  ;;  %v15494_v22 = vld [vmem:[#allocation42_spill] sm:$0xff] }
 0x57b   : > { %9102 = vrsqrt.f32 %v4580_v28  ;;  %v4577_v59 = vadd.f32 1e-05, %v4545_v49  ;;  %v4546_v2 = vsub.f32 %v4482_v42, %v4514_v0  ;;  %v11463_v39 = vmul.f32 0.03125, %v4261_v47 }
 0x57c   : > { %v4264_v13 = vpop.xlane.xlu1 %4263  ;;  %v4707_v9 = vmul.f32 %v11409_v34, %v4670_v8  ;;  %v4743_v15 = vadd.f32 %v11420_v23, %v4706_v63  ;;  %v4774_v24 = vpack.c.bf16 %v4746_v10, %v4745_v25  ;;  %v4643_v62 = vsub.f32 %v15493_v19, %v11425_v16  ;;  %v15495_v16 = vld [vmem:[#allocation44_spill] sm:$0xff] }
 0x57d   : > { %9104 = vrsqrt.f32 %v4577_v59  ;;  %v4578_v36 = vadd.f32 1e-05, %v4546_v2  ;;  %v11466_v12 = vmul.f32 0.03125, %v4264_v13  ;;  %v4519_v55 = vmul.f32 %v11463_v39, %v11463_v39 }
 0x57e   : > { %v4255_v53 = vpop.xlane.xlu0 %4254  ;;  %v4744_v38 = vadd.f32 %v11420_v23, %v4707_v9  ;;  %v4641_v28 = vsub.f32 %v15494_v22, %v11433_v3  ;;  %v4642_v2 = vsub.f32 %v15495_v16, %v11441_v32 }
 0x57f   : > { %9106 = vrsqrt.f32 %v4578_v36  ;;  %v11468_v61 = vmul.f32 0.03125, %v4255_v53  ;;  %v4520_v0 = vmul.f32 %v11466_v12, %v11466_v12 }
 0x580   : > { %v4258_v35 = vpop.xlane.xlu1 %4257  ;;  %v4773_v45 = vpack.c.bf16 %v4744_v38, %v4743_v15 }
 0x581   : > { %v11476_v40 = vmul.f32 0.03125, %v4258_v35  ;;  %v4517_v49 = vmul.f32 %v11468_v61, %v11468_v61 }
 0x582   : > { %8603 = vmatprep.mubr.msk.bf16.mxu0 %vm497_vm0, %v4773_v45  ;;  %v4421_v29 = vpop.xlane.xlu0 %4420 }
 0x583   : > { %v4487_v17 = vmul.f32 0.03125, %v4421_v29  ;;  %8604 = vmatmul.mubr.msk.bf16.gmra.mrb[116].mxu0 %vm497_vm0, %v4774_v24  ;;  %v9101_v37 = vpop.eup %9100  ;;  %v4518_v33 = vmul.f32 %v11476_v40, %v11476_v40 }
 0x584   : > { %v4424_v30 = vpop.xlane.xlu1 %4423  ;;  %v4675_v59 = vmul.f32 %v9101_v37, %v4643_v62 }
 0x585   : > { %v9103_v56 = vpop.eup %9102  ;;  %v4551_v20 = vsub.f32 %v4487_v17, %v4519_v55  ;;  %v4488_v60 = vmul.f32 0.03125, %v4424_v30 }
 0x586   : > { %v4415_v42 = vpop.xlane.xlu0 %4414  ;;  %v4676_v48 = vmul.f32 %v9103_v56, %v4644_v58  ;;  %v4712_v32 = vmul.f32 %v11409_v34, %v4675_v59  ;;  %v4647_v59 = vsub.f32 %v10915_v11, %v11463_v39  ;;  %v15496_v11 = vld [vmem:[#allocation45_spill] sm:$0xff] }
 0x587   : > { %v9105_v4 = vpop.eup %9104  ;;  %v4583_v47 = vadd.f32 1e-05, %v4551_v20  ;;  %v4552_v8 = vsub.f32 %v4488_v60, %v4520_v0  ;;  %v4485_v63 = vmul.f32 0.03125, %v4415_v42  ;;  %v4646_v39 = vsub.f32 %v15496_v11, %v11476_v40 }
 0x588   : > { %v4418_v13 = vpop.xlane.xlu1 %4417  ;;  %v4673_v9 = vmul.f32 %v9105_v4, %v4641_v28  ;;  %v4713_v15 = vmul.f32 %v11409_v34, %v4676_v48  ;;  %v4749_v19 = vadd.f32 %v11420_v23, %v4712_v32  ;;  %v4648_v4 = vsub.f32 %v10949_v26, %v11466_v12 }
 0x589   : > { %v9107_v36 = vpop.eup %9106  ;;  %v4584_v3 = vadd.f32 1e-05, %v4552_v8  ;;  %v4549_v10 = vsub.f32 %v4485_v63, %v4517_v49  ;;  %v4486_v53 = vmul.f32 0.03125, %v4418_v13  ;;  %9108 = vrsqrt.f32 %v4583_v47 }
 0x58a   : > { %v4273_v38 = vpop.xlane.xlu0 %4272  ;;  %v4674_v25 = vmul.f32 %v9107_v36, %v4642_v2  ;;  %v4710_v35 = vmul.f32 %v11409_v34, %v4673_v9  ;;  %v4750_v37 = vadd.f32 %v11420_v23, %v4713_v15  ;;  %v4645_v13 = vsub.f32 %v10922_v7, %v11468_v61 }
 0x58b   : > { %9110 = vrsqrt.f32 %v4584_v3  ;;  %v4581_v45 = vadd.f32 1e-05, %v4549_v10  ;;  %v4550_v24 = vsub.f32 %v4486_v53, %v4518_v33  ;;  %v11497_v56 = vmul.f32 0.03125, %v4273_v38 }
 0x58c   : > { %v4276_v29 = vpop.xlane.xlu1 %4275  ;;  %v4711_v55 = vmul.f32 %v11409_v34, %v4674_v25  ;;  %v4747_v58 = vadd.f32 %v11420_v23, %v4710_v35  ;;  %v4776_v60 = vpack.c.bf16 %v4750_v37, %v4749_v19 }
 0x58d   : > { %9112 = vrsqrt.f32 %v4581_v45  ;;  %v4582_v17 = vadd.f32 1e-05, %v4550_v24  ;;  %v11500_v20 = vmul.f32 0.03125, %v4276_v29  ;;  %v4523_v49 = vmul.f32 %v11497_v56, %v11497_v56 }
 0x58e   : > { %v4267_v50 = vpop.xlane.xlu0 %4266  ;;  %v4748_v30 = vadd.f32 %v11420_v23, %v4711_v55 }
 0x58f   : > { %9114 = vrsqrt.f32 %v4582_v17  ;;  %v11502_v22 = vmul.f32 0.03125, %v4267_v50  ;;  %v4524_v16 = vmul.f32 %v11500_v20, %v11500_v20 }
 0x590   : > { %v4270_v62 = vpop.xlane.xlu1 %4269  ;;  %v4775_v0 = vpack.c.bf16 %v4748_v30, %v4747_v58 }
 0x591   : > { %v11510_v47 = vmul.f32 0.03125, %v4270_v62  ;;  %v4521_v9 = vmul.f32 %v11502_v22, %v11502_v22  ;;  %v4649_v11 = vsub.f32 %v11008_v41, %v11502_v22 }
 0x592   : > { %8607 = vmatprep.mubr.msk.bf16.mxu0 %vm497_vm0, %v4775_v0  ;;  %v4433_v28 = vpop.xlane.xlu0 %4432 }
 0x593   : > { %v4491_v42 = vmul.f32 0.03125, %v4433_v28  ;;  %8608 = vmatmul.mubr.msk.bf16.gmra.mrb[120].mxu0 %vm497_vm0, %v4776_v60  ;;  %v9109_v48 = vpop.eup %9108  ;;  %v4522_v38 = vmul.f32 %v11510_v47, %v11510_v47 }
 0x594   : > { %v4436_v8 = vpop.xlane.xlu1 %4435  ;;  %v4679_v15 = vmul.f32 %v9109_v48, %v4647_v59 }
 0x595   : > { %v9111_v63 = vpop.eup %9110  ;;  %v4555_v2 = vsub.f32 %v4491_v42, %v4523_v49  ;;  %v4492_v33 = vmul.f32 0.03125, %v4436_v8 }
 0x596   : > { %v4427_v36 = vpop.xlane.xlu0 %4426  ;;  %v4680_v26 = vmul.f32 %v9111_v63, %v4648_v4  ;;  %v4716_v40 = vmul.f32 %v11409_v34, %v4679_v15 }
 0x597   : > { %v9113_v12 = vpop.eup %9112  ;;  %v4587_v3 = vadd.f32 1e-05, %v4555_v2  ;;  %v4556_v10 = vsub.f32 %v4492_v33, %v4524_v16  ;;  %v4489_v53 = vmul.f32 0.03125, %v4427_v36 }
 0x598   : > { %v4430_v25 = vpop.xlane.xlu1 %4429  ;;  %v4677_v35 = vmul.f32 %v9113_v12, %v4645_v13  ;;  %v4717_v32 = vmul.f32 %v11409_v34, %v4680_v26  ;;  %v4753_v42 = vadd.f32 %v11420_v23, %v4716_v40 }
 0x599   : > { %v9115_v45 = vpop.eup %9114  ;;  %v4588_v7 = vadd.f32 1e-05, %v4556_v10  ;;  %v4553_v61 = vsub.f32 %v4489_v53, %v4521_v9  ;;  %v4490_v24 = vmul.f32 0.03125, %v4430_v25  ;;  %9116 = vrsqrt.f32 %v4587_v3 }
 0x59a   : > { %v4285_v29 = vpop.xlane.xlu0 %4284  ;;  %v4678_v55 = vmul.f32 %v9115_v45, %v4646_v39  ;;  %v4714_v17 = vmul.f32 %v11409_v34, %v4677_v35  ;;  %v4754_v62 = vadd.f32 %v11420_v23, %v4717_v32  ;;  %v4652_v9 = vsub.f32 %v11035_v5, %v11500_v20 }
 0x59b   : > { %9118 = vrsqrt.f32 %v4588_v7  ;;  %v4585_v37 = vadd.f32 1e-05, %v4553_v61  ;;  %v4554_v50 = vsub.f32 %v4490_v24, %v4522_v38  ;;  %v11531_v49 = vmul.f32 0.03125, %v4285_v29 }
 0x59c   : > { %v4288_v58 = vpop.xlane.xlu1 %4287  ;;  %v4715_v30 = vmul.f32 %v11409_v34, %v4678_v55  ;;  %v4751_v60 = vadd.f32 %v11420_v23, %v4714_v17  ;;  %v4778_v63 = vpack.c.bf16 %v4754_v62, %v4753_v42  ;;  %v4651_v3 = vsub.f32 %v11006_v52, %v11497_v56 }
 0x59d   : > { %9120 = vrsqrt.f32 %v4585_v37  ;;  %v4586_v19 = vadd.f32 1e-05, %v4554_v50  ;;  %v11534_v8 = vmul.f32 0.03125, %v4288_v58  ;;  %v4527_v2 = vmul.f32 %v11531_v49, %v11531_v49 }
 0x59e   : > { %v4279_v0 = vpop.xlane.xlu0 %4278  ;;  %v4752_v28 = vadd.f32 %v11420_v23, %v4715_v30  ;;  %v4650_v52 = vsub.f32 %v11039_v6, %v11510_v47 }
 0x59f   : > { %9122 = vrsqrt.f32 %v4586_v19  ;;  %v11536_v59 = vmul.f32 0.03125, %v4279_v0  ;;  %v4528_v10 = vmul.f32 %v11534_v8, %v11534_v8 }
 0x5a0   : > { %v4282_v48 = vpop.xlane.xlu1 %4281  ;;  %v4777_v4 = vpack.c.bf16 %v4752_v28, %v4751_v60 }
 0x5a1   : > { %v11544_v36 = vmul.f32 0.03125, %v4282_v48  ;;  %v4525_v39 = vmul.f32 %v11536_v59, %v11536_v59 }
 0x5a2   : > { %8611 = vmatprep.mubr.msk.bf16.mxu0 %vm497_vm0, %v4777_v4  ;;  %v4445_v16 = vpop.xlane.xlu0 %4444 }
 0x5a3   : > { %v4495_v33 = vmul.f32 0.03125, %v4445_v16  ;;  %8612 = vmatmul.mubr.msk.bf16.gmra.mrb[124].mxu0 %vm497_vm0, %v4778_v63  ;;  %v9117_v13 = vpop.eup %9116  ;;  %v4526_v56 = vmul.f32 %v11544_v36, %v11544_v36 }
 0x5a4   : > { %v4448_v26 = vpop.xlane.xlu1 %4447  ;;  %v4683_v7 = vmul.f32 %v9117_v13, %v4651_v3  ;;  %v4656_v3 = vsub.f32 %v11095_v54, %v11534_v8 }
 0x5a5   : > { %v9119_v12 = vpop.eup %9118  ;;  %v4559_v53 = vsub.f32 %v4495_v33, %v4527_v2  ;;  %v4496_v15 = vmul.f32 0.03125, %v4448_v26 }
 0x5a6   : > { %v4439_v38 = vpop.xlane.xlu0 %4438  ;;  %v4684_v5 = vmul.f32 %v9119_v12, %v4652_v9  ;;  %v4720_v6 = vmul.f32 %v11409_v34, %v4683_v7 }
 0x5a7   : > { %v9121_v20 = vpop.eup %9120  ;;  %v4591_v25 = vadd.f32 1e-05, %v4559_v53  ;;  %v4560_v35 = vsub.f32 %v4496_v15, %v4528_v10  ;;  %v4493_v45 = vmul.f32 0.03125, %v4439_v38 }
 0x5a8   : > { %v4442_v61 = vpop.xlane.xlu1 %4441  ;;  %v4681_v24 = vmul.f32 %v9121_v20, %v4649_v11  ;;  %v4721_v55 = vmul.f32 %v11409_v34, %v4684_v5  ;;  %v4757_v48 = vadd.f32 %v11420_v23, %v4720_v6  ;;  %v4655_v11 = vsub.f32 %v11083_v14, %v11531_v49 }
 0x5a9   : > { %v9123_v32 = vpop.eup %9122  ;;  %v4592_v41 = vadd.f32 1e-05, %v4560_v35  ;;  %v4557_v22 = vsub.f32 %v4493_v45, %v4525_v39  ;;  %v4494_v29 = vmul.f32 0.03125, %v4442_v61  ;;  %9124 = vrsqrt.f32 %v4591_v25 }
 0x5aa   : > { %v4297_v17 = vpop.xlane.xlu0 %4296  ;;  %v4682_v37 = vmul.f32 %v9123_v32, %v4650_v52  ;;  %v4718_v50 = vmul.f32 %v11409_v34, %v4681_v24  ;;  %v4758_v62 = vadd.f32 %v11420_v23, %v4721_v55  ;;  %v4653_v20 = vsub.f32 %v11107_v1, %v11536_v59 }
 0x5ab   : > { %9126 = vrsqrt.f32 %v4592_v41  ;;  %v4589_v40 = vadd.f32 1e-05, %v4557_v22  ;;  %v4558_v58 = vsub.f32 %v4494_v29, %v4526_v56  ;;  %v11565_v42 = vmul.f32 0.03125, %v4297_v17 }
 0x5ac   : > { %v4300_v47 = vpop.xlane.xlu1 %4299  ;;  %v4719_v30 = vmul.f32 %v11409_v34, %v4682_v37  ;;  %v4755_v60 = vadd.f32 %v11420_v23, %v4718_v50  ;;  %v4780_v2 = vpack.c.bf16 %v4758_v62, %v4757_v48  ;;  %v4654_v14 = vsub.f32 %v11109_v21, %v11544_v36 }
 0x5ad   : > { %9128 = vrsqrt.f32 %v4589_v40  ;;  %v4590_v19 = vadd.f32 1e-05, %v4558_v58  ;;  %v11568_v16 = vmul.f32 0.03125, %v4300_v47  ;;  %v4531_v9 = vmul.f32 %v11565_v42, %v11565_v42 }
 0x5ae   : > { %v4291_v0 = vpop.xlane.xlu0 %4290  ;;  %v4756_v28 = vadd.f32 %v11420_v23, %v4719_v30 }
 0x5af   : > { %9130 = vrsqrt.f32 %v4590_v19  ;;  %v11570_v33 = vmul.f32 0.03125, %v4291_v0  ;;  %v4532_v39 = vmul.f32 %v11568_v16, %v11568_v16 }
 0x5b0   : > { %v4294_v4 = vpop.xlane.xlu1 %4293  ;;  %v4779_v63 = vpack.c.bf16 %v4756_v28, %v4755_v60 }
 0x5b1   : > { %v11578_v10 = vmul.f32 0.03125, %v4294_v4  ;;  %v4529_v25 = vmul.f32 %v11570_v33, %v11570_v33 }
 0x5b2   : > { %8615 = vmatprep.mubr.msk.bf16.mxu0 %vm497_vm0, %v4779_v63  ;;  %v4457_v13 = vpop.xlane.xlu0 %4456 }
 0x5b3   : > { %v4499_v26 = vmul.f32 0.03125, %v4457_v13  ;;  %8616 = vmatmul.mubr.msk.bf16.gmra.mrb[128].mxu0 %vm497_vm0, %v4780_v2  ;;  %v9125_v12 = vpop.eup %9124  ;;  %v4530_v49 = vmul.f32 %v11578_v10, %v11578_v10 }
 0x5b4   : > { %v4460_v53 = vpop.xlane.xlu1 %4459  ;;  %v4687_v56 = vmul.f32 %v9125_v12, %v4655_v11  ;;  %v4660_v12 = vsub.f32 %v11147_v44, %v11568_v16 }
 0x5b5   : > { %v9127_v15 = vpop.eup %9126  ;;  %v4563_v38 = vsub.f32 %v4499_v26, %v4531_v9  ;;  %v4500_v5 = vmul.f32 0.03125, %v4460_v53 }
 0x5b6   : > { %v4451_v35 = vpop.xlane.xlu0 %4450  ;;  %v4688_v54 = vmul.f32 %v9127_v15, %v4656_v3  ;;  %v4724_v21 = vmul.f32 %v11409_v34, %v4687_v56 }
 0x5b7   : > { %v9129_v8 = vpop.eup %9128  ;;  %v4595_v45 = vadd.f32 1e-05, %v4563_v38  ;;  %v4564_v7 = vsub.f32 %v4500_v5, %v4532_v39  ;;  %v4497_v52 = vmul.f32 0.03125, %v4451_v35  ;;  %v4659_v38 = vsub.f32 %v11139_v51, %v11565_v42 }
 0x5b8   : > { %v4454_v61 = vpop.xlane.xlu1 %4453  ;;  %v4685_v24 = vmul.f32 %v9129_v8, %v4653_v20  ;;  %v4725_v22 = vmul.f32 %v11409_v34, %v4688_v54  ;;  %v4761_v0 = vadd.f32 %v11420_v23, %v4724_v21  ;;  %v4657_v5 = vsub.f32 %v11177_v57, %v11570_v33 }
 0x5b9   : > { %v9131_v32 = vpop.eup %9130  ;;  %v4596_v1 = vadd.f32 1e-05, %v4564_v7  ;;  %v4561_v59 = vsub.f32 %v4497_v52, %v4529_v25  ;;  %v4498_v41 = vmul.f32 0.03125, %v4454_v61  ;;  %9132 = vrsqrt.f32 %v4595_v45 }
 0x5ba   : > { %v4309_v29 = vpop.xlane.xlu0 %4308  ;;  %v4686_v55 = vmul.f32 %v9131_v32, %v4654_v14  ;;  %v4722_v17 = vmul.f32 %v11409_v34, %v4685_v24  ;;  %v4762_v6 = vadd.f32 %v11420_v23, %v4725_v22  ;;  %v4658_v33 = vsub.f32 %v11179_v27, %v11578_v10 }
 0x5bb   : > { %9134 = vrsqrt.f32 %v4596_v1  ;;  %v4593_v37 = vadd.f32 1e-05, %v4561_v59  ;;  %v4562_v50 = vsub.f32 %v4498_v41, %v4530_v49  ;;  %v11605_v2 = vmul.f32 0.03125, %v4309_v29 }
 0x5bc   : > { %v4312_v36 = vpop.xlane.xlu1 %4311  ;;  %v4723_v40 = vmul.f32 %v11409_v34, %v4686_v55  ;;  %v4759_v30 = vadd.f32 %v11420_v23, %v4722_v17  ;;  %v4782_v4 = vpack.c.bf16 %v4762_v6, %v4761_v0 }
 0x5bd   : > { %9136 = vrsqrt.f32 %v4593_v37  ;;  %v4594_v58 = vadd.f32 1e-05, %v4562_v50  ;;  %v4344_v20 = vmul.f32 0.03125, %v4312_v36  ;;  %v4535_v44 = vmul.f32 %v11605_v2, %v11605_v2 }
 0x5be   : > { %v4303_v47 = vpop.xlane.xlu0 %4302  ;;  %v4760_v19 = vadd.f32 %v11420_v23, %v4723_v40 }
 0x5bf   : > { %9138 = vrsqrt.f32 %v4594_v58  ;;  %v11599_v62 = vmul.f32 0.03125, %v4303_v47  ;;  %v4536_v32 = vmul.f32 %v4344_v20, %v4344_v20 }
 0x5c0   : > { %v4306_v60 = vpop.xlane.xlu1 %4305  ;;  %v4781_v28 = vpack.c.bf16 %v4760_v19, %v4759_v30 }
 0x5c1   : > { %v11602_v48 = vmul.f32 0.03125, %v4306_v60  ;;  %v4533_v13 = vmul.f32 %v11599_v62, %v11599_v62  ;;  %v4661_v58 = vsub.f32 %v11212_v18, %v11599_v62  ;;  %v4663_v60 = vsub.f32 %v11206_v46, %v11605_v2 }
 0x5c2   : > { %8619 = vmatprep.mubr.msk.bf16.mxu0 %vm497_vm0, %v4781_v28  ;;  %v4463_v63 = vpop.xlane.xlu0 %4462 }
 0x5c3   : > { %v4501_v9 = vmul.f32 0.03125, %v4463_v63  ;;  %8620 = vmatmul.mubr.msk.bf16.gmra.mrb[132].mxu0 %vm497_vm0, %v4782_v4  ;;  %v9133_v26 = vpop.eup %9132  ;;  %v4534_v15 = vmul.f32 %v11602_v48, %v11602_v48  ;;  %v4662_v30 = vsub.f32 %v11251_v31, %v11602_v48  ;;  %v4664_v48 = vsub.f32 %v11219_v43, %v4344_v20 }
 0x5c4   : > { %v4466_v3 = vpop.xlane.xlu1 %4465  ;;  %v4691_v42 = vmul.f32 %v9133_v26, %v4659_v38 }
 0x5c5   : > { %v9135_v53 = vpop.eup %9134  ;;  %v4565_v11 = vsub.f32 %v4501_v9, %v4533_v13  ;;  %v4502_v39 = vmul.f32 0.03125, %v4466_v3 }
 0x5c6   : > { %v11618_v25 = vpop.f32.mrb[80].mxu0  ;;  %v4469_v35 = vpop.xlane.xlu0 %4468  ;;  %v4692_v54 = vmul.f32 %v9135_v53, %v4660_v12  ;;  %v4728_v17 = vmul.f32 %v11409_v34, %v4691_v42  ;;  %v15518_v42 = vld [vmem:[#allocation7_spill] sm:$0xff] }
 0x5c7   : > { %15497 = vst [vmem:[#allocation18_spill] sm:$0xff] %v11618_v25  ;;  %v9137_v8 = vpop.eup %9136  ;;  %v4597_v16 = vadd.f32 1e-05, %v4565_v11  ;;  %v4566_v45 = vsub.f32 %v4502_v39, %v4534_v15  ;;  %v4503_v7 = vmul.f32 0.03125, %v4469_v35  ;;  %v11622_v52 = vpop.f32.mrb[81].mxu0 }
 0x5c8   : > { %15498 = vst [vmem:[#allocation19_spill] sm:$0xff] %v11622_v52  ;;  %v4472_v56 = vpop.xlane.xlu1 %4471  ;;  %v11624_v14 = vpop.f32.mrb[82].mxu0  ;;  %v4689_v51 = vmul.f32 %v9137_v8, %v4657_v5  ;;  %v4729_v59 = vmul.f32 %v11409_v34, %v4692_v54  ;;  %v4765_v36 = vadd.f32 %v11420_v23, %v4728_v17  ;;  %v15505_v5 = vld [vmem:[#allocation2_spill] sm:$0xff] }
 0x5c9   : > { %15499 = vst [vmem:[#allocation20_spill] sm:$0xff] %v11624_v14  ;;  %v9139_v57 = vpop.eup %9138  ;;  %9140 = vrsqrt.f32 %v4597_v16  ;;  %v4598_v49 = vadd.f32 1e-05, %v4566_v45  ;;  %v4567_v61 = vsub.f32 %v4503_v7, %v4535_v44  ;;  %v11628_v24 = vpop.f32.mrb[83].mxu0  ;;  %v4504_v1 = vmul.f32 0.03125, %v4472_v56  ;;  %v15511_v44 = vld [vmem:[#allocation4_spill] sm:$0xff] }
 0x5ca   : > { %15500 = vst [vmem:[#allocation23_spill] sm:$0xff] %v11628_v24  ;;  %v4690_v22 = vmul.f32 %v9139_v57, %v4658_v33  ;;  %v4726_v29 = vmul.f32 %v11409_v34, %v4689_v51  ;;  %v4766_v37 = vadd.f32 %v11420_v23, %v4729_v59  ;;  %v15513_v16 = vld [vmem:[#allocation6_spill] sm:$0xff]  ;;  %v15519_v57 = vld [vmem:[#allocation8_spill] sm:$0xff]  ;;  %v15520_v33 = vld [vmem:[#allocation9_spill] sm:$0xff] }
 0x5cb   : > { %9142 = vrsqrt.f32 %v4598_v49  ;;  %v4599_v41 = vadd.f32 1e-05, %v4567_v61  ;;  %v4568_v55 = vsub.f32 %v4504_v1, %v4536_v32  ;;  %v15521_v49 = vld [vmem:[#allocation10_spill] sm:$0xff] }
 0x5cc   : > { %v4727_v27 = vmul.f32 %v11409_v34, %v4690_v22  ;;  %v4763_v50 = vadd.f32 %v11420_v23, %v4726_v29  ;;  %v4784_v6 = vpack.c.bf16 %v4766_v37, %v4765_v36  ;;  %v15527_v22 = vld [vmem:[#allocation12_spill] sm:$0xff]  ;;  %v15528_v29 = vld [vmem:[#allocation13_spill] sm:$0xff] }
 0x5cd   : > { %9144 = vrsqrt.f32 %v4599_v41  ;;  %v4600_v10 = vadd.f32 1e-05, %v4568_v55  ;;  %v15526_v41 = vld [vmem:[#allocation11_spill] sm:$0xff]  ;;  %v15529_v55 = vld [vmem:[#allocation14_spill] sm:$0xff]  ;;  %v15536_v36 = vld [vmem:[#allocation17_spill] sm:$0xff] }
 0x5ce   : > { %v4764_v21 = vadd.f32 %v11420_v23, %v4727_v27 }
 0x5cf   : > { %9146 = vrsqrt.f32 %v4600_v10 }
 0x5d0   : > { %v4783_v40 = vpack.c.bf16 %v4764_v21, %v4763_v50  ;;  %v15534_v50 = vld [vmem:[#allocation15_spill] sm:$0xff]  ;;  %v15535_v21 = vld [vmem:[#allocation16_spill] sm:$0xff] }
 0x5d2   : > { %8623 = vmatprep.mubr.msk.bf16.mxu0 %vm497_vm0, %v4783_v40 }
 0x5d3   : > { %v9141_v47 = vpop.eup %9140  ;;  %8624 = vmatmul.mubr.msk.bf16.gmra.mrb[136].mxu0 %vm497_vm0, %v4784_v6 }
 0x5d4   : > { %v4693_v19 = vmul.f32 %v9141_v47, %v4661_v58 }
 0x5d5   : > { %v9143_v0 = vpop.eup %9142 }
 0x5d6   : > { %v11646_v28 = vpop.f32.mrb[84].mxu0  ;;  %v4694_v4 = vmul.f32 %v9143_v0, %v4662_v30  ;;  %v4730_v63 = vmul.f32 %v11409_v34, %v4693_v19 }
 0x5d7   : > { %15501 = vst [vmem:[#allocation21_spill] sm:$0xff] %v11646_v28  ;;  %v9145_v18 = vpop.eup %9144  ;;  %v11649_v62 = vpop.f32.mrb[85].mxu0 }
 0x5d8   : > { %15502 = vst [vmem:[#allocation22_spill] sm:$0xff] %v11649_v62  ;;  %v11651_v13 = vpop.f32.mrb[86].mxu0  ;;  %v4731_v9 = vmul.f32 %v11409_v34, %v4694_v4  ;;  %v4695_v31 = vmul.f32 %v9145_v18, %v4663_v60  ;;  %v4767_v46 = vadd.f32 %v11420_v23, %v4730_v63  ;;  %v11748_v4 = vld [vmem:[%s15257_s4 + $0xb] ss:$0 sm:$0xff] }
 0x5d9   : > { %15503 = vst [vmem:[#allocation24_spill] sm:$0xff] %v11651_v13  ;;  %v11655_v26 = vpop.f32.mrb[87].mxu0  ;;  %v9147_v12 = vpop.eup %9146 }
 0x5da   : > { %15504 = vst [vmem:[#allocation27_spill] sm:$0xff] %v11655_v26  ;;  %v4768_v2 = vadd.f32 %v11420_v23, %v4731_v9  ;;  %v4696_v3 = vmul.f32 %v9147_v12, %v4664_v48  ;;  %v4732_v53 = vmul.f32 %v11409_v34, %v4695_v31 }
 0x5dc   : > { %v4785_v15 = vpack.c.bf16 %v4768_v2, %v4767_v46  ;;  %v4733_v11 = vmul.f32 %v11409_v34, %v4696_v3  ;;  %v4769_v39 = vadd.f32 %v11420_v23, %v4732_v53  ;;  %v15510_v34 = vld [vmem:[#allocation3_spill] sm:$0xff] }
 0x5de   : > { %8627 = vmatprep.mubr.msk.bf16.mxu0 %vm497_vm0, %v4785_v15  ;;  %v4770_v38 = vadd.f32 %v11420_v23, %v4733_v11  ;;  %v15512_v23 = vld [vmem:[#allocation5_spill] sm:$0xff] }
 0x5e0   : > { %v4786_v43 = vpack.c.bf16 %v4770_v38, %v4769_v39 }
 0x5e2   : > { %8628 = vmatmul.mubr.msk.bf16.gmra.mrb[140].mxu0 %vm497_vm0, %v4786_v43 }
 0x5e3   : > { %8671 = vmatprep.mubr.msk.bf16.mxu0 %vm497_vm0, %v15505_v5 }
 0x5e6   : > { %v11667_v20 = vpop.f32.mrb[88].mxu0 }
 0x5e7   : > { %15506 = vst [vmem:[#allocation25_spill] sm:$0xff] %v11667_v20  ;;  %v11669_v35 = vpop.f32.mrb[89].mxu0 }
 0x5e8   : > { %15507 = vst [vmem:[#allocation26_spill] sm:$0xff] %v11669_v35  ;;  %v11671_v54 = vpop.f32.mrb[90].mxu0 }
 0x5e9   : > { %15508 = vst [vmem:[#allocation28_spill] sm:$0xff] %v11671_v54  ;;  %v11673_v8 = vpop.f32.mrb[91].mxu0 }
 0x5ea   : > { %15509 = vst [vmem:[#allocation30_spill] sm:$0xff] %v11673_v8  ;;  %8672 = vmatmul.mubr.msk.bf16.vlgmr.msra.gmra.mrb[144].mxu0 %vm497_vm0, %v15510_v34 }
 0x5eb   : > { %8675 = vmatprep.mubr.msk.bf16.mxu0 %vm497_vm0, %v15511_v44 }
 0x5f2   : > { %8676 = vmatmul.mubr.msk.bf16.gmra.mrb[148].mxu0 %vm497_vm0, %v15512_v23 }
 0x5f3   : > { %8679 = vmatprep.mubr.msk.bf16.mxu0 %vm497_vm0, %v15513_v16 }
 0x5f6   : > { %v11683_v45 = vpop.f32.mrb[92].mxu0 }
 0x5f7   : > { %15514 = vst [vmem:[#allocation29_spill] sm:$0xff] %v11683_v45  ;;  %v11685_v7 = vpop.f32.mrb[93].mxu0 }
 0x5f8   : > { %15515 = vst [vmem:[#allocation31_spill] sm:$0xff] %v11685_v7  ;;  %v11687_v56 = vpop.f32.mrb[94].mxu0 }
 0x5f9   : > { %15516 = vst [vmem:[#allocation32_spill] sm:$0xff] %v11687_v56  ;;  %v11689_v51 = vpop.f32.mrb[95].mxu0 }
 0x5fa   : > { %15517 = vst [vmem:[#allocation34_spill] sm:$0xff] %v11689_v51  ;;  %8680 = vmatmul.mubr.msk.bf16.gmra.mrb[152].mxu0 %vm497_vm0, %v15518_v42 }
 0x5fb   : > { %8683 = vmatprep.mubr.msk.bf16.mxu0 %vm497_vm0, %v15519_v57 }
 0x602   : > { %8684 = vmatmul.mubr.msk.bf16.gmra.mrb[156].mxu0 %vm497_vm0, %v15520_v33 }
 0x603   : > { %8687 = vmatprep.mubr.msk.bf16.mxu0 %vm497_vm0, %v15521_v49 }
 0x606   : > { %v11699_v61 = vpop.f32.mrb[96].mxu0 }
 0x607   : > { %15522 = vst [vmem:[#allocation33_spill] sm:$0xff] %v11699_v61  ;;  %v11701_v32 = vpop.f32.mrb[97].mxu0 }
 0x608   : > { %15523 = vst [vmem:[#allocation35_spill] sm:$0xff] %v11701_v32  ;;  %v11703_v1 = vpop.f32.mrb[98].mxu0 }
 0x609   : > { %15524 = vst [vmem:[#allocation36_spill] sm:$0xff] %v11703_v1  ;;  %v11705_v59 = vpop.f32.mrb[99].mxu0 }
 0x60a   : > { %15525 = vst [vmem:[#allocation38_spill] sm:$0xff] %v11705_v59  ;;  %8688 = vmatmul.mubr.msk.bf16.gmra.mrb[160].mxu0 %vm497_vm0, %v15526_v41 }
 0x60b   : > { %8691 = vmatprep.mubr.msk.bf16.mxu0 %vm497_vm0, %v15527_v22 }
 0x612   : > { %8692 = vmatmul.mubr.msk.bf16.gmra.mrb[164].mxu0 %vm497_vm0, %v15528_v29 }
 0x613   : > { %8695 = vmatprep.mubr.msk.bf16.mxu0 %vm497_vm0, %v15529_v55 }
 0x616   : > { %v11715_v17 = vpop.f32.mrb[100].mxu0 }
 0x617   : > { %15530 = vst [vmem:[#allocation37_spill] sm:$0xff] %v11715_v17  ;;  %v11717_v27 = vpop.f32.mrb[101].mxu0 }
 0x618   : > { %15531 = vst [vmem:[#allocation39_spill] sm:$0xff] %v11717_v27  ;;  %v11719_v10 = vpop.f32.mrb[102].mxu0 }
 0x619   : > { %15532 = vst [vmem:[#allocation40_spill] sm:$0xff] %v11719_v10  ;;  %v11721_v37 = vpop.f32.mrb[103].mxu0 }
 0x61a   : > { %15533 = vst [vmem:[#allocation43_spill] sm:$0xff] %v11721_v37  ;;  %8696 = vmatmul.mubr.msk.bf16.gmra.mrb[168].mxu0 %vm497_vm0, %v15534_v50 }
 0x61b   : > { %8699 = vmatprep.mubr.msk.bf16.mxu0 %vm497_vm0, %v15535_v21 }
 0x622   : > { %8700 = vmatmul.mubr.msk.bf16.gmra.mrb[172].mxu0 %vm497_vm0, %v15536_v36 }
 0x626   : > { %v11729_v40 = vpop.f32.mrb[104].mxu0 }
 0x627   : > { %15537 = vst [vmem:[#allocation41_spill] sm:$0xff] %v11729_v40  ;;  %v11731_v58 = vpop.f32.mrb[105].mxu0 }
 0x628   : > { %15538 = vst [vmem:[#allocation42_spill] sm:$0xff] %v11731_v58  ;;  %v11733_v6 = vpop.f32.mrb[106].mxu0 }
 0x629   : > { %15539 = vst [vmem:[#allocation44_spill] sm:$0xff] %v11733_v6  ;;  %v11735_v47 = vpop.f32.mrb[107].mxu0 }
 0x62a   : > { %15540 = vst [vmem:[#allocation45_spill] sm:$0xff] %v11735_v47 }
 0x636   : > { %v11737_v30 = vpop.f32.mrb[108].mxu0 }
 0x637   : > { %15541 = vst [vmem:[#allocation2_spill] sm:$0xff] %v11737_v30  ;;  %v11739_v19 = vpop.f32.mrb[109].mxu0 }
 0x638   : > { %15542 = vst [vmem:[#allocation3_spill] sm:$0xff] %v11739_v19  ;;  %v11741_v0 = vpop.f32.mrb[110].mxu0 }
 0x639   : > { %15543 = vst [vmem:[#allocation4_spill] sm:$0xff] %v11741_v0  ;;  %v11743_v60 = vpop.f32.mrb[111].mxu0 }
 0x63a   : > { %15544 = vst [vmem:[#allocation5_spill] sm:$0xff] %v11743_v60 }
 0x646   : > { %v8601_v63 = vpop.f32.mrb[112].mxu0 }
 0x647   : > { %v4900_v18 = vadd.f32 %v8601_v63, %v11748_v4  ;;  %v4891_v9 = vpop.f32.mrb[113].mxu0 }
 0x648   : > { %v4892_v31 = vadd.f32 %v11748_v4, %v4891_v9  ;;  %v8602_v48 = vpop.f32.mrb[114].mxu0 }
 0x649   : > { %v11752_v12 = vmax.f32 %v4900_v18, 0.0  ;;  %v4903_v46 = vadd.f32 %v8602_v48, %v11748_v4  ;;  %v4894_v2 = vpop.f32.mrb[115].mxu0 }
 0x64a   : > { %v4895_v3 = vadd.f32 %v11748_v4, %v4894_v2  ;;  %v11756_v53 = vmax.f32 %v4892_v31, 0.0 }
 0x64b   : > { %v11758_v15 = vmax.f32 %v4903_v46, 0.0  ;;  %v5056_v11 = vsel %vm497_vm0, %v11752_v12, 0.0  ;;  %v5180_v5 = vmul.f32 %v11752_v12, %v11752_v12 }
 0x64c   : > { %5057 = vadd.xlane.f32.xlu0 %v5056_v11  ;;  %v11762_v39 = vmax.f32 %v4895_v3, 0.0  ;;  %v5050_v43 = vsel %vm497_vm0, %v11756_v53, 0.0  ;;  %v5178_v16 = vmul.f32 %v11756_v53, %v11756_v53 }
 0x64d   : > { %v5059_v38 = vsel %vm497_vm0, %v11758_v15, 0.0  ;;  %v5181_v44 = vmul.f32 %v11758_v15, %v11758_v15  ;;  %v5216_v23 = vsel %vm497_vm0, %v5180_v5, 0.0 }
 0x64e   : > { %5060 = vadd.xlane.f32.xlu1 %v5059_v38  ;;  %v5053_v34 = vsel %vm497_vm0, %v11762_v39, 0.0  ;;  %v5179_v57 = vmul.f32 %v11762_v39, %v11762_v39  ;;  %v5210_v22 = vsel %vm497_vm0, %v5178_v16, 0.0 }
 0x64f   : > { %v5219_v42 = vsel %vm497_vm0, %v5181_v44, 0.0 }
 0x650   : > { %5051 = vadd.xlane.f32.xlu0 %v5050_v43  ;;  %v5213_v63 = vsel %vm497_vm0, %v5179_v57, 0.0 }
 0x652   : > { %5054 = vadd.xlane.f32.xlu1 %v5053_v34 }
 0x654   : > { %5217 = vadd.xlane.f32.xlu0 %v5216_v23 }
 0x656   : > { %5220 = vadd.xlane.f32.xlu1 %v5219_v42  ;;  %v8605_v33 = vpop.f32.mrb[116].mxu0 }
 0x657   : > { %v4916_v49 = vadd.f32 %v8605_v33, %v11748_v4  ;;  %v4907_v41 = vpop.f32.mrb[117].mxu0 }
 0x658   : > { %v4908_v29 = vadd.f32 %v11748_v4, %v4907_v41  ;;  %5211 = vadd.xlane.f32.xlu0 %v5210_v22  ;;  %v8606_v55 = vpop.f32.mrb[118].mxu0 }
 0x659   : > { %v11783_v50 = vmax.f32 %v4916_v49, 0.0  ;;  %v4919_v21 = vadd.f32 %v8606_v55, %v11748_v4  ;;  %v4910_v36 = vpop.f32.mrb[119].mxu0 }
 0x65a   : > { %v4911_v18 = vadd.f32 %v11748_v4, %v4910_v36  ;;  %5214 = vadd.xlane.f32.xlu1 %v5213_v63  ;;  %v11788_v9 = vmax.f32 %v4908_v29, 0.0 }
 0x65b   : > { %v11790_v31 = vmax.f32 %v4919_v21, 0.0  ;;  %v5068_v48 = vsel %vm497_vm0, %v11783_v50, 0.0  ;;  %v5184_v11 = vmul.f32 %v11783_v50, %v11783_v50 }
 0x65c   : > { %5069 = vadd.xlane.f32.xlu0 %v5068_v48  ;;  %v11794_v46 = vmax.f32 %v4911_v18, 0.0  ;;  %v5062_v3 = vsel %vm497_vm0, %v11788_v9, 0.0  ;;  %v5182_v34 = vmul.f32 %v11788_v9, %v11788_v9 }
 0x65d   : > { %v5071_v2 = vsel %vm497_vm0, %v11790_v31, 0.0  ;;  %v5185_v43 = vmul.f32 %v11790_v31, %v11790_v31  ;;  %v5228_v5 = vsel %vm497_vm0, %v5184_v11, 0.0 }
 0x65e   : > { %5072 = vadd.xlane.f32.xlu1 %v5071_v2  ;;  %v5065_v38 = vsel %vm497_vm0, %v11794_v46, 0.0  ;;  %v5183_v23 = vmul.f32 %v11794_v46, %v11794_v46  ;;  %v5222_v33 = vsel %vm497_vm0, %v5182_v34, 0.0 }
 0x65f   : > { %v5231_v44 = vsel %vm497_vm0, %v5185_v43, 0.0 }
 0x660   : > { %5063 = vadd.xlane.f32.xlu0 %v5062_v3  ;;  %v5225_v21 = vsel %vm497_vm0, %v5183_v23, 0.0 }
 0x662   : > { %5066 = vadd.xlane.f32.xlu1 %v5065_v38 }
 0x664   : > { %5229 = vadd.xlane.f32.xlu0 %v5228_v5 }
 0x666   : > { %5232 = vadd.xlane.f32.xlu1 %v5231_v44  ;;  %v8609_v16 = vpop.f32.mrb[120].mxu0 }
 0x667   : > { %v4932_v42 = vadd.f32 %v8609_v16, %v11748_v4  ;;  %v4923_v57 = vpop.f32.mrb[121].mxu0 }
 0x668   : > { %v4924_v49 = vadd.f32 %v11748_v4, %v4923_v57  ;;  %5223 = vadd.xlane.f32.xlu0 %v5222_v33  ;;  %v8610_v41 = vpop.f32.mrb[122].mxu0 }
 0x669   : > { %v11815_v22 = vmax.f32 %v4932_v42, 0.0  ;;  %v4935_v29 = vadd.f32 %v8610_v41, %v11748_v4  ;;  %v4926_v55 = vpop.f32.mrb[123].mxu0 }
 0x66a   : > { %v4927_v36 = vadd.f32 %v11748_v4, %v4926_v55  ;;  %5226 = vadd.xlane.f32.xlu1 %v5225_v21  ;;  %v11820_v63 = vmax.f32 %v4924_v49, 0.0 }
 0x66b   : > { %v11822_v18 = vmax.f32 %v4935_v29, 0.0  ;;  %v5080_v48 = vsel %vm497_vm0, %v11815_v22, 0.0  ;;  %v5188_v38 = vmul.f32 %v11815_v22, %v11815_v22 }
 0x66c   : > { %5081 = vadd.xlane.f32.xlu0 %v5080_v48  ;;  %v11826_v2 = vmax.f32 %v4927_v36, 0.0  ;;  %v5074_v11 = vsel %vm497_vm0, %v11820_v63, 0.0  ;;  %v5186_v44 = vmul.f32 %v11820_v63, %v11820_v63 }
 0x66d   : > { %v5083_v3 = vsel %vm497_vm0, %v11822_v18, 0.0  ;;  %v5189_v5 = vmul.f32 %v11822_v18, %v11822_v18  ;;  %v5240_v34 = vsel %vm497_vm0, %v5188_v38, 0.0 }
 0x66e   : > { %5084 = vadd.xlane.f32.xlu1 %v5083_v3  ;;  %v5077_v43 = vsel %vm497_vm0, %v11826_v2, 0.0  ;;  %v5187_v16 = vmul.f32 %v11826_v2, %v11826_v2  ;;  %v5234_v49 = vsel %vm497_vm0, %v5186_v44, 0.0 }
 0x66f   : > { %v5243_v23 = vsel %vm497_vm0, %v5189_v5, 0.0 }
 0x670   : > { %5075 = vadd.xlane.f32.xlu0 %v5074_v11  ;;  %v5237_v48 = vsel %vm497_vm0, %v5187_v16, 0.0  ;;  %v8950_v11 = vld [vmem:[%s15258_s5 + $0x10] sm:$0xff]  }
 0x671   : > { %8631 = vmatprep.subr.bf16.mxu1 %v8950_v11 }
 0x672   : > { %5078 = vadd.xlane.f32.xlu1 %v5077_v43  ;;  %8632 = vmatpush3.bf16.msra.mxu1 %v8950_v11 }
 0x674   : > { %5241 = vadd.xlane.f32.xlu0 %v5240_v34 }
 0x676   : > { %5244 = vadd.xlane.f32.xlu1 %v5243_v23  ;;  %v8613_v42 = vpop.f32.mrb[124].mxu0  ;;  %v8951_v23 = vld [vmem:[%s15258_s5 + $0x18] sm:$0xff]  }
 0x677   : > { %v4948_v57 = vadd.f32 %v8613_v42, %v11748_v4  ;;  %v4939_v33 = vpop.f32.mrb[125].mxu0  ;;  %8633 = vmatprep.subr.bf16.mxu1 %v8951_v23 }
 0x678   : > { %v4940_v41 = vadd.f32 %v11748_v4, %v4939_v33  ;;  %5235 = vadd.xlane.f32.xlu0 %v5234_v49  ;;  %v8614_v29 = vpop.f32.mrb[126].mxu0  ;;  %8634 = vmatpush3.bf16.msra.mxu1 %v8951_v23 }
 0x679   : > { %v11847_v55 = vmax.f32 %v4948_v57, 0.0  ;;  %v4951_v21 = vadd.f32 %v8614_v29, %v11748_v4  ;;  %v4942_v36 = vpop.f32.mrb[127].mxu0 }
 0x67a   : > { %v4943_v3 = vadd.f32 %v11748_v4, %v4942_v36  ;;  %5238 = vadd.xlane.f32.xlu1 %v5237_v48  ;;  %v11855_v38 = vmax.f32 %v4940_v41, 0.0 }
 0x67b   : > { %v11857_v43 = vmax.f32 %v4951_v21, 0.0  ;;  %v5092_v5 = vsel %vm497_vm0, %v11847_v55, 0.0  ;;  %v5192_v42 = vmul.f32 %v11847_v55, %v11847_v55 }
 0x67c   : > { %5093 = vadd.xlane.f32.xlu0 %v5092_v5  ;;  %v11861_v34 = vmax.f32 %v4943_v3, 0.0  ;;  %v5086_v16 = vsel %vm497_vm0, %v11855_v38, 0.0  ;;  %v5190_v41 = vmul.f32 %v11855_v38, %v11855_v38 }
 0x67d   : > { %v5095_v44 = vsel %vm497_vm0, %v11857_v43, 0.0  ;;  %v5193_v33 = vmul.f32 %v11857_v43, %v11857_v43  ;;  %v5252_v49 = vsel %vm497_vm0, %v5192_v42, 0.0 }
 0x67e   : > { %5096 = vadd.xlane.f32.xlu1 %v5095_v44  ;;  %v5089_v57 = vsel %vm497_vm0, %v11861_v34, 0.0  ;;  %v5191_v21 = vmul.f32 %v11861_v34, %v11861_v34  ;;  %v5246_v11 = vsel %vm497_vm0, %v5190_v41, 0.0 }
 0x67f   : > { %v5255_v29 = vsel %vm497_vm0, %v5193_v33, 0.0 }
 0x680   : > { %5087 = vadd.xlane.f32.xlu0 %v5086_v16 }
 0x682   : > { %5090 = vadd.xlane.f32.xlu1 %v5089_v57  ;;  %v5249_v57 = vsel %vm497_vm0, %v5191_v21, 0.0 }
 0x684   : > { %5253 = vadd.xlane.f32.xlu0 %v5252_v49 }
 0x686   : > { %5256 = vadd.xlane.f32.xlu1 %v5255_v29  ;;  %v8617_v36 = vpop.f32.mrb[128].mxu0 }
 0x687   : > { %v4964_v48 = vadd.f32 %v8617_v36, %v11748_v4  ;;  %v4955_v3 = vpop.f32.mrb[129].mxu0 }
 0x688   : > { %v4956_v5 = vadd.f32 %v11748_v4, %v4955_v3  ;;  %5247 = vadd.xlane.f32.xlu0 %v5246_v11  ;;  %v8618_v44 = vpop.f32.mrb[130].mxu0 }
 0x689   : > { %v11885_v23 = vmax.f32 %v4964_v48, 0.0  ;;  %v4967_v16 = vadd.f32 %v8618_v44, %v11748_v4  ;;  %v4958_v42 = vpop.f32.mrb[131].mxu0 }
 0x68a   : > { %v4959_v33 = vadd.f32 %v11748_v4, %v4958_v42  ;;  %5250 = vadd.xlane.f32.xlu1 %v5249_v57  ;;  %v11890_v49 = vmax.f32 %v4956_v5, 0.0 }
 0x68b   : > { %15545 = vst [vmem:[#allocation6_spill] sm:$0xff] %v11885_v23  ;;  %v11892_v29 = vmax.f32 %v4967_v16, 0.0  ;;  %v5104_v41 = vsel %vm497_vm0, %v11885_v23, 0.0  ;;  %v5196_v3 = vmul.f32 %v11885_v23, %v11885_v23 }
 0x68c   : > { %15546 = vst [vmem:[#allocation7_spill] sm:$0xff] %v11890_v49  ;;  %5105 = vadd.xlane.f32.xlu0 %v5104_v41  ;;  %v11896_v36 = vmax.f32 %v4959_v33, 0.0  ;;  %v5098_v21 = vsel %vm497_vm0, %v11890_v49, 0.0  ;;  %v5194_v16 = vmul.f32 %v11890_v49, %v11890_v49 }
 0x68d   : > { %v5107_v48 = vsel %vm497_vm0, %v11892_v29, 0.0  ;;  %v5197_v5 = vmul.f32 %v11892_v29, %v11892_v29  ;;  %v5264_v44 = vsel %vm497_vm0, %v5196_v3, 0.0 }
 0x68e   : > { %15547 = vst [vmem:[#allocation8_spill] sm:$0xff] %v11896_v36  ;;  %5108 = vadd.xlane.f32.xlu1 %v5107_v48  ;;  %v5101_v11 = vsel %vm497_vm0, %v11896_v36, 0.0  ;;  %v5195_v57 = vmul.f32 %v11896_v36, %v11896_v36 }
 0x68f   : > { %v5267_v42 = vsel %vm497_vm0, %v5197_v5, 0.0 }
 0x690   : > { %5099 = vadd.xlane.f32.xlu0 %v5098_v21  ;;  %v5258_v21 = vsel %vm497_vm0, %v5194_v16, 0.0  ;;  %v5261_v5 = vsel %vm497_vm0, %v5195_v57, 0.0 }
 0x692   : > { %5102 = vadd.xlane.f32.xlu1 %v5101_v11 }
 0x694   : > { %5265 = vadd.xlane.f32.xlu0 %v5264_v44 }
 0x696   : > { %5268 = vadd.xlane.f32.xlu1 %v5267_v42  ;;  %v8621_v33 = vpop.f32.mrb[132].mxu0 }
 0x697   : > { %v4980_v41 = vadd.f32 %v8621_v33, %v11748_v4  ;;  %v4971_v48 = vpop.f32.mrb[133].mxu0 }
 0x698   : > { %v4972_v11 = vadd.f32 %v11748_v4, %v4971_v48  ;;  %5259 = vadd.xlane.f32.xlu0 %v5258_v21  ;;  %v8622_v3 = vpop.f32.mrb[134].mxu0 }
 0x699   : > { %v11917_v60 = vmax.f32 %v4980_v41, 0.0  ;;  %v4983_v44 = vadd.f32 %v8622_v3, %v11748_v4  ;;  %v4974_v0 = vpop.f32.mrb[135].mxu0 }
 0x69a   : > { %v4975_v19 = vadd.f32 %v11748_v4, %v4974_v0  ;;  %5262 = vadd.xlane.f32.xlu1 %v5261_v5  ;;  %v11922_v42 = vmax.f32 %v4972_v11, 0.0 }
 0x69b   : > { %15548 = vst [vmem:[#allocation9_spill] sm:$0xff] %v11917_v60  ;;  %v11924_v33 = vmax.f32 %v4983_v44, 0.0  ;;  %v5116_v16 = vsel %vm497_vm0, %v11917_v60, 0.0  ;;  %v5200_v0 = vmul.f32 %v11917_v60, %v11917_v60 }
 0x69c   : > { %15549 = vst [vmem:[#allocation10_spill] sm:$0xff] %v11922_v42  ;;  %5117 = vadd.xlane.f32.xlu0 %v5116_v16  ;;  %v11928_v48 = vmax.f32 %v4975_v19, 0.0  ;;  %v5110_v57 = vsel %vm497_vm0, %v11922_v42, 0.0  ;;  %v5198_v3 = vmul.f32 %v11922_v42, %v11922_v42 }
 0x69d   : > { %15550 = vst [vmem:[#allocation11_spill] sm:$0xff] %v11924_v33  ;;  %v5119_v41 = vsel %vm497_vm0, %v11924_v33, 0.0  ;;  %v5201_v11 = vmul.f32 %v11924_v33, %v11924_v33  ;;  %v5276_v19 = vsel %vm497_vm0, %v5200_v0, 0.0 }
 0x69e   : > { %15551 = vst [vmem:[#allocation12_spill] sm:$0xff] %v11928_v48  ;;  %5120 = vadd.xlane.f32.xlu1 %v5119_v41  ;;  %v5113_v21 = vsel %vm497_vm0, %v11928_v48, 0.0  ;;  %v5199_v5 = vmul.f32 %v11928_v48, %v11928_v48  ;;  %v5270_v41 = vsel %vm497_vm0, %v5198_v3, 0.0 }
 0x69f   : > { %v5279_v44 = vsel %vm497_vm0, %v5201_v11, 0.0 }
 0x6a0   : > { %5111 = vadd.xlane.f32.xlu0 %v5110_v57  ;;  %v5273_v6 = vsel %vm497_vm0, %v5199_v5, 0.0 }
 0x6a2   : > { %5114 = vadd.xlane.f32.xlu1 %v5113_v21 }
 0x6a4   : > { %5277 = vadd.xlane.f32.xlu0 %v5276_v19 }
 0x6a6   : > { %5280 = vadd.xlane.f32.xlu1 %v5279_v44  ;;  %v8625_v16 = vpop.f32.mrb[136].mxu0 }
 0x6a7   : > { %v4996_v57 = vadd.f32 %v8625_v16, %v11748_v4  ;;  %v4987_v30 = vpop.f32.mrb[137].mxu0 }
 0x6a8   : > { %5271 = vadd.xlane.f32.xlu0 %v5270_v41  ;;  %v4988_v21 = vadd.f32 %v11748_v4, %v4987_v30  ;;  %v8626_v0 = vpop.f32.mrb[138].mxu0 }
 0x6a9   : > { %v11950_v47 = vmax.f32 %v4996_v57, 0.0  ;;  %v4999_v11 = vadd.f32 %v8626_v0, %v11748_v4  ;;  %v4990_v19 = vpop.f32.mrb[139].mxu0 }
 0x6aa   : > { %5274 = vadd.xlane.f32.xlu1 %v5273_v6  ;;  %v4991_v44 = vadd.f32 %v11748_v4, %v4990_v19  ;;  %v11954_v58 = vmax.f32 %v4988_v21, 0.0 }
 0x6ab   : > { %15552 = vst [vmem:[#allocation13_spill] sm:$0xff] %v11950_v47  ;;  %v11956_v3 = vmax.f32 %v4999_v11, 0.0  ;;  %v5128_v16 = vsel %vm497_vm0, %v11950_v47, 0.0  ;;  %v5204_v6 = vmul.f32 %v11950_v47, %v11950_v47 }
 0x6ac   : > { %15553 = vst [vmem:[#allocation14_spill] sm:$0xff] %v11954_v58  ;;  %5129 = vadd.xlane.f32.xlu0 %v5128_v16  ;;  %v11960_v30 = vmax.f32 %v4991_v44, 0.0  ;;  %v5122_v41 = vsel %vm497_vm0, %v11954_v58, 0.0  ;;  %v5202_v11 = vmul.f32 %v11954_v58, %v11954_v58 }
 0x6ad   : > { %15554 = vst [vmem:[#allocation15_spill] sm:$0xff] %v11956_v3  ;;  %v5131_v5 = vsel %vm497_vm0, %v11956_v3, 0.0  ;;  %v5205_v21 = vmul.f32 %v11956_v3, %v11956_v3  ;;  %v5288_v0 = vsel %vm497_vm0, %v5204_v6, 0.0 }
 0x6ae   : > { %15555 = vst [vmem:[#allocation16_spill] sm:$0xff] %v11960_v30  ;;  %5132 = vadd.xlane.f32.xlu1 %v5131_v5  ;;  %v5125_v57 = vsel %vm497_vm0, %v11960_v30, 0.0  ;;  %v5203_v16 = vmul.f32 %v11960_v30, %v11960_v30 }
 0x6af   : > { %v5291_v44 = vsel %vm497_vm0, %v5205_v21, 0.0 }
 0x6b0   : > { %5123 = vadd.xlane.f32.xlu0 %v5122_v41  ;;  %v5285_v27 = vsel %vm497_vm0, %v5203_v16, 0.0 }
 0x6b2   : > { %5126 = vadd.xlane.f32.xlu1 %v5125_v57  ;;  %v5282_v57 = vsel %vm497_vm0, %v5202_v11, 0.0 }
 0x6b4   : > { %5289 = vadd.xlane.f32.xlu0 %v5288_v0 }
 0x6b5   : > { %v8629_v19 = vpop.f32.mrb[140].mxu0 }
 0x6b6   : > { %v5012_v5 = vadd.f32 %v8629_v19, %v11748_v4  ;;  %5292 = vadd.xlane.f32.xlu1 %v5291_v44  ;;  %v5003_v41 = vpop.f32.mrb[141].mxu0 }
 0x6b7   : > { %v5004_v40 = vadd.f32 %v11748_v4, %v5003_v41  ;;  %v8630_v37 = vpop.f32.mrb[142].mxu0 }
 0x6b8   : > { %v11981_v6 = vmax.f32 %v5012_v5, 0.0  ;;  %v5015_v10 = vadd.f32 %v8630_v37, %v11748_v4  ;;  %5283 = vadd.xlane.f32.xlu0 %v5282_v57  ;;  %v5006_v0 = vpop.f32.mrb[143].mxu0 }
 0x6b9   : > { %v5007_v21 = vadd.f32 %v11748_v4, %v5006_v0  ;;  %v11990_v44 = vmax.f32 %v5004_v40, 0.0  ;;  %v11999_v4 = vld [vmem:[%s15257_s4 + $0xe] ss:$0 sm:$0xff] }
 0x6ba   : > { %15556 = vst [vmem:[#allocation17_spill] sm:$0xff] %v11981_v6  ;;  %v11986_v17 = vmax.f32 %v5015_v10, 0.0  ;;  %5286 = vadd.xlane.f32.xlu1 %v5285_v27  ;;  %v5140_v19 = vsel %vm497_vm0, %v11981_v6, 0.0  ;;  %v5208_v40 = vmul.f32 %v11981_v6, %v11981_v6 }
 0x6bb   : > { %15558 = vst [vmem:[#allocation47_spill] sm:$0xff] %v11990_v44  ;;  %v11994_v5 = vmax.f32 %v5007_v21, 0.0  ;;  %v5134_v27 = vsel %vm497_vm0, %v11990_v44, 0.0 }
 0x6bc   : > { %15557 = vst [vmem:[#allocation46_spill] sm:$0xff] %v11986_v17  ;;  %5141 = vadd.xlane.f32.xlu0 %v5140_v19  ;;  %v5143_v11 = vsel %vm497_vm0, %v11986_v17, 0.0  ;;  %v5209_v21 = vmul.f32 %v11986_v17, %v11986_v17  ;;  %v12013_v19 = vld [vmem:[%s15256_s3 + $0x70] sm:$0xff]  }
 0x6bd   : > { %15559 = vst [vmem:[#allocation48_spill] sm:$0xff] %v11994_v5  ;;  %v8673_v37 = vpop.f32.mrb[144].mxu0  ;;  %v5137_v57 = vsel %vm497_vm0, %v11994_v5, 0.0  ;;  %8703 = vmatprep.subr.bf16.mxu1 %v12013_v19 }
 0x6be   : > { %5144 = vadd.xlane.f32.xlu1 %v5143_v11  ;;  %v5907_v10 = vpop.f32.mrb[145].mxu0  ;;  %v5916_v0 = vadd.f32 %v8673_v37, %v11999_v4  ;;  %v5300_v11 = vsel %vm497_vm0, %v5208_v40, 0.0  ;;  %v5303_v1 = vsel %vm497_vm0, %v5209_v21, 0.0 }
 0x6bf   : > { %v8674_v16 = vpop.f32.mrb[146].mxu0  ;;  %v5908_v40 = vadd.f32 %v11999_v4, %v5907_v10 }
 0x6c0   : > { %5135 = vadd.xlane.f32.xlu0 %v5134_v27  ;;  %v5910_v41 = vpop.f32.mrb[147].mxu0  ;;  %v5206_v27 = vmul.f32 %v11990_v44, %v11990_v44  ;;  %v12019_v59 = vmax.f32 %v5916_v0, 0.0  ;;  %v5919_v37 = vadd.f32 %v8674_v16, %v11999_v4 }
 0x6c1   : > { %v5911_v0 = vadd.f32 %v11999_v4, %v5910_v41  ;;  %v12033_v45 = vmax.f32 %v5908_v40, 0.0 }
 0x6c2   : > { %5138 = vadd.xlane.f32.xlu1 %v5137_v57  ;;  %15560 = vst [vmem:[#allocation49_spill] sm:$0xff] %v12019_v59  ;;  %v5207_v57 = vmul.f32 %v11994_v5, %v11994_v5  ;;  %v5294_v51 = vsel %vm497_vm0, %v5206_v27, 0.0  ;;  %v12027_v7 = vmax.f32 %v5919_v37, 0.0  ;;  %v6072_v21 = vsel %vm497_vm0, %v12019_v59, 0.0 }
 0x6c3   : > { %15562 = vst [vmem:[#allocation51_spill] sm:$0xff] %v12033_v45  ;;  %v6066_v41 = vsel %vm497_vm0, %v12033_v45, 0.0  ;;  %v6196_v37 = vmul.f32 %v12019_v59, %v12019_v59  ;;  %v6194_v54 = vmul.f32 %v12033_v45, %v12033_v45 }
 0x6c4   : > { %5301 = vadd.xlane.f32.xlu0 %v5300_v11  ;;  %15561 = vst [vmem:[#allocation50_spill] sm:$0xff] %v12027_v7  ;;  %v5297_v16 = vsel %vm497_vm0, %v5207_v57, 0.0  ;;  %v6075_v10 = vsel %vm497_vm0, %v12027_v7, 0.0 }
 0x6c5   : > { %v8677_v32 = vpop.f32.mrb[148].mxu0 }
 0x6c6   : > { %5304 = vadd.xlane.f32.xlu1 %v5303_v1  ;;  %v5923_v61 = vpop.f32.mrb[149].mxu0  ;;  %v12035_v1 = vmax.f32 %v5911_v0, 0.0 }
 0x6c7   : > { %v8678_v56 = vpop.f32.mrb[150].mxu0 }
 0x6c8   : > { %5295 = vadd.xlane.f32.xlu0 %v5294_v51  ;;  %v5926_v11 = vpop.f32.mrb[151].mxu0  ;;  %15563 = vst [vmem:[#allocation52_spill] sm:$0xff] %v12035_v1  ;;  %v6069_v0 = vsel %vm497_vm0, %v12035_v1, 0.0  ;;  %v6195_v20 = vmul.f32 %v12035_v1, %v12035_v1 }
 0x6ca   : > { %5298 = vadd.xlane.f32.xlu1 %v5297_v16  ;;  %v5932_v16 = vadd.f32 %v8677_v32, %v11999_v4  ;;  %v6229_v28 = vsel %vm497_vm0, %v6195_v20, 0.0 }
 0x6cc   : > { %6073 = vadd.xlane.f32.xlu0 %v6072_v21  ;;  %v6197_v21 = vmul.f32 %v12027_v7, %v12027_v7  ;;  %v12057_v8 = vmax.f32 %v5932_v16, 0.0 }
 0x6cd   : > { %v8681_v51 = vpop.f32.mrb[152].mxu0 }
 0x6ce   : > { %6076 = vadd.xlane.f32.xlu1 %v6075_v10  ;;  %v12039_v27 = vpop.f32.mrb[153].mxu0  ;;  %v6232_v10 = vsel %vm497_vm0, %v6196_v37, 0.0  ;;  %15564 = vst [vmem:[#allocation53_spill] sm:$0xff] %v12057_v8  ;;  %v6235_v35 = vsel %vm497_vm0, %v6197_v21, 0.0  ;;  %v5924_v37 = vadd.f32 %v11999_v4, %v5923_v61  ;;  %v5927_v21 = vadd.f32 %v11999_v4, %v5926_v11 }
 0x6cf   : > { %v12045_v57 = vpop.f32.mrb[154].mxu0  ;;  %v6200_v11 = vmul.f32 %v12057_v8, %v12057_v8 }
 0x6d0   : > { %6067 = vadd.xlane.f32.xlu0 %v6066_v41  ;;  %v12047_v40 = vpop.f32.mrb[155].mxu0  ;;  %v5935_v41 = vadd.f32 %v8678_v56, %v11999_v4  ;;  %v12079_v61 = vmax.f32 %v5924_v37, 0.0  ;;  %v12081_v14 = vmax.f32 %v5927_v21, 0.0 }
 0x6d1   : > { %v6244_v59 = vsel %vm497_vm0, %v6200_v11, 0.0  ;;  %v5940_v11 = vadd.f32 %v11999_v4, %v12039_v27 }
 0x6d2   : > { %6070 = vadd.xlane.f32.xlu1 %v6069_v0  ;;  %v6226_v0 = vsel %vm497_vm0, %v6194_v54, 0.0  ;;  %v12073_v56 = vmax.f32 %v5935_v41, 0.0  ;;  %15566 = vst [vmem:[#allocation55_spill] sm:$0xff] %v12079_v61  ;;  %15567 = vst [vmem:[#allocation56_spill] sm:$0xff] %v12081_v14  ;;  %v6199_v7 = vmul.f32 %v12081_v14, %v12081_v14 }
 0x6d4   : > { %6233 = vadd.xlane.f32.xlu0 %v6232_v10  ;;  %15565 = vst [vmem:[#allocation54_spill] sm:$0xff] %v12073_v56  ;;  %v6087_v41 = vsel %vm497_vm0, %v12073_v56, 0.0 }
 0x6d5   : > { %v12063_v32 = vpop.f32.mrb[156].mxu0 }
 0x6d6   : > { %6236 = vadd.xlane.f32.xlu1 %v6235_v35  ;;  %v12065_v13 = vpop.f32.mrb[157].mxu0  ;;  %v6084_v35 = vsel %vm497_vm0, %v12057_v8, 0.0 }
 0x6d7   : > { %v12069_v26 = vpop.f32.mrb[158].mxu0 }
 0x6d8   : > { %6227 = vadd.xlane.f32.xlu0 %v6226_v0  ;;  %v12071_v10 = vpop.f32.mrb[159].mxu0 }
 0x6d9   : > { %v5058_v16 = vpop.xlane.xlu0 %5057 }
 0x6da   : > { %6230 = vadd.xlane.f32.xlu1 %v6229_v28  ;;  %v12083_v0 = vmul.f32 0.03125, %v5058_v16  ;;  %v6201_v28 = vmul.f32 %v12073_v56, %v12073_v56  ;;  %v6078_v16 = vsel %vm497_vm0, %v12079_v61, 0.0 }
 0x6db   : > { %v5061_v62 = vpop.xlane.xlu1 %5060 }
 0x6dc   : > { %6085 = vadd.xlane.f32.xlu0 %v6084_v35  ;;  %v12095_v35 = vmul.f32 0.03125, %v5061_v62  ;;  %v5340_v8 = vmul.f32 %v12083_v0, %v12083_v0  ;;  %v6081_v62 = vsel %vm497_vm0, %v12081_v14, 0.0  ;;  %v5943_v14 = vadd.f32 %v11999_v4, %v12047_v40 }
 0x6dd   : > { %v5052_v54 = vpop.xlane.xlu0 %5051  ;;  %v12087_v24 = vpop.f32.mrb[160].mxu0 }
 0x6de   : > { %6088 = vadd.xlane.f32.xlu1 %v6087_v41  ;;  %v12093_v37 = vpop.f32.mrb[161].mxu0  ;;  %v5948_v41 = vadd.f32 %v8681_v51, %v11999_v4  ;;  %v12106_v1 = vmul.f32 0.03125, %v5052_v54  ;;  %v6198_v51 = vmul.f32 %v12079_v61, %v12079_v61  ;;  %v5341_v54 = vmul.f32 %v12095_v35, %v12095_v35 }
 0x6df   : > { %v5055_v20 = vpop.xlane.xlu1 %5054  ;;  %v12099_v21 = vpop.f32.mrb[162].mxu0 }
 0x6e0   : > { %6079 = vadd.xlane.f32.xlu0 %v6078_v16  ;;  %v12102_v52 = vpop.f32.mrb[163].mxu0  ;;  %v6247_v16 = vsel %vm497_vm0, %v6201_v28, 0.0  ;;  %v12118_v5 = vmul.f32 0.03125, %v5055_v20  ;;  %v12120_v6 = vmax.f32 %v5948_v41, 0.0  ;;  %v5951_v28 = vadd.f32 %v12045_v57, %v11999_v4 }
 0x6e1   : > { %v5218_v25 = vpop.xlane.xlu0 %5217  ;;  %v5338_v61 = vmul.f32 %v12106_v1, %v12106_v1  ;;  %v6238_v27 = vsel %vm497_vm0, %v6198_v51, 0.0 }
 0x6e2   : > { %v5308_v56 = vmul.f32 0.03125, %v5218_v25  ;;  %6082 = vadd.xlane.f32.xlu1 %v6081_v62  ;;  %15568 = vst [vmem:[#allocation57_spill] sm:$0xff] %v12120_v6  ;;  %v5339_v57 = vmul.f32 %v12118_v5, %v12118_v5 }
 0x6e3   : > { %v5221_v45 = vpop.xlane.xlu1 %5220 }
 0x6e4   : > { %v5372_v25 = vsub.f32 %v5308_v56, %v5340_v8  ;;  %v5309_v44 = vmul.f32 0.03125, %v5221_v45  ;;  %6245 = vadd.xlane.f32.xlu0 %v6244_v59  ;;  %v6241_v59 = vsel %vm497_vm0, %v6199_v7, 0.0  ;;  %v6096_v7 = vsel %vm497_vm0, %v12120_v6, 0.0 }
 0x6e5   : > { %v5212_v62 = vpop.xlane.xlu0 %5211  ;;  %v12130_v45 = vpop.f32.mrb[164].mxu0 }
 0x6e6   : > { %v5404_v20 = vadd.f32 1e-05, %v5372_v25  ;;  %v5373_v17 = vsub.f32 %v5309_v44, %v5341_v54  ;;  %v5306_v8 = vmul.f32 0.03125, %v5212_v62  ;;  %6248 = vadd.xlane.f32.xlu1 %v6247_v16  ;;  %v12134_v41 = vpop.f32.mrb[165].mxu0  ;;  %v12140_v44 = vmax.f32 %v5940_v11, 0.0 }
 0x6e7   : > { %v5215_v56 = vpop.xlane.xlu1 %5214  ;;  %v12138_v47 = vpop.f32.mrb[166].mxu0  ;;  %v12142_v54 = vmax.f32 %v5951_v28, 0.0  ;;  %v12148_v62 = vmax.f32 %v5943_v14, 0.0  ;;  %v6204_v11 = vmul.f32 %v12120_v6, %v12120_v6 }
 0x6e8   : > { %v5405_v40 = vadd.f32 1e-05, %v5373_v17  ;;  %v5370_v30 = vsub.f32 %v5306_v8, %v5338_v61  ;;  %v5307_v58 = vmul.f32 0.03125, %v5215_v56  ;;  %9148 = vrsqrt.f32 %v5404_v20  ;;  %15569 = vst [vmem:[#allocation58_spill] sm:$0xff] %v12140_v44  ;;  %6239 = vadd.xlane.f32.xlu0 %v6238_v27  ;;  %v12146_v51 = vpop.f32.mrb[167].mxu0 }
 0x6e9   : > { %15570 = vst [vmem:[#allocation59_spill] sm:$0xff] %v12142_v54  ;;  %v5070_v16 = vpop.xlane.xlu0 %5069  ;;  %15571 = vst [vmem:[#allocation60_spill] sm:$0xff] %v12148_v62  ;;  %v6099_v8 = vsel %vm497_vm0, %v12142_v54, 0.0  ;;  %v6205_v56 = vmul.f32 %v12142_v54, %v12142_v54  ;;  %v6202_v14 = vmul.f32 %v12140_v44, %v12140_v44  ;;  %v6203_v27 = vmul.f32 %v12148_v62, %v12148_v62 }
 0x6ea   : > { %9150 = vrsqrt.f32 %v5405_v40  ;;  %v5402_v25 = vadd.f32 1e-05, %v5370_v30  ;;  %v5371_v17 = vsub.f32 %v5307_v58, %v5339_v57  ;;  %6242 = vadd.xlane.f32.xlu1 %v6241_v59  ;;  %v12158_v58 = vmul.f32 0.03125, %v5070_v16 }
 0x6eb   : > { %v5073_v61 = vpop.xlane.xlu1 %5072  ;;  %v5964_v30 = vadd.f32 %v12063_v32, %v11999_v4  ;;  %v5956_v40 = vadd.f32 %v11999_v4, %v12065_v13  ;;  %v6090_v16 = vsel %vm497_vm0, %v12140_v44, 0.0  ;;  %v6259_v13 = vsel %vm497_vm0, %v6205_v56, 0.0 }
 0x6ec   : > { %9152 = vrsqrt.f32 %v5402_v25  ;;  %v5403_v20 = vadd.f32 1e-05, %v5371_v17  ;;  %6097 = vadd.xlane.f32.xlu0 %v6096_v7  ;;  %v12170_v25 = vmul.f32 0.03125, %v5073_v61  ;;  %v6256_v17 = vsel %vm497_vm0, %v6204_v11, 0.0 }
 0x6ed   : > { %v5064_v28 = vpop.xlane.xlu0 %5063  ;;  %v12164_v59 = vpop.f32.mrb[168].mxu0  ;;  %v6250_v54 = vsel %vm497_vm0, %v6202_v14, 0.0  ;;  %v5344_v44 = vmul.f32 %v12158_v58, %v12158_v58  ;;  %v12187_v11 = vmax.f32 %v5964_v30, 0.0  ;;  %v5967_v14 = vadd.f32 %v12069_v26, %v11999_v4 }
 0x6ee   : > { %9154 = vrsqrt.f32 %v5403_v20  ;;  %6100 = vadd.xlane.f32.xlu1 %v6099_v8  ;;  %v12168_v7 = vpop.f32.mrb[169].mxu0  ;;  %v12177_v20 = vmul.f32 0.03125, %v5064_v28  ;;  %v6093_v8 = vsel %vm497_vm0, %v12148_v62, 0.0  ;;  %v6253_v28 = vsel %vm497_vm0, %v6203_v27, 0.0 }
 0x6ef   : > { %v5067_v57 = vpop.xlane.xlu1 %5066  ;;  %v12175_v32 = vpop.f32.mrb[170].mxu0  ;;  %v12194_v62 = vmax.f32 %v5956_v40, 0.0  ;;  %v5345_v30 = vmul.f32 %v12170_v25, %v12170_v25  ;;  %v5959_v26 = vadd.f32 %v11999_v4, %v12071_v10 }
 0x6f0   : > { %6091 = vadd.xlane.f32.xlu0 %v6090_v16  ;;  %v12183_v61 = vpop.f32.mrb[171].mxu0  ;;  %v5469_v16 = vsub.f32 %v11758_v15, %v12095_v35  ;;  %v12192_v42 = vmul.f32 0.03125, %v5067_v57  ;;  %v5466_v15 = vsub.f32 %v11756_v53, %v12106_v1  ;;  %v5342_v57 = vmul.f32 %v12177_v20, %v12177_v20 }
 0x6f1   : > { %v5230_v6 = vpop.xlane.xlu0 %5229  ;;  %v12219_v1 = vmax.f32 %v5967_v14, 0.0  ;;  %v6108_v14 = vsel %vm497_vm0, %v12187_v11, 0.0 }
 0x6f2   : > { %v5312_v3 = vmul.f32 0.03125, %v5230_v6  ;;  %v9149_v48 = vpop.eup %9148  ;;  %6094 = vadd.xlane.f32.xlu1 %v6093_v8  ;;  %v5468_v6 = vsub.f32 %v11752_v12, %v12083_v0  ;;  %v5343_v53 = vmul.f32 %v12192_v42, %v12192_v42 }
 0x6f3   : > { %v5233_v56 = vpop.xlane.xlu1 %5232 }
 0x6f4   : > { %v9151_v60 = vpop.eup %9150  ;;  %v5376_v27 = vsub.f32 %v5312_v3, %v5344_v44  ;;  %v5313_v33 = vmul.f32 0.03125, %v5233_v56  ;;  %6257 = vadd.xlane.f32.xlu0 %v6256_v17  ;;  %v5500_v36 = vmul.f32 %v9149_v48, %v5468_v6  ;;  %v5467_v3 = vsub.f32 %v11762_v39, %v12118_v5 }
 0x6f5   : > { %v5501_v35 = vmul.f32 %v9151_v60, %v5469_v16  ;;  %v5224_v40 = vpop.xlane.xlu0 %5223  ;;  %v12208_v23 = vpop.f32.mrb[172].mxu0  ;;  %v12215_v60 = vld [vmem:[%s15257_s4 + $0xc] ss:$0 sm:$0xff] }
 0x6f6   : > { %v9153_v8 = vpop.eup %9152  ;;  %v5408_v12 = vadd.f32 1e-05, %v5376_v27  ;;  %v5377_v0 = vsub.f32 %v5313_v33, %v5345_v30  ;;  %v5310_v49 = vmul.f32 0.03125, %v5224_v40  ;;  %6260 = vadd.xlane.f32.xlu1 %v6259_v13  ;;  %v12221_v33 = vpop.f32.mrb[173].mxu0 }
 0x6f7   : > { %v5227_v48 = vpop.xlane.xlu1 %5226  ;;  %v5498_v10 = vmul.f32 %v9153_v8, %v5466_v15  ;;  %v5538_v17 = vmul.f32 %v12215_v60, %v5501_v35  ;;  %v12224_v56 = vpop.f32.mrb[174].mxu0  ;;  %v5537_v15 = vmul.f32 %v12215_v60, %v5500_v36  ;;  %v12238_v8 = vld [vmem:[%s15257_s4 + $0xd] ss:$0 sm:$0xff]  ;;  %v6111_v36 = vsel %vm497_vm0, %v12219_v1, 0.0 }
 0x6f8   : > { %v9155_v44 = vpop.eup %9154  ;;  %v5409_v16 = vadd.f32 1e-05, %v5377_v0  ;;  %v5374_v39 = vsub.f32 %v5310_v49, %v5342_v57  ;;  %v5311_v5 = vmul.f32 0.03125, %v5227_v48  ;;  %9156 = vrsqrt.f32 %v5408_v12  ;;  %6251 = vadd.xlane.f32.xlu0 %v6250_v54  ;;  %v12229_v27 = vpop.f32.mrb[175].mxu0 }
 0x6f9   : > { %v5082_v6 = vpop.xlane.xlu0 %5081  ;;  %v5499_v30 = vmul.f32 %v9155_v44, %v5467_v3  ;;  %v5535_v13 = vmul.f32 %v12215_v60, %v5498_v10  ;;  %v12232_v49 = vmax.f32 %v5959_v26, 0.0  ;;  %v6208_v12 = vmul.f32 %v12187_v11, %v12187_v11 }
 0x6fa   : > { %9158 = vrsqrt.f32 %v5409_v16  ;;  %v5406_v35 = vadd.f32 1e-05, %v5374_v39  ;;  %v5375_v40 = vsub.f32 %v5311_v5, %v5343_v53  ;;  %6254 = vadd.xlane.f32.xlu1 %v6253_v28  ;;  %v5575_v26 = vadd.f32 %v12238_v8, %v5538_v17 }
 0x6fb   : > { %15572 = vst [vmem:[#allocation61_spill] sm:$0xff] %v12232_v49  ;;  %v5085_v57 = vpop.xlane.xlu1 %5084  ;;  %v5536_v54 = vmul.f32 %v12215_v60, %v5499_v30  ;;  %v5572_v3 = vadd.f32 %v12238_v8, %v5535_v13  ;;  %v5980_v48 = vadd.f32 %v12087_v24, %v11999_v4  ;;  %v6209_v10 = vmul.f32 %v12219_v1, %v12219_v1 }
 0x6fc   : > { %9160 = vrsqrt.f32 %v5406_v35  ;;  %v5407_v0 = vadd.f32 1e-05, %v5375_v40  ;;  %6109 = vadd.xlane.f32.xlu0 %v6108_v14  ;;  %v12251_v44 = vmul.f32 0.03125, %v5082_v6  ;;  %v5574_v16 = vadd.f32 %v12238_v8, %v5537_v15  ;;  %v8953_v35 = vld [vmem:[%s15256_s3 + $0x78] sm:$0xff]  }
 0x6fd   : > { %v5076_v28 = vpop.xlane.xlu0 %5075  ;;  %v5573_v53 = vadd.f32 %v12238_v8, %v5536_v54  ;;  %v6206_v17 = vmul.f32 %v12194_v62, %v12194_v62  ;;  %v5972_v14 = vadd.f32 %v11999_v4, %v12093_v37  ;;  %v6207_v24 = vmul.f32 %v12232_v49, %v12232_v49 }
 0x6fe   : > { %9162 = vrsqrt.f32 %v5407_v0  ;;  %6112 = vadd.xlane.f32.xlu1 %v6111_v36  ;;  %v12260_v30 = vmul.f32 0.03125, %v5085_v57  ;;  %v6102_v6 = vsel %vm497_vm0, %v12194_v62, 0.0  ;;  %v5605_v13 = vpack.c.bf16 %v5575_v26, %v5574_v16 }
 0x6ff   : > { %v5079_v39 = vpop.xlane.xlu1 %5078  ;;  %v5604_v5 = vpack.c.bf16 %v5573_v53, %v5572_v3  ;;  %v6268_v15 = vsel %vm497_vm0, %v6208_v12, 0.0  ;;  %v12268_v40 = vmul.f32 0.03125, %v5076_v28  ;;  %v6105_v57 = vsel %vm497_vm0, %v12232_v49, 0.0 }
 0x700   : > { %6103 = vadd.xlane.f32.xlu0 %v6102_v6  ;;  %v12273_v54 = vmax.f32 %v5980_v48, 0.0  ;;  %v6271_v0 = vsel %vm497_vm0, %v6209_v10, 0.0  ;;  %v5348_v12 = vmul.f32 %v12251_v44, %v12251_v44  ;;  %v5983_v26 = vadd.f32 %v12099_v21, %v11999_v4 }
 0x701   : > { %8635 = vmatprep.mubr.msk.bf16.mxu1 %vm497_vm0, %v5604_v5  ;;  %v5242_v37 = vpop.xlane.xlu0 %5241  ;;  %v6262_v28 = vsel %vm497_vm0, %v6206_v17, 0.0  ;;  %v5473_v53 = vsub.f32 %v11790_v31, %v12170_v25  ;;  %v12284_v16 = vmul.f32 0.03125, %v5079_v39  ;;  %v12286_v10 = vmax.f32 %v5972_v14, 0.0 }
 0x702   : > { %v5316_v36 = vmul.f32 0.03125, %v5242_v37  ;;  %8636 = vmatmul.mubr.msk.bf16.vlgmr.msra.gmra.mrb[80].mxu1 %vm497_vm0, %v5605_v13  ;;  %v9157_v3 = vpop.eup %9156  ;;  %6106 = vadd.xlane.f32.xlu1 %v6105_v57  ;;  %v6265_v5 = vsel %vm497_vm0, %v6207_v24, 0.0  ;;  %v5472_v21 = vsub.f32 %v11783_v50, %v12158_v58  ;;  %v5349_v17 = vmul.f32 %v12260_v30, %v12260_v30 }
 0x703   : > { %v5245_v48 = vpop.xlane.xlu1 %5244  ;;  %8704 = vmatpush3.bf16.msra.mxu1 %v12013_v19  ;;  %v5470_v31 = vsub.f32 %v11788_v9, %v12177_v20  ;;  %v5346_v25 = vmul.f32 %v12268_v40, %v12268_v40  ;;  %v5975_v19 = vadd.f32 %v11999_v4, %v12102_v52  ;;  %v5347_v9 = vmul.f32 %v12284_v16, %v12284_v16 }
 0x704   : > { %v9159_v6 = vpop.eup %9158  ;;  %v5380_v13 = vsub.f32 %v5316_v36, %v5348_v12  ;;  %v5317_v37 = vmul.f32 0.03125, %v5245_v48  ;;  %8705 = vmatprep.subr.bf16.mxu1 %v8953_v35  ;;  %6269 = vadd.xlane.f32.xlu0 %v6268_v15  ;;  %v5504_v49 = vmul.f32 %v9157_v3, %v5472_v21  ;;  %v5471_v12 = vsub.f32 %v11794_v46, %v12192_v42 }
 0x705   : > { %v5236_v39 = vpop.xlane.xlu0 %5235  ;;  %v5505_v14 = vmul.f32 %v9159_v6, %v5473_v53  ;;  %v12304_v20 = vmax.f32 %v5983_v26, 0.0  ;;  %v6120_v46 = vsel %vm497_vm0, %v12273_v54, 0.0 }
 0x706   : > { %v9161_v24 = vpop.eup %9160  ;;  %v5412_v50 = vadd.f32 1e-05, %v5380_v13  ;;  %v5381_v58 = vsub.f32 %v5317_v37, %v5349_v17  ;;  %v5314_v57 = vmul.f32 0.03125, %v5236_v39  ;;  %6272 = vadd.xlane.f32.xlu1 %v6271_v0  ;;  %v12311_v13 = vmax.f32 %v5975_v19, 0.0 }
 0x707   : > { %v5239_v15 = vpop.xlane.xlu1 %5238  ;;  %v5502_v36 = vmul.f32 %v9161_v24, %v5470_v31  ;;  %8706 = vmatpush3.bf16.msra.mxu1 %v8953_v35  ;;  %v5542_v17 = vmul.f32 %v12215_v60, %v5505_v14  ;;  %v5541_v35 = vmul.f32 %v12215_v60, %v5504_v49  ;;  %v6210_v14 = vmul.f32 %v12286_v10, %v12286_v10 }
 0x708   : > { %v9163_v48 = vpop.eup %9162  ;;  %v5413_v52 = vadd.f32 1e-05, %v5381_v58  ;;  %v5378_v53 = vsub.f32 %v5314_v57, %v5346_v25  ;;  %v5315_v6 = vmul.f32 0.03125, %v5239_v15  ;;  %9164 = vrsqrt.f32 %v5412_v50  ;;  %6263 = vadd.xlane.f32.xlu0 %v6262_v28 }
 0x709   : > { %v5094_v3 = vpop.xlane.xlu0 %5093  ;;  %v5503_v42 = vmul.f32 %v9163_v48, %v5471_v12  ;;  %v5539_v26 = vmul.f32 %v12215_v60, %v5502_v36  ;;  %v6212_v28 = vmul.f32 %v12273_v54, %v12273_v54  ;;  %v5579_v39 = vadd.f32 %v12238_v8, %v5542_v17 }
 0x70a   : > { %9166 = vrsqrt.f32 %v5413_v52  ;;  %v5410_v0 = vadd.f32 1e-05, %v5378_v53  ;;  %v5379_v21 = vsub.f32 %v5315_v6, %v5347_v9  ;;  %6266 = vadd.xlane.f32.xlu1 %v6265_v5  ;;  %v6123_v49 = vsel %vm497_vm0, %v12304_v20, 0.0 }
 0x70b   : > { %v5097_v37 = vpop.xlane.xlu1 %5096  ;;  %v5540_v31 = vmul.f32 %v12215_v60, %v5503_v42  ;;  %v5576_v5 = vadd.f32 %v12238_v8, %v5539_v26  ;;  %v6213_v50 = vmul.f32 %v12304_v20, %v12304_v20  ;;  %v12325_v58 = vmul.f32 0.03125, %v5094_v3 }
 0x70c   : > { %9168 = vrsqrt.f32 %v5410_v0  ;;  %v5411_v25 = vadd.f32 1e-05, %v5379_v21  ;;  %6121 = vadd.xlane.f32.xlu0 %v6120_v46  ;;  %v5578_v57 = vadd.f32 %v12238_v8, %v5541_v35  ;;  %v5996_v12 = vadd.f32 %v12130_v45, %v11999_v4 }
 0x70d   : > { %v5088_v24 = vpop.xlane.xlu0 %5087  ;;  %v5577_v19 = vadd.f32 %v12238_v8, %v5540_v31  ;;  %v6211_v36 = vmul.f32 %v12311_v13, %v12311_v13  ;;  %v12332_v48 = vmul.f32 0.03125, %v5097_v37  ;;  %v6114_v52 = vsel %vm497_vm0, %v12286_v10, 0.0 }
 0x70e   : > { %9170 = vrsqrt.f32 %v5411_v25  ;;  %6124 = vadd.xlane.f32.xlu1 %v6123_v49  ;;  %v5607_v53 = vpack.c.bf16 %v5579_v39, %v5578_v57  ;;  %v6280_v6 = vsel %vm497_vm0, %v6212_v28, 0.0  ;;  %v12337_v17 = vmul.f32 0.03125, %v5088_v24 }
 0x70f   : > { %v5091_v9 = vpop.xlane.xlu1 %5090  ;;  %v5606_v15 = vpack.c.bf16 %v5577_v19, %v5576_v5  ;;  %v6117_v3 = vsel %vm497_vm0, %v12311_v13, 0.0  ;;  %v5999_v46 = vadd.f32 %v12138_v47, %v11999_v4  ;;  %v6274_v42 = vsel %vm497_vm0, %v6210_v14, 0.0 }
 0x710   : > { %6115 = vadd.xlane.f32.xlu0 %v6114_v52  ;;  %v5352_v26 = vmul.f32 %v12325_v58, %v12325_v58  ;;  %v12348_v21 = vmax.f32 %v5996_v12, 0.0  ;;  %v6283_v35 = vsel %vm497_vm0, %v6213_v50, 0.0  ;;  %v5477_v31 = vsub.f32 %v11822_v18, %v12260_v30 }
 0x711   : > { %8639 = vmatprep.mubr.msk.bf16.mxu1 %vm497_vm0, %v5606_v15  ;;  %v5254_v45 = vpop.xlane.xlu0 %5253  ;;  %v12353_v28 = vmul.f32 0.03125, %v5091_v9  ;;  %v5988_v25 = vadd.f32 %v11999_v4, %v12134_v41  ;;  %v6277_v39 = vsel %vm497_vm0, %v6211_v36, 0.0  ;;  %v5476_v24 = vsub.f32 %v11815_v22, %v12251_v44 }
 0x712   : > { %v5320_v0 = vmul.f32 0.03125, %v5254_v45  ;;  %8640 = vmatmul.mubr.msk.bf16.gmra.mrb[84].mxu1 %vm497_vm0, %v5607_v53  ;;  %v9165_v37 = vpop.eup %9164  ;;  %6118 = vadd.xlane.f32.xlu1 %v6117_v3  ;;  %v5353_v49 = vmul.f32 %v12332_v48, %v12332_v48  ;;  %v5474_v18 = vsub.f32 %v11820_v63, %v12268_v40  ;;  %v5350_v30 = vmul.f32 %v12337_v17, %v12337_v17 }
 0x713   : > { %v5257_v47 = vpop.xlane.xlu1 %5256  ;;  %v12366_v50 = vmax.f32 %v5999_v46, 0.0  ;;  %v5508_v44 = vmul.f32 %v9165_v37, %v5476_v24  ;;  %v5475_v36 = vsub.f32 %v11826_v2, %v12284_v16  ;;  %v5351_v52 = vmul.f32 %v12353_v28, %v12353_v28 }
 0x714   : > { %v9167_v14 = vpop.eup %9166  ;;  %v5384_v5 = vsub.f32 %v5320_v0, %v5352_v26  ;;  %v5321_v19 = vmul.f32 0.03125, %v5257_v47  ;;  %6281 = vadd.xlane.f32.xlu0 %v6280_v6  ;;  %v5991_v63 = vadd.f32 %v11999_v4, %v12146_v51  ;;  %v6132_v2 = vsel %vm497_vm0, %v12348_v21, 0.0 }
 0x715   : > { %v5248_v41 = vpop.xlane.xlu0 %5247  ;;  %v5509_v57 = vmul.f32 %v9167_v14, %v5477_v31  ;;  %v5545_v31 = vmul.f32 %v12215_v60, %v5508_v44  ;;  %v12379_v47 = vmax.f32 %v5988_v25, 0.0 }
 0x716   : > { %v9169_v12 = vpop.eup %9168  ;;  %v5416_v9 = vadd.f32 1e-05, %v5384_v5  ;;  %v5385_v15 = vsub.f32 %v5321_v19, %v5353_v49  ;;  %v5318_v22 = vmul.f32 0.03125, %v5248_v41  ;;  %6284 = vadd.xlane.f32.xlu1 %v6283_v35  ;;  %v12381_v14 = vmax.f32 %v5991_v63, 0.0 }
 0x717   : > { %v5251_v40 = vpop.xlane.xlu1 %5250  ;;  %v5506_v53 = vmul.f32 %v9169_v12, %v5474_v18  ;;  %v5546_v26 = vmul.f32 %v12215_v60, %v5509_v57  ;;  %v6216_v18 = vmul.f32 %v12348_v21, %v12348_v21  ;;  %v6217_v57 = vmul.f32 %v12366_v50, %v12366_v50 }
 0x718   : > { %v9171_v6 = vpop.eup %9170  ;;  %v5417_v45 = vadd.f32 1e-05, %v5385_v15  ;;  %v5382_v3 = vsub.f32 %v5318_v22, %v5350_v30  ;;  %v5319_v46 = vmul.f32 0.03125, %v5251_v40  ;;  %9172 = vrsqrt.f32 %v5416_v9  ;;  %6275 = vadd.xlane.f32.xlu0 %v6274_v42 }
 0x719   : > { %v5106_v0 = vpop.xlane.xlu0 %5105  ;;  %v5507_v16 = vmul.f32 %v9171_v6, %v5475_v36  ;;  %v5543_v37 = vmul.f32 %v12215_v60, %v5506_v53  ;;  %v6135_v42 = vsel %vm497_vm0, %v12366_v50, 0.0  ;;  %v5583_v19 = vadd.f32 %v12238_v8, %v5546_v26 }
 0x71a   : > { %9174 = vrsqrt.f32 %v5417_v45  ;;  %v5414_v51 = vadd.f32 1e-05, %v5382_v3  ;;  %v5383_v35 = vsub.f32 %v5319_v46, %v5351_v52  ;;  %6278 = vadd.xlane.f32.xlu1 %v6277_v39  ;;  %v6012_v39 = vadd.f32 %v12164_v59, %v11999_v4 }
 0x71b   : > { %v5109_v24 = vpop.xlane.xlu1 %5108  ;;  %v5544_v49 = vmul.f32 %v12215_v60, %v5507_v16  ;;  %v5580_v25 = vadd.f32 %v12238_v8, %v5543_v37  ;;  %v12395_v12 = vmul.f32 0.03125, %v5106_v0  ;;  %v5582_v9 = vadd.f32 %v12238_v8, %v5545_v31 }
 0x71c   : > { %9176 = vrsqrt.f32 %v5414_v51  ;;  %v5415_v5 = vadd.f32 1e-05, %v5383_v35  ;;  %6133 = vadd.xlane.f32.xlu0 %v6132_v2  ;;  %v6015_v15 = vadd.f32 %v12175_v32, %v11999_v4  ;;  %v6126_v44 = vsel %vm497_vm0, %v12379_v47, 0.0 }
 0x71d   : > { %v5100_v30 = vpop.xlane.xlu0 %5099  ;;  %v5581_v41 = vadd.f32 %v12238_v8, %v5544_v49  ;;  %v12402_v52 = vmul.f32 0.03125, %v5109_v24  ;;  %v6129_v59 = vsel %vm497_vm0, %v12381_v14, 0.0  ;;  %v5609_v63 = vpack.c.bf16 %v5583_v19, %v5582_v9 }
 0x71e   : > { %9178 = vrsqrt.f32 %v5415_v5  ;;  %6136 = vadd.xlane.f32.xlu1 %v6135_v42  ;;  %v6004_v40 = vadd.f32 %v11999_v4, %v12168_v7  ;;  %v12408_v53 = vmul.f32 0.03125, %v5100_v30  ;;  %v12411_v6 = vmax.f32 %v6012_v39, 0.0 }
 0x71f   : > { %v5103_v22 = vpop.xlane.xlu1 %5102  ;;  %v5608_v36 = vpack.c.bf16 %v5581_v41, %v5580_v25  ;;  %v6292_v45 = vsel %vm497_vm0, %v6216_v18, 0.0  ;;  %v6295_v3 = vsel %vm497_vm0, %v6217_v57, 0.0  ;;  %v5356_v46 = vmul.f32 %v12395_v12, %v12395_v12 }
 0x720   : > { %6127 = vadd.xlane.f32.xlu0 %v6126_v44  ;;  %v12418_v0 = vmax.f32 %v6015_v15, 0.0  ;;  %v6007_v7 = vadd.f32 %v11999_v4, %v12183_v61  ;;  %v5481_v16 = vsub.f32 %v11857_v43, %v12332_v48  ;;  %v12424_v37 = vmul.f32 0.03125, %v5103_v22 }
 0x721   : > { %8643 = vmatprep.mubr.msk.bf16.mxu1 %vm497_vm0, %v5608_v36  ;;  %v5266_v32 = vpop.xlane.xlu0 %5265  ;;  %v6214_v35 = vmul.f32 %v12379_v47, %v12379_v47  ;;  %v6215_v31 = vmul.f32 %v12381_v14, %v12381_v14  ;;  %v5480_v42 = vsub.f32 %v11847_v55, %v12325_v58  ;;  %v5357_v61 = vmul.f32 %v12402_v52, %v12402_v52 }
 0x722   : > { %v5324_v26 = vmul.f32 0.03125, %v5266_v32  ;;  %8644 = vmatmul.mubr.msk.bf16.gmra.mrb[88].mxu1 %vm497_vm0, %v5609_v63  ;;  %v9173_v2 = vpop.eup %9172  ;;  %6130 = vadd.xlane.f32.xlu1 %v6129_v59  ;;  %v5478_v43 = vsub.f32 %v11855_v38, %v12337_v17  ;;  %v5354_v48 = vmul.f32 %v12408_v53, %v12408_v53  ;;  %v6144_v18 = vsel %vm497_vm0, %v12411_v6, 0.0 }
 0x723   : > { %v5269_v51 = vpop.xlane.xlu1 %5268  ;;  %v5512_v39 = vmul.f32 %v9173_v2, %v5480_v42  ;;  %v5479_v57 = vsub.f32 %v11861_v34, %v12353_v28  ;;  %v5355_v38 = vmul.f32 %v12424_v37, %v12424_v37  ;;  %v6286_v9 = vsel %vm497_vm0, %v6214_v35, 0.0 }
 0x724   : > { %v9175_v24 = vpop.eup %9174  ;;  %v5388_v49 = vsub.f32 %v5324_v26, %v5356_v46  ;;  %v5325_v5 = vmul.f32 0.03125, %v5269_v51  ;;  %6293 = vadd.xlane.f32.xlu0 %v6292_v45  ;;  %v6289_v45 = vsel %vm497_vm0, %v6215_v31, 0.0  ;;  %v12449_v2 = vmax.f32 %v6004_v40, 0.0 }
 0x725   : > { %v5260_v19 = vpop.xlane.xlu0 %5259  ;;  %v5513_v30 = vmul.f32 %v9175_v24, %v5481_v16  ;;  %v5549_v26 = vmul.f32 %v12215_v60, %v5512_v39  ;;  %v12451_v16 = vmax.f32 %v6007_v7, 0.0  ;;  %v6147_v31 = vsel %vm497_vm0, %v12418_v0, 0.0 }
 0x726   : > { %v9177_v25 = vpop.eup %9176  ;;  %v5420_v41 = vadd.f32 1e-05, %v5388_v49  ;;  %v5389_v55 = vsub.f32 %v5325_v5, %v5357_v61  ;;  %v5322_v58 = vmul.f32 0.03125, %v5260_v19  ;;  %6296 = vadd.xlane.f32.xlu1 %v6295_v3  ;;  %v6028_v7 = vadd.f32 %v12208_v23, %v11999_v4 }
 0x727   : > { %v5263_v17 = vpop.xlane.xlu1 %5262  ;;  %v5510_v15 = vmul.f32 %v9177_v25, %v5478_v43  ;;  %v5550_v63 = vmul.f32 %v12215_v60, %v5513_v30  ;;  %v6220_v5 = vmul.f32 %v12411_v6, %v12411_v6  ;;  %v6031_v19 = vadd.f32 %v12224_v56, %v11999_v4 }
 0x728   : > { %v9179_v22 = vpop.eup %9178  ;;  %v5421_v44 = vadd.f32 1e-05, %v5389_v55  ;;  %v5386_v36 = vsub.f32 %v5322_v58, %v5354_v48  ;;  %v5323_v59 = vmul.f32 0.03125, %v5263_v17  ;;  %9180 = vrsqrt.f32 %v5420_v41  ;;  %6287 = vadd.xlane.f32.xlu0 %v6286_v9 }
 0x729   : > { %v5118_v32 = vpop.xlane.xlu0 %5117  ;;  %v5511_v34 = vmul.f32 %v9179_v22, %v5479_v57  ;;  %v5547_v28 = vmul.f32 %v12215_v60, %v5510_v15  ;;  %v5587_v42 = vadd.f32 %v12238_v8, %v5550_v63  ;;  %v5586_v48 = vadd.f32 %v12238_v8, %v5549_v26 }
 0x72a   : > { %9182 = vrsqrt.f32 %v5421_v44  ;;  %v5418_v3 = vadd.f32 1e-05, %v5386_v36  ;;  %v5387_v46 = vsub.f32 %v5323_v59, %v5355_v38  ;;  %6290 = vadd.xlane.f32.xlu1 %v6289_v45  ;;  %v12463_v43 = vmul.f32 0.03125, %v5118_v32 }
 0x72b   : > { %v5121_v51 = vpop.xlane.xlu1 %5120  ;;  %v5548_v35 = vmul.f32 %v12215_v60, %v5511_v34  ;;  %v5584_v49 = vadd.f32 %v12238_v8, %v5547_v28  ;;  %v6138_v30 = vsel %vm497_vm0, %v12449_v2, 0.0  ;;  %v6221_v23 = vmul.f32 %v12418_v0, %v12418_v0 }
 0x72c   : > { %9184 = vrsqrt.f32 %v5418_v3  ;;  %v5419_v24 = vadd.f32 1e-05, %v5387_v46  ;;  %6145 = vadd.xlane.f32.xlu0 %v6144_v18  ;;  %v12472_v41 = vmul.f32 0.03125, %v5121_v51  ;;  %v6141_v55 = vsel %vm497_vm0, %v12451_v16, 0.0  ;;  %v15573_v3 = vld [vmem:[#allocation6_spill] sm:$0xff] }
 0x72d   : > { %v5112_v61 = vpop.xlane.xlu0 %5111  ;;  %v5585_v40 = vadd.f32 %v12238_v8, %v5548_v35  ;;  %v5611_v58 = vpack.c.bf16 %v5587_v42, %v5586_v48  ;;  %v6020_v39 = vadd.f32 %v11999_v4, %v12221_v33  ;;  %v12481_v38 = vmax.f32 %v6028_v7, 0.0  ;;  %v9499_v33 = vld [vmem:[%s15257_s4 + $0xe] ss:$0 sm:$0xff] }
 0x72e   : > { %9186 = vrsqrt.f32 %v5419_v24  ;;  %6148 = vadd.xlane.f32.xlu1 %v6147_v31  ;;  %v12478_v57 = vmul.f32 0.03125, %v5112_v61  ;;  %v6304_v17 = vsel %vm497_vm0, %v6220_v5, 0.0  ;;  %v6218_v9 = vmul.f32 %v12449_v2, %v12449_v2  ;;  %v15575_v5 = vld [vmem:[#allocation8_spill] sm:$0xff] }
 0x72f   : > { %v5115_v18 = vpop.xlane.xlu1 %5114  ;;  %v5610_v25 = vpack.c.bf16 %v5585_v40, %v5584_v49  ;;  %v5360_v15 = vmul.f32 %v12463_v43, %v12463_v43  ;;  %v12489_v4 = vmax.f32 %v6031_v19, 0.0  ;;  %v6023_v44 = vadd.f32 %v9499_v33, %v12229_v27 }
 0x730   : > { %6139 = vadd.xlane.f32.xlu0 %v6138_v30  ;;  %v5485_v59 = vsub.f32 %v11892_v29, %v12402_v52  ;;  %v12497_v63 = vmul.f32 0.03125, %v5115_v18  ;;  %v6307_v45 = vsel %vm497_vm0, %v6221_v23, 0.0  ;;  %v6219_v34 = vmul.f32 %v12451_v16, %v12451_v16  ;;  %v15574_v29 = vld [vmem:[#allocation7_spill] sm:$0xff] }
 0x731   : > { %8647 = vmatprep.mubr.msk.bf16.mxu1 %vm497_vm0, %v5610_v25  ;;  %v5278_v56 = vpop.xlane.xlu0 %5277  ;;  %v5484_v46 = vsub.f32 %v15573_v3, %v12395_v12  ;;  %v5361_v27 = vmul.f32 %v12472_v41, %v12472_v41  ;;  %v5482_v52 = vsub.f32 %v15574_v29, %v12408_v53  ;;  %v5358_v35 = vmul.f32 %v12478_v57, %v12478_v57 }
 0x732   : > { %v5328_v22 = vmul.f32 0.03125, %v5278_v56  ;;  %8648 = vmatmul.mubr.msk.bf16.gmra.mrb[92].mxu1 %vm497_vm0, %v5611_v58  ;;  %v9181_v36 = vpop.eup %9180  ;;  %6142 = vadd.xlane.f32.xlu1 %v6141_v55  ;;  %v6298_v31 = vsel %vm497_vm0, %v6218_v9, 0.0  ;;  %v5483_v48 = vsub.f32 %v15575_v5, %v12424_v37  ;;  %v5359_v19 = vmul.f32 %v12497_v63, %v12497_v63  ;;  %v15576_v5 = vld [vmem:[#allocation11_spill] sm:$0xff] }
 0x733   : > { %v5281_v32 = vpop.xlane.xlu1 %5280  ;;  %v5516_v7 = vmul.f32 %v9181_v36, %v5484_v46  ;;  %v6156_v18 = vsel %vm497_vm0, %v12481_v38, 0.0 }
 0x734   : > { %v9183_v28 = vpop.eup %9182  ;;  %v5392_v26 = vsub.f32 %v5328_v22, %v5360_v15  ;;  %v5329_v51 = vmul.f32 0.03125, %v5281_v32  ;;  %6305 = vadd.xlane.f32.xlu0 %v6304_v17  ;;  %v6301_v17 = vsel %vm497_vm0, %v6219_v34, 0.0  ;;  %v6159_v34 = vsel %vm497_vm0, %v12489_v4, 0.0 }
 0x735   : > { %v5272_v24 = vpop.xlane.xlu0 %5271  ;;  %v5517_v42 = vmul.f32 %v9183_v28, %v5485_v59  ;;  %v5553_v36 = vmul.f32 %v12215_v60, %v5516_v7  ;;  %v12521_v59 = vmax.f32 %v6020_v39, 0.0 }
 0x736   : > { %v9185_v61 = vpop.eup %9184  ;;  %v5424_v49 = vadd.f32 1e-05, %v5392_v26  ;;  %v5393_v40 = vsub.f32 %v5329_v51, %v5361_v27  ;;  %v5326_v12 = vmul.f32 0.03125, %v5272_v24  ;;  %6308 = vadd.xlane.f32.xlu1 %v6307_v45  ;;  %v12529_v26 = vmax.f32 %v6023_v44, 0.0 }
 0x737   : > { %v5275_v53 = vpop.xlane.xlu1 %5274  ;;  %v5514_v30 = vmul.f32 %v9185_v61, %v5482_v52  ;;  %v5554_v56 = vmul.f32 %v12215_v60, %v5517_v42  ;;  %v5590_v51 = vadd.f32 %v12238_v8, %v5553_v36 }
 0x738   : > { %v9187_v25 = vpop.eup %9186  ;;  %v5425_v23 = vadd.f32 1e-05, %v5393_v40  ;;  %v5390_v55 = vsub.f32 %v5326_v12, %v5358_v35  ;;  %v5327_v58 = vmul.f32 0.03125, %v5275_v53  ;;  %9188 = vrsqrt.f32 %v5424_v49  ;;  %6299 = vadd.xlane.f32.xlu0 %v6298_v31 }
 0x739   : > { %v5515_v37 = vmul.f32 %v9187_v25, %v5483_v48  ;;  %v5551_v9 = vmul.f32 %v12215_v60, %v5514_v30  ;;  %v5130_v33 = vpop.xlane.xlu0 %5129  ;;  %v5591_v3 = vadd.f32 %v12238_v8, %v5554_v56  ;;  %v6222_v35 = vmul.f32 %v12521_v59, %v12521_v59  ;;  %v15577_v25 = vld [vmem:[#allocation9_spill] sm:$0xff] }
 0x73a   : > { %9190 = vrsqrt.f32 %v5425_v23  ;;  %v5422_v15 = vadd.f32 1e-05, %v5390_v55  ;;  %v5391_v22 = vsub.f32 %v5327_v58, %v5359_v19  ;;  %6302 = vadd.xlane.f32.xlu1 %v6301_v17  ;;  %v12532_v29 = vmul.f32 0.03125, %v5130_v33  ;;  %v15578_v55 = vld [vmem:[#allocation10_spill] sm:$0xff] }
 0x73b   : > { %v5552_v32 = vmul.f32 %v12215_v60, %v5515_v37  ;;  %v5133_v28 = vpop.xlane.xlu1 %5132  ;;  %v5588_v46 = vadd.f32 %v12238_v8, %v5551_v9  ;;  %v6150_v31 = vsel %vm497_vm0, %v12521_v59, 0.0  ;;  %v5613_v42 = vpack.c.bf16 %v5591_v3, %v5590_v51 }
 0x73c   : > { %9192 = vrsqrt.f32 %v5422_v15  ;;  %v5423_v45 = vadd.f32 1e-05, %v5391_v22  ;;  %6157 = vadd.xlane.f32.xlu0 %v6156_v18  ;;  %v12538_v61 = vmul.f32 0.03125, %v5133_v28  ;;  %v6153_v40 = vsel %vm497_vm0, %v12529_v26, 0.0 }
 0x73d   : > { %v5589_v27 = vadd.f32 %v12238_v8, %v5552_v32  ;;  %v5124_v39 = vpop.xlane.xlu0 %5123  ;;  %v6223_v12 = vmul.f32 %v12529_v26, %v12529_v26  ;;  %v5489_v48 = vsub.f32 %v15576_v5, %v12472_v41  ;;  %v5364_v19 = vmul.f32 %v12532_v29, %v12532_v29 }
 0x73e   : > { %9194 = vrsqrt.f32 %v5423_v45  ;;  %6160 = vadd.xlane.f32.xlu1 %v6159_v34  ;;  %v12541_v44 = vmul.f32 0.03125, %v5124_v39  ;;  %v6310_v18 = vsel %vm497_vm0, %v6222_v35, 0.0  ;;  %v5488_v23 = vsub.f32 %v15577_v25, %v12463_v43  ;;  %v15579_v39 = vld [vmem:[#allocation12_spill] sm:$0xff] }
 0x73f   : > { %v5612_v52 = vpack.c.bf16 %v5589_v27, %v5588_v46  ;;  %v5127_v24 = vpop.xlane.xlu1 %5126  ;;  %v5486_v58 = vsub.f32 %v15578_v55, %v12478_v57  ;;  %v6224_v41 = vmul.f32 %v12481_v38, %v12481_v38  ;;  %v5365_v37 = vmul.f32 %v12538_v61, %v12538_v61 }
 0x740   : > { %6151 = vadd.xlane.f32.xlu0 %v6150_v31  ;;  %v12557_v56 = vmul.f32 0.03125, %v5127_v24  ;;  %v5362_v43 = vmul.f32 %v12541_v44, %v12541_v44  ;;  %v6313_v57 = vsel %vm497_vm0, %v6223_v12, 0.0  ;;  %v6225_v32 = vmul.f32 %v12489_v4, %v12489_v4 }
 0x741   : > { %8651 = vmatprep.mubr.msk.bf16.mxu1 %vm497_vm0, %v5612_v52  ;;  %v5290_v49 = vpop.xlane.xlu0 %5289  ;;  %v5487_v51 = vsub.f32 %v15579_v39, %v12497_v63  ;;  %v6316_v24 = vsel %vm497_vm0, %v6224_v41, 0.0  ;;  %v15581_v39 = vld [vmem:[#allocation13_spill] sm:$0xff] }
 0x742   : > { %8652 = vmatmul.mubr.msk.bf16.gmra.mrb[96].mxu1 %vm497_vm0, %v5613_v42  ;;  %v9189_v7 = vpop.eup %9188  ;;  %v5332_v53 = vmul.f32 0.03125, %v5290_v49  ;;  %6154 = vadd.xlane.f32.xlu1 %v6153_v40  ;;  %v5363_v52 = vmul.f32 %v12557_v56, %v12557_v56 }
 0x743   : > { %v5293_v17 = vpop.xlane.xlu1 %5292  ;;  %v5520_v45 = vmul.f32 %v9189_v7, %v5488_v23  ;;  %v6319_v7 = vsel %vm497_vm0, %v6225_v32, 0.0 }
 0x744   : > { %v9191_v30 = vpop.eup %9190  ;;  %v5396_v9 = vsub.f32 %v5332_v53, %v5364_v19  ;;  %v5333_v15 = vmul.f32 0.03125, %v5293_v17  ;;  %6311 = vadd.xlane.f32.xlu0 %v6310_v18 }
 0x745   : > { %v5521_v22 = vmul.f32 %v9191_v30, %v5489_v48  ;;  %v5284_v36 = vpop.xlane.xlu0 %5283  ;;  %v5557_v53 = vmul.f32 %v12215_v60, %v5520_v45 }
 0x746   : > { %v9193_v33 = vpop.eup %9192  ;;  %v5428_v28 = vadd.f32 1e-05, %v5396_v9  ;;  %v5397_v34 = vsub.f32 %v5333_v15, %v5365_v37  ;;  %v5330_v3 = vmul.f32 0.03125, %v5284_v36  ;;  %6314 = vadd.xlane.f32.xlu1 %v6313_v57 }
 0x747   : > { %v5518_v46 = vmul.f32 %v9193_v33, %v5486_v58  ;;  %v5287_v35 = vpop.xlane.xlu1 %5286  ;;  %v5558_v40 = vmul.f32 %v12215_v60, %v5521_v22  ;;  %v5594_v37 = vadd.f32 %v12238_v8, %v5557_v53 }
 0x748   : > { %v9195_v27 = vpop.eup %9194  ;;  %v5429_v31 = vadd.f32 1e-05, %v5397_v34  ;;  %v5394_v42 = vsub.f32 %v5330_v3, %v5362_v43  ;;  %v5331_v49 = vmul.f32 0.03125, %v5287_v35  ;;  %6317 = vadd.xlane.f32.xlu0 %v6316_v24  ;;  %9196 = vrsqrt.f32 %v5428_v28  ;;  %v15580_v28 = vld [vmem:[#allocation15_spill] sm:$0xff] }
 0x749   : > { %v5142_v12 = vpop.xlane.xlu0 %5141  ;;  %v5519_v5 = vmul.f32 %v9195_v27, %v5487_v51  ;;  %v5555_v48 = vmul.f32 %v12215_v60, %v5518_v46  ;;  %v5595_v23 = vadd.f32 %v12238_v8, %v5558_v40  ;;  %v5493_v34 = vsub.f32 %v15580_v28, %v12538_v61 }
 0x74a   : > { %9198 = vrsqrt.f32 %v5429_v31  ;;  %v5426_v63 = vadd.f32 1e-05, %v5394_v42  ;;  %v5395_v19 = vsub.f32 %v5331_v49, %v5363_v52  ;;  %6320 = vadd.xlane.f32.xlu1 %v6319_v7  ;;  %v12581_v41 = vmul.f32 0.03125, %v5142_v12  ;;  %v15582_v31 = vld [vmem:[#allocation14_spill] sm:$0xff] }
 0x74b   : > { %v5145_v18 = vpop.xlane.xlu1 %5144  ;;  %v5556_v30 = vmul.f32 %v12215_v60, %v5519_v5  ;;  %v5592_v58 = vadd.f32 %v12238_v8, %v5555_v48  ;;  %v5615_v33 = vpack.c.bf16 %v5595_v23, %v5594_v37  ;;  %v5492_v51 = vsub.f32 %v15581_v39, %v12532_v29  ;;  %v15583_v29 = vld [vmem:[#allocation16_spill] sm:$0xff] }
 0x74c   : > { %9200 = vrsqrt.f32 %v5426_v63  ;;  %v5427_v25 = vadd.f32 1e-05, %v5395_v19  ;;  %v12584_v22 = vmul.f32 0.03125, %v5145_v18  ;;  %v5368_v57 = vmul.f32 %v12581_v41, %v12581_v41 }
 0x74d   : > { %v5136_v55 = vpop.xlane.xlu0 %5135  ;;  %v5593_v17 = vadd.f32 %v12238_v8, %v5556_v30  ;;  %v5490_v42 = vsub.f32 %v15582_v31, %v12541_v44  ;;  %v5491_v19 = vsub.f32 %v15583_v29, %v12557_v56 }
 0x74e   : > { %9202 = vrsqrt.f32 %v5427_v25  ;;  %v12586_v43 = vmul.f32 0.03125, %v5136_v55  ;;  %v5369_v52 = vmul.f32 %v12584_v22, %v12584_v22 }
 0x74f   : > { %v5139_v9 = vpop.xlane.xlu1 %5138  ;;  %v5614_v15 = vpack.c.bf16 %v5593_v17, %v5592_v58 }
 0x750   : > { %v12594_v3 = vmul.f32 0.03125, %v5139_v9  ;;  %v5366_v49 = vmul.f32 %v12586_v43, %v12586_v43 }
 0x751   : > { %8655 = vmatprep.mubr.msk.bf16.mxu1 %vm497_vm0, %v5614_v15  ;;  %v5302_v36 = vpop.xlane.xlu0 %5301 }
 0x752   : > { %v5336_v32 = vmul.f32 0.03125, %v5302_v36  ;;  %8656 = vmatmul.mubr.msk.bf16.gmra.mrb[100].mxu1 %vm497_vm0, %v5615_v33  ;;  %v9197_v45 = vpop.eup %9196  ;;  %v5367_v53 = vmul.f32 %v12594_v3, %v12594_v3 }
 0x753   : > { %v5305_v46 = vpop.xlane.xlu1 %5304  ;;  %v5524_v63 = vmul.f32 %v9197_v45, %v5492_v51 }
 0x754   : > { %v9199_v27 = vpop.eup %9198  ;;  %v5400_v35 = vsub.f32 %v5336_v32, %v5368_v57  ;;  %v5337_v24 = vmul.f32 0.03125, %v5305_v46 }
 0x755   : > { %v5296_v40 = vpop.xlane.xlu0 %5295  ;;  %v5525_v61 = vmul.f32 %v9199_v27, %v5493_v34  ;;  %v5561_v56 = vmul.f32 %v12215_v60, %v5524_v63 }
 0x756   : > { %v9201_v12 = vpop.eup %9200  ;;  %v5432_v7 = vadd.f32 1e-05, %v5400_v35  ;;  %v5401_v5 = vsub.f32 %v5337_v24, %v5369_v52  ;;  %v5334_v48 = vmul.f32 0.03125, %v5296_v40 }
 0x757   : > { %v5299_v18 = vpop.xlane.xlu1 %5298  ;;  %v5522_v30 = vmul.f32 %v9201_v12, %v5490_v42  ;;  %v5562_v58 = vmul.f32 %v12215_v60, %v5525_v61  ;;  %v5598_v39 = vadd.f32 %v12238_v8, %v5561_v56  ;;  %v15584_v61 = vld [vmem:[#allocation46_spill] sm:$0xff] }
 0x758   : > { %v9203_v25 = vpop.eup %9202  ;;  %v5433_v44 = vadd.f32 1e-05, %v5401_v5  ;;  %v5398_v23 = vsub.f32 %v5334_v48, %v5366_v49  ;;  %v5335_v55 = vmul.f32 0.03125, %v5299_v18  ;;  %9204 = vrsqrt.f32 %v5432_v7  ;;  %v15585_v48 = vld [vmem:[#allocation17_spill] sm:$0xff]  ;;  %v15586_v18 = vld [vmem:[#allocation47_spill] sm:$0xff] }
 0x759   : > { %v6074_v17 = vpop.xlane.xlu0 %6073  ;;  %v5523_v37 = vmul.f32 %v9203_v25, %v5491_v19  ;;  %v5559_v9 = vmul.f32 %v12215_v60, %v5522_v30  ;;  %v5599_v45 = vadd.f32 %v12238_v8, %v5562_v58  ;;  %v5496_v63 = vsub.f32 %v15585_v48, %v12581_v41  ;;  %v15587_v41 = vld [vmem:[#allocation48_spill] sm:$0xff] }
 0x75a   : > { %9206 = vrsqrt.f32 %v5433_v44  ;;  %v5430_v15 = vadd.f32 1e-05, %v5398_v23  ;;  %v5399_v33 = vsub.f32 %v5335_v55, %v5367_v53  ;;  %v12615_v27 = vmul.f32 0.03125, %v6074_v17 }
 0x75b   : > { %v6077_v36 = vpop.xlane.xlu1 %6076  ;;  %v5560_v57 = vmul.f32 %v12215_v60, %v5523_v37  ;;  %v5596_v34 = vadd.f32 %v12238_v8, %v5559_v9  ;;  %v5617_v24 = vpack.c.bf16 %v5599_v45, %v5598_v39  ;;  %v5494_v30 = vsub.f32 %v15586_v18, %v12586_v43  ;;  %v9500_v45 = vld [vmem:[%s15257_s4 + $0xc] ss:$0 sm:$0xff] }
 0x75c   : > { %9208 = vrsqrt.f32 %v5430_v15  ;;  %v5431_v32 = vadd.f32 1e-05, %v5399_v33  ;;  %v12618_v35 = vmul.f32 0.03125, %v6077_v36  ;;  %v6356_v42 = vmul.f32 %v12615_v27, %v12615_v27 }
 0x75d   : > { %v6068_v28 = vpop.xlane.xlu0 %6067  ;;  %v5597_v46 = vadd.f32 %v12238_v8, %v5560_v57  ;;  %v5497_v8 = vsub.f32 %v15584_v61, %v12584_v22  ;;  %v5495_v9 = vsub.f32 %v15587_v41, %v12594_v3  ;;  %v15589_v41 = vld [vmem:[#allocation49_spill] sm:$0xff] }
 0x75e   : > { %9210 = vrsqrt.f32 %v5431_v32  ;;  %v12620_v60 = vmul.f32 0.03125, %v6068_v28  ;;  %v6357_v29 = vmul.f32 %v12618_v35, %v12618_v35 }
 0x75f   : > { %v6071_v51 = vpop.xlane.xlu1 %6070  ;;  %v5616_v52 = vpack.c.bf16 %v5597_v46, %v5596_v34 }
 0x760   : > { %v12628_v12 = vmul.f32 0.03125, %v6071_v51  ;;  %v6354_v25 = vmul.f32 %v12620_v60, %v12620_v60 }
 0x761   : > { %8659 = vmatprep.mubr.msk.bf16.mxu1 %vm497_vm0, %v5616_v52  ;;  %v6234_v31 = vpop.xlane.xlu0 %6233 }
 0x762   : > { %v6324_v49 = vmul.f32 0.03125, %v6234_v31  ;;  %8660 = vmatmul.mubr.msk.bf16.gmra.mrb[104].mxu1 %vm497_vm0, %v5617_v24  ;;  %v9205_v40 = vpop.eup %9204  ;;  %v6355_v15 = vmul.f32 %v12628_v12, %v12628_v12 }
 0x763   : > { %v6237_v7 = vpop.xlane.xlu1 %6236  ;;  %v5528_v37 = vmul.f32 %v9205_v40, %v5496_v63 }
 0x764   : > { %v9207_v5 = vpop.eup %9206  ;;  %v6388_v19 = vsub.f32 %v6324_v49, %v6356_v42  ;;  %v6325_v53 = vmul.f32 0.03125, %v6237_v7  ;;  %v9501_v49 = vld [vmem:[%s15257_s4 + $0xd] ss:$0 sm:$0xff] }
 0x765   : > { %v6228_v44 = vpop.xlane.xlu0 %6227  ;;  %v5529_v22 = vmul.f32 %v9207_v5, %v5497_v8  ;;  %v5565_v52 = vmul.f32 %v9500_v45, %v5528_v37 }
 0x766   : > { %v9209_v23 = vpop.eup %9208  ;;  %v6420_v55 = vadd.f32 1e-05, %v6388_v19  ;;  %v6389_v58 = vsub.f32 %v6325_v53, %v6357_v29  ;;  %v6322_v17 = vmul.f32 0.03125, %v6228_v44 }
 0x767   : > { %v6231_v33 = vpop.xlane.xlu1 %6230  ;;  %v5526_v56 = vmul.f32 %v9209_v23, %v5494_v30  ;;  %v5566_v28 = vmul.f32 %v9500_v45, %v5529_v22  ;;  %v5602_v48 = vadd.f32 %v9501_v49, %v5565_v52  ;;  %v15588_v23 = vld [vmem:[#allocation50_spill] sm:$0xff] }
 0x768   : > { %v9211_v36 = vpop.eup %9210  ;;  %v6421_v43 = vadd.f32 1e-05, %v6389_v58  ;;  %v6386_v57 = vsub.f32 %v6322_v17, %v6354_v25  ;;  %v6323_v32 = vmul.f32 0.03125, %v6231_v33  ;;  %9212 = vrsqrt.f32 %v6420_v55 }
 0x769   : > { %v6086_v34 = vpop.xlane.xlu0 %6085  ;;  %v5527_v46 = vmul.f32 %v9211_v36, %v5495_v9  ;;  %v5563_v39 = vmul.f32 %v9500_v45, %v5526_v56  ;;  %v5603_v40 = vadd.f32 %v9501_v49, %v5566_v28  ;;  %v6485_v55 = vsub.f32 %v15588_v23, %v12618_v35  ;;  %v15590_v36 = vld [vmem:[#allocation51_spill] sm:$0xff] }
 0x76a   : > { %9214 = vrsqrt.f32 %v6421_v43  ;;  %v6418_v3 = vadd.f32 1e-05, %v6386_v57  ;;  %v6387_v51 = vsub.f32 %v6323_v32, %v6355_v15  ;;  %v12648_v5 = vmul.f32 0.03125, %v6086_v34 }
 0x76b   : > { %v6089_v24 = vpop.xlane.xlu1 %6088  ;;  %v5564_v31 = vmul.f32 %v9500_v45, %v5527_v46  ;;  %v5600_v8 = vadd.f32 %v9501_v49, %v5563_v39  ;;  %v5619_v53 = vpack.c.bf16 %v5603_v40, %v5602_v48  ;;  %v6484_v9 = vsub.f32 %v15589_v41, %v12615_v27  ;;  %v15591_v27 = vld [vmem:[#allocation52_spill] sm:$0xff] }
 0x76c   : > { %9216 = vrsqrt.f32 %v6418_v3  ;;  %v6419_v42 = vadd.f32 1e-05, %v6387_v51  ;;  %v12650_v19 = vmul.f32 0.03125, %v6089_v24  ;;  %v6360_v25 = vmul.f32 %v12648_v5, %v12648_v5  ;;  %v12675_v51 = vld [vmem:[%s15257_s4 + $0xf] ss:$0 sm:$0xff] }
 0x76d   : > { %v6080_v61 = vpop.xlane.xlu0 %6079  ;;  %v5601_v7 = vadd.f32 %v9501_v49, %v5564_v31  ;;  %v6482_v43 = vsub.f32 %v15590_v36, %v12620_v60  ;;  %v6483_v3 = vsub.f32 %v15591_v27, %v12628_v12  ;;  %v15593_v27 = vld [vmem:[#allocation53_spill] sm:$0xff] }
 0x76e   : > { %9218 = vrsqrt.f32 %v6419_v42  ;;  %v12652_v18 = vmul.f32 0.03125, %v6080_v61  ;;  %v6361_v15 = vmul.f32 %v12650_v19, %v12650_v19 }
 0x76f   : > { %v6083_v63 = vpop.xlane.xlu1 %6082  ;;  %v5618_v29 = vpack.c.bf16 %v5601_v7, %v5600_v8 }
 0x770   : > { %v12660_v58 = vmul.f32 0.03125, %v6083_v63  ;;  %v6358_v32 = vmul.f32 %v12652_v18, %v12652_v18 }
 0x771   : > { %8663 = vmatprep.mubr.msk.bf16.mxu1 %vm497_vm0, %v5618_v29  ;;  %v6246_v30 = vpop.xlane.xlu0 %6245 }
 0x772   : > { %v6328_v44 = vmul.f32 0.03125, %v6246_v30  ;;  %8664 = vmatmul.mubr.msk.bf16.gmra.mrb[108].mxu1 %vm497_vm0, %v5619_v53  ;;  %v9213_v22 = vpop.eup %9212  ;;  %v6359_v60 = vmul.f32 %v12660_v58, %v12660_v58 }
 0x773   : > { %v6249_v17 = vpop.xlane.xlu1 %6248  ;;  %v6516_v28 = vmul.f32 %v9213_v22, %v6484_v9 }
 0x774   : > { %v9215_v37 = vpop.eup %9214  ;;  %v6392_v33 = vsub.f32 %v6328_v44, %v6360_v25  ;;  %v6329_v56 = vmul.f32 0.03125, %v6249_v17  ;;  %v12686_v25 = vld [vmem:[%s15257_s4 + $0x10] ss:$0 sm:$0xff] }
 0x775   : > { %v6517_v57 = vmul.f32 %v9215_v37, %v6485_v55  ;;  %v6240_v35 = vpop.xlane.xlu0 %6239  ;;  %v6553_v48 = vmul.f32 %v12675_v51, %v6516_v28 }
 0x776   : > { %v9217_v45 = vpop.eup %9216  ;;  %v6424_v34 = vadd.f32 1e-05, %v6392_v33  ;;  %v6393_v46 = vsub.f32 %v6329_v56, %v6361_v15  ;;  %v6326_v39 = vmul.f32 0.03125, %v6240_v35 }
 0x777   : > { %v6243_v52 = vpop.xlane.xlu1 %6242  ;;  %v6514_v24 = vmul.f32 %v9217_v45, %v6482_v43  ;;  %v6554_v42 = vmul.f32 %v12675_v51, %v6517_v57  ;;  %v6590_v41 = vadd.f32 %v12686_v25, %v6553_v48  ;;  %v15592_v45 = vld [vmem:[#allocation54_spill] sm:$0xff] }
 0x778   : > { %v9219_v31 = vpop.eup %9218  ;;  %v6425_v49 = vadd.f32 1e-05, %v6393_v46  ;;  %v6390_v40 = vsub.f32 %v6326_v39, %v6358_v32  ;;  %v6327_v61 = vmul.f32 0.03125, %v6243_v52  ;;  %9220 = vrsqrt.f32 %v6424_v34 }
 0x779   : > { %v6098_v8 = vpop.xlane.xlu0 %6097  ;;  %v6515_v7 = vmul.f32 %v9219_v31, %v6483_v3  ;;  %v6551_v12 = vmul.f32 %v12675_v51, %v6514_v24  ;;  %v6591_v22 = vadd.f32 %v12686_v25, %v6554_v42  ;;  %v6489_v28 = vsub.f32 %v15592_v45, %v12650_v19  ;;  %v15594_v31 = vld [vmem:[#allocation55_spill] sm:$0xff] }
 0x77a   : > { %9222 = vrsqrt.f32 %v6425_v49  ;;  %v6422_v63 = vadd.f32 1e-05, %v6390_v40  ;;  %v6391_v29 = vsub.f32 %v6327_v61, %v6359_v60  ;;  %v12691_v37 = vmul.f32 0.03125, %v6098_v8 }
 0x77b   : > { %v6101_v53 = vpop.xlane.xlu1 %6100  ;;  %v6552_v30 = vmul.f32 %v12675_v51, %v6515_v7  ;;  %v6588_v55 = vadd.f32 %v12686_v25, %v6551_v12  ;;  %v6621_v56 = vpack.c.bf16 %v6591_v22, %v6590_v41  ;;  %v6488_v3 = vsub.f32 %v15593_v27, %v12648_v5  ;;  %v15595_v5 = vld [vmem:[#allocation56_spill] sm:$0xff] }
 0x77c   : > { %9224 = vrsqrt.f32 %v6422_v63  ;;  %v6423_v44 = vadd.f32 1e-05, %v6391_v29  ;;  %v12694_v33 = vmul.f32 0.03125, %v6101_v53  ;;  %v6364_v57 = vmul.f32 %v12691_v37, %v12691_v37 }
 0x77d   : > { %v6092_v23 = vpop.xlane.xlu0 %6091  ;;  %v6589_v17 = vadd.f32 %v12686_v25, %v6552_v30  ;;  %v6486_v42 = vsub.f32 %v15594_v31, %v12652_v18  ;;  %v6487_v63 = vsub.f32 %v15595_v5, %v12660_v58  ;;  %v15597_v5 = vld [vmem:[#allocation57_spill] sm:$0xff] }
 0x77e   : > { %9226 = vrsqrt.f32 %v6423_v44  ;;  %v12696_v36 = vmul.f32 0.03125, %v6092_v23  ;;  %v6365_v60 = vmul.f32 %v12694_v33, %v12694_v33 }
 0x77f   : > { %v6095_v9 = vpop.xlane.xlu1 %6094  ;;  %v6620_v15 = vpack.c.bf16 %v6589_v17, %v6588_v55 }
 0x780   : > { %v12704_v34 = vmul.f32 0.03125, %v6095_v9  ;;  %v6362_v49 = vmul.f32 %v12696_v36, %v12696_v36 }
 0x781   : > { %8707 = vmatprep.mubr.msk.bf16.mxu1 %vm497_vm0, %v6620_v15  ;;  %v6258_v43 = vpop.xlane.xlu0 %6257 }
 0x782   : > { %v6332_v32 = vmul.f32 0.03125, %v6258_v43  ;;  %8708 = vmatmul.mubr.msk.bf16.vlgmr.msra.gmra.mrb[112].mxu1 %vm497_vm0, %v6621_v56  ;;  %v9221_v35 = vpop.eup %9220  ;;  %v6363_v29 = vmul.f32 %v12704_v34, %v12704_v34 }
 0x783   : > { %v6261_v46 = vpop.xlane.xlu1 %6260  ;;  %v6520_v48 = vmul.f32 %v9221_v35, %v6488_v3 }
 0x784   : > { %v9223_v39 = vpop.eup %9222  ;;  %v6396_v52 = vsub.f32 %v6332_v32, %v6364_v57  ;;  %v6333_v24 = vmul.f32 0.03125, %v6261_v46 }
 0x785   : > { %v6252_v40 = vpop.xlane.xlu0 %6251  ;;  %v6521_v19 = vmul.f32 %v9223_v39, %v6489_v28  ;;  %v6557_v58 = vmul.f32 %v12675_v51, %v6520_v48 }
 0x786   : > { %v9225_v61 = vpop.eup %9224  ;;  %v6428_v8 = vadd.f32 1e-05, %v6396_v52  ;;  %v6397_v7 = vsub.f32 %v6333_v24, %v6365_v60  ;;  %v6330_v12 = vmul.f32 0.03125, %v6252_v40 }
 0x787   : > { %v6255_v53 = vpop.xlane.xlu1 %6254  ;;  %v6518_v30 = vmul.f32 %v9225_v61, %v6486_v42  ;;  %v6558_v55 = vmul.f32 %v12675_v51, %v6521_v19  ;;  %v6594_v27 = vadd.f32 %v12686_v25, %v6557_v58  ;;  %v15596_v61 = vld [vmem:[#allocation59_spill] sm:$0xff] }
 0x788   : > { %v9227_v44 = vpop.eup %9226  ;;  %v6429_v18 = vadd.f32 1e-05, %v6397_v7  ;;  %v6394_v22 = vsub.f32 %v6330_v12, %v6362_v49  ;;  %v6331_v23 = vmul.f32 0.03125, %v6255_v53  ;;  %9228 = vrsqrt.f32 %v6428_v8 }
 0x789   : > { %v6110_v17 = vpop.xlane.xlu0 %6109  ;;  %v6519_v41 = vmul.f32 %v9227_v44, %v6487_v63  ;;  %v6555_v9 = vmul.f32 %v12675_v51, %v6518_v30  ;;  %v6595_v35 = vadd.f32 %v12686_v25, %v6558_v55  ;;  %v6493_v8 = vsub.f32 %v15596_v61, %v12694_v33  ;;  %v15598_v44 = vld [vmem:[#allocation58_spill] sm:$0xff] }
 0x78a   : > { %9230 = vrsqrt.f32 %v6429_v18  ;;  %v6426_v15 = vadd.f32 1e-05, %v6394_v22  ;;  %v6395_v56 = vsub.f32 %v6331_v23, %v6363_v29  ;;  %v12725_v39 = vmul.f32 0.03125, %v6110_v17 }
 0x78b   : > { %v6113_v43 = vpop.xlane.xlu1 %6112  ;;  %v6556_v57 = vmul.f32 %v12675_v51, %v6519_v41  ;;  %v6592_v28 = vadd.f32 %v12686_v25, %v6555_v9  ;;  %v6623_v24 = vpack.c.bf16 %v6595_v35, %v6594_v27  ;;  %v6492_v63 = vsub.f32 %v15597_v5, %v12691_v37  ;;  %v15599_v37 = vld [vmem:[#allocation60_spill] sm:$0xff] }
 0x78c   : > { %9232 = vrsqrt.f32 %v6426_v15  ;;  %v6427_v32 = vadd.f32 1e-05, %v6395_v56  ;;  %v12728_v52 = vmul.f32 0.03125, %v6113_v43  ;;  %v6368_v49 = vmul.f32 %v12725_v39, %v12725_v39 }
 0x78d   : > { %v6104_v45 = vpop.xlane.xlu0 %6103  ;;  %v6593_v46 = vadd.f32 %v12686_v25, %v6556_v57  ;;  %v6490_v18 = vsub.f32 %v15598_v44, %v12696_v36  ;;  %v6491_v56 = vsub.f32 %v15599_v37, %v12704_v34 }
 0x78e   : > { %9234 = vrsqrt.f32 %v6427_v32  ;;  %v12730_v31 = vmul.f32 0.03125, %v6104_v45  ;;  %v6369_v29 = vmul.f32 %v12728_v52, %v12728_v52 }
 0x78f   : > { %v6107_v3 = vpop.xlane.xlu1 %6106  ;;  %v6622_v60 = vpack.c.bf16 %v6593_v46, %v6592_v28 }
 0x790   : > { %v12738_v7 = vmul.f32 0.03125, %v6107_v3  ;;  %v6366_v22 = vmul.f32 %v12730_v31, %v12730_v31 }
 0x791   : > { %8711 = vmatprep.mubr.msk.bf16.mxu1 %vm497_vm0, %v6622_v60  ;;  %v6270_v42 = vpop.xlane.xlu0 %6269 }
 0x792   : > { %v6336_v40 = vmul.f32 0.03125, %v6270_v42  ;;  %8712 = vmatmul.mubr.msk.bf16.gmra.mrb[116].mxu1 %vm497_vm0, %v6623_v24  ;;  %v9229_v19 = vpop.eup %9228  ;;  %v6367_v58 = vmul.f32 %v12738_v7, %v12738_v7 }
 0x793   : > { %v6273_v12 = vpop.xlane.xlu1 %6272  ;;  %v6524_v15 = vmul.f32 %v9229_v19, %v6492_v63 }
 0x794   : > { %v9231_v48 = vpop.eup %9230  ;;  %v6400_v53 = vsub.f32 %v6336_v40, %v6368_v49  ;;  %v6337_v30 = vmul.f32 0.03125, %v6273_v12 }
 0x795   : > { %v6264_v23 = vpop.xlane.xlu0 %6263  ;;  %v6525_v33 = vmul.f32 %v9231_v48, %v6493_v8  ;;  %v6561_v34 = vmul.f32 %v12675_v51, %v6524_v15  ;;  %v6496_v15 = vsub.f32 %v12187_v11, %v12725_v39  ;;  %v15600_v11 = vld [vmem:[#allocation61_spill] sm:$0xff] }
 0x796   : > { %v9233_v55 = vpop.eup %9232  ;;  %v6432_v17 = vadd.f32 1e-05, %v6400_v53  ;;  %v6401_v41 = vsub.f32 %v6337_v30, %v6369_v29  ;;  %v6334_v9 = vmul.f32 0.03125, %v6264_v23  ;;  %v6495_v39 = vsub.f32 %v15600_v11, %v12738_v7 }
 0x797   : > { %v6267_v43 = vpop.xlane.xlu1 %6266  ;;  %v6522_v57 = vmul.f32 %v9233_v55, %v6490_v18  ;;  %v6562_v28 = vmul.f32 %v12675_v51, %v6525_v33  ;;  %v6598_v5 = vadd.f32 %v12686_v25, %v6561_v34  ;;  %v6497_v55 = vsub.f32 %v12219_v1, %v12728_v52 }
 0x798   : > { %v9235_v32 = vpop.eup %9234  ;;  %v6433_v36 = vadd.f32 1e-05, %v6401_v41  ;;  %v6398_v35 = vsub.f32 %v6334_v9, %v6366_v22  ;;  %v6335_v45 = vmul.f32 0.03125, %v6267_v43  ;;  %9236 = vrsqrt.f32 %v6432_v17 }
 0x799   : > { %v6122_v46 = vpop.xlane.xlu0 %6121  ;;  %v6523_v27 = vmul.f32 %v9235_v32, %v6491_v56  ;;  %v6559_v3 = vmul.f32 %v12675_v51, %v6522_v57  ;;  %v6599_v19 = vadd.f32 %v12686_v25, %v6562_v28  ;;  %v6494_v43 = vsub.f32 %v12194_v62, %v12730_v31 }
 0x79a   : > { %9238 = vrsqrt.f32 %v6433_v36  ;;  %v6430_v60 = vadd.f32 1e-05, %v6398_v35  ;;  %v6399_v24 = vsub.f32 %v6335_v45, %v6367_v58  ;;  %v12759_v48 = vmul.f32 0.03125, %v6122_v46 }
 0x79b   : > { %v6125_v42 = vpop.xlane.xlu1 %6124  ;;  %v6560_v49 = vmul.f32 %v12675_v51, %v6523_v27  ;;  %v6596_v8 = vadd.f32 %v12686_v25, %v6559_v3  ;;  %v6625_v30 = vpack.c.bf16 %v6599_v19, %v6598_v5 }
 0x79c   : > { %9240 = vrsqrt.f32 %v6430_v60  ;;  %v6431_v40 = vadd.f32 1e-05, %v6399_v24  ;;  %v12762_v53 = vmul.f32 0.03125, %v6125_v42  ;;  %v6372_v22 = vmul.f32 %v12759_v48, %v12759_v48 }
 0x79d   : > { %v6116_v61 = vpop.xlane.xlu0 %6115  ;;  %v6597_v12 = vadd.f32 %v12686_v25, %v6560_v49 }
 0x79e   : > { %9242 = vrsqrt.f32 %v6431_v40  ;;  %v12764_v44 = vmul.f32 0.03125, %v6116_v61  ;;  %v6373_v37 = vmul.f32 %v12762_v53, %v12762_v53 }
 0x79f   : > { %v6119_v63 = vpop.xlane.xlu1 %6118  ;;  %v6624_v29 = vpack.c.bf16 %v6597_v12, %v6596_v8 }
 0x7a0   : > { %v12772_v17 = vmul.f32 0.03125, %v6119_v63  ;;  %v6370_v57 = vmul.f32 %v12764_v44, %v12764_v44  ;;  %v6498_v11 = vsub.f32 %v12286_v10, %v12764_v44 }
 0x7a1   : > { %8715 = vmatprep.mubr.msk.bf16.mxu1 %vm497_vm0, %v6624_v29  ;;  %v6282_v18 = vpop.xlane.xlu0 %6281 }
 0x7a2   : > { %v6340_v23 = vmul.f32 0.03125, %v6282_v18  ;;  %8716 = vmatmul.mubr.msk.bf16.gmra.mrb[120].mxu1 %vm497_vm0, %v6625_v30  ;;  %v9237_v33 = vpop.eup %9236  ;;  %v6371_v46 = vmul.f32 %v12772_v17, %v12772_v17 }
 0x7a3   : > { %v6285_v41 = vpop.xlane.xlu1 %6284  ;;  %v6528_v28 = vmul.f32 %v9237_v33, %v6496_v15 }
 0x7a4   : > { %v9239_v9 = vpop.eup %9238  ;;  %v6404_v56 = vsub.f32 %v6340_v23, %v6372_v22  ;;  %v6341_v58 = vmul.f32 0.03125, %v6285_v41 }
 0x7a5   : > { %v6276_v32 = vpop.xlane.xlu0 %6275  ;;  %v6529_v1 = vmul.f32 %v9239_v9, %v6497_v55  ;;  %v6565_v7 = vmul.f32 %v12675_v51, %v6528_v28 }
 0x7a6   : > { %v9241_v52 = vpop.eup %9240  ;;  %v6436_v36 = vadd.f32 1e-05, %v6404_v56  ;;  %v6405_v35 = vsub.f32 %v6341_v58, %v6373_v37  ;;  %v6338_v45 = vmul.f32 0.03125, %v6276_v32 }
 0x7a7   : > { %v6279_v27 = vpop.xlane.xlu1 %6278  ;;  %v6526_v3 = vmul.f32 %v9241_v52, %v6494_v43  ;;  %v6566_v34 = vmul.f32 %v12675_v51, %v6529_v1  ;;  %v6602_v23 = vadd.f32 %v12686_v25, %v6565_v7 }
 0x7a8   : > { %v9243_v60 = vpop.eup %9242  ;;  %v6437_v62 = vadd.f32 1e-05, %v6405_v35  ;;  %v6402_v31 = vsub.f32 %v6338_v45, %v6370_v57  ;;  %v6339_v24 = vmul.f32 0.03125, %v6279_v27  ;;  %9244 = vrsqrt.f32 %v6436_v36 }
 0x7a9   : > { %v6134_v42 = vpop.xlane.xlu0 %6133  ;;  %v6527_v49 = vmul.f32 %v9243_v60, %v6495_v39  ;;  %v6563_v40 = vmul.f32 %v12675_v51, %v6526_v3  ;;  %v6603_v63 = vadd.f32 %v12686_v25, %v6566_v34  ;;  %v6501_v57 = vsub.f32 %v12304_v20, %v12762_v53 }
 0x7aa   : > { %9246 = vrsqrt.f32 %v6437_v62  ;;  %v6434_v19 = vadd.f32 1e-05, %v6402_v31  ;;  %v6403_v61 = vsub.f32 %v6339_v24, %v6371_v46  ;;  %v12793_v22 = vmul.f32 0.03125, %v6134_v42 }
 0x7ab   : > { %v6137_v8 = vpop.xlane.xlu1 %6136  ;;  %v6564_v12 = vmul.f32 %v12675_v51, %v6527_v49  ;;  %v6600_v30 = vadd.f32 %v12686_v25, %v6563_v40  ;;  %v6627_v9 = vpack.c.bf16 %v6603_v63, %v6602_v23  ;;  %v6500_v36 = vsub.f32 %v12273_v54, %v12759_v48 }
 0x7ac   : > { %9248 = vrsqrt.f32 %v6434_v19  ;;  %v6435_v5 = vadd.f32 1e-05, %v6403_v61  ;;  %v12796_v41 = vmul.f32 0.03125, %v6137_v8  ;;  %v6376_v56 = vmul.f32 %v12793_v22, %v12793_v22 }
 0x7ad   : > { %v6128_v29 = vpop.xlane.xlu0 %6127  ;;  %v6601_v18 = vadd.f32 %v12686_v25, %v6564_v12  ;;  %v6499_v54 = vsub.f32 %v12311_v13, %v12772_v17 }
 0x7ae   : > { %9250 = vrsqrt.f32 %v6435_v5  ;;  %v12798_v15 = vmul.f32 0.03125, %v6128_v29  ;;  %v6377_v35 = vmul.f32 %v12796_v41, %v12796_v41 }
 0x7af   : > { %v6131_v33 = vpop.xlane.xlu1 %6130  ;;  %v6626_v55 = vpack.c.bf16 %v6601_v18, %v6600_v30 }
 0x7b0   : > { %v12806_v32 = vmul.f32 0.03125, %v6131_v33  ;;  %v6374_v39 = vmul.f32 %v12798_v15, %v12798_v15 }
 0x7b1   : > { %8719 = vmatprep.mubr.msk.bf16.mxu1 %vm497_vm0, %v6626_v55  ;;  %v6294_v37 = vpop.xlane.xlu0 %6293 }
 0x7b2   : > { %v6344_v58 = vmul.f32 0.03125, %v6294_v37  ;;  %8720 = vmatmul.mubr.msk.bf16.gmra.mrb[124].mxu1 %vm497_vm0, %v6627_v9  ;;  %v9245_v43 = vpop.eup %9244  ;;  %v6375_v48 = vmul.f32 %v12806_v32, %v12806_v32 }
 0x7b3   : > { %v6297_v1 = vpop.xlane.xlu1 %6296  ;;  %v6532_v62 = vmul.f32 %v9245_v43, %v6500_v36  ;;  %v6505_v36 = vsub.f32 %v12366_v50, %v12796_v41 }
 0x7b4   : > { %v9247_v52 = vpop.eup %9246  ;;  %v6408_v45 = vsub.f32 %v6344_v58, %v6376_v56  ;;  %v6345_v28 = vmul.f32 0.03125, %v6297_v1 }
 0x7b5   : > { %v6288_v46 = vpop.xlane.xlu0 %6287  ;;  %v6533_v20 = vmul.f32 %v9247_v52, %v6501_v57  ;;  %v6569_v13 = vmul.f32 %v12675_v51, %v6532_v62 }
 0x7b6   : > { %v9249_v53 = vpop.eup %9248  ;;  %v6440_v27 = vadd.f32 1e-05, %v6408_v45  ;;  %v6409_v3 = vsub.f32 %v6345_v28, %v6377_v35  ;;  %v6342_v60 = vmul.f32 0.03125, %v6288_v46 }
 0x7b7   : > { %v6291_v31 = vpop.xlane.xlu1 %6290  ;;  %v6530_v24 = vmul.f32 %v9249_v53, %v6498_v11  ;;  %v6570_v49 = vmul.f32 %v12675_v51, %v6533_v20  ;;  %v6606_v33 = vadd.f32 %v12686_v25, %v6569_v13  ;;  %v6504_v11 = vsub.f32 %v12348_v21, %v12793_v22 }
 0x7b8   : > { %v9251_v34 = vpop.eup %9250  ;;  %v6441_v10 = vadd.f32 1e-05, %v6409_v3  ;;  %v6406_v44 = vsub.f32 %v6342_v60, %v6374_v39  ;;  %v6343_v42 = vmul.f32 0.03125, %v6291_v31  ;;  %9252 = vrsqrt.f32 %v6440_v27 }
 0x7b9   : > { %v6146_v40 = vpop.xlane.xlu0 %6145  ;;  %v6531_v19 = vmul.f32 %v9251_v34, %v6499_v54  ;;  %v6567_v61 = vmul.f32 %v12675_v51, %v6530_v24  ;;  %v6607_v63 = vadd.f32 %v12686_v25, %v6570_v49  ;;  %v6502_v53 = vsub.f32 %v12379_v47, %v12798_v15 }
 0x7ba   : > { %9254 = vrsqrt.f32 %v6441_v10  ;;  %v6438_v7 = vadd.f32 1e-05, %v6406_v44  ;;  %v6407_v8 = vsub.f32 %v6343_v42, %v6375_v48  ;;  %v12827_v23 = vmul.f32 0.03125, %v6146_v40 }
 0x7bb   : > { %v6149_v17 = vpop.xlane.xlu1 %6148  ;;  %v6568_v12 = vmul.f32 %v12675_v51, %v6531_v19  ;;  %v6604_v30 = vadd.f32 %v12686_v25, %v6567_v61  ;;  %v6629_v56 = vpack.c.bf16 %v6607_v63, %v6606_v33  ;;  %v6503_v21 = vsub.f32 %v12381_v14, %v12806_v32 }
 0x7bc   : > { %9256 = vrsqrt.f32 %v6438_v7  ;;  %v6439_v5 = vadd.f32 1e-05, %v6407_v8  ;;  %v12830_v37 = vmul.f32 0.03125, %v6149_v17  ;;  %v6380_v57 = vmul.f32 %v12827_v23, %v12827_v23 }
 0x7bd   : > { %v6140_v29 = vpop.xlane.xlu0 %6139  ;;  %v6605_v18 = vadd.f32 %v12686_v25, %v6568_v12 }
 0x7be   : > { %9258 = vrsqrt.f32 %v6439_v5  ;;  %v12832_v58 = vmul.f32 0.03125, %v6140_v29  ;;  %v6381_v39 = vmul.f32 %v12830_v37, %v12830_v37 }
 0x7bf   : > { %v6143_v55 = vpop.xlane.xlu1 %6142  ;;  %v6628_v9 = vpack.c.bf16 %v6605_v18, %v6604_v30 }
 0x7c0   : > { %v12840_v35 = vmul.f32 0.03125, %v6143_v55  ;;  %v6378_v27 = vmul.f32 %v12832_v58, %v12832_v58 }
 0x7c1   : > { %8723 = vmatprep.mubr.msk.bf16.mxu1 %vm497_vm0, %v6628_v9  ;;  %v6306_v43 = vpop.xlane.xlu0 %6305 }
 0x7c2   : > { %v6348_v1 = vmul.f32 0.03125, %v6306_v43  ;;  %8724 = vmatmul.mubr.msk.bf16.gmra.mrb[128].mxu1 %vm497_vm0, %v6629_v56  ;;  %v9253_v52 = vpop.eup %9252  ;;  %v6379_v22 = vmul.f32 %v12840_v35, %v12840_v35 }
 0x7c3   : > { %v6309_v45 = vpop.xlane.xlu1 %6308  ;;  %v6536_v48 = vmul.f32 %v9253_v52, %v6504_v11  ;;  %v6509_v52 = vsub.f32 %v12418_v0, %v12830_v37  ;;  %v6508_v11 = vsub.f32 %v12411_v6, %v12827_v23 }
 0x7c4   : > { %v9255_v28 = vpop.eup %9254  ;;  %v6412_v46 = vsub.f32 %v6348_v1, %v6380_v57  ;;  %v6349_v20 = vmul.f32 0.03125, %v6309_v45 }
 0x7c5   : > { %v6300_v3 = vpop.xlane.xlu0 %6299  ;;  %v6537_v50 = vmul.f32 %v9255_v28, %v6505_v36  ;;  %v6573_v14 = vmul.f32 %v12675_v51, %v6536_v48 }
 0x7c6   : > { %v9257_v41 = vpop.eup %9256  ;;  %v6444_v60 = vadd.f32 1e-05, %v6412_v46  ;;  %v6413_v62 = vsub.f32 %v6349_v20, %v6381_v39  ;;  %v6346_v54 = vmul.f32 0.03125, %v6300_v3 }
 0x7c7   : > { %v6303_v31 = vpop.xlane.xlu1 %6302  ;;  %v6534_v24 = vmul.f32 %v9257_v41, %v6502_v53  ;;  %v6574_v44 = vmul.f32 %v12675_v51, %v6537_v50  ;;  %v6610_v29 = vadd.f32 %v12686_v25, %v6573_v14  ;;  %v6506_v53 = vsub.f32 %v12449_v2, %v12832_v58 }
 0x7c8   : > { %v9259_v34 = vpop.eup %9258  ;;  %v6445_v47 = vadd.f32 1e-05, %v6413_v62  ;;  %v6410_v15 = vsub.f32 %v6346_v54, %v6378_v27  ;;  %v6347_v10 = vmul.f32 0.03125, %v6303_v31  ;;  %9260 = vrsqrt.f32 %v6444_v60 }
 0x7c9   : > { %v6158_v42 = vpop.xlane.xlu0 %6157  ;;  %v6535_v49 = vmul.f32 %v9259_v34, %v6503_v21  ;;  %v6571_v40 = vmul.f32 %v12675_v51, %v6534_v24  ;;  %v6611_v13 = vadd.f32 %v12686_v25, %v6574_v44  ;;  %v6507_v54 = vsub.f32 %v12451_v16, %v12840_v35 }
 0x7ca   : > { %9262 = vrsqrt.f32 %v6445_v47  ;;  %v6442_v19 = vadd.f32 1e-05, %v6410_v15  ;;  %v6411_v61 = vsub.f32 %v6347_v10, %v6379_v22  ;;  %v12862_v9 = vmul.f32 0.03125, %v6158_v42 }
 0x7cb   : > { %v6161_v32 = vpop.xlane.xlu1 %6160  ;;  %v6572_v7 = vmul.f32 %v12675_v51, %v6535_v49  ;;  %v6608_v12 = vadd.f32 %v12686_v25, %v6571_v40  ;;  %v6631_v55 = vpack.c.bf16 %v6611_v13, %v6610_v29 }
 0x7cc   : > { %9264 = vrsqrt.f32 %v6442_v19  ;;  %v6443_v8 = vadd.f32 1e-05, %v6411_v61  ;;  %v6193_v36 = vmul.f32 0.03125, %v6161_v32  ;;  %v6384_v27 = vmul.f32 %v12862_v9, %v12862_v9 }
 0x7cd   : > { %v6152_v17 = vpop.xlane.xlu0 %6151  ;;  %v6609_v5 = vadd.f32 %v12686_v25, %v6572_v7 }
 0x7ce   : > { %9266 = vrsqrt.f32 %v6443_v8  ;;  %v6190_v63 = vmul.f32 0.03125, %v6152_v17  ;;  %v6385_v6 = vmul.f32 %v6193_v36, %v6193_v36  ;;  %v6512_v17 = vsub.f32 %v12481_v38, %v12862_v9 }
 0x7cf   : > { %v6155_v30 = vpop.xlane.xlu1 %6154  ;;  %v6630_v18 = vpack.c.bf16 %v6609_v5, %v6608_v12 }
 0x7d0   : > { %v6191_v33 = vmul.f32 0.03125, %v6155_v30  ;;  %v6382_v43 = vmul.f32 %v6190_v63, %v6190_v63  ;;  %v6510_v14 = vsub.f32 %v12521_v59, %v6190_v63  ;;  %v6513_v30 = vsub.f32 %v12489_v4, %v6193_v36 }
 0x7d1   : > { %8727 = vmatprep.mubr.msk.bf16.mxu1 %vm497_vm0, %v6630_v18  ;;  %v6312_v56 = vpop.xlane.xlu0 %6311 }
 0x7d2   : > { %v6350_v57 = vmul.f32 0.03125, %v6312_v56  ;;  %8728 = vmatmul.mubr.msk.bf16.gmra.mrb[132].mxu1 %vm497_vm0, %v6631_v55  ;;  %v9261_v1 = vpop.eup %9260  ;;  %v6383_v39 = vmul.f32 %v6191_v33, %v6191_v33  ;;  %v6511_v7 = vsub.f32 %v12529_v26, %v6191_v33 }
 0x7d3   : > { %v6315_v45 = vpop.xlane.xlu1 %6314  ;;  %v6540_v62 = vmul.f32 %v9261_v1, %v6508_v11  ;;  %v12904_v1 = vld [vmem:[%s15257_s4 + $0x11] ss:$0 sm:$0xff] }
 0x7d4   : > { %v9263_v28 = vpop.eup %9262  ;;  %v6414_v46 = vsub.f32 %v6350_v57, %v6382_v43  ;;  %v6351_v20 = vmul.f32 0.03125, %v6315_v45 }
 0x7d5   : > { %v6318_v3 = vpop.xlane.xlu0 %6317  ;;  %v6541_v50 = vmul.f32 %v9263_v28, %v6509_v52  ;;  %v6577_v10 = vmul.f32 %v12675_v51, %v6540_v62 }
 0x7d6   : > { %v9265_v41 = vpop.eup %9264  ;;  %v6446_v60 = vadd.f32 1e-05, %v6414_v46  ;;  %v6415_v0 = vsub.f32 %v6351_v20, %v6383_v39  ;;  %v6352_v37 = vmul.f32 0.03125, %v6318_v3 }
 0x7d7   : > { %v6321_v23 = vpop.xlane.xlu1 %6320  ;;  %v6538_v48 = vmul.f32 %v9265_v41, %v6506_v53  ;;  %v6578_v21 = vmul.f32 %v12675_v51, %v6541_v50  ;;  %v6614_v40 = vadd.f32 %v12686_v25, %v6577_v10 }
 0x7d8   : > { %v9267_v22 = vpop.eup %9266  ;;  %9268 = vrsqrt.f32 %v6446_v60  ;;  %v6447_v2 = vadd.f32 1e-05, %v6415_v0  ;;  %v6416_v58 = vsub.f32 %v6352_v37, %v6384_v27  ;;  %v6353_v31 = vmul.f32 0.03125, %v6321_v23 }
 0x7d9   : > { %v6539_v24 = vmul.f32 %v9267_v22, %v6507_v54  ;;  %v6575_v34 = vmul.f32 %v12675_v51, %v6538_v48  ;;  %v6615_v44 = vadd.f32 %v12686_v25, %v6578_v21 }
 0x7da   : > { %9270 = vrsqrt.f32 %v6447_v2  ;;  %v6448_v47 = vadd.f32 1e-05, %v6416_v58  ;;  %v6417_v15 = vsub.f32 %v6353_v31, %v6385_v6 }
 0x7db   : > { %v6576_v16 = vmul.f32 %v12675_v51, %v6539_v24  ;;  %v6612_v42 = vadd.f32 %v12686_v25, %v6575_v34  ;;  %v6633_v61 = vpack.c.bf16 %v6615_v44, %v6614_v40 }
 0x7dc   : > { %9272 = vrsqrt.f32 %v6448_v47  ;;  %v6449_v35 = vadd.f32 1e-05, %v6417_v15 }
 0x7dd   : > { %v6613_v49 = vadd.f32 %v12686_v25, %v6576_v16 }
 0x7de   : > { %9274 = vrsqrt.f32 %v6449_v35 }
 0x7df   : > { %v6632_v19 = vpack.c.bf16 %v6613_v49, %v6612_v42 }
 0x7e1   : > { %8731 = vmatprep.mubr.msk.bf16.mxu1 %vm497_vm0, %v6632_v19 }
 0x7e2   : > { %v9269_v32 = vpop.eup %9268  ;;  %8732 = vmatmul.mubr.msk.bf16.gmra.mrb[136].mxu1 %vm497_vm0, %v6633_v61 }
 0x7e3   : > { %v6542_v8 = vmul.f32 %v9269_v32, %v6510_v14 }
 0x7e4   : > { %v9271_v13 = vpop.eup %9270 }
 0x7e5   : > { %v6543_v12 = vmul.f32 %v9271_v13, %v6511_v7  ;;  %v6579_v5 = vmul.f32 %v12675_v51, %v6542_v8 }
 0x7e6   : > { %v9273_v29 = vpop.eup %9272 }
 0x7e7   : > { %v6580_v59 = vmul.f32 %v12675_v51, %v6543_v12  ;;  %v6544_v63 = vmul.f32 %v9273_v29, %v6512_v17  ;;  %v6616_v55 = vadd.f32 %v12686_v25, %v6579_v5 }
 0x7e8   : > { %v9275_v18 = vpop.eup %9274 }
 0x7e9   : > { %v6617_v56 = vadd.f32 %v12686_v25, %v6580_v59  ;;  %v6545_v26 = vmul.f32 %v9275_v18, %v6513_v30  ;;  %v6581_v33 = vmul.f32 %v12675_v51, %v6544_v63 }
 0x7eb   : > { %v6634_v43 = vpack.c.bf16 %v6617_v56, %v6616_v55  ;;  %v6582_v38 = vmul.f32 %v12675_v51, %v6545_v26  ;;  %v6618_v9 = vadd.f32 %v12686_v25, %v6581_v33 }
 0x7ed   : > { %8735 = vmatprep.mubr.msk.bf16.mxu1 %vm497_vm0, %v6634_v43  ;;  %v6619_v4 = vadd.f32 %v12686_v25, %v6582_v38 }
 0x7ef   : > { %v6635_v57 = vpack.c.bf16 %v6619_v4, %v6618_v9 }
 0x7f1   : > { %8736 = vmatmul.mubr.msk.bf16.gmra.mrb[140].mxu1 %vm497_vm0, %v6635_v57 }
 0x855   : > { %v8709_v52 = vpop.f32.mrb[112].mxu1 }
 0x856   : > { %v6749_v36 = vadd.f32 %v8709_v52, %v12904_v1  ;;  %v6740_v45 = vpop.f32.mrb[113].mxu1 }
 0x857   : > { %v6741_v51 = vadd.f32 %v12904_v1, %v6740_v45  ;;  %v8710_v28 = vpop.f32.mrb[114].mxu1 }
 0x858   : > { %v12908_v11 = vmax.f32 %v6749_v36, 0.0  ;;  %v6752_v39 = vadd.f32 %v8710_v28, %v12904_v1  ;;  %v6743_v25 = vpop.f32.mrb[115].mxu1 }
 0x859   : > { %v6744_v46 = vadd.f32 %v12904_v1, %v6743_v25  ;;  %v12912_v20 = vmax.f32 %v6741_v51, 0.0 }
 0x85a   : > { %v12914_v53 = vmax.f32 %v6752_v39, 0.0  ;;  %v6905_v27 = vsel %vm497_vm0, %v12908_v11, 0.0  ;;  %v7029_v60 = vmul.f32 %v12908_v11, %v12908_v11 }
 0x85b   : > { %6906 = vadd.xlane.f32.xlu0 %v6905_v27  ;;  %v12918_v3 = vmax.f32 %v6744_v46, 0.0  ;;  %v6899_v41 = vsel %vm497_vm0, %v12912_v20, 0.0  ;;  %v7027_v54 = vmul.f32 %v12912_v20, %v12912_v20 }
 0x85c   : > { %v6908_v50 = vsel %vm497_vm0, %v12914_v53, 0.0  ;;  %v7030_v37 = vmul.f32 %v12914_v53, %v12914_v53  ;;  %v7065_v62 = vsel %vm497_vm0, %v7029_v60, 0.0 }
 0x85d   : > { %6909 = vadd.xlane.f32.xlu1 %v6908_v50  ;;  %v6902_v0 = vsel %vm497_vm0, %v12918_v3, 0.0  ;;  %v7028_v23 = vmul.f32 %v12918_v3, %v12918_v3  ;;  %v7059_v2 = vsel %vm497_vm0, %v7027_v54, 0.0 }
 0x85e   : > { %v7068_v6 = vsel %vm497_vm0, %v7030_v37, 0.0 }
 0x85f   : > { %6900 = vadd.xlane.f32.xlu0 %v6899_v41  ;;  %v7062_v15 = vsel %vm497_vm0, %v7028_v23, 0.0 }
 0x861   : > { %6903 = vadd.xlane.f32.xlu1 %v6902_v0 }
 0x863   : > { %7066 = vadd.xlane.f32.xlu0 %v7065_v62 }
 0x865   : > { %7069 = vadd.xlane.f32.xlu1 %v7068_v6  ;;  %v8713_v48 = vpop.f32.mrb[116].mxu1 }
 0x866   : > { %v6765_v21 = vadd.f32 %v8713_v48, %v12904_v1  ;;  %v6756_v22 = vpop.f32.mrb[117].mxu1  ;;  %v8954_v48 = vld [vmem:[%s15258_s5 + $0x20] sm:$0xff]  }
 0x867   : > { %v6757_v58 = vadd.f32 %v12904_v1, %v6756_v22  ;;  %7060 = vadd.xlane.f32.xlu0 %v7059_v2  ;;  %v8714_v31 = vpop.f32.mrb[118].mxu1  ;;  %8739 = vmatprep.subr.bf16.mxu1 %v8954_v48 }
 0x868   : > { %v12939_v24 = vmax.f32 %v6765_v21, 0.0  ;;  %v6768_v34 = vadd.f32 %v8714_v31, %v12904_v1  ;;  %v6759_v47 = vpop.f32.mrb[119].mxu1  ;;  %8740 = vmatpush3.bf16.msra.mxu1 %v8954_v48 }
 0x869   : > { %v6760_v10 = vadd.f32 %v12904_v1, %v6759_v47  ;;  %7063 = vadd.xlane.f32.xlu1 %v7062_v15  ;;  %v12944_v16 = vmax.f32 %v6757_v58, 0.0 }
 0x86a   : > { %v12946_v35 = vmax.f32 %v6768_v34, 0.0  ;;  %v6917_v44 = vsel %vm497_vm0, %v12939_v24, 0.0  ;;  %v7033_v19 = vmul.f32 %v12939_v24, %v12939_v24  ;;  %v8955_v34 = vld [vmem:[%s15258_s5 + $0x28] sm:$0xff]  }
 0x86b   : > { %6918 = vadd.xlane.f32.xlu0 %v6917_v44  ;;  %v12950_v42 = vmax.f32 %v6760_v10, 0.0  ;;  %v6911_v40 = vsel %vm497_vm0, %v12944_v16, 0.0  ;;  %v7031_v7 = vmul.f32 %v12944_v16, %v12944_v16  ;;  %8741 = vmatprep.subr.bf16.mxu1 %v8955_v34 }
 0x86c   : > { %v6920_v49 = vsel %vm497_vm0, %v12946_v35, 0.0  ;;  %v7034_v14 = vmul.f32 %v12946_v35, %v12946_v35  ;;  %v7077_v32 = vsel %vm497_vm0, %v7033_v19, 0.0  ;;  %8742 = vmatpush3.bf16.msra.mxu1 %v8955_v34 }
 0x86d   : > { %6921 = vadd.xlane.f32.xlu1 %v6920_v49  ;;  %v6914_v61 = vsel %vm497_vm0, %v12950_v42, 0.0  ;;  %v7032_v13 = vmul.f32 %v12950_v42, %v12950_v42  ;;  %v7071_v29 = vsel %vm497_vm0, %v7031_v7, 0.0 }
 0x86e   : > { %v7080_v8 = vsel %vm497_vm0, %v7034_v14, 0.0 }
 0x86f   : > { %6912 = vadd.xlane.f32.xlu0 %v6911_v40  ;;  %v7074_v56 = vsel %vm497_vm0, %v7032_v13, 0.0 }
 0x871   : > { %6915 = vadd.xlane.f32.xlu1 %v6914_v61 }
 0x873   : > { %7078 = vadd.xlane.f32.xlu0 %v7077_v32 }
 0x875   : > { %7081 = vadd.xlane.f32.xlu1 %v7080_v8  ;;  %v8717_v17 = vpop.f32.mrb[120].mxu1 }
 0x876   : > { %v6781_v12 = vadd.f32 %v8717_v17, %v12904_v1  ;;  %v6772_v5 = vpop.f32.mrb[121].mxu1 }
 0x877   : > { %v6773_v30 = vadd.f32 %v12904_v1, %v6772_v5  ;;  %7072 = vadd.xlane.f32.xlu0 %v7071_v29  ;;  %v8718_v59 = vpop.f32.mrb[122].mxu1 }
 0x878   : > { %v12971_v63 = vmax.f32 %v6781_v12, 0.0  ;;  %v6784_v18 = vadd.f32 %v8718_v59, %v12904_v1  ;;  %v6775_v55 = vpop.f32.mrb[123].mxu1 }
 0x879   : > { %v6776_v26 = vadd.f32 %v12904_v1, %v6775_v55  ;;  %7075 = vadd.xlane.f32.xlu1 %v7074_v56  ;;  %v12976_v33 = vmax.f32 %v6773_v30, 0.0 }
 0x87a   : > { %v12978_v43 = vmax.f32 %v6784_v18, 0.0  ;;  %v6929_v38 = vsel %vm497_vm0, %v12971_v63, 0.0  ;;  %v7037_v52 = vmul.f32 %v12971_v63, %v12971_v63 }
 0x87b   : > { %6930 = vadd.xlane.f32.xlu0 %v6929_v38  ;;  %v12982_v9 = vmax.f32 %v6776_v26, 0.0  ;;  %v6923_v57 = vsel %vm497_vm0, %v12976_v33, 0.0  ;;  %v7035_v28 = vmul.f32 %v12976_v33, %v12976_v33 }
 0x87c   : > { %v6932_v4 = vsel %vm497_vm0, %v12978_v43, 0.0  ;;  %v7038_v45 = vmul.f32 %v12978_v43, %v12978_v43  ;;  %v7089_v51 = vsel %vm497_vm0, %v7037_v52, 0.0 }
 0x87d   : > { %6933 = vadd.xlane.f32.xlu1 %v6932_v4  ;;  %v6926_v36 = vsel %vm497_vm0, %v12982_v9, 0.0  ;;  %v7036_v25 = vmul.f32 %v12982_v9, %v12982_v9  ;;  %v7083_v41 = vsel %vm497_vm0, %v7035_v28, 0.0 }
 0x87e   : > { %v7092_v39 = vsel %vm497_vm0, %v7038_v45, 0.0 }
 0x87f   : > { %6924 = vadd.xlane.f32.xlu0 %v6923_v57  ;;  %v7086_v6 = vsel %vm497_vm0, %v7036_v25, 0.0 }
 0x881   : > { %6927 = vadd.xlane.f32.xlu1 %v6926_v36 }
 0x883   : > { %7090 = vadd.xlane.f32.xlu0 %v7089_v51 }
 0x885   : > { %7093 = vadd.xlane.f32.xlu1 %v7092_v39  ;;  %v8721_v46 = vpop.f32.mrb[124].mxu1 }
 0x886   : > { %v6797_v27 = vadd.f32 %v8721_v46, %v12904_v1  ;;  %v6788_v50 = vpop.f32.mrb[125].mxu1 }
 0x887   : > { %v6789_v60 = vadd.f32 %v12904_v1, %v6788_v50  ;;  %7084 = vadd.xlane.f32.xlu0 %v7083_v41  ;;  %v8722_v0 = vpop.f32.mrb[126].mxu1 }
 0x888   : > { %v13003_v37 = vmax.f32 %v6797_v27, 0.0  ;;  %v6800_v62 = vadd.f32 %v8722_v0, %v12904_v1  ;;  %v6791_v54 = vpop.f32.mrb[127].mxu1 }
 0x889   : > { %v6792_v23 = vadd.f32 %v12904_v1, %v6791_v54  ;;  %7087 = vadd.xlane.f32.xlu1 %v7086_v6  ;;  %v13011_v21 = vmax.f32 %v6789_v60, 0.0 }
 0x88a   : > { %v13013_v22 = vmax.f32 %v6800_v62, 0.0  ;;  %v6941_v2 = vsel %vm497_vm0, %v13003_v37, 0.0  ;;  %v7041_v15 = vmul.f32 %v13003_v37, %v13003_v37 }
 0x88b   : > { %6942 = vadd.xlane.f32.xlu0 %v6941_v2  ;;  %v13017_v58 = vmax.f32 %v6792_v23, 0.0  ;;  %v6935_v47 = vsel %vm497_vm0, %v13011_v21, 0.0  ;;  %v7039_v40 = vmul.f32 %v13011_v21, %v13011_v21 }
 0x88c   : > { %v6944_v31 = vsel %vm497_vm0, %v13013_v22, 0.0  ;;  %v7042_v44 = vmul.f32 %v13013_v22, %v13013_v22  ;;  %v7101_v49 = vsel %vm497_vm0, %v7041_v15, 0.0  ;;  %v9544_v15 = vmov 14  }
 0x88d   : > { %6945 = vadd.xlane.f32.xlu1 %v6944_v31  ;;  %v6938_v10 = vsel %vm497_vm0, %v13017_v58, 0.0  ;;  %v7040_v61 = vmul.f32 %v13017_v58, %v13017_v58  ;;  %v7095_v8 = vsel %vm497_vm0, %v7039_v40, 0.0  ;;  %8916 = vset.pattern.permute.xlu0 %v9544_v15 }
 0x88e   : > { %v7104_v19 = vsel %vm497_vm0, %v7042_v44, 0.0  ;;  %8917 = vset.pattern.permute.xlu1 %v9544_v15  ;;  %v13140_v15 = vld [vmem:[%s15257_s4 + $0x14] ss:$0 sm:$0xff] }
 0x88f   : > { %6936 = vadd.xlane.f32.xlu0 %v6935_v47  ;;  %v7098_v30 = vsel %vm497_vm0, %v7040_v61, 0.0 }
 0x891   : > { %6939 = vadd.xlane.f32.xlu1 %v6938_v10 }
 0x893   : > { %7102 = vadd.xlane.f32.xlu0 %v7101_v49 }
 0x895   : > { %7105 = vadd.xlane.f32.xlu1 %v7104_v19  ;;  %v8725_v14 = vpop.f32.mrb[128].mxu1 }
 0x896   : > { %v6813_v32 = vadd.f32 %v8725_v14, %v12904_v1  ;;  %v6804_v7 = vpop.f32.mrb[129].mxu1 }
 0x897   : > { %v6805_v13 = vadd.f32 %v12904_v1, %v6804_v7  ;;  %7096 = vadd.xlane.f32.xlu0 %v7095_v8  ;;  %v8726_v17 = vpop.f32.mrb[130].mxu1 }
 0x898   : > { %v13041_v12 = vmax.f32 %v6813_v32, 0.0  ;;  %v6816_v5 = vadd.f32 %v8726_v17, %v12904_v1  ;;  %v6807_v29 = vpop.f32.mrb[131].mxu1 }
 0x899   : > { %v6808_v59 = vadd.f32 %v12904_v1, %v6807_v29  ;;  %7099 = vadd.xlane.f32.xlu1 %v7098_v30  ;;  %v13046_v18 = vmax.f32 %v6805_v13, 0.0 }
 0x89a   : > { %v13048_v55 = vmax.f32 %v6816_v5, 0.0  ;;  %v6953_v56 = vsel %vm497_vm0, %v13041_v12, 0.0  ;;  %v7045_v57 = vmul.f32 %v13041_v12, %v13041_v12 }
 0x89b   : > { %6954 = vadd.xlane.f32.xlu0 %v6953_v56  ;;  %v13052_v26 = vmax.f32 %v6808_v59, 0.0  ;;  %v6947_v4 = vsel %vm497_vm0, %v13046_v18, 0.0  ;;  %v7043_v51 = vmul.f32 %v13046_v18, %v13046_v18 }
 0x89c   : > { %v6956_v38 = vsel %vm497_vm0, %v13048_v55, 0.0  ;;  %v7046_v36 = vmul.f32 %v13048_v55, %v13048_v55  ;;  %v7113_v45 = vsel %vm497_vm0, %v7045_v57, 0.0 }
 0x89d   : > { %6957 = vadd.xlane.f32.xlu1 %v6956_v38  ;;  %v6950_v52 = vsel %vm497_vm0, %v13052_v26, 0.0  ;;  %v7044_v39 = vmul.f32 %v13052_v26, %v13052_v26  ;;  %v7107_v50 = vsel %vm497_vm0, %v7043_v51, 0.0 }
 0x89e   : > { %v7116_v28 = vsel %vm497_vm0, %v7046_v36, 0.0 }
 0x89f   : > { %6948 = vadd.xlane.f32.xlu0 %v6947_v4  ;;  %v7110_v6 = vsel %vm497_vm0, %v7044_v39, 0.0 }
 0x8a1   : > { %6951 = vadd.xlane.f32.xlu1 %v6950_v52 }
 0x8a3   : > { %7114 = vadd.xlane.f32.xlu0 %v7113_v45 }
 0x8a5   : > { %7117 = vadd.xlane.f32.xlu1 %v7116_v28  ;;  %v8729_v25 = vpop.f32.mrb[132].mxu1 }
 0x8a6   : > { %v6829_v46 = vadd.f32 %v8729_v25, %v12904_v1  ;;  %v6820_v27 = vpop.f32.mrb[133].mxu1 }
 0x8a7   : > { %v6821_v41 = vadd.f32 %v12904_v1, %v6820_v27  ;;  %7108 = vadd.xlane.f32.xlu0 %v7107_v50  ;;  %v8730_v60 = vpop.f32.mrb[134].mxu1 }
 0x8a8   : > { %v13073_v0 = vmax.f32 %v6829_v46, 0.0  ;;  %v6832_v62 = vadd.f32 %v8730_v60, %v12904_v1  ;;  %v6823_v54 = vpop.f32.mrb[135].mxu1 }
 0x8a9   : > { %v6824_v23 = vadd.f32 %v12904_v1, %v6823_v54  ;;  %7111 = vadd.xlane.f32.xlu1 %v7110_v6  ;;  %v13078_v48 = vmax.f32 %v6821_v41, 0.0 }
 0x8aa   : > { %v13080_v2 = vmax.f32 %v6832_v62, 0.0  ;;  %v6965_v31 = vsel %vm497_vm0, %v13073_v0, 0.0  ;;  %v7049_v44 = vmul.f32 %v13073_v0, %v13073_v0 }
 0x8ab   : > { %6966 = vadd.xlane.f32.xlu0 %v6965_v31  ;;  %v13084_v34 = vmax.f32 %v6824_v23, 0.0  ;;  %v6959_v10 = vsel %vm497_vm0, %v13078_v48, 0.0  ;;  %v7047_v61 = vmul.f32 %v13078_v48, %v13078_v48 }
 0x8ac   : > { %v6968_v47 = vsel %vm497_vm0, %v13080_v2, 0.0  ;;  %v7050_v40 = vmul.f32 %v13080_v2, %v13080_v2  ;;  %v7125_v19 = vsel %vm497_vm0, %v7049_v44, 0.0 }
 0x8ad   : > { %6969 = vadd.xlane.f32.xlu1 %v6968_v47  ;;  %v6962_v49 = vsel %vm497_vm0, %v13084_v34, 0.0  ;;  %v7048_v32 = vmul.f32 %v13084_v34, %v13084_v34  ;;  %v7119_v17 = vsel %vm497_vm0, %v7047_v61, 0.0 }
 0x8ae   : > { %v7128_v14 = vsel %vm497_vm0, %v7050_v40, 0.0  ;;  %v3000_v40 = vlaneseq }
 0x8af   : > { %6960 = vadd.xlane.f32.xlu0 %v6959_v10  ;;  %v7122_v38 = vsel %vm497_vm0, %v7048_v32, 0.0 }
 0x8b1   : > { %6963 = vadd.xlane.f32.xlu1 %v6962_v49 }
 0x8b3   : > { %7126 = vadd.xlane.f32.xlu0 %v7125_v19 }
 0x8b5   : > { %7129 = vadd.xlane.f32.xlu1 %v7128_v14  ;;  %v8733_v7 = vpop.f32.mrb[136].mxu1 }
 0x8b6   : > { %v6845_v8 = vadd.f32 %v8733_v7, %v12904_v1  ;;  %v6836_v13 = vpop.f32.mrb[137].mxu1  ;;  %v15606_v7 = vld [vmem:[#allocation19_spill] sm:$0xff] }
 0x8b7   : > { %v6837_v5 = vadd.f32 %v12904_v1, %v6836_v13  ;;  %7120 = vadd.xlane.f32.xlu0 %v7119_v17  ;;  %v8734_v29 = vpop.f32.mrb[138].mxu1  ;;  %v13158_v17 = vld [vmem:[%s15257_s4 + $0x15] ss:$0 sm:$0xff] }
 0x8b8   : > { %v13105_v30 = vmax.f32 %v6845_v8, 0.0  ;;  %v6848_v59 = vadd.f32 %v8734_v29, %v12904_v1  ;;  %v6839_v56 = vpop.f32.mrb[139].mxu1  ;;  %v2805_v8 = vadd.f32 %v13140_v15, %v15606_v7 }
 0x8b9   : > { %v6840_v4 = vadd.f32 %v12904_v1, %v6839_v56  ;;  %7123 = vadd.xlane.f32.xlu1 %v7122_v38  ;;  %v13110_v57 = vmax.f32 %v6837_v5, 0.0  ;;  %v13162_v5 = vand.u32 127, %v3000_v40  ;;  %v15611_v38 = vld [vmem:[#allocation23_spill] sm:$0xff]  ;;  %v15621_v40 = vld [vmem:[#allocation21_spill] sm:$0xff] }
 0x8ba   : > { %15601 = vst [vmem:[#allocation6_spill] sm:$0xff] %v13105_v30  ;;  %v13112_v52 = vmax.f32 %v6848_v59, 0.0  ;;  %v6977_v36 = vsel %vm497_vm0, %v13105_v30, 0.0  ;;  %v7053_v39 = vmul.f32 %v13105_v30, %v13105_v30  ;;  %v15610_v59 = vld [vmem:[#allocation18_spill] sm:$0xff] }
 0x8bb   : > { %15602 = vst [vmem:[#allocation7_spill] sm:$0xff] %v13110_v57  ;;  %6978 = vadd.xlane.f32.xlu0 %v6977_v36  ;;  %v13116_v45 = vmax.f32 %v6840_v4, 0.0  ;;  %v6971_v28 = vsel %vm497_vm0, %v13110_v57, 0.0  ;;  %v7051_v50 = vmul.f32 %v13110_v57, %v13110_v57  ;;  %15608 = vst [vmem:[#allocation12_spill] sm:$0xff] %v13162_v5  ;;  %v2813_v56 = vadd.f32 %v15610_v59, %v13140_v15  ;;  %v15624_v59 = vld [vmem:[#allocation24_spill] sm:$0xff] }
 0x8bc   : > { %v6980_v51 = vsel %vm497_vm0, %v13112_v52, 0.0  ;;  %v7054_v46 = vmul.f32 %v13112_v52, %v13112_v52  ;;  %v7137_v27 = vsel %vm497_vm0, %v7053_v39, 0.0  ;;  %v2808_v4 = vadd.f32 %v13140_v15, %v15611_v38  ;;  %v15613_v39 = vld [vmem:[#allocation20_spill] sm:$0xff] }
 0x8bd   : > { %15603 = vst [vmem:[#allocation8_spill] sm:$0xff] %v13116_v45  ;;  %6981 = vadd.xlane.f32.xlu1 %v6980_v51  ;;  %v6974_v25 = vsel %vm497_vm0, %v13116_v45, 0.0  ;;  %v7052_v62 = vmul.f32 %v13116_v45, %v13116_v45  ;;  %v7131_v47 = vsel %vm497_vm0, %v7051_v50, 0.0  ;;  %v13171_v36 = vmul.f32 %v13158_v17, %v2805_v8 }
 0x8be   : > { %v7140_v60 = vsel %vm497_vm0, %v7054_v46, 0.0  ;;  %vm3003_vm1 = vcmp.ge.s32.totalorder %v13162_v5, 6  ;;  %vm3004_vm2 = vcmp.le.s32.totalorder %v13162_v5, 7  ;;  %v13186_v50 = vmul.f32 %v13158_v17, %v2813_v56 }
 0x8bf   : > { %6972 = vadd.xlane.f32.xlu0 %v6971_v28  ;;  %v7134_v61 = vsel %vm497_vm0, %v7052_v62, 0.0  ;;  %15612 = vst [vmem:[#allocation13_spill] sm:$0xff] %v13171_v36  ;;  %vm13198_vm3 = vmand %vm3003_vm1, %vm3004_vm2  ;;  %v2832_v56 = vadd.f32 %v15624_v59, %v13140_v15 }
 0x8c0   : > { %15614 = vst [vmem:[#allocation14_spill] sm:$0xff] %v13186_v50  ;;  %v3011_v8 = vmul.f32 %v13186_v50, %v13186_v50 }
 0x8c1   : > { %6975 = vadd.xlane.f32.xlu1 %v6974_v25  ;;  %v2816_v25 = vadd.f32 %v15613_v39, %v13140_v15 }
 0x8c3   : > { %7138 = vadd.xlane.f32.xlu0 %v7137_v27 }
 0x8c4   : > { %v8737_v41 = vpop.f32.mrb[140].mxu1 }
 0x8c5   : > { %v6861_v54 = vadd.f32 %v8737_v41, %v12904_v1  ;;  %7141 = vadd.xlane.f32.xlu1 %v7140_v60  ;;  %v6852_v6 = vpop.f32.mrb[141].mxu1  ;;  %v13189_v41 = vmul.f32 %v13158_v17, %v2808_v4  ;;  %v15616_v60 = vld [vmem:[#allocation22_spill] sm:$0xff] }
 0x8c6   : > { %v6853_v23 = vadd.f32 %v12904_v1, %v6852_v6  ;;  %v8738_v31 = vpop.f32.mrb[142].mxu1  ;;  %v2821_v62 = vadd.f32 %v13140_v15, %v15616_v60  ;;  %v13237_v60 = vmul.f32 %v13158_v17, %v2832_v56 }
 0x8c7   : > { %v13142_v10 = vmax.f32 %v6861_v54, 0.0  ;;  %v6864_v44 = vadd.f32 %v8738_v31, %v12904_v1  ;;  %7132 = vadd.xlane.f32.xlu0 %v7131_v47  ;;  %v6855_v49 = vpop.f32.mrb[143].mxu1  ;;  %15615 = vst [vmem:[#allocation16_spill] sm:$0xff] %v13189_v41  ;;  %v15617_v31 = vmov 0  ;;  %v13203_v47 = vmul.f32 %v13158_v17, %v2816_v25 }
 0x8c8   : > { %v6856_v19 = vadd.f32 %v12904_v1, %v6855_v49  ;;  %v13153_v13 = vmax.f32 %v6853_v23, 0.0  ;;  %v3009_v23 = vmul.f32 %v13171_v36, %v13171_v36  ;;  %v15618_v31 = vsel %vm13198_vm3, 4294967295, %v15617_v31  ;;  %15627 = vst [vmem:[#allocation49_spill] sm:$0xff] %v13237_v60 }
 0x8c9   : > { %15604 = vst [vmem:[#allocation11_spill] sm:$0xff] %v13142_v10  ;;  %v13147_v14 = vmax.f32 %v6864_v44, 0.0  ;;  %7135 = vadd.xlane.f32.xlu1 %v7134_v61  ;;  %v6989_v32 = vsel %vm497_vm0, %v13142_v10, 0.0  ;;  %v7057_v6 = vmul.f32 %v13142_v10, %v13142_v10  ;;  %15619 = vst [vmem:[#allocation46_spill] sm:$0xff] %v15618_v31  ;;  %v15622_v61 = vld [vmem:[#allocation27_spill] sm:$0xff]  ;;  %v3010_v7 = vmul.f32 %v13189_v41, %v13189_v41 }
 0x8ca   : > { %15607 = vst [vmem:[#allocation10_spill] sm:$0xff] %v13153_v13  ;;  %v13164_v29 = vmax.f32 %v6856_v19, 0.0  ;;  %v6983_v51 = vsel %vm497_vm0, %v13153_v13, 0.0  ;;  %v7055_v28 = vmul.f32 %v13153_v13, %v13153_v13  ;;  %15620 = vst [vmem:[#allocation17_spill] sm:$0xff] %v13203_v47  ;;  %v2829_v19 = vadd.f32 %v15621_v40, %v13140_v15  ;;  %v15630_v40 = vld [vmem:[#allocation30_spill] sm:$0xff] }
 0x8cb   : > { %15605 = vst [vmem:[#allocation9_spill] sm:$0xff] %v13147_v14  ;;  %6990 = vadd.xlane.f32.xlu0 %v6989_v32  ;;  %v6992_v1 = vsel %vm497_vm0, %v13147_v14, 0.0  ;;  %v7058_v49 = vmul.f32 %v13147_v14, %v13147_v14  ;;  %v2824_v32 = vadd.f32 %v13140_v15, %v15622_v61  ;;  %v7149_v38 = vsel %vm497_vm0, %v7057_v6, 0.0 }
 0x8cc   : > { %15609 = vst [vmem:[#allocation15_spill] sm:$0xff] %v13164_v29  ;;  %v6986_v46 = vsel %vm497_vm0, %v13164_v29, 0.0  ;;  %v7056_v27 = vmul.f32 %v13164_v29, %v13164_v29  ;;  %v7143_v54 = vsel %vm497_vm0, %v7055_v28, 0.0  ;;  %v3041_v4 = vsel %vm13198_vm3, %v3009_v23, 0.0 }
 0x8cd   : > { %6993 = vadd.xlane.f32.xlu1 %v6992_v1  ;;  %v13217_v1 = vmul.f32 %v13158_v17, %v2821_v62  ;;  %v3012_v28 = vmul.f32 %v13203_v47, %v13203_v47  ;;  %v13228_v39 = vmul.f32 %v13158_v17, %v2829_v19  ;;  %v13231_v25 = vmul.f32 %v13158_v17, %v2824_v32  ;;  %v15628_v62 = vld [vmem:[#allocation25_spill] sm:$0xff] }
 0x8ce   : > { %v7146_v44 = vsel %vm497_vm0, %v7056_v27, 0.0  ;;  %v3042_v27 = vsel %vm13198_vm3, %v3010_v7, 0.0  ;;  %v3043_v6 = vsel %vm13198_vm3, %v3011_v8, 0.0  ;;  %v2840_v19 = vadd.f32 %v13140_v15, %v15630_v40  ;;  %v15637_v40 = vld [vmem:[#allocation32_spill] sm:$0xff] }
 0x8cf   : > { %6984 = vadd.xlane.f32.xlu0 %v6983_v51  ;;  %15623 = vst [vmem:[#allocation47_spill] sm:$0xff] %v13217_v1  ;;  %v7152_v51 = vsel %vm497_vm0, %v7058_v49, 0.0  ;;  %15625 = vst [vmem:[#allocation48_spill] sm:$0xff] %v13228_v39  ;;  %v3013_v23 = vmul.f32 %v13217_v1, %v13217_v1  ;;  %v3077_v61 = vsel %vm3073_vm4, %v3042_v27, 0.0  ;;  %v3080_v32 = vsel %vm3073_vm4, %v3043_v6, 0.0 }
 0x8d0   : > { %15626 = vst [vmem:[#allocation50_spill] sm:$0xff] %v13231_v25  ;;  %v3044_v7 = vsel %vm13198_vm3, %v3012_v28, 0.0  ;;  %v3014_v8 = vmul.f32 %v13231_v25, %v13231_v25  ;;  %v3015_v59 = vmul.f32 %v13228_v39, %v13228_v39  ;;  %v13270_v27 = vmul.f32 %v13158_v17, %v2840_v19  ;;  %v15655_v39 = vld [vmem:[#allocation43_spill] sm:$0xff] }
 0x8d1   : > { %6987 = vadd.xlane.f32.xlu1 %v6986_v46  ;;  %v3074_v46 = vsel %vm3073_vm4, %v3041_v4, 0.0 }
 0x8d2   : > { %15634 = vst [vmem:[#allocation54_spill] sm:$0xff] %v13270_v27  ;;  %v3047_v19 = vsel %vm13198_vm3, %v3015_v59, 0.0  ;;  %v3018_v59 = vmul.f32 %v13270_v27, %v13270_v27 }
 0x8d3   : > { %7144 = vadd.xlane.f32.xlu0 %v7143_v54  ;;  %v2845_v54 = vadd.f32 %v15628_v62, %v13140_v15  ;;  %v15635_v62 = vld [vmem:[#allocation29_spill] sm:$0xff]  ;;  %v3092_v10 = vsel %vm3073_vm4, %v3047_v19, 0.0 }
 0x8d4   : > { %v2861_v6 = vadd.f32 %v15635_v62, %v13140_v15 }
 0x8d5   : > { %7147 = vadd.xlane.f32.xlu1 %v7146_v44  ;;  %v15629_v44 = vld [vmem:[#allocation26_spill] sm:$0xff]  ;;  %v13258_v56 = vmul.f32 %v13158_v17, %v2845_v54  ;;  %v15636_v54 = vld [vmem:[#allocation31_spill] sm:$0xff] }
 0x8d6   : > { %v2837_v49 = vadd.f32 %v13140_v15, %v15629_v44  ;;  %v2853_v44 = vadd.f32 %v13140_v15, %v15636_v54  ;;  %v15691_v31 = vld [vmem:[#allocation48_spill] sm:$0xff] }
 0x8d7   : > { %7150 = vadd.xlane.f32.xlu0 %v7149_v38  ;;  %15631 = vst [vmem:[#allocation51_spill] sm:$0xff] %v13258_v56  ;;  %v15632_v38 = vld [vmem:[#allocation28_spill] sm:$0xff] }
 0x8d8   : > { %v2848_v4 = vadd.f32 %v15632_v38, %v13140_v15  ;;  %v13267_v28 = vmul.f32 %v13158_v17, %v2837_v49  ;;  %v15638_v38 = vld [vmem:[#allocation34_spill] sm:$0xff]  ;;  %v3046_v49 = vsel %vm13198_vm3, %v3014_v8, 0.0 }
 0x8d9   : > { %7153 = vadd.xlane.f32.xlu1 %v7152_v51  ;;  %v3045_v51 = vsel %vm13198_vm3, %v3013_v23, 0.0  ;;  %v3083_v23 = vsel %vm3073_vm4, %v3044_v7, 0.0  ;;  %v2856_v14 = vadd.f32 %v13140_v15, %v15638_v38  ;;  %v3019_v7 = vmul.f32 %v13258_v56, %v13258_v56 }
 0x8da   : > { %15633 = vst [vmem:[#allocation52_spill] sm:$0xff] %v13267_v28  ;;  %v13286_v62 = vmul.f32 %v13158_v17, %v2848_v4  ;;  %v3017_v8 = vmul.f32 %v13267_v28, %v13267_v28  ;;  %v3089_v38 = vsel %vm3073_vm4, %v3046_v49, 0.0 }
 0x8db   : > { %3075 = vadd.xlane.f32.xlu0 %v3074_v46  ;;  %v3016_v46 = vmul.f32 %v13237_v60, %v13237_v60 }
 0x8dc   : > { %15639 = vst [vmem:[#allocation53_spill] sm:$0xff] %v13286_v62  ;;  %v3020_v27 = vmul.f32 %v13286_v62, %v13286_v62  ;;  %v3049_v49 = vsel %vm13198_vm3, %v3017_v8, 0.0 }
 0x8dd   : > { %3078 = vadd.xlane.f32.xlu1 %v3077_v61  ;;  %v2864_v61 = vadd.f32 %v15637_v40, %v13140_v15  ;;  %v3048_v54 = vsel %vm13198_vm3, %v3016_v46, 0.0  ;;  %v13294_v40 = vmul.f32 %v13158_v17, %v2861_v6  ;;  %v13310_v6 = vmul.f32 %v13158_v17, %v2856_v14 }
 0x8de   : > { %v3095_v28 = vsel %vm3073_vm4, %v3048_v54, 0.0  ;;  %v3050_v14 = vsel %vm13198_vm3, %v3018_v59, 0.0 }
 0x8df   : > { %3081 = vadd.xlane.f32.xlu0 %v3080_v32  ;;  %v3086_v32 = vsel %vm3073_vm4, %v3045_v51, 0.0  ;;  %15640 = vst [vmem:[#allocation55_spill] sm:$0xff] %v13294_v40  ;;  %v13304_v4 = vmul.f32 %v13158_v17, %v2864_v61  ;;  %v15643_v51 = vld [vmem:[#allocation33_spill] sm:$0xff]  ;;  %15644 = vst [vmem:[#allocation57_spill] sm:$0xff] %v13310_v6  ;;  %v3051_v61 = vsel %vm13198_vm3, %v3019_v7, 0.0  ;;  %v3023_v19 = vmul.f32 %v13294_v40, %v13294_v40  ;;  %v15647_v7 = vld [vmem:[#allocation36_spill] sm:$0xff] }
 0x8e0   : > { %v2877_v46 = vadd.f32 %v15643_v51, %v13140_v15  ;;  %v3104_v56 = vsel %vm3073_vm4, %v3051_v61, 0.0 }
 0x8e1   : > { %3084 = vadd.xlane.f32.xlu1 %v3083_v23  ;;  %v13297_v23 = vmul.f32 %v13158_v17, %v2853_v44  ;;  %15642 = vst [vmem:[#allocation59_spill] sm:$0xff] %v13304_v4  ;;  %v15645_v44 = vld [vmem:[#allocation35_spill] sm:$0xff]  ;;  %v3024_v8 = vmul.f32 %v13304_v4, %v13304_v4 }
 0x8e2   : > { %v13329_v54 = vmul.f32 %v13158_v17, %v2877_v46  ;;  %v3098_v46 = vsel %vm3073_vm4, %v3049_v49, 0.0 }
 0x8e3   : > { %15641 = vst [vmem:[#allocation56_spill] sm:$0xff] %v13297_v23  ;;  %3087 = vadd.xlane.f32.xlu0 %v3086_v32  ;;  %v2869_v32 = vadd.f32 %v13140_v15, %v15645_v44  ;;  %v3021_v51 = vmul.f32 %v13297_v23, %v13297_v23  ;;  %v15648_v44 = vld [vmem:[#allocation38_spill] sm:$0xff]  ;;  %v3022_v23 = vmul.f32 %v13310_v6, %v13310_v6 }
 0x8e4   : > { %15646 = vst [vmem:[#allocation58_spill] sm:$0xff] %v13329_v54 }
 0x8e5   : > { %3090 = vadd.xlane.f32.xlu1 %v3089_v38  ;;  %v2880_v38 = vadd.f32 %v15647_v7, %v13140_v15  ;;  %v13338_v59 = vmul.f32 %v13158_v17, %v2869_v32  ;;  %v3052_v7 = vsel %vm13198_vm3, %v3020_v27, 0.0  ;;  %v3053_v4 = vsel %vm13198_vm3, %v3021_v51, 0.0 }
 0x8e6   : > { %v3056_v27 = vsel %vm13198_vm3, %v3024_v8, 0.0  ;;  %v3107_v51 = vsel %vm3073_vm4, %v3052_v7, 0.0  ;;  %v15653_v8 = vld [vmem:[#allocation39_spill] sm:$0xff] }
 0x8e7   : > { %3093 = vadd.xlane.f32.xlu0 %v3092_v10  ;;  %v2872_v10 = vadd.f32 %v13140_v15, %v15648_v44  ;;  %15649 = vst [vmem:[#allocation60_spill] sm:$0xff] %v13338_v59  ;;  %v3101_v44 = vsel %vm3073_vm4, %v3050_v14, 0.0  ;;  %v13352_v32 = vmul.f32 %v13158_v17, %v2880_v38  ;;  %v13361_v14 = vmul.f32 %v13329_v54, %v13329_v54  ;;  %v15654_v54 = vld [vmem:[#allocation40_spill] sm:$0xff] }
 0x8e8   : > { %v6907_v62 = vpop.xlane.xlu0 %6906  ;;  %v13370_v38 = vmul.f32 %v13338_v59, %v13338_v59  ;;  %v2885_v60 = vadd.f32 %v13140_v15, %v15653_v8  ;;  %v3119_v1 = vsel %vm3073_vm4, %v3056_v27, 0.0 }
 0x8e9   : > { %3096 = vadd.xlane.f32.xlu1 %v3095_v28  ;;  %v3055_v28 = vsel %vm13198_vm3, %v3023_v19, 0.0  ;;  %15650 = vst [vmem:[#allocation61_spill] sm:$0xff] %v13352_v32  ;;  %v13355_v6 = vmul.f32 %v13158_v17, %v2872_v10  ;;  %v13363_v61 = vmul.f32 0.03125, %v6907_v62  ;;  %v3054_v19 = vsel %vm13198_vm3, %v3022_v23, 0.0  ;;  %v15652_v10 = vld [vmem:[#allocation37_spill] sm:$0xff] }
 0x8ea   : > { %v6910_v40 = vpop.xlane.xlu1 %6909  ;;  %v2896_v62 = vadd.f32 %v15654_v54, %v13140_v15  ;;  %v3110_v23 = vsel %vm3073_vm4, %v3053_v4, 0.0  ;;  %v3116_v59 = vsel %vm3073_vm4, %v3055_v28, 0.0  ;;  %v3113_v47 = vsel %vm3073_vm4, %v3054_v19, 0.0 }
 0x8eb   : > { %3099 = vadd.xlane.f32.xlu0 %v3098_v46  ;;  %15651 = vst [vmem:[#allocation19_spill] sm:$0xff] %v13355_v6  ;;  %v2893_v46 = vadd.f32 %v15652_v10, %v13140_v15  ;;  %v13380_v25 = vmul.f32 0.03125, %v6910_v40  ;;  %v3026_v8 = vmul.f32 %v13355_v6, %v13355_v6  ;;  %v13393_v40 = vmul.f32 %v13352_v32, %v13352_v32 }
 0x8ec   : > { %v6901_v49 = vpop.xlane.xlu0 %6900  ;;  %v3057_v28 = vsel %vm13198_vm3, %v13370_v38, 0.0  ;;  %v13406_v19 = vmul.f32 %v13158_v17, %v2885_v60  ;;  %v15661_v60 = vld [vmem:[#allocation42_spill] sm:$0xff] }
 0x8ed   : > { %3102 = vadd.xlane.f32.xlu1 %v3101_v44  ;;  %v2888_v44 = vadd.f32 %v13140_v15, %v15655_v39  ;;  %v13397_v4 = vmul.f32 0.03125, %v6901_v49  ;;  %v13403_v27 = vmul.f32 %v13158_v17, %v2893_v46  ;;  %v13409_v39 = vmul.f32 %v13158_v17, %v2896_v62  ;;  %v15660_v46 = vld [vmem:[#allocation41_spill] sm:$0xff] }
 0x8ee   : > { %v6904_v7 = vpop.xlane.xlu1 %6903  ;;  %15657 = vst [vmem:[#allocation23_spill] sm:$0xff] %v13406_v19  ;;  %v2909_v50 = vadd.f32 %v15660_v46, %v13140_v15  ;;  %v2901_v36 = vadd.f32 %v13140_v15, %v15661_v60  ;;  %v15662_v62 = vld [vmem:[#allocation45_spill] sm:$0xff]  ;;  %v3058_v13 = vsel %vm13198_vm3, %v3026_v8, 0.0 }
 0x8ef   : > { %3105 = vadd.xlane.f32.xlu0 %v3104_v56  ;;  %v7189_v56 = vmul.f32 %v13363_v61, %v13363_v61  ;;  %15656 = vst [vmem:[#allocation18_spill] sm:$0xff] %v13403_v27  ;;  %15658 = vst [vmem:[#allocation20_spill] sm:$0xff] %v13409_v39  ;;  %v13412_v32 = vmul.f32 %v13158_v17, %v2888_v44  ;;  %v2904_v5 = vadd.f32 %v13140_v15, %v15662_v62 }
 0x8f0   : > { %v7067_v10 = vpop.xlane.xlu0 %7066  ;;  %v3031_v60 = vmul.f32 %v13403_v27, %v13403_v27  ;;  %v3032_v8 = vmul.f32 %v13409_v39, %v13409_v39 }
 0x8f1   : > { %v7157_v54 = vmul.f32 0.03125, %v7067_v10  ;;  %3108 = vadd.xlane.f32.xlu1 %v3107_v51  ;;  %15659 = vst [vmem:[#allocation22_spill] sm:$0xff] %v13412_v32  ;;  %v7190_v51 = vmul.f32 %v13380_v25, %v13380_v25  ;;  %v13416_v10 = vmul.f32 0.03125, %v6904_v7  ;;  %v7187_v7 = vmul.f32 %v13397_v4, %v13397_v4 }
 0x8f2   : > { %v7070_v49 = vpop.xlane.xlu1 %7069  ;;  %v3030_v46 = vmul.f32 %v13412_v32, %v13412_v32  ;;  %v15665_v32 = vld [vmem:[#allocation44_spill] sm:$0xff]  ;;  %v13447_v39 = vmul.f32 %v13158_v17, %v2904_v5 }
 0x8f3   : > { %v7221_v6 = vsub.f32 %v7157_v54, %v7189_v56  ;;  %v7158_v38 = vmul.f32 0.03125, %v7070_v49  ;;  %3111 = vadd.xlane.f32.xlu0 %v3110_v23  ;;  %v3029_v49 = vmul.f32 %v13406_v19, %v13406_v19  ;;  %v7188_v62 = vmul.f32 %v13416_v10, %v13416_v10 }
 0x8f4   : > { %v7061_v44 = vpop.xlane.xlu0 %7060  ;;  %v2912_v19 = vadd.f32 %v15665_v32, %v13140_v15  ;;  %15666 = vst [vmem:[#allocation24_spill] sm:$0xff] %v13447_v39 }
 0x8f5   : > { %v7253_v41 = vadd.f32 1e-05, %v7221_v6  ;;  %v7222_v56 = vsub.f32 %v7158_v38, %v7190_v51  ;;  %v7155_v54 = vmul.f32 0.03125, %v7061_v44  ;;  %3114 = vadd.xlane.f32.xlu1 %v3113_v47  ;;  %v13439_v47 = vmul.f32 %v13158_v17, %v2909_v50 }
 0x8f6   : > { %v7064_v23 = vpop.xlane.xlu1 %7063  ;;  %v13442_v44 = vmul.f32 %v13158_v17, %v2901_v36  ;;  %v3125_v50 = vsel %vm3073_vm4, %v3058_v13, 0.0  ;;  %v3060_v36 = vsel %vm13198_vm3, %v13393_v40, 0.0  ;;  %v3061_v5 = vsel %vm13198_vm3, %v3029_v49, 0.0  ;;  %v15668_v49 = vld [vmem:[#allocation2_spill] sm:$0xff] }
 0x8f7   : > { %v7254_v6 = vadd.f32 1e-05, %v7222_v56  ;;  %v7219_v51 = vsub.f32 %v7155_v54, %v7187_v7  ;;  %v7156_v38 = vmul.f32 0.03125, %v7064_v23  ;;  %3117 = vadd.xlane.f32.xlu0 %v3116_v59  ;;  %15663 = vst [vmem:[#allocation21_spill] sm:$0xff] %v13439_v47  ;;  %9276 = vrsqrt.f32 %v7253_v41 }
 0x8f8   : > { %15664 = vst [vmem:[#allocation27_spill] sm:$0xff] %v13442_v44  ;;  %v6919_v27 = vpop.xlane.xlu0 %6918  ;;  %v3122_v59 = vsel %vm3073_vm4, %v3057_v28, 0.0  ;;  %v3063_v41 = vsel %vm13198_vm3, %v3031_v60, 0.0  ;;  %v13461_v28 = vmul.f32 %v13158_v17, %v2912_v19  ;;  %v3062_v54 = vsel %vm13198_vm3, %v3030_v46, 0.0 }
 0x8f9   : > { %9278 = vrsqrt.f32 %v7254_v6  ;;  %v7251_v29 = vadd.f32 1e-05, %v7219_v51  ;;  %v7220_v56 = vsub.f32 %v7156_v38, %v7188_v62  ;;  %3120 = vadd.xlane.f32.xlu1 %v3119_v1  ;;  %v3064_v1 = vsel %vm13198_vm3, %v3032_v8, 0.0 }
 0x8fa   : > { %v6922_v7 = vpop.xlane.xlu1 %6921  ;;  %15667 = vst [vmem:[#allocation25_spill] sm:$0xff] %v13461_v28  ;;  %v13467_v40 = vmul.f32 %v13442_v44, %v13442_v44  ;;  %v13473_v23 = vmul.f32 0.03125, %v6919_v27  ;;  %v13477_v19 = vmul.f32 %v13447_v39, %v13447_v39  ;;  %v2925_v60 = vadd.f32 %v15668_v49, %v13140_v15 }
 0x8fb   : > { %9280 = vrsqrt.f32 %v7251_v29  ;;  %v7252_v32 = vadd.f32 1e-05, %v7220_v56  ;;  %3123 = vadd.xlane.f32.xlu0 %v3122_v59  ;;  %v13471_v29 = vmul.f32 %v13439_v47, %v13439_v47  ;;  %v15669_v8 = vsel %vm13198_vm3, %v13361_v14, 0.0 }
 0x8fc   : > { %v6913_v13 = vpop.xlane.xlu0 %6912  ;;  %v3128_v62 = vsel %vm3073_vm4, %v15669_v8, 0.0  ;;  %v3131_v6 = vsel %vm3073_vm4, %v3060_v36, 0.0  ;;  %v3140_v27 = vsel %vm3073_vm4, %v3063_v41, 0.0  ;;  %v13488_v51 = vmul.f32 0.03125, %v6922_v7  ;;  %v15670_v41 = vld [vmem:[#allocation3_spill] sm:$0xff]  ;;  %v15672_v8 = vld [vmem:[#allocation4_spill] sm:$0xff] }
 0x8fd   : > { %9282 = vrsqrt.f32 %v7252_v32  ;;  %3126 = vadd.xlane.f32.xlu1 %v3125_v50  ;;  %v3134_v38 = vsel %vm3073_vm4, %v3061_v5, 0.0  ;;  %v3137_v56 = vsel %vm3073_vm4, %v3062_v54, 0.0  ;;  %v3143_v59 = vsel %vm3073_vm4, %v3064_v1, 0.0 }
 0x8fe   : > { %v6916_v46 = vpop.xlane.xlu1 %6915  ;;  %v13493_v50 = vmul.f32 0.03125, %v6913_v13  ;;  %v3065_v14 = vsel %vm13198_vm3, %v13467_v40, 0.0  ;;  %v13503_v7 = vmul.f32 %v13461_v28, %v13461_v28  ;;  %v2917_v5 = vadd.f32 %v13140_v15, %v15670_v41 }
 0x8ff   : > { %3129 = vadd.xlane.f32.xlu0 %v3128_v62  ;;  %v7193_v1 = vmul.f32 %v13473_v23, %v13473_v23  ;;  %v3066_v54 = vsel %vm13198_vm3, %v13477_v19, 0.0  ;;  %v13513_v49 = vmul.f32 %v13158_v17, %v2925_v60  ;;  %v2928_v62 = vadd.f32 %v15672_v8, %v13140_v15  ;;  %v15673_v60 = vld [vmem:[#allocation5_spill] sm:$0xff] }
 0x900   : > { %v7079_v32 = vpop.xlane.xlu0 %7078  ;;  %v7318_v36 = vsub.f32 %v12914_v53, %v13380_v25  ;;  %v13519_v41 = vmul.f32 0.03125, %v6916_v46  ;;  %v7194_v19 = vmul.f32 %v13488_v51, %v13488_v51  ;;  %v2920_v47 = vadd.f32 %v13140_v15, %v15673_v60  ;;  %v13557_v60 = vld [vmem:[%s15257_s4 + $0x13] ss:$0 sm:$0xff] }
 0x901   : > { %v7161_v13 = vmul.f32 0.03125, %v7079_v32  ;;  %3132 = vadd.xlane.f32.xlu1 %v3131_v6  ;;  %v9277_v40 = vpop.eup %9276  ;;  %15671 = vst [vmem:[#allocation26_spill] sm:$0xff] %v13513_v49  ;;  %v7317_v6 = vsub.f32 %v12908_v11, %v13363_v61  ;;  %v7315_v8 = vsub.f32 %v12912_v20, %v13397_v4  ;;  %v7191_v25 = vmul.f32 %v13493_v50, %v13493_v50  ;;  %v13539_v20 = vld [vmem:[%s15257_s4 + $0x12] ss:$0 sm:$0xff] }
 0x902   : > { %v7082_v44 = vpop.xlane.xlu1 %7081  ;;  %v7316_v15 = vsub.f32 %v12918_v3, %v13416_v10  ;;  %v7192_v4 = vmul.f32 %v13519_v41, %v13519_v41 }
 0x903   : > { %v9279_v28 = vpop.eup %9278  ;;  %v7225_v32 = vsub.f32 %v7161_v13, %v7193_v1  ;;  %v7162_v39 = vmul.f32 0.03125, %v7082_v44  ;;  %3135 = vadd.xlane.f32.xlu0 %v3134_v38  ;;  %v7349_v57 = vmul.f32 %v9277_v40, %v7317_v6  ;;  %v13532_v44 = vmul.f32 %v13158_v17, %v2917_v5 }
 0x904   : > { %v7350_v53 = vmul.f32 %v9279_v28, %v7318_v36  ;;  %v7073_v46 = vpop.xlane.xlu0 %7072  ;;  %v13545_v13 = vmul.f32 %v13158_v17, %v2920_v47 }
 0x905   : > { %v9281_v45 = vpop.eup %9280  ;;  %v7257_v11 = vadd.f32 1e-05, %v7225_v32  ;;  %v7226_v61 = vsub.f32 %v7162_v39, %v7194_v19  ;;  %v7159_v30 = vmul.f32 0.03125, %v7073_v46  ;;  %3138 = vadd.xlane.f32.xlu1 %v3137_v56  ;;  %15674 = vst [vmem:[#allocation30_spill] sm:$0xff] %v13532_v44  ;;  %v7386_v6 = vmul.f32 %v13539_v20, %v7349_v57 }
 0x906   : > { %v7076_v28 = vpop.xlane.xlu1 %7075  ;;  %v7347_v38 = vmul.f32 %v9281_v45, %v7315_v8  ;;  %v7387_v39 = vmul.f32 %v13539_v20, %v7350_v53  ;;  %15675 = vst [vmem:[#allocation28_spill] sm:$0xff] %v13545_v13  ;;  %v13550_v32 = vmul.f32 %v13158_v17, %v2928_v62  ;;  %v3068_v57 = vsel %vm13198_vm3, %v13503_v7, 0.0 }
 0x907   : > { %v9283_v36 = vpop.eup %9282  ;;  %v7258_v56 = vadd.f32 1e-05, %v7226_v61  ;;  %v7223_v1 = vsub.f32 %v7159_v30, %v7191_v25  ;;  %v7160_v5 = vmul.f32 0.03125, %v7076_v28  ;;  %3141 = vadd.xlane.f32.xlu0 %v3140_v27  ;;  %9284 = vrsqrt.f32 %v7257_v11 }
 0x908   : > { %v6931_v3 = vpop.xlane.xlu0 %6930  ;;  %v7348_v10 = vmul.f32 %v9283_v36, %v7316_v15  ;;  %v7384_v40 = vmul.f32 %v13539_v20, %v7347_v38  ;;  %15676 = vst [vmem:[#allocation29_spill] sm:$0xff] %v13550_v32  ;;  %v3146_v27 = vsel %vm3073_vm4, %v3065_v14, 0.0  ;;  %v7424_v17 = vadd.f32 %v13557_v60, %v7387_v39 }
 0x909   : > { %9286 = vrsqrt.f32 %v7258_v56  ;;  %v7255_v19 = vadd.f32 1e-05, %v7223_v1  ;;  %v7224_v45 = vsub.f32 %v7160_v5, %v7192_v4  ;;  %3144 = vadd.xlane.f32.xlu1 %v3143_v59  ;;  %v3037_v59 = vmul.f32 %v13532_v44, %v13532_v44 }
 0x90a   : > { %v6934_v30 = vpop.xlane.xlu1 %6933  ;;  %v7385_v47 = vmul.f32 %v13539_v20, %v7348_v10  ;;  %v3149_v62 = vsel %vm3073_vm4, %v3066_v54, 0.0  ;;  %v7421_v53 = vadd.f32 %v13557_v60, %v7384_v40  ;;  %v3039_v46 = vmul.f32 %v13513_v49, %v13513_v49 }
 0x90b   : > { %9288 = vrsqrt.f32 %v7255_v19  ;;  %v7256_v8 = vadd.f32 1e-05, %v7224_v45  ;;  %3147 = vadd.xlane.f32.xlu0 %v3146_v27  ;;  %v13570_v7 = vmul.f32 0.03125, %v6931_v3  ;;  %v7423_v11 = vadd.f32 %v13557_v60, %v7386_v6 }
 0x90c   : > { %v6925_v14 = vpop.xlane.xlu0 %6924  ;;  %v7422_v25 = vadd.f32 %v13557_v60, %v7385_v47  ;;  %v3038_v61 = vmul.f32 %v13545_v13, %v13545_v13  ;;  %v15677_v54 = vsel %vm13198_vm3, %v13471_v29, 0.0  ;;  %v3040_v38 = vmul.f32 %v13550_v32, %v13550_v32 }
 0x90d   : > { %9290 = vrsqrt.f32 %v7256_v8  ;;  %3150 = vadd.xlane.f32.xlu1 %v3149_v62  ;;  %v3152_v4 = vsel %vm3073_vm4, %v15677_v54, 0.0  ;;  %v13582_v36 = vmul.f32 0.03125, %v6934_v30  ;;  %v7454_v39 = vpack.c.bf16 %v7424_v17, %v7423_v11 }
 0x90e   : > { %v6928_v15 = vpop.xlane.xlu1 %6927  ;;  %v7453_v28 = vpack.c.bf16 %v7422_v25, %v7421_v53  ;;  %v3069_v56 = vsel %vm13198_vm3, %v3037_v59, 0.0  ;;  %v13586_v1 = vmul.f32 0.03125, %v6925_v14  ;;  %v3155_v29 = vsel %vm3073_vm4, %v3068_v57, 0.0 }
 0x90f   : > { %3153 = vadd.xlane.f32.xlu0 %v3152_v4  ;;  %v7197_v3 = vmul.f32 %v13570_v7, %v13570_v7  ;;  %v3070_v40 = vsel %vm13198_vm3, %v3038_v61, 0.0  ;;  %v3071_v6 = vsel %vm13198_vm3, %v3039_v46, 0.0  ;;  %v7322_v45 = vsub.f32 %v12946_v35, %v13488_v51 }
 0x910   : > { %8743 = vmatprep.mubr.msk.bf16.mxu1 %vm497_vm0, %v7453_v28  ;;  %v7091_v5 = vpop.xlane.xlu0 %7090  ;;  %v13599_v30 = vmul.f32 0.03125, %v6928_v15  ;;  %v3158_v47 = vsel %vm3073_vm4, %v3069_v56, 0.0  ;;  %v3072_v57 = vsel %vm13198_vm3, %v3040_v38, 0.0  ;;  %v7321_v17 = vsub.f32 %v12939_v24, %v13473_v23 }
 0x911   : > { %v7165_v10 = vmul.f32 0.03125, %v7091_v5  ;;  %3156 = vadd.xlane.f32.xlu1 %v3155_v29  ;;  %8744 = vmatmul.mubr.msk.bf16.vlgmr.msra.gmra.mrb[80].mxu1 %vm497_vm0, %v7454_v39  ;;  %v9285_v19 = vpop.eup %9284  ;;  %v7198_v59 = vmul.f32 %v13582_v36, %v13582_v36  ;;  %v7319_v35 = vsub.f32 %v12944_v16, %v13493_v50  ;;  %v7195_v51 = vmul.f32 %v13586_v1, %v13586_v1 }
 0x912   : > { %v7094_v27 = vpop.xlane.xlu1 %7093  ;;  %v3161_v25 = vsel %vm3073_vm4, %v3070_v40, 0.0  ;;  %v7353_v23 = vmul.f32 %v9285_v19, %v7321_v17  ;;  %v7320_v54 = vsub.f32 %v12950_v42, %v13519_v41  ;;  %v7196_v4 = vmul.f32 %v13599_v30, %v13599_v30 }
 0x913   : > { %v9287_v8 = vpop.eup %9286  ;;  %v7229_v14 = vsub.f32 %v7165_v10, %v7197_v3  ;;  %v7166_v62 = vmul.f32 0.03125, %v7094_v27  ;;  %3159 = vadd.xlane.f32.xlu0 %v3158_v47  ;;  %v3164_v50 = vsel %vm3073_vm4, %v3071_v6, 0.0  ;;  %v3167_v10 = vsel %vm3073_vm4, %v3072_v57, 0.0 }
 0x914   : > { %v7085_v53 = vpop.xlane.xlu0 %7084  ;;  %v7354_v46 = vmul.f32 %v9287_v8, %v7322_v45  ;;  %v7390_v6 = vmul.f32 %v13539_v20, %v7353_v23  ;;  %v7326_v23 = vsub.f32 %v12978_v43, %v13582_v36 }
 0x915   : > { %v9289_v11 = vpop.eup %9288  ;;  %v7261_v61 = vadd.f32 1e-05, %v7229_v14  ;;  %v7230_v15 = vsub.f32 %v7166_v62, %v7198_v59  ;;  %v7163_v24 = vmul.f32 0.03125, %v7085_v53  ;;  %3162 = vadd.xlane.f32.xlu1 %v3161_v25 }
 0x916   : > { %v7088_v16 = vpop.xlane.xlu1 %7087  ;;  %v7351_v28 = vmul.f32 %v9289_v11, %v7319_v35  ;;  %v7391_v29 = vmul.f32 %v13539_v20, %v7354_v46  ;;  %v7427_v62 = vadd.f32 %v13557_v60, %v7390_v6 }
 0x917   : > { %v9291_v38 = vpop.eup %9290  ;;  %v7262_v39 = vadd.f32 1e-05, %v7230_v15  ;;  %v7227_v56 = vsub.f32 %v7163_v24, %v7195_v51  ;;  %v7164_v5 = vmul.f32 0.03125, %v7088_v16  ;;  %3165 = vadd.xlane.f32.xlu0 %v3164_v50  ;;  %9292 = vrsqrt.f32 %v7261_v61 }
 0x918   : > { %v6943_v3 = vpop.xlane.xlu0 %6942  ;;  %v7352_v40 = vmul.f32 %v9291_v38, %v7320_v54  ;;  %v7388_v42 = vmul.f32 %v13539_v20, %v7351_v28  ;;  %v7428_v8 = vadd.f32 %v13557_v60, %v7391_v29  ;;  %v7325_v50 = vsub.f32 %v12971_v63, %v13570_v7 }
 0x919   : > { %9294 = vrsqrt.f32 %v7262_v39  ;;  %v7259_v41 = vadd.f32 1e-05, %v7227_v56  ;;  %v7228_v19 = vsub.f32 %v7164_v5, %v7196_v4  ;;  %3168 = vadd.xlane.f32.xlu1 %v3167_v10  ;;  %v13626_v14 = vmul.f32 0.03125, %v6943_v3 }
 0x91a   : > { %v6946_v45 = vpop.xlane.xlu1 %6945  ;;  %v7389_v27 = vmul.f32 %v13539_v20, %v7352_v40  ;;  %v7425_v59 = vadd.f32 %v13557_v60, %v7388_v42  ;;  %v7456_v25 = vpack.c.bf16 %v7428_v8, %v7427_v62  ;;  %v7323_v56 = vsub.f32 %v12976_v33, %v13586_v1 }
 0x91b   : > { %9296 = vrsqrt.f32 %v7259_v41  ;;  %v7260_v47 = vadd.f32 1e-05, %v7228_v19  ;;  %v13629_v53 = vmul.f32 0.03125, %v6946_v45  ;;  %v7201_v61 = vmul.f32 %v13626_v14, %v13626_v14 }
 0x91c   : > { %v6937_v17 = vpop.xlane.xlu0 %6936  ;;  %v7426_v57 = vadd.f32 %v13557_v60, %v7389_v27  ;;  %v7324_v7 = vsub.f32 %v12982_v9, %v13599_v30 }
 0x91d   : > { %9298 = vrsqrt.f32 %v7260_v47  ;;  %v13631_v46 = vmul.f32 0.03125, %v6937_v17  ;;  %v7202_v28 = vmul.f32 %v13629_v53, %v13629_v53 }
 0x91e   : > { %v6940_v35 = vpop.xlane.xlu1 %6939  ;;  %v7455_v51 = vpack.c.bf16 %v7426_v57, %v7425_v59  ;;  %v13664_v59 = vld [vmem:[%s13660_s23 + $0x8] sm:$0xff] }
 0x91f   : > { %v13639_v54 = vmul.f32 0.03125, %v6940_v35  ;;  %v7199_v5 = vmul.f32 %v13631_v46, %v13631_v46 }
 0x920   : > { %8747 = vmatprep.mubr.msk.bf16.mxu1 %vm497_vm0, %v7455_v51  ;;  %v7103_v11 = vpop.xlane.xlu0 %7102 }
 0x921   : > { %v7169_v15 = vmul.f32 0.03125, %v7103_v11  ;;  %8748 = vmatmul.mubr.msk.bf16.gmra.mrb[84].mxu1 %vm497_vm0, %v7456_v25  ;;  %v9293_v24 = vpop.eup %9292  ;;  %v7200_v42 = vmul.f32 %v13639_v54, %v13639_v54 }
 0x922   : > { %v7106_v4 = vpop.xlane.xlu1 %7105  ;;  %v7357_v63 = vmul.f32 %v9293_v24, %v7325_v50 }
 0x923   : > { %v9295_v16 = vpop.eup %9294  ;;  %v7233_v38 = vsub.f32 %v7169_v15, %v7201_v61  ;;  %v7170_v39 = vmul.f32 0.03125, %v7106_v4  ;;  %v13671_v61 = vld [vmem:[%s13660_s23] sm:$0xff]  ;;  %v13679_v4 = vld [vmem:[%s13660_s23 + $0x10] sm:$0xff] }
 0x924   : > { %v7097_v43 = vpop.xlane.xlu0 %7096  ;;  %v7358_v36 = vmul.f32 %v9295_v16, %v7326_v23  ;;  %v7394_v57 = vmul.f32 %v13539_v20, %v7357_v63 }
 0x925   : > { %v9297_v29 = vpop.eup %9296  ;;  %v7265_v3 = vadd.f32 1e-05, %v7233_v38  ;;  %v7234_v10 = vsub.f32 %v7170_v39, %v7202_v28  ;;  %v7167_v40 = vmul.f32 0.03125, %v7097_v43  ;;  %v13689_v43 = vld [vmem:[%s13660_s23 + $0x48] sm:$0xff] }
 0x926   : > { %v7100_v41 = vpop.xlane.xlu1 %7099  ;;  %v7355_v33 = vmul.f32 %v9297_v29, %v7323_v56  ;;  %v7395_v27 = vmul.f32 %v13539_v20, %v7358_v36  ;;  %v7431_v16 = vadd.f32 %v13557_v60, %v7394_v57 }
 0x927   : > { %v9299_v1 = vpop.eup %9298  ;;  %v7266_v19 = vadd.f32 1e-05, %v7234_v10  ;;  %v7231_v6 = vsub.f32 %v7167_v40, %v7199_v5  ;;  %v7168_v45 = vmul.f32 0.03125, %v7100_v41  ;;  %9300 = vrsqrt.f32 %v7265_v3  ;;  %v13696_v3 = vld [vmem:[%s13660_s23 + $0x18] sm:$0xff] }
 0x928   : > { %v6955_v47 = vpop.xlane.xlu0 %6954  ;;  %v7356_v9 = vmul.f32 %v9299_v1, %v7324_v7  ;;  %v7392_v30 = vmul.f32 %v13539_v20, %v7355_v33  ;;  %v7432_v25 = vadd.f32 %v13557_v60, %v7395_v27  ;;  %v7330_v40 = vsub.f32 %v13013_v22, %v13629_v53 }
 0x929   : > { %9302 = vrsqrt.f32 %v7266_v19  ;;  %v7263_v8 = vadd.f32 1e-05, %v7231_v6  ;;  %v7232_v17 = vsub.f32 %v7168_v45, %v7200_v42  ;;  %v13675_v23 = vmul.f32 0.03125, %v6955_v47  ;;  %v13712_v45 = vld [vmem:[%s13660_s23 + $0x58] sm:$0xff] }
 0x92a   : > { %v6958_v62 = vpop.xlane.xlu1 %6957  ;;  %3593 = vperm.xlu1 %8917, %v13664_v59   ;;  %v7393_v35 = vmul.f32 %v13539_v20, %v7356_v9  ;;  %v7429_v15 = vadd.f32 %v13557_v60, %v7392_v30  ;;  %v7458_v39 = vpack.c.bf16 %v7432_v25, %v7431_v16  ;;  %v7329_v41 = vsub.f32 %v13003_v37, %v13626_v14  ;;  %v13716_v37 = vld [vmem:[%s13660_s23 + $0x20] sm:$0xff] }
 0x92b   : > { %9304 = vrsqrt.f32 %v7263_v8  ;;  %v7264_v51 = vadd.f32 1e-05, %v7232_v17  ;;  %v13683_v38 = vmul.f32 0.03125, %v6958_v62  ;;  %v7205_v36 = vmul.f32 %v13675_v23, %v13675_v23 }
 0x92c   : > { %v6949_v11 = vpop.xlane.xlu0 %6948  ;;  %v7430_v24 = vadd.f32 %v13557_v60, %v7393_v35  ;;  %v7327_v6 = vsub.f32 %v13011_v21, %v13631_v46  ;;  %v7328_v21 = vsub.f32 %v13017_v58, %v13639_v54 }
 0x92d   : > { %9306 = vrsqrt.f32 %v7264_v51  ;;  %3588 = vperm.xlu0 %8916, %v13671_v61   ;;  %v13685_v56 = vmul.f32 0.03125, %v6949_v11  ;;  %v7206_v33 = vmul.f32 %v13683_v38, %v13683_v38 }
 0x92e   : > { %v6952_v50 = vpop.xlane.xlu1 %6951  ;;  %3598 = vperm.xlu1 %8917, %v13679_v4   ;;  %v7457_v28 = vpack.c.bf16 %v7430_v24, %v7429_v15  ;;  %v2981_v24 = vld [vmem:[%s13660_s23 + $0x68] sm:$0xff] }
 0x92f   : > { %v13700_v63 = vmul.f32 0.03125, %v6952_v50  ;;  %v7203_v22 = vmul.f32 %v13685_v56, %v13685_v56 }
 0x930   : > { %8751 = vmatprep.mubr.msk.bf16.mxu1 %vm497_vm0, %v7457_v28  ;;  %v7115_v5 = vpop.xlane.xlu0 %7114  ;;  %v13727_v28 = vld [vmem:[%s13660_s23 + $0x28] sm:$0xff] }
 0x931   : > { %v7173_v29 = vmul.f32 0.03125, %v7115_v5  ;;  %3633 = vperm.xlu0 %8916, %v13689_v43   ;;  %8752 = vmatmul.mubr.msk.bf16.gmra.mrb[88].mxu1 %vm497_vm0, %v7458_v39  ;;  %v9301_v10 = vpop.eup %9300  ;;  %v7204_v46 = vmul.f32 %v13700_v63, %v13700_v63 }
 0x932   : > { %v7118_v7 = vpop.xlane.xlu1 %7117  ;;  %3603 = vperm.xlu1 %8917, %v13696_v3   ;;  %v7361_v14 = vmul.f32 %v9301_v10, %v7329_v41 }
 0x933   : > { %v9303_v42 = vpop.eup %9302  ;;  %v7237_v1 = vsub.f32 %v7173_v29, %v7205_v36  ;;  %v7174_v19 = vmul.f32 0.03125, %v7118_v7  ;;  %v2983_v7 = vld [vmem:[%s13660_s23 + $0x78] sm:$0xff] }
 0x934   : > { %v7109_v53 = vpop.xlane.xlu0 %7108  ;;  %v7362_v27 = vmul.f32 %v9303_v42, %v7330_v40  ;;  %v7398_v39 = vmul.f32 %v13539_v20, %v7361_v14 }
 0x935   : > { %v9305_v47 = vpop.eup %9304  ;;  %v7269_v9 = vadd.f32 1e-05, %v7237_v1  ;;  %v7238_v30 = vsub.f32 %v7174_v19, %v7206_v33  ;;  %v7171_v8 = vmul.f32 0.03125, %v7109_v53  ;;  %3643 = vperm.xlu0 %8916, %v13712_v45   ;;  %v13739_v1 = vld [vmem:[%s13660_s23 + $0x30] sm:$0xff] }
 0x936   : > { %v7112_v17 = vpop.xlane.xlu1 %7111  ;;  %3608 = vperm.xlu1 %8917, %v13716_v37   ;;  %v7359_v57 = vmul.f32 %v9305_v47, %v7327_v6  ;;  %v7399_v11 = vmul.f32 %v13539_v20, %v7362_v27  ;;  %v7435_v19 = vadd.f32 %v13557_v60, %v7398_v39 }
 0x937   : > { %v9307_v62 = vpop.eup %9306  ;;  %v7270_v35 = vadd.f32 1e-05, %v7238_v30  ;;  %v7235_v51 = vsub.f32 %v7171_v8, %v7203_v22  ;;  %v7172_v25 = vmul.f32 0.03125, %v7112_v17  ;;  %9308 = vrsqrt.f32 %v7269_v9  ;;  %v13749_v30 = vld [vmem:[%s13660_s23 + $0x88] sm:$0xff] }
 0x938   : > { %v6967_v15 = vpop.xlane.xlu0 %6966  ;;  %v7360_v16 = vmul.f32 %v9307_v62, %v7328_v21  ;;  %v7396_v58 = vmul.f32 %v13539_v20, %v7359_v57  ;;  %v7436_v10 = vadd.f32 %v13557_v60, %v7399_v11  ;;  %v13756_v21 = vld [vmem:[%s13660_s23 + $0x38] sm:$0xff]  ;;  %v7334_v17 = vsub.f32 %v13048_v55, %v13683_v38 }
 0x939   : > { %9310 = vrsqrt.f32 %v7270_v35  ;;  %v7267_v54 = vadd.f32 1e-05, %v7235_v51  ;;  %v7236_v50 = vsub.f32 %v7172_v25, %v7204_v46  ;;  %3653 = vperm.xlu0 %8916, %v2981_v24   ;;  %v13736_v33 = vmul.f32 0.03125, %v6967_v15 }
 0x93a   : > { %v6970_v5 = vpop.xlane.xlu1 %6969  ;;  %3613 = vperm.xlu1 %8917, %v13727_v28   ;;  %v7397_v36 = vmul.f32 %v13539_v20, %v7360_v16  ;;  %v7433_v42 = vadd.f32 %v13557_v60, %v7396_v58  ;;  %v7460_v27 = vpack.c.bf16 %v7436_v10, %v7435_v19  ;;  %v7333_v51 = vsub.f32 %v13041_v12, %v13675_v23  ;;  %v13772_v16 = vld [vmem:[%s13660_s23 + $0x98] sm:$0xff]  ;;  %v13776_v12 = vld [vmem:[%s13660_s23 + $0x40] sm:$0xff] }
 0x93b   : > { %9312 = vrsqrt.f32 %v7267_v54  ;;  %v7268_v29 = vadd.f32 1e-05, %v7236_v50  ;;  %v13743_v53 = vmul.f32 0.03125, %v6970_v5  ;;  %v7209_v8 = vmul.f32 %v13736_v33, %v13736_v33 }
 0x93c   : > { %v6961_v40 = vpop.xlane.xlu0 %6960  ;;  %v7434_v41 = vadd.f32 %v13557_v60, %v7397_v36  ;;  %v7331_v24 = vsub.f32 %v13046_v18, %v13685_v56  ;;  %v7332_v18 = vsub.f32 %v13052_v26, %v13700_v63 }
 0x93d   : > { %9314 = vrsqrt.f32 %v7268_v29  ;;  %3663 = vperm.xlu0 %8916, %v2983_v7   ;;  %v13745_v47 = vmul.f32 0.03125, %v6961_v40  ;;  %v7210_v25 = vmul.f32 %v13743_v53, %v13743_v53 }
 0x93e   : > { %v6964_v6 = vpop.xlane.xlu1 %6963  ;;  %3618 = vperm.xlu1 %8917, %v13739_v1   ;;  %v7459_v22 = vpack.c.bf16 %v7434_v41, %v7433_v42 }
 0x93f   : > { %v13760_v57 = vmul.f32 0.03125, %v6964_v6  ;;  %v7207_v55 = vmul.f32 %v13745_v47, %v13745_v47  ;;  %v13785_v6 = vld [vmem:[%s13660_s23 + $0xa8] sm:$0xff] }
 0x940   : > { %8755 = vmatprep.mubr.msk.bf16.mxu1 %vm497_vm0, %v7459_v22  ;;  %v7127_v9 = vpop.xlane.xlu0 %7126 }
 0x941   : > { %v7177_v14 = vmul.f32 0.03125, %v7127_v9  ;;  %3673 = vperm.xlu0 %8916, %v13749_v30   ;;  %8756 = vmatmul.mubr.msk.bf16.gmra.mrb[92].mxu1 %vm497_vm0, %v7460_v27  ;;  %v9309_v46 = vpop.eup %9308  ;;  %v7208_v56 = vmul.f32 %v13760_v57, %v13760_v57  ;;  %v13790_v9 = vld [vmem:[%s13660_s23 + $0x50] sm:$0xff] }
 0x942   : > { %v7130_v62 = vpop.xlane.xlu1 %7129  ;;  %3623 = vperm.xlu1 %8917, %v13756_v21   ;;  %v7365_v23 = vmul.f32 %v9309_v46, %v7333_v51  ;;  %v13797_v51 = vld [vmem:[%s13660_s23 + $0xb8] sm:$0xff] }
 0x943   : > { %v9311_v35 = vpop.eup %9310  ;;  %v7241_v11 = vsub.f32 %v7177_v14, %v7209_v8  ;;  %v7178_v15 = vmul.f32 0.03125, %v7130_v62 }
 0x944   : > { %v7121_v38 = vpop.xlane.xlu0 %7120  ;;  %v7366_v58 = vmul.f32 %v9311_v35, %v7334_v17  ;;  %v7402_v8 = vmul.f32 %v13539_v20, %v7365_v23  ;;  %v13812_v23 = vld [vmem:[%s13660_s23 + $0xc8] sm:$0xff] }
 0x945   : > { %v9313_v54 = vpop.eup %9312  ;;  %v7273_v50 = vadd.f32 1e-05, %v7241_v11  ;;  %v7242_v39 = vsub.f32 %v7178_v15, %v7210_v25  ;;  %v7175_v5 = vmul.f32 0.03125, %v7121_v38  ;;  %3683 = vperm.xlu0 %8916, %v13772_v16  }
 0x946   : > { %v7124_v36 = vpop.xlane.xlu1 %7123  ;;  %3628 = vperm.xlu1 %8917, %v13776_v12   ;;  %v7363_v29 = vmul.f32 %v9313_v54, %v7331_v24  ;;  %v7403_v41 = vmul.f32 %v13539_v20, %v7366_v58  ;;  %v2980_v24 = vld [vmem:[%s13660_s23 + $0x60] sm:$0xff] }
 0x947   : > { %v9315_v10 = vpop.eup %9314  ;;  %v7274_v40 = vadd.f32 1e-05, %v7242_v39  ;;  %v7239_v7 = vsub.f32 %v7175_v5, %v7207_v55  ;;  %v7176_v42 = vmul.f32 0.03125, %v7124_v36  ;;  %9316 = vrsqrt.f32 %v7273_v50  ;;  %v13819_v36 = vld [vmem:[%s13660_s23 + $0x70] sm:$0xff] }
 0x948   : > { %v6979_v19 = vpop.xlane.xlu0 %6978  ;;  %v7364_v26 = vmul.f32 %v9315_v10, %v7332_v18  ;;  %v7400_v63 = vmul.f32 %v13539_v20, %v7363_v29  ;;  %v7440_v62 = vadd.f32 %v13557_v60, %v7403_v41  ;;  %v7439_v55 = vadd.f32 %v13557_v60, %v7402_v8 }
 0x949   : > { %9318 = vrsqrt.f32 %v7274_v40  ;;  %v7271_v22 = vadd.f32 1e-05, %v7239_v7  ;;  %v7240_v27 = vsub.f32 %v7176_v42, %v7208_v56  ;;  %3693 = vperm.xlu0 %8916, %v13785_v6   ;;  %v13801_v15 = vmul.f32 0.03125, %v6979_v19 }
 0x94a   : > { %v6982_v14 = vpop.xlane.xlu1 %6981  ;;  %3638 = vperm.xlu1 %8917, %v13790_v9   ;;  %v7401_v46 = vmul.f32 %v13539_v20, %v7364_v26  ;;  %v7437_v25 = vadd.f32 %v13557_v60, %v7400_v63  ;;  %v7462_v50 = vpack.c.bf16 %v7440_v62, %v7439_v55  ;;  %v7338_v10 = vsub.f32 %v13080_v2, %v13743_v53 }
 0x94b   : > { %9320 = vrsqrt.f32 %v7271_v22  ;;  %v7272_v17 = vadd.f32 1e-05, %v7240_v27  ;;  %v13806_v54 = vmul.f32 0.03125, %v6982_v14  ;;  %v7213_v18 = vmul.f32 %v13801_v15, %v13801_v15  ;;  %v13835_v27 = vld [vmem:[%s13660_s23 + $0xd8] sm:$0xff] }
 0x94c   : > { %v6973_v35 = vpop.xlane.xlu0 %6972  ;;  %v7438_v11 = vadd.f32 %v13557_v60, %v7401_v46  ;;  %v7337_v41 = vsub.f32 %v13073_v0, %v13736_v33  ;;  %v7335_v22 = vsub.f32 %v13078_v48, %v13745_v47  ;;  %v2984_v0 = vld [vmem:[%s13660_s23 + $0x80] sm:$0xff] }
 0x94d   : > { %9322 = vrsqrt.f32 %v7272_v17  ;;  %3703 = vperm.xlu0 %8916, %v13797_v51   ;;  %v13808_v39 = vmul.f32 0.03125, %v6973_v35  ;;  %v7214_v19 = vmul.f32 %v13806_v54, %v13806_v54  ;;  %v7336_v35 = vsub.f32 %v13084_v34, %v13760_v57 }
 0x94e   : > { %v6976_v38 = vpop.xlane.xlu1 %6975  ;;  %3648 = vperm.xlu1 %8917, %v2980_v24   ;;  %v7461_v58 = vpack.c.bf16 %v7438_v11, %v7437_v25 }
 0x94f   : > { %v13823_v40 = vmul.f32 0.03125, %v6976_v38  ;;  %v7211_v2 = vmul.f32 %v13808_v39, %v13808_v39 }
 0x950   : > { %8759 = vmatprep.mubr.msk.bf16.mxu1 %vm497_vm0, %v7461_v58  ;;  %v7139_v5 = vpop.xlane.xlu0 %7138 }
 0x951   : > { %v7181_v56 = vmul.f32 0.03125, %v7139_v5  ;;  %3713 = vperm.xlu0 %8916, %v13812_v23   ;;  %8760 = vmatmul.mubr.msk.bf16.gmra.mrb[96].mxu1 %vm497_vm0, %v7462_v50  ;;  %v9317_v29 = vpop.eup %9316  ;;  %v7212_v48 = vmul.f32 %v13823_v40, %v13823_v40  ;;  %v13845_v5 = vld [vmem:[%s13660_s23 + $0xe8] sm:$0xff] }
 0x952   : > { %v7142_v7 = vpop.xlane.xlu1 %7141  ;;  %3658 = vperm.xlu1 %8917, %v13819_v36   ;;  %v7369_v33 = vmul.f32 %v9317_v29, %v7337_v41  ;;  %v2986_v29 = vld [vmem:[%s13660_s23 + $0x90] sm:$0xff] }
 0x953   : > { %v9319_v42 = vpop.eup %9318  ;;  %v7245_v26 = vsub.f32 %v7181_v56, %v7213_v18  ;;  %v7182_v63 = vmul.f32 0.03125, %v7142_v7 }
 0x954   : > { %v7133_v53 = vpop.xlane.xlu0 %7132  ;;  %v7370_v8 = vmul.f32 %v9319_v42, %v7338_v10  ;;  %v7406_v10 = vmul.f32 %v13539_v20, %v7369_v33 }
 0x955   : > { %v9321_v14 = vpop.eup %9320  ;;  %v7277_v46 = vadd.f32 1e-05, %v7245_v26  ;;  %v7246_v17 = vsub.f32 %v7182_v63, %v7214_v19  ;;  %v7179_v62 = vmul.f32 0.03125, %v7133_v53  ;;  %3723 = vperm.xlu0 %8916, %v13835_v27   ;;  %v13854_v63 = vld [vmem:[%s13660_s23 + $0xf8] sm:$0xff] }
 0x956   : > { %v7136_v47 = vpop.xlane.xlu1 %7135  ;;  %3668 = vperm.xlu1 %8917, %v2984_v0   ;;  %v7367_v25 = vmul.f32 %v9321_v14, %v7335_v22  ;;  %v7407_v58 = vmul.f32 %v13539_v20, %v7370_v8  ;;  %15678 = vst [vmem:[#allocation31_spill] sm:$0xff] %v13854_v63  ;;  %v13862_v8 = vld [vmem:[%s13660_s23 + $0xa0] sm:$0xff]  ;;  %v7443_v14 = vadd.f32 %v13557_v60, %v7406_v10 }
 0x957   : > { %v9323_v11 = vpop.eup %9322  ;;  %v7278_v24 = vadd.f32 1e-05, %v7246_v17  ;;  %v7243_v55 = vsub.f32 %v7179_v62, %v7211_v2  ;;  %v7180_v38 = vmul.f32 0.03125, %v7136_v47  ;;  %9324 = vrsqrt.f32 %v7277_v46  ;;  %v13873_v47 = vld [vmem:[%s13660_s23 + $0xb0] sm:$0xff] }
 0x958   : > { %v6991_v50 = vpop.xlane.xlu0 %6990  ;;  %v7368_v18 = vmul.f32 %v9323_v11, %v7336_v35  ;;  %v7404_v34 = vmul.f32 %v13539_v20, %v7367_v25  ;;  %v7444_v19 = vadd.f32 %v13557_v60, %v7407_v58  ;;  %v7342_v11 = vsub.f32 %v13112_v52, %v13806_v54  ;;  %v13885_v54 = vld [vmem:[%s13660_s23 + $0xc0] sm:$0xff] }
 0x959   : > { %9326 = vrsqrt.f32 %v7278_v24  ;;  %v7275_v57 = vadd.f32 1e-05, %v7243_v55  ;;  %v7244_v56 = vsub.f32 %v7180_v38, %v7212_v48  ;;  %3733 = vperm.xlu0 %8916, %v13845_v5   ;;  %v15679_v38 = vld [vmem:[#allocation6_spill] sm:$0xff] }
 0x95a   : > { %v6994_v7 = vpop.xlane.xlu1 %6993  ;;  %3678 = vperm.xlu1 %8917, %v2986_v29   ;;  %v7405_v42 = vmul.f32 %v13539_v20, %v7368_v18  ;;  %v7441_v22 = vadd.f32 %v13557_v60, %v7404_v34  ;;  %v7464_v0 = vpack.c.bf16 %v7444_v19, %v7443_v14  ;;  %v7341_v58 = vsub.f32 %v15679_v38, %v13801_v15 }
 0x95b   : > { %9328 = vrsqrt.f32 %v7275_v57  ;;  %v7276_v41 = vadd.f32 1e-05, %v7244_v56  ;;  %v15680_v56 = vld [vmem:[#allocation7_spill] sm:$0xff] }
 0x95c   : > { %v6985_v26 = vpop.xlane.xlu0 %6984  ;;  %v7442_v2 = vadd.f32 %v13557_v60, %v7405_v42  ;;  %v7339_v29 = vsub.f32 %v15680_v56, %v13808_v39 }
 0x95d   : > { %9330 = vrsqrt.f32 %v7276_v41  ;;  %v13858_v53 = vmul.f32 0.03125, %v6985_v26  ;;  %3743 = vperm.xlu0 %8916, %v13854_v63  }
 0x95e   : > { %v6988_v46 = vpop.xlane.xlu1 %6987  ;;  %3688 = vperm.xlu1 %8917, %v13862_v8   ;;  %v7463_v17 = vpack.c.bf16 %v7442_v2, %v7441_v22  ;;  %v15681_v22 = vld [vmem:[#allocation8_spill] sm:$0xff] }
 0x95f   : > { %v13866_v62 = vmul.f32 0.03125, %v6988_v46  ;;  %v7215_v35 = vmul.f32 %v13858_v53, %v13858_v53  ;;  %v7340_v15 = vsub.f32 %v15681_v22, %v13823_v40  ;;  %v13897_v40 = vld [vmem:[%s13660_s23 + $0xd0] sm:$0xff] }
 0x960   : > { %8763 = vmatprep.mubr.msk.bf16.mxu1 %vm497_vm0, %v7463_v17  ;;  %v7145_v33 = vpop.xlane.xlu0 %7144  ;;  %v13890_v17 = vmul.f32 0.03125, %v6991_v50 }
 0x961   : > { %v7183_v48 = vmul.f32 0.03125, %v7145_v33  ;;  %8764 = vmatmul.mubr.msk.bf16.gmra.mrb[100].mxu1 %vm497_vm0, %v7464_v0  ;;  %v9325_v25 = vpop.eup %9324  ;;  %v7216_v18 = vmul.f32 %v13866_v62, %v13866_v62 }
 0x962   : > { %v7148_v24 = vpop.xlane.xlu1 %7147  ;;  %3698 = vperm.xlu1 %8917, %v13873_v47   ;;  %v7373_v26 = vmul.f32 %v9325_v25, %v7341_v58  ;;  %v7217_v38 = vmul.f32 %v13890_v17, %v13890_v17 }
 0x963   : > { %v9327_v55 = vpop.eup %9326  ;;  %v7247_v34 = vsub.f32 %v7183_v48, %v7215_v35  ;;  %v7184_v57 = vmul.f32 0.03125, %v7148_v24  ;;  %v13900_v24 = vmul.f32 0.03125, %v6994_v7 }
 0x964   : > { %v7151_v10 = vpop.xlane.xlu0 %7150  ;;  %v7374_v42 = vmul.f32 %v9327_v55, %v7342_v11  ;;  %v7410_v11 = vmul.f32 %v13539_v20, %v7373_v26 }
 0x965   : > { %v9329_v41 = vpop.eup %9328  ;;  %v7279_v19 = vadd.f32 1e-05, %v7247_v34  ;;  %v7248_v52 = vsub.f32 %v7184_v57, %v7216_v18  ;;  %v7185_v25 = vmul.f32 0.03125, %v7151_v10 }
 0x966   : > { %v7154_v2 = vpop.xlane.xlu1 %7153  ;;  %3708 = vperm.xlu1 %8917, %v13885_v54   ;;  %v7371_v14 = vmul.f32 %v9329_v41, %v7339_v29  ;;  %v7411_v0 = vmul.f32 %v13539_v20, %v7374_v42  ;;  %v13914_v29 = vld [vmem:[%s13660_s23 + $0xe0] sm:$0xff]  ;;  %v7447_v10 = vadd.f32 %v13557_v60, %v7410_v11  ;;  %v7218_v42 = vmul.f32 %v13900_v24, %v13900_v24 }
 0x967   : > { %v9331_v46 = vpop.eup %9330  ;;  %v7280_v39 = vadd.f32 1e-05, %v7248_v52  ;;  %9332 = vrsqrt.f32 %v7279_v19  ;;  %v7186_v18 = vmul.f32 0.03125, %v7154_v2  ;;  %v7249_v56 = vsub.f32 %v7185_v25, %v7217_v38  ;;  %v13927_v2 = vld [vmem:[%s13660_s23 + $0xf0] sm:$0xff]  ;;  %v15684_v11 = vld [vmem:[#allocation10_spill] sm:$0xff] }
 0x968   : > { %v13893_v33 = vpop.xlane.xlu0 %3075  ;;  %v7372_v35 = vmul.f32 %v9331_v46, %v7340_v15  ;;  %v7408_v48 = vmul.f32 %v13539_v20, %v7371_v14  ;;  %v7448_v58 = vadd.f32 %v13557_v60, %v7411_v0  ;;  %v15682_v46 = vld [vmem:[#allocation15_spill] sm:$0xff]  ;;  %v15685_v38 = vld [vmem:[#allocation12_spill] sm:$0xff] }
 0x969   : > { %9334 = vrsqrt.f32 %v7280_v39  ;;  %v7250_v26 = vsub.f32 %v7186_v18, %v7218_v42  ;;  %v7281_v15 = vadd.f32 1e-05, %v7249_v56  ;;  %v7344_v39 = vsub.f32 %v15682_v46, %v13866_v62  ;;  %v15687_v56 = vld [vmem:[#allocation14_spill] sm:$0xff]  ;;  %v15688_v42 = vld [vmem:[#allocation17_spill] sm:$0xff] }
 0x96a   : > { %v13902_v50 = vpop.xlane.xlu1 %3078  ;;  %3718 = vperm.xlu1 %8917, %v13897_v40   ;;  %v7409_v55 = vmul.f32 %v13539_v20, %v7372_v35  ;;  %v7445_v57 = vadd.f32 %v13557_v60, %v7408_v48  ;;  %v7466_v52 = vpack.c.bf16 %v7448_v58, %v7447_v10  ;;  %v15683_v48 = vld [vmem:[#allocation16_spill] sm:$0xff]  ;;  %vm3002_vm5 = vcmp.le.s32.totalorder %v15685_v38, 5  ;;  %v15686_v58 = vld [vmem:[#allocation13_spill] sm:$0xff]  ;;  %v15690_v46 = vld [vmem:[#allocation50_spill] sm:$0xff] }
 0x96b   : > { %v3459_v25 = vadd.f32 %v13664_v59, %v15683_v48  ;;  %v3458_v18 = vadd.f32 %v13671_v61, %v15686_v58  ;;  %v3460_v10 = vadd.f32 %v13679_v4, %v15687_v56  ;;  %9336 = vrsqrt.f32 %v7281_v15 }
 0x96c   : > { %v13909_v34 = vpop.xlane.xlu0 %3081  ;;  %v7446_v7 = vadd.f32 %v13557_v60, %v7409_v55  ;;  %v7343_v55 = vsub.f32 %v15684_v11, %v13858_v53  ;;  %v3463_v11 = vadd.f32 %v13727_v28, %v15690_v46  ;;  %v3464_v61 = vadd.f32 %v13739_v1, %v15691_v31 }
 0x96d   : > { %9338 = vrsqrt.f32 %v13893_v33  ;;  %v13959_v4 = vsel %vm3002_vm5, %v3459_v25, %v15683_v48  ;;  %vm3172_vm6 = vcmp.eq.f32.partialorder %v13893_v33, inf  ;;  %vm3174_vm7 = vcmp.eq.f32.partialorder %v13893_v33, 0.0 }
 0x96e   : > { %v13919_v41 = vpop.xlane.xlu1 %3084  ;;  %3728 = vperm.xlu1 %8917, %v13914_v29   ;;  %v7465_v19 = vpack.c.bf16 %v7446_v7, %v7445_v57  ;;  %v7282_v57 = vadd.f32 1e-05, %v7250_v26  ;;  %15693 = vst [vmem:[#allocation34_spill] sm:$0xff] %v13959_v4  ;;  %v15721_v4 = vld [vmem:[#allocation27_spill] sm:$0xff]  ;;  %vm3179_vm8 = vcmp.eq.f32.partialorder %v13902_v50, inf  ;;  %vm3181_vm9 = vcmp.eq.f32.partialorder %v13902_v50, 0.0 }
 0x96f   : > { %vm3186_vm10 = vcmp.eq.f32.partialorder %v13909_v34, inf  ;;  %vm3188_vm11 = vcmp.eq.f32.partialorder %v13909_v34, 0.0  ;;  %vm3193_vm12 = vcmp.eq.f32.partialorder %v13919_v41, inf  ;;  %vm3195_vm13 = vcmp.eq.f32.partialorder %v13919_v41, 0.0 }
 0x970   : > { %8767 = vmatprep.mubr.msk.bf16.mxu1 %vm497_vm0, %v7465_v19  ;;  %v13923_v22 = vpop.xlane.xlu0 %3087  ;;  %v3461_v19 = vadd.f32 %v13696_v3, %v15688_v42  ;;  %v15694_v3 = vld [vmem:[#allocation49_spill] sm:$0xff]  ;;  %9340 = vrsqrt.f32 %v7282_v57  ;;  %v13998_v57 = vsel %vm3002_vm5, %v3463_v11, %v15690_v46 }
 0x971   : > { %8768 = vmatmul.mubr.msk.bf16.gmra.mrb[104].mxu1 %vm497_vm0, %v7466_v52  ;;  %v9333_v14 = vpop.eup %9332  ;;  %v15689_v52 = vld [vmem:[#allocation47_spill] sm:$0xff]  ;;  %v3465_v15 = vadd.f32 %v13756_v21, %v15694_v3  ;;  %15702 = vst [vmem:[#allocation38_spill] sm:$0xff] %v13998_v57  ;;  %9342 = vrsqrt.f32 %v13902_v50  ;;  %v15717_v57 = vld [vmem:[#allocation21_spill] sm:$0xff]  ;;  %vm3200_vm14 = vcmp.eq.f32.partialorder %v13923_v22, inf  ;;  %vm3202_vm15 = vcmp.eq.f32.partialorder %v13923_v22, 0.0 }
 0x972   : > { %v13931_v0 = vpop.xlane.xlu1 %3090  ;;  %3738 = vperm.xlu1 %8917, %v13927_v2   ;;  %v7375_v59 = vmul.f32 %v9333_v14, %v7343_v55  ;;  %v3462_v53 = vadd.f32 %v13716_v37, %v15689_v52  ;;  %v15695_v14 = vld [vmem:[#allocation51_spill] sm:$0xff]  ;;  %v13977_v21 = vsel %vm3002_vm5, %v3461_v19, %v15688_v42  ;;  %9344 = vrsqrt.f32 %v13909_v34 }
 0x973   : > { %v9335_v35 = vpop.eup %9334  ;;  %v3468_v37 = vadd.f32 %v13790_v9, %v15695_v14  ;;  %15699 = vst [vmem:[#allocation33_spill] sm:$0xff] %v13977_v21  ;;  %9346 = vrsqrt.f32 %v13919_v41  ;;  %v3482_v21 = vadd.f32 %v13885_v54, %v15721_v4  ;;  %vm3209_vm1 = vcmp.eq.f32.partialorder %v13931_v0, 0.0 }
 0x974   : > { %v13941_v7 = vpop.xlane.xlu0 %3093  ;;  %v7376_v62 = vmul.f32 %v9335_v35, %v7344_v39  ;;  %v15696_v39 = vld [vmem:[#allocation54_spill] sm:$0xff]  ;;  %v15697_v35 = vld [vmem:[#allocation53_spill] sm:$0xff]  ;;  %v7412_v9 = vmul.f32 %v13539_v20, %v7375_v59  ;;  %9348 = vrsqrt.f32 %v13923_v22 }
 0x975   : > { %v3467_v1 = vadd.f32 %v13689_v43, %v15696_v39  ;;  %v3469_v55 = vadd.f32 %v13712_v45, %v15697_v35  ;;  %v13983_v43 = vsel %vm3002_vm5, %v3460_v10, %v15687_v56  ;;  %v13988_v45 = vsel %vm3002_vm5, %v3458_v18, %v15686_v58 }
 0x976   : > { %v13954_v26 = vpop.xlane.xlu1 %3096  ;;  %v7413_v28 = vmul.f32 %v13539_v20, %v7376_v62  ;;  %15700 = vst [vmem:[#allocation35_spill] sm:$0xff] %v13988_v45  ;;  %v14003_v20 = vsel %vm3002_vm5, %v3464_v61, %v15691_v31  ;;  %v14011_v18 = vsel %vm3002_vm5, %v3465_v15, %v15694_v3  ;;  %v14016_v10 = vsel %vm3002_vm5, %v3468_v37, %v15695_v14  ;;  %v15709_v61 = vld [vmem:[#allocation55_spill] sm:$0xff] }
 0x977   : > { %15692 = vst [vmem:[#allocation32_spill] sm:$0xff] %v13954_v26  ;;  %v15698_v26 = vld [vmem:[#allocation52_spill] sm:$0xff]  ;;  %15703 = vst [vmem:[#allocation37_spill] sm:$0xff] %v14003_v20  ;;  %v14023_v59 = vsel %vm3002_vm5, %v3467_v1, %v15696_v39  ;;  %v14037_v15 = vadd.f32 %v13819_v36, %v15709_v61  ;;  %v15715_v36 = vld [vmem:[#allocation18_spill] sm:$0xff]  ;;  %9350 = vrsqrt.f32 %v13931_v0  ;;  %vm3214_vm2 = vcmp.eq.f32.partialorder %v13941_v7, inf }
 0x978   : > { %v3466_v63 = vadd.f32 %v13776_v12, %v15698_v26  ;;  %v13972_v25 = vpop.xlane.xlu0 %3099  ;;  %v13993_v12 = vsel %vm3002_vm5, %v3462_v53, %v15689_v52  ;;  %15704 = vst [vmem:[#allocation39_spill] sm:$0xff] %v14011_v18  ;;  %15705 = vst [vmem:[#allocation40_spill] sm:$0xff] %v14016_v10  ;;  %v7450_v19 = vadd.f32 %v13557_v60, %v7413_v28  ;;  %v15711_v28 = vld [vmem:[#allocation19_spill] sm:$0xff]  ;;  %v15718_v18 = vld [vmem:[#allocation24_spill] sm:$0xff]  ;;  %9352 = vrsqrt.f32 %v13941_v7 }
 0x979   : > { %15701 = vst [vmem:[#allocation36_spill] sm:$0xff] %v13993_v12  ;;  %15706 = vst [vmem:[#allocation43_spill] sm:$0xff] %v14023_v59  ;;  %v14028_v53 = vsel %vm3002_vm5, %v3469_v55, %v15697_v35  ;;  %v3475_v1 = vadd.f32 %v13749_v30, %v15711_v28  ;;  %v15712_v59 = vld [vmem:[#allocation61_spill] sm:$0xff]  ;;  %v7449_v55 = vadd.f32 %v13557_v60, %v7412_v9  ;;  %v9337_v30 = vpop.eup %9336  ;;  %v15720_v20 = vld [vmem:[#allocation11_spill] sm:$0xff] }
 0x97a   : > { %v14006_v62 = vpop.xlane.xlu1 %3102  ;;  %15707 = vst [vmem:[#allocation41_spill] sm:$0xff] %v14028_v53  ;;  %v14033_v11 = vsel %vm3002_vm5, %v3466_v63, %v15698_v26  ;;  %15710 = vst [vmem:[#allocation45_spill] sm:$0xff] %v14037_v15  ;;  %v3477_v10 = vadd.f32 %v13772_v16, %v15712_v59  ;;  %v15713_v53 = vld [vmem:[#allocation20_spill] sm:$0xff]  ;;  %v3480_v15 = vadd.f32 %v13873_v47, %v15715_v36  ;;  %v15716_v26 = vld [vmem:[#allocation22_spill] sm:$0xff]  ;;  %v9339_v9 = vpop.eup %9338 }
 0x97b   : > { %15708 = vst [vmem:[#allocation42_spill] sm:$0xff] %v14033_v11  ;;  %v3481_v63 = vadd.f32 %v13797_v51, %v15713_v53  ;;  %v15714_v11 = vld [vmem:[#allocation23_spill] sm:$0xff]  ;;  %v3479_v16 = vadd.f32 %v13785_v6, %v15716_v26  ;;  %v3484_v60 = vadd.f32 %v13897_v40, %v15717_v57  ;;  %v7467_v51 = vpack.c.bf16 %v7450_v19, %v7449_v55  ;;  %v15719_v12 = vld [vmem:[#allocation25_spill] sm:$0xff]  ;;  %v9341_v54 = vpop.eup %9340 }
 0x97c   : > { %v14039_v37 = vpop.xlane.xlu0 %3105  ;;  %v3478_v14 = vadd.f32 %v13862_v8, %v15714_v11  ;;  %v3483_v8 = vadd.f32 %v13812_v23, %v15718_v18  ;;  %v3485_v47 = vadd.f32 %v13835_v27, %v15719_v12  ;;  %v7345_v45 = vsub.f32 %v15720_v20, %v13890_v17  ;;  %v15728_v55 = vld [vmem:[#allocation9_spill] sm:$0xff] }
 0x97d   : > { %v14074_v40 = vsel %vm3002_vm5, %v3475_v1, %v15711_v28  ;;  %v14079_v23 = vsel %vm3002_vm5, %v3477_v10, %v15712_v59  ;;  %v3488_v27 = vadd.f32 %v13927_v2, %v13513_v49  ;;  %8771 = vmatprep.mubr.msk.bf16.mxu1 %vm497_vm0, %v7467_v51  ;;  %v14088_v17 = vsel %vm3002_vm5, %v3481_v63, %v15713_v53 }
 0x97e   : > { %v14054_v61 = vpop.xlane.xlu1 %3108  ;;  %15722 = vst [vmem:[#allocation44_spill] sm:$0xff] %v14074_v40  ;;  %15723 = vst [vmem:[#allocation2_spill] sm:$0xff] %v14079_v23  ;;  %v14093_v20 = vsel %vm3002_vm5, %v3478_v14, %v15714_v11  ;;  %v14098_v10 = vsel %vm3002_vm5, %v3480_v15, %v15715_v36  ;;  %v7377_v2 = vmul.f32 %v9337_v30, %v7345_v45  ;;  %v9343_v15 = vpop.eup %9342 }
 0x97f   : > { %15724 = vst [vmem:[#allocation3_spill] sm:$0xff] %v14088_v17  ;;  %15725 = vst [vmem:[#allocation4_spill] sm:$0xff] %v14093_v20  ;;  %v14105_v1 = vsel %vm3002_vm5, %v3479_v16, %v15716_v26  ;;  %v7346_v63 = vsub.f32 %v15728_v55, %v13900_v24  ;;  %v3171_v51 = vmul.f32 %v9339_v9, %v13893_v33  ;;  %v9345_v9 = vpop.eup %9344  ;;  %v15733_v55 = vld [vmem:[#allocation31_spill] sm:$0xff] }
 0x980   : > { %v14069_v6 = vpop.xlane.xlu0 %3111  ;;  %15726 = vst [vmem:[#allocation5_spill] sm:$0xff] %v14098_v10  ;;  %15727 = vst [vmem:[#allocation6_spill] sm:$0xff] %v14105_v1  ;;  %v14113_v14 = vsel %vm3002_vm5, %v3484_v60, %v15717_v57  ;;  %v14118_v45 = vsel %vm3002_vm5, %v3483_v8, %v15718_v18  ;;  %v14123_v30 = vsel %vm3002_vm5, %v3485_v47, %v15719_v12 }
 0x981   : > { %15729 = vst [vmem:[#allocation7_spill] sm:$0xff] %v14113_v14  ;;  %15730 = vst [vmem:[#allocation8_spill] sm:$0xff] %v14118_v45  ;;  %v14128_v24 = vsel %vm3002_vm5, %v3482_v21, %v15721_v4  ;;  %v14132_v16 = vadd.f32 %v13914_v29, %v13532_v44  ;;  %v14138_v8 = vadd.f32 %v13845_v5, %v13545_v13  ;;  %v15735_v29 = vld [vmem:[#allocation32_spill] sm:$0xff] }
 0x982   : > { %v14100_v19 = vpop.xlane.xlu1 %3114  ;;  %15731 = vst [vmem:[#allocation15_spill] sm:$0xff] %v14123_v30  ;;  %15732 = vst [vmem:[#allocation16_spill] sm:$0xff] %v14128_v24  ;;  %v14142_v47 = vadd.f32 %v15733_v55, %v13550_v32  ;;  %v14147_v21 = vsel %vm3002_vm5, %v3488_v27, %v13513_v49  ;;  %v7378_v45 = vmul.f32 %v9341_v54, %v7346_v63  ;;  %9354 = vrsqrt.f32 %v15735_v29  ;;  %v9502_v5 = vld [vmem:[%s15257_s4 + $0x12] ss:$0 sm:$0xff]  ;;  %v9347_v55 = vpop.eup %9346 }
 0x983   : > { %15734 = vst [vmem:[#allocation10_spill] sm:$0xff] %v14147_v21  ;;  %v7414_v30 = vmul.f32 %v9502_v5, %v7377_v2  ;;  %v3173_v14 = vsel %vm3172_vm6, %v13893_v33, %v3171_v51  ;;  %v3178_v27 = vmul.f32 %v9343_v15, %v13902_v50  ;;  %9356 = vrsqrt.f32 %v13972_v25  ;;  %v9349_v63 = vpop.eup %9348  ;;  %v9503_v15 = vld [vmem:[%s15257_s4 + $0x13] ss:$0 sm:$0xff] }
 0x984   : > { %v14134_v60 = vpop.xlane.xlu0 %3117  ;;  %v7415_v54 = vmul.f32 %v9502_v5, %v7378_v45  ;;  %v3175_v21 = vand.u32 2147483648, %v13893_v33  ;;  %v3185_v49 = vmul.f32 %v9345_v9, %v13909_v34  ;;  %9358 = vrsqrt.f32 %v14006_v62  ;;  %v9351_v1 = vpop.eup %9350 }
 0x985   : > { %v3182_v51 = vand.u32 2147483648, %v13902_v50  ;;  %v7451_v45 = vadd.f32 %v9503_v15, %v7414_v30  ;;  %v3192_v9 = vmul.f32 %v9347_v55, %v13919_v41  ;;  %v9353_v4 = vpop.eup %9352  ;;  %v3180_v20 = vsel %vm3179_vm8, %v13902_v50, %v3178_v27 }
 0x986   : > { %v14155_v24 = vpop.xlane.xlu1 %3120  ;;  %v7452_v5 = vadd.f32 %v9503_v15, %v7415_v54  ;;  %v3176_v57 = vsel %vm3174_vm7, %v3175_v21, %v3173_v14  ;;  %v3199_v10 = vmul.f32 %v9349_v63, %v13923_v22  ;;  %9360 = vrsqrt.f32 %v14039_v37 }
 0x987   : > { %v3187_v33 = vsel %vm3186_vm10, %v13909_v34, %v3185_v49  ;;  %v3189_v14 = vand.u32 2147483648, %v13909_v34  ;;  %v3206_v21 = vmul.f32 %v9351_v1, %v13931_v0  ;;  %v3394_v54 = vmax.f32 %v3176_v57, 1e-12 }
 0x988   : > { %v14164_v2 = vpop.xlane.xlu0 %3123  ;;  %v7468_v30 = vpack.c.bf16 %v7452_v5, %v7451_v45  ;;  %v3196_v27 = vand.u32 2147483648, %v13919_v41  ;;  %v3183_v49 = vsel %vm3181_vm9, %v3182_v51, %v3180_v20  ;;  %v3194_v63 = vsel %vm3193_vm12, %v13919_v41, %v3192_v9 }
 0x989   : > { %15736 = vst [vmem:[#allocation12_spill] sm:$0xff] %v14164_v2  ;;  %v3213_v15 = vmul.f32 %v9353_v4, %v13941_v7  ;;  %9362 = vrsqrt.f32 %v14054_v61  ;;  %v3190_v57 = vsel %vm3188_vm11, %v3189_v14, %v3187_v33  ;;  %v3201_v45 = vsel %vm3200_vm14, %v13923_v22, %v3199_v10 }
 0x98a   : > { %v14176_v17 = vpop.xlane.xlu1 %3126  ;;  %8772 = vmatmul.mubr.msk.bf16.gmra.mrb[108].mxu1 %vm497_vm0, %v7468_v30  ;;  %vm3207_vm0 = vcmp.eq.f32.partialorder %v13931_v0, inf  ;;  %v3203_v50 = vand.u32 2147483648, %v13923_v22  ;;  %v3210_v4 = vand.u32 2147483648, %v13931_v0  ;;  %v3395_v34 = vmax.f32 %v3183_v49, 1e-12 }
 0x98b   : > { %v3208_v20 = vsel %vm3207_vm0, %v13931_v0, %v3206_v21  ;;  %v3197_v10 = vsel %vm3195_vm13, %v3196_v27, %v3194_v63  ;;  %vm3216_vm6 = vcmp.eq.f32.partialorder %v13941_v7, 0.0  ;;  %9364 = vrcp.f32 %v3394_v54 }
 0x98c   : > { %v14187_v55 = vpop.xlane.xlu0 %3129  ;;  %v9355_v5 = vpop.eup %9354  ;;  %v3396_v33 = vmax.f32 %v3190_v57, 1e-12  ;;  %v3204_v14 = vsel %vm3202_vm15, %v3203_v50, %v3201_v45  ;;  %v3215_v21 = vsel %vm3214_vm2, %v13941_v7, %v3213_v15  ;;  %v3211_v36 = vsel %vm3209_vm1, %v3210_v4, %v3208_v20 }
 0x98d   : > { %15737 = vst [vmem:[#allocation13_spill] sm:$0xff] %v14187_v55  ;;  %v9357_v9 = vpop.eup %9356  ;;  %v3217_v49 = vand.u32 2147483648, %v13941_v7  ;;  %v3220_v41 = vmul.f32 %v9355_v5, %v15735_v29  ;;  %9366 = vrsqrt.f32 %v14069_v6  ;;  %v3397_v27 = vmax.f32 %v3197_v10, 1e-12 }
 0x98e   : > { %v14198_v1 = vpop.xlane.xlu1 %3132  ;;  %v9359_v30 = vpop.eup %9358  ;;  %vm3221_vm7 = vcmp.eq.f32.partialorder %v15735_v29, inf  ;;  %v3227_v54 = vmul.f32 %v9357_v9, %v13972_v25  ;;  %9368 = vrsqrt.f32 %v14100_v19  ;;  %v3398_v15 = vmax.f32 %v3204_v14, 1e-12 }
 0x98f   : > { %9370 = vrcp.f32 %v3395_v34  ;;  %v3218_v57 = vsel %vm3216_vm6, %v3217_v49, %v3215_v21  ;;  %v3234_v45 = vmul.f32 %v9359_v30, %v14006_v62  ;;  %v3399_v5 = vmax.f32 %v3211_v36, 1e-12 }
 0x990   : > { %v14209_v51 = vpop.xlane.xlu0 %3135  ;;  %v9361_v63 = vpop.eup %9360  ;;  %9372 = vrcp.f32 %v3396_v33  ;;  %vm3223_vm8 = vcmp.eq.f32.partialorder %v15735_v29, 0.0  ;;  %v3224_v50 = vand.u32 2147483648, %v15735_v29  ;;  %v3222_v4 = vsel %vm3221_vm7, %v15735_v29, %v3220_v41 }
 0x991   : > { %vm3228_vm9 = vcmp.eq.f32.partialorder %v13972_v25, inf  ;;  %vm3235_vm10 = vcmp.eq.f32.partialorder %v14006_v62, inf  ;;  %9374 = vrsqrt.f32 %v14134_v60  ;;  %v3400_v9 = vmax.f32 %v3218_v57, 1e-12 }
 0x992   : > { %v14218_v0 = vpop.xlane.xlu1 %3138  ;;  %9376 = vrcp.f32 %v3397_v27  ;;  %v3229_v34 = vsel %vm3228_vm9, %v13972_v25, %v3227_v54  ;;  %v3241_v36 = vmul.f32 %v9361_v63, %v14039_v37  ;;  %vm3230_vm11 = vcmp.eq.f32.partialorder %v13972_v25, 0.0 }
 0x993   : > { %v9363_v7 = vpop.eup %9362  ;;  %9378 = vrcp.f32 %v3398_v15  ;;  %v3231_v30 = vand.u32 2147483648, %v13972_v25  ;;  %v3236_v33 = vsel %vm3235_vm10, %v14006_v62, %v3234_v45  ;;  %v3225_v14 = vsel %vm3223_vm8, %v3224_v50, %v3222_v4 }
 0x994   : > { %v14226_v22 = vpop.xlane.xlu0 %3141  ;;  %9380 = vrcp.f32 %v3399_v5  ;;  %vm3237_vm12 = vcmp.eq.f32.partialorder %v14006_v62, 0.0  ;;  %v3238_v21 = vand.u32 2147483648, %v14006_v62  ;;  %vm3242_vm13 = vcmp.eq.f32.partialorder %v14039_v37, inf }
 0x995   : > { %v3232_v41 = vsel %vm3230_vm11, %v3231_v30, %v3229_v34  ;;  %v3248_v27 = vmul.f32 %v9363_v7, %v14054_v61  ;;  %9382 = vrsqrt.f32 %v14155_v24  ;;  %v14255_v25 = vpop.eup %9364  ;;  %v14261_v29 = vsel %vm3002_vm5, %v14142_v47, %v13550_v32 }
 0x996   : > { %v14233_v20 = vpop.xlane.xlu1 %3144  ;;  %15738 = vst [vmem:[#allocation14_spill] sm:$0xff] %v14261_v29  ;;  %9384 = vrcp.f32 %v3400_v9  ;;  %v3239_v54 = vsel %vm3237_vm12, %v3238_v21, %v3236_v33  ;;  %v3243_v62 = vsel %vm3242_vm13, %v14039_v37, %v3241_v36  ;;  %v14270_v57 = vsel %vm3002_vm5, %v14132_v16, %v13532_v44 }
 0x997   : > { %v9367_v15 = vpop.eup %9366  ;;  %15739 = vst [vmem:[#allocation17_spill] sm:$0xff] %v14270_v57  ;;  %v3401_v45 = vmax.f32 %v3225_v14, 1e-12  ;;  %v3245_v5 = vand.u32 2147483648, %v14039_v37  ;;  %9386 = vrsqrt.f32 %v14176_v17  ;;  %v3402_v50 = vmax.f32 %v3232_v41, 1e-12 }
 0x998   : > { %v14241_v10 = vpop.xlane.xlu0 %3147  ;;  %v9369_v47 = vpop.eup %9368  ;;  %vm3244_vm14 = vcmp.eq.f32.partialorder %v14039_v37, 0.0  ;;  %vm3249_vm15 = vcmp.eq.f32.partialorder %v14054_v61, inf  ;;  %9388 = vrsqrt.f32 %v14198_v1  ;;  %v3403_v9 = vmax.f32 %v3239_v54, 1e-12 }
 0x999   : > { %v14279_v7 = vpop.eup %9370  ;;  %v3246_v16 = vsel %vm3244_vm14, %v3245_v5, %v3243_v62  ;;  %v3250_v34 = vsel %vm3249_vm15, %v14054_v61, %v3248_v27  ;;  %9390 = vrsqrt.f32 %v14209_v51  ;;  %v14289_v37 = vsel %vm3002_vm5, %v14138_v8, %v13545_v13 }
 0x99a   : > { %v14250_v49 = vpop.xlane.xlu1 %3150  ;;  %v14283_v36 = vpop.eup %9372  ;;  %15740 = vst [vmem:[#allocation47_spill] sm:$0xff] %v14289_v37  ;;  %v3252_v30 = vand.u32 2147483648, %v14054_v61  ;;  %v3255_v33 = vmul.f32 %v9367_v15, %v14069_v6  ;;  %9392 = vrsqrt.f32 %v14218_v0  ;;  %vm3251_vm0 = vcmp.eq.f32.partialorder %v14054_v61, 0.0 }
 0x99b   : > { %v9375_v14 = vpop.eup %9374  ;;  %9394 = vrcp.f32 %v3401_v45  ;;  %vm3256_vm1 = vcmp.eq.f32.partialorder %v14069_v6, inf  ;;  %v3262_v21 = vmul.f32 %v9369_v47, %v14100_v19  ;;  %v3404_v27 = vmax.f32 %v3246_v16, 1e-12 }
 0x99c   : > { %v14264_v63 = vpop.xlane.xlu0 %3153  ;;  %v14297_v41 = vpop.eup %9376  ;;  %9396 = vrcp.f32 %v3402_v50  ;;  %v3253_v8 = vsel %vm3251_vm0, %v3252_v30, %v3250_v34  ;;  %vm3258_vm2 = vcmp.eq.f32.partialorder %v14069_v6, 0.0  ;;  %v3259_v61 = vand.u32 2147483648, %v14069_v6 }
 0x99d   : > { %v14304_v15 = vpop.eup %9378  ;;  %9398 = vrcp.f32 %v3403_v9  ;;  %vm3263_vm6 = vcmp.eq.f32.partialorder %v14100_v19, inf  ;;  %vm3265_vm7 = vcmp.eq.f32.partialorder %v14100_v19, 0.0  ;;  %v3257_v5 = vsel %vm3256_vm1, %v14069_v6, %v3255_v33 }
 0x99e   : > { %v14277_v4 = vpop.xlane.xlu1 %3156  ;;  %v14309_v45 = vpop.eup %9380  ;;  %v3266_v47 = vand.u32 2147483648, %v14100_v19  ;;  %v3269_v50 = vmul.f32 %v9375_v14, %v14134_v60  ;;  %9400 = vrsqrt.f32 %v14226_v22  ;;  %v3405_v34 = vmax.f32 %v3253_v8, 1e-12 }
 0x99f   : > { %v9383_v16 = vpop.eup %9382  ;;  %v3264_v9 = vsel %vm3263_vm6, %v14100_v19, %v3262_v21  ;;  %vm3270_vm8 = vcmp.eq.f32.partialorder %v14134_v60, inf  ;;  %9402 = vrsqrt.f32 %v14164_v2  ;;  %vm3272_vm9 = vcmp.eq.f32.partialorder %v14134_v60, 0.0 }
 0x9a0   : > { %v14300_v54 = vpop.xlane.xlu0 %3159  ;;  %v14318_v30 = vpop.eup %9384  ;;  %9404 = vrcp.f32 %v3404_v27  ;;  %v3273_v33 = vand.u32 2147483648, %v14134_v60  ;;  %vm3277_vm10 = vcmp.eq.f32.partialorder %v14155_v24, inf  ;;  %v3260_v8 = vsel %vm3258_vm2, %v3259_v61, %v3257_v5 }
 0x9a1   : > { %v9387_v37 = vpop.eup %9386  ;;  %vm3279_vm11 = vcmp.eq.f32.partialorder %v14155_v24, 0.0  ;;  %v3280_v21 = vand.u32 2147483648, %v14155_v24  ;;  %9406 = vrsqrt.f32 %v14187_v55  ;;  %v3267_v27 = vsel %vm3265_vm7, %v3266_v47, %v3264_v9 }
 0x9a2   : > { %v14302_v62 = vpop.xlane.xlu1 %3162  ;;  %v9389_v29 = vpop.eup %9388  ;;  %v3271_v57 = vsel %vm3270_vm8, %v14134_v60, %v3269_v50  ;;  %v3276_v44 = vmul.f32 %v9383_v16, %v14155_v24  ;;  %9408 = vrsqrt.f32 %v14233_v20  ;;  %vm3291_vm12 = vcmp.eq.f32.partialorder %v14176_v17, inf }
 0x9a3   : > { %v9391_v6 = vpop.eup %9390  ;;  %9410 = vrcp.f32 %v3405_v34  ;;  %vm3293_vm13 = vcmp.eq.f32.partialorder %v14176_v17, 0.0  ;;  %v3294_v61 = vand.u32 2147483648, %v14176_v17  ;;  %v3406_v23 = vmax.f32 %v3260_v8, 1e-12 }
 0x9a4   : > { %v14335_v40 = vpop.xlane.xlu0 %3165  ;;  %v9393_v5 = vpop.eup %9392  ;;  %v3290_v19 = vmul.f32 %v9387_v37, %v14176_v17  ;;  %vm3305_vm14 = vcmp.eq.f32.partialorder %v14198_v1, inf  ;;  %9412 = vrsqrt.f32 %v14241_v10  ;;  %v3407_v16 = vmax.f32 %v3267_v27, 1e-12 }
 0x9a5   : > { %v14345_v50 = vpop.eup %9394  ;;  %v3274_v34 = vsel %vm3272_vm9, %v3273_v33, %v3271_v57  ;;  %v3304_v9 = vmul.f32 %v9389_v29, %v14198_v1  ;;  %vm3307_vm15 = vcmp.eq.f32.partialorder %v14198_v1, 0.0  ;;  %v3278_v37 = vsel %vm3277_vm10, %v14155_v24, %v3276_v44 }
 0x9a6   : > { %v14323_v14 = vpop.xlane.xlu1 %3168  ;;  %v14351_v11 = vpop.eup %9396  ;;  %v3308_v8 = vand.u32 2147483648, %v14198_v1  ;;  %v3311_v32 = vmul.f32 %v9391_v6, %v14209_v51  ;;  %9414 = vrsqrt.f32 %v14250_v49  ;;  %vm3312_vm0 = vcmp.eq.f32.partialorder %v14209_v51, inf }
 0x9a7   : > { %15741 = vst [vmem:[#allocation50_spill] sm:$0xff] %v14351_v11  ;;  %v14361_v60 = vpop.eup %9398  ;;  %vm3314_vm1 = vcmp.eq.f32.partialorder %v14209_v51, 0.0  ;;  %v3315_v29 = vand.u32 2147483648, %v14209_v51  ;;  %v3318_v57 = vmul.f32 %v9393_v5, %v14218_v0  ;;  %9416 = vrcp.f32 %v3406_v23 }
 0x9a8   : > { %15742 = vst [vmem:[#allocation48_spill] sm:$0xff] %v14361_v60  ;;  %v9401_v33 = vpop.eup %9400  ;;  %v3408_v44 = vmax.f32 %v3274_v34, 1e-12  ;;  %v3292_v6 = vsel %vm3291_vm12, %v14176_v17, %v3290_v19  ;;  %vm3319_vm2 = vcmp.eq.f32.partialorder %v14218_v0, inf  ;;  %9418 = vrcp.f32 %v3407_v16 }
 0x9a9   : > { %v9403_v60 = vpop.eup %9402  ;;  %v3281_v12 = vsel %vm3279_vm11, %v3280_v21, %v3278_v37  ;;  %v3306_v5 = vsel %vm3305_vm14, %v14198_v1, %v3304_v9  ;;  %vm3321_vm6 = vcmp.eq.f32.partialorder %v14218_v0, 0.0  ;;  %v3313_v19 = vsel %vm3312_vm0, %v14209_v51, %v3311_v32 }
 0x9aa   : > { %v14343_v47 = vpop.permute.xlu1 %3593  ;;  %v14379_v23 = vpop.eup %9404  ;;  %v3322_v34 = vand.u32 2147483648, %v14218_v0  ;;  %vm3326_vm7 = vcmp.eq.f32.partialorder %v14226_v22, inf  ;;  %9420 = vrsqrt.f32 %v14264_v63  ;;  %v3295_v16 = vsel %vm3293_vm13, %v3294_v61, %v3292_v6 }
 0x9ab   : > { %15743 = vst [vmem:[#allocation49_spill] sm:$0xff] %v14379_v23  ;;  %v9407_v21 = vpop.eup %9406  ;;  %v3320_v9 = vsel %vm3319_vm2, %v14218_v0, %v3318_v57  ;;  %v3325_v37 = vmul.f32 %v9401_v33, %v14226_v22  ;;  %9422 = vrsqrt.f32 %v14277_v4  ;;  %v3409_v32 = vmax.f32 %v3281_v12, 1e-12 }
 0x9ac   : > { %v14359_v27 = vpop.permute.xlu0 %3588  ;;  %v9409_v18 = vpop.eup %9408  ;;  %9424 = vrcp.f32 %v3408_v44  ;;  %v14395_v53 = vmul.f32 %v9403_v60, %v14164_v2  ;;  %v3309_v11 = vsel %vm3307_vm15, %v3308_v8, %v3306_v5  ;;  %v3316_v17 = vsel %vm3314_vm1, %v3315_v29, %v3313_v19  ;;  %v9505_v2 = vld [vmem:[%s13660_s23] sm:$0xff] }
 0x9ad   : > { %v14401_v26 = vpop.eup %9410  ;;  %vm3328_vm8 = vcmp.eq.f32.partialorder %v14226_v22, 0.0  ;;  %v3329_v61 = vand.u32 2147483648, %v14226_v22  ;;  %9426 = vrsqrt.f32 %v14300_v54  ;;  %v3411_v57 = vmax.f32 %v3295_v16, 1e-12 }
 0x9ae   : > { %v14371_v13 = vpop.permute.xlu1 %3598  ;;  %15744 = vst [vmem:[#allocation54_spill] sm:$0xff] %v14395_v53  ;;  %v9413_v12 = vpop.eup %9412  ;;  %v3323_v60 = vsel %vm3321_vm6, %v3322_v34, %v3320_v9  ;;  %vm3333_vm9 = vcmp.eq.f32.partialorder %v14233_v20, inf  ;;  %9428 = vrsqrt.f32 %v14302_v62  ;;  %v14415_v51 = vmul.f32 %v9407_v21, %v14187_v55 }
 0x9af   : > { %v3413_v8 = vmax.f32 %v3309_v11, 1e-12  ;;  %v3327_v29 = vsel %vm3326_vm7, %v14226_v22, %v3325_v37  ;;  %v3332_v33 = vmul.f32 %v9409_v18, %v14233_v20  ;;  %9430 = vrcp.f32 %v3409_v32 }
 0x9b0   : > { %v14387_v24 = vpop.permute.xlu0 %3633  ;;  %15745 = vst [vmem:[#allocation53_spill] sm:$0xff] %v14415_v51  ;;  %v9415_v44 = vpop.eup %9414  ;;  %v3414_v0 = vmax.f32 %v3316_v17, 1e-12  ;;  %vm3335_vm10 = vcmp.eq.f32.partialorder %v14233_v20, 0.0  ;;  %v3336_v6 = vand.u32 2147483648, %v14233_v20  ;;  %v3339_v34 = vmul.f32 %v9413_v12, %v14241_v10 }
 0x9b1   : > { %v3415_v19 = vmax.f32 %v3323_v60, 1e-12  ;;  %vm3340_vm11 = vcmp.eq.f32.partialorder %v14241_v10, inf  ;;  %9432 = vrsqrt.f32 %v14335_v40  ;;  %v14428_v11 = vpop.eup %9416  ;;  %v3330_v18 = vsel %vm3328_vm8, %v3329_v61, %v3327_v29 }
 0x9b2   : > { %v14399_v23 = vpop.permute.xlu1 %3603  ;;  %15746 = vst [vmem:[#allocation19_spill] sm:$0xff] %v14428_v11  ;;  %9434 = vrcp.f32 %v3411_v57  ;;  %vm3342_vm12 = vcmp.eq.f32.partialorder %v14241_v10, 0.0  ;;  %v3343_v21 = vand.u32 2147483648, %v14241_v10  ;;  %v14436_v9 = vpop.eup %9418  ;;  %v3334_v37 = vsel %vm3333_vm9, %v14233_v20, %v3332_v33 }
 0x9b3   : > { %15748 = vst [vmem:[#allocation11_spill] sm:$0xff] %v14436_v9  ;;  %9436 = vrcp.f32 %v3413_v8  ;;  %v3346_v32 = vmul.f32 %v9415_v44, %v14250_v49  ;;  %vm3347_vm13 = vcmp.eq.f32.partialorder %v14250_v49, inf  ;;  %vm3349_vm14 = vcmp.eq.f32.partialorder %v14250_v49, 0.0 }
 0x9b4   : > { %v14412_v1 = vpop.permute.xlu0 %3643  ;;  %v9421_v17 = vpop.eup %9420  ;;  %9438 = vrcp.f32 %v3414_v0  ;;  %v3350_v22 = vand.u32 2147483648, %v14250_v49  ;;  %vm3354_vm15 = vcmp.eq.f32.partialorder %v14264_v63, inf  ;;  %v3416_v57 = vmax.f32 %v3330_v18, 1e-12 }
 0x9b5   : > { %v9423_v12 = vpop.eup %9422  ;;  %9440 = vrcp.f32 %v3415_v19  ;;  %v3341_v60 = vsel %vm3340_vm11, %v14241_v10, %v3339_v34  ;;  %vm3356_vm0 = vcmp.eq.f32.partialorder %v14264_v63, 0.0  ;;  %v3337_v29 = vsel %vm3335_vm10, %v3336_v6, %v3334_v37 }
 0x9b6   : > { %v14423_v5 = vpop.permute.xlu1 %3608  ;;  %v14452_v8 = vpop.eup %9424  ;;  %v3357_v33 = vand.u32 2147483648, %v14264_v63  ;;  %vm3361_vm1 = vcmp.eq.f32.partialorder %v14277_v4, inf  ;;  %9442 = vrsqrt.f32 %v14323_v14  ;;  %v3348_v19 = vsel %vm3347_vm13, %v14250_v49, %v3346_v32 }
 0x9b7   : > { %15749 = vst [vmem:[#allocation9_spill] sm:$0xff] %v14452_v8  ;;  %v9427_v0 = vpop.eup %9426  ;;  %v3353_v34 = vmul.f32 %v9421_v17, %v14264_v63  ;;  %vm3363_vm2 = vcmp.eq.f32.partialorder %v14277_v4, 0.0  ;;  %v3364_v20 = vand.u32 2147483648, %v14277_v4  ;;  %v3344_v18 = vsel %vm3342_vm12, %v3343_v21, %v3341_v60 }
 0x9b8   : > { %v14434_v16 = vpop.permute.xlu0 %3653  ;;  %v9429_v6 = vpop.eup %9428  ;;  %v3360_v37 = vmul.f32 %v9423_v12, %v14277_v4  ;;  %vm3368_vm6 = vcmp.eq.f32.partialorder %v14300_v54, inf  ;;  %vm3370_vm7 = vcmp.eq.f32.partialorder %v14300_v54, 0.0  ;;  %vm3006_vm8 = vcmp.ge.s32.totalorder %v15685_v38, 8 }
 0x9b9   : > { %15747 = vst [vmem:[#allocation61_spill] sm:$0xff] %v14434_v16  ;;  %vm3007_vm9 = vcmp.lt.s32.totalorder %v15685_v38, 11  ;;  %9444 = vrcp.f32 %v3416_v57  ;;  %v3417_v32 = vmax.f32 %v3337_v29, 1e-12  ;;  %v3371_v17 = vand.u32 2147483648, %v14300_v54  ;;  %v14478_v10 = vpop.eup %9430 }
 0x9ba   : > { %v14446_v61 = vpop.permute.xlu1 %3613  ;;  %vm3375_vm10 = vcmp.eq.f32.partialorder %v14302_v62, inf  ;;  %15751 = vst [vmem:[#allocation32_spill] sm:$0xff] %v14478_v10  ;;  %v3351_v21 = vsel %vm3349_vm14, %v3350_v22, %v3348_v19  ;;  %v3367_v12 = vmul.f32 %v9427_v0, %v14300_v54  ;;  %vm3377_vm11 = vcmp.eq.f32.partialorder %v14302_v62, 0.0 }
 0x9bb   : > { %v3378_v60 = vand.u32 2147483648, %v14302_v62  ;;  %v9433_v8 = vpop.eup %9432  ;;  %v3418_v57 = vmax.f32 %v3344_v18, 1e-12  ;;  %v3355_v29 = vsel %vm3354_vm15, %v14264_v63, %v3353_v34  ;;  %v3374_v16 = vmul.f32 %v9429_v6, %v14302_v62 }
 0x9bc   : > { %v14459_v44 = vpop.permute.xlu0 %3663  ;;  %vm3382_vm12 = vcmp.eq.f32.partialorder %v14335_v40, inf  ;;  %v14492_v49 = vpop.eup %9434  ;;  %v3362_v22 = vsel %vm3361_vm1, %v14277_v4, %v3360_v37  ;;  %vm3384_vm13 = vcmp.eq.f32.partialorder %v14335_v40, 0.0  ;;  %v3747_v0 = vmul.f32 %v14343_v47, %v15683_v48  ;;  %v9506_v4 = vld [vmem:[%s13660_s23 + $0x10] sm:$0xff] }
 0x9bd   : > { %15750 = vst [vmem:[#allocation31_spill] sm:$0xff] %v14459_v44  ;;  %v3746_v19 = vmul.f32 %v14359_v27, %v15686_v58  ;;  %v3748_v34 = vmul.f32 %v14371_v13, %v15687_v56  ;;  %v14506_v18 = vpop.eup %9436  ;;  %9446 = vrcp.f32 %v3417_v32  ;;  %v3419_v10 = vmax.f32 %v3351_v21, 1e-12 }
 0x9be   : > { %v14472_v9 = vpop.permute.xlu1 %3618  ;;  %v3385_v44 = vand.u32 2147483648, %v14335_v40  ;;  %v14510_v53 = vpop.eup %9438  ;;  %v3358_v47 = vsel %vm3356_vm0, %v3357_v33, %v3355_v29  ;;  %v3369_v13 = vsel %vm3368_vm6, %v14300_v54, %v3367_v12  ;;  %v3381_v27 = vmul.f32 %v9433_v8, %v14335_v40  ;;  %vm14566_vm0 = vmand %vm3006_vm8, %vm3007_vm9 }
 0x9bf   : > { %vm3389_vm14 = vcmp.eq.f32.partialorder %v14323_v14, inf  ;;  %v3755_v32 = vmul.f32 %v14387_v24, %v15696_v39  ;;  %v14523_v37 = vpop.eup %9440  ;;  %v3365_v63 = vsel %vm3363_vm2, %v3364_v20, %v3362_v22  ;;  %v3376_v33 = vsel %vm3375_vm10, %v14302_v62, %v3374_v16  ;;  %v9504_v24 = vld [vmem:[%s13660_s23 + $0x8] sm:$0xff] }
 0x9c0   : > { %v14485_v11 = vpop.permute.xlu0 %3673  ;;  %v3749_v12 = vmul.f32 %v14399_v23, %v15688_v42  ;;  %v3524_v8 = vmul.f32 %v14283_v36, %v15687_v56  ;;  %v9443_v29 = vpop.eup %9442  ;;  %9448 = vrcp.f32 %v3418_v57  ;;  %v3779_v51 = vadd.f32 %v9504_v24, %v3747_v0  ;;  %v9510_v24 = vld [vmem:[%s13660_s23 + $0x20] sm:$0xff] }
 0x9c1   : > { %v14536_v55 = vadd.f32 %v9505_v2, %v3746_v19  ;;  %v3780_v20 = vadd.f32 %v9506_v4, %v3748_v34  ;;  %9450 = vrcp.f32 %v3419_v10  ;;  %v3420_v16 = vmax.f32 %v3358_v47, 1e-12  ;;  %v9507_v19 = vld [vmem:[%s13660_s23 + $0x48] sm:$0xff]  ;;  %v9508_v34 = vld [vmem:[%s13660_s23 + $0x18] sm:$0xff] }
 0x9c2   : > { %v14504_v6 = vpop.permute.xlu1 %3623  ;;  %v3372_v23 = vsel %vm3370_vm7, %v3371_v17, %v3369_v13  ;;  %vm3391_vm15 = vcmp.eq.f32.partialorder %v14323_v14, 0.0  ;;  %v3757_v56 = vmul.f32 %v14412_v1, %v15697_v35  ;;  %v3421_v36 = vmax.f32 %v3365_v63, 1e-12 }
 0x9c3   : > { %v3379_v2 = vsel %vm3377_vm11, %v3378_v60, %v3376_v33  ;;  %v3383_v57 = vsel %vm3382_vm12, %v14335_v40, %v3381_v27  ;;  %v3750_v10 = vmul.f32 %v14423_v5, %v15689_v52  ;;  %v14555_v54 = vpop.eup %9444  ;;  %v3388_v17 = vmul.f32 %v9443_v29, %v14323_v14 }
 0x9c4   : > { %v14521_v21 = vpop.permute.xlu0 %3683  ;;  %v14559_v1 = vadd.f32 %v9507_v19, %v3755_v32  ;;  %v3781_v62 = vadd.f32 %v9508_v34, %v3749_v12  ;;  %v3556_v47 = vsel %vm13198_vm3, %v3524_v8, %v13983_v43  ;;  %v3422_v13 = vmax.f32 %v3372_v23, 1e-12  ;;  %v9509_v8 = vld [vmem:[%s13660_s23 + $0x58] sm:$0xff] }
 0x9c5   : > { %v3752_v27 = vmul.f32 %v14472_v9, %v15691_v31  ;;  %v3812_v63 = vsel %vm14566_vm0, %v3780_v20, %v3556_v47  ;;  %v3525_v33 = vmul.f32 %v14297_v41, %v15688_v42  ;;  %9452 = vrcp.f32 %v3420_v16  ;;  %v9512_v47 = vld [vmem:[%s13660_s23 + $0x38] sm:$0xff] }
 0x9c6   : > { %v14539_v22 = vpop.permute.xlu1 %3628  ;;  %15752 = vst [vmem:[#allocation62_spill] sm:$0xff] %v14559_v1  ;;  %v3423_v12 = vmax.f32 %v3379_v2, 1e-12  ;;  %v3386_v29 = vsel %vm3384_vm13, %v3385_v44, %v3383_v57  ;;  %v3523_v43 = vmul.f32 %v14279_v7, %v15683_v48  ;;  %9454 = vrcp.f32 %v3421_v36  ;;  %v15757_v36 = vld [vmem:[#allocation33_spill] sm:$0xff] }
 0x9c7   : > { %v14586_v9 = vadd.f32 %v9509_v8, %v3757_v56  ;;  %v3782_v4 = vadd.f32 %v9510_v24, %v3750_v10  ;;  %v3522_v42 = vmul.f32 %v14255_v25, %v15686_v58  ;;  %v14593_v41 = vpop.eup %9446  ;;  %v3390_v40 = vsel %vm3389_vm14, %v14323_v14, %v3388_v17  ;;  %v9511_v25 = vld [vmem:[%s13660_s23 + $0x30] sm:$0xff]  ;;  %v9513_v24 = vld [vmem:[%s13660_s23 + $0x28] sm:$0xff] }
 0x9c8   : > { %v14553_v0 = vpop.permute.xlu0 %3693  ;;  %v3753_v48 = vmul.f32 %v14504_v6, %v15694_v3  ;;  %v3528_v7 = vmul.f32 %v14318_v30, %v15691_v31  ;;  %v3526_v44 = vmul.f32 %v14304_v15, %v15689_v52  ;;  %9456 = vrcp.f32 %v3422_v13  ;;  %v15758_v30 = vld [vmem:[#allocation34_spill] sm:$0xff] }
 0x9c9   : > { %v3424_v20 = vmax.f32 %v3386_v29, 1e-12  ;;  %v3751_v58 = vmul.f32 %v14446_v61, %v15690_v46  ;;  %v3784_v16 = vadd.f32 %v9511_v25, %v3752_v27  ;;  %9458 = vrcp.f32 %v3423_v12  ;;  %v15760_v27 = vld [vmem:[#allocation35_spill] sm:$0xff]  ;;  %v15762_v12 = vld [vmem:[#allocation36_spill] sm:$0xff] }
 0x9ca   : > { %v14575_v32 = vpop.permute.xlu1 %3638  ;;  %v3844_v6 = vsel %vm3007_vm9, %v3812_v63, 0.0  ;;  %v3557_v31 = vsel %vm13198_vm3, %v3525_v33, %v15757_v36  ;;  %v3555_v52 = vsel %vm13198_vm3, %v3523_v43, %v15758_v30  ;;  %v14617_v15 = vpop.eup %9448  ;;  %v15759_v61 = vand.u32 2147483648, %v14323_v14  ;;  %v15761_v63 = vld [vmem:[#allocation37_spill] sm:$0xff] }
 0x9cb   : > { %v3813_v10 = vsel %vm14566_vm0, %v3781_v62, %v3557_v31  ;;  %v3811_v17 = vsel %vm14566_vm0, %v3779_v51, %v3555_v52  ;;  %v3529_v19 = vmul.f32 %v14345_v50, %v15694_v3  ;;  %v14631_v34 = vpop.eup %9450  ;;  %v3785_v13 = vadd.f32 %v9512_v47, %v3753_v48 }
 0x9cc   : > { %v14589_v23 = vpop.permute.xlu0 %3703  ;;  %v3393_v2 = vsel %vm3391_vm15, %v15759_v61, %v3390_v40  ;;  %v3554_v14 = vsel %vm13198_vm3, %v3522_v42, %v15760_v27  ;;  %v3560_v33 = vsel %vm13198_vm3, %v3528_v7, %v15761_v63  ;;  %v3558_v62 = vsel %vm13198_vm3, %v3526_v44, %v15762_v12  ;;  %v14658_v40 = vld [vmem:[%s15257_s4 + $0x16] ss:$0 sm:$0xff]  ;;  %v15766_v61 = vld [vmem:[#allocation38_spill] sm:$0xff] }
 0x9cd   : > { %v3810_v3 = vsel %vm14566_vm0, %v14536_v55, %v3554_v14  ;;  %v3816_v50 = vsel %vm14566_vm0, %v3784_v16, %v3560_v33  ;;  %v3814_v29 = vsel %vm14566_vm0, %v3782_v4, %v3558_v62  ;;  %v3527_v43 = vmul.f32 %v14309_v45, %v15690_v46  ;;  %v15764_v45 = vld [vmem:[#allocation39_spill] sm:$0xff]  ;;  %v15769_v14 = vld [vmem:[#allocation22_spill] sm:$0xff] }
 0x9ce   : > { %v14607_v56 = vpop.permute.xlu1 %3648  ;;  %v3425_v8 = vmax.f32 %v3393_v2, 1e-12  ;;  %v3783_v42 = vadd.f32 %v9513_v24, %v3751_v58  ;;  %v3845_v55 = vsel %vm3007_vm9, %v3813_v10, 0.0  ;;  %v3843_v48 = vsel %vm3007_vm9, %v3811_v17, 0.0  ;;  %v15767_v10 = vld [vmem:[#allocation52_spill] sm:$0xff] }
 0x9cf   : > { %15756 = vst [vmem:[#allocation46_spill] sm:$0xff] %v14607_v56  ;;  %9460 = vrcp.f32 %v3424_v20  ;;  %v3763_v4 = vmul.f32 %v14485_v11, %v15711_v28  ;;  %v14667_v46 = vadd.f32 %v14658_v40, %v3844_v6  ;;  %v3561_v44 = vsel %vm13198_vm3, %v3529_v19, %v15764_v45  ;;  %v14672_v58 = vpop.eup %9452  ;;  %v15768_v19 = vld [vmem:[#allocation51_spill] sm:$0xff]  ;;  %v15785_v56 = vld [vmem:[#allocation18_spill] sm:$0xff] }
 0x9d0   : > { %v14623_v57 = vpop.permute.xlu0 %3713  ;;  %v3842_v25 = vsel %vm3007_vm9, %v3810_v3, 0.0  ;;  %v3848_v16 = vsel %vm3007_vm9, %v3816_v50, 0.0  ;;  %v3846_v20 = vsel %vm3007_vm9, %v3814_v29, 0.0  ;;  %v3817_v11 = vsel %vm14566_vm0, %v3785_v13, %v3561_v44  ;;  %v14682_v6 = vpop.eup %9454  ;;  %v9514_v3 = vld [vmem:[%s13660_s23 + $0x88] sm:$0xff] }
 0x9d1   : > { %v3765_v36 = vmul.f32 %v14521_v21, %v15712_v59  ;;  %v8785_v30 = vadd.f32 %v14658_v40, %v3845_v55  ;;  %v8788_v52 = vadd.f32 %v14658_v40, %v3843_v48  ;;  %v3559_v2 = vsel %vm13198_vm3, %v3527_v43, %v15766_v61  ;;  %v14700_v21 = vld [vmem:[%s15257_s4 + $0x17] ss:$0 sm:$0xff] }
 0x9d2   : > { %v14643_v51 = vpop.permute.xlu1 %3658  ;;  %9462 = vrcp.f32 %v3425_v8  ;;  %v3754_v17 = vmul.f32 %v14539_v22, %v15767_v10  ;;  %v3756_v47 = vmul.f32 %v14575_v32, %v15768_v19  ;;  %v3815_v13 = vsel %vm14566_vm0, %v3783_v42, %v3559_v2  ;;  %v14704_v27 = vpop.eup %9456  ;;  %v15771_v8 = vld [vmem:[#allocation50_spill] sm:$0xff]  ;;  %v9515_v42 = vld [vmem:[%s13660_s23 + $0x98] sm:$0xff]  ;;  %v15773_v61 = vld [vmem:[#allocation20_spill] sm:$0xff] }
 0x9d3   : > { %15763 = vst [vmem:[#allocation33_spill] sm:$0xff] %v14643_v51  ;;  %v3767_v63 = vmul.f32 %v14553_v0, %v15769_v14  ;;  %v8791_v22 = vadd.f32 %v14658_v40, %v3848_v16  ;;  %v8794_v12 = vadd.f32 %v14658_v40, %v3846_v20  ;;  %v3849_v32 = vsel %vm3007_vm9, %v3817_v11, 0.0  ;;  %v14712_v62 = vpop.eup %9458  ;;  %v15770_v0 = vld [vmem:[#allocation49_spill] sm:$0xff]  ;;  %v9517_v20 = vld [vmem:[%s13660_s23 + $0x50] sm:$0xff] }
 0x9d4   : > { %v3724_v7 = vpop.permute.xlu0 %3723  ;;  %v3795_v50 = vadd.f32 %v9514_v3, %v3763_v4  ;;  %v14716_v29 = vadd.f32 %v14658_v40, %v3842_v25  ;;  %v3532_v43 = vmul.f32 %v15770_v0, %v15768_v19  ;;  %v14722_v24 = vmul.f32 %v15771_v8, %v15767_v10  ;;  %v9516_v25 = vld [vmem:[%s13660_s23 + $0x40] sm:$0xff]  ;;  %v9518_v10 = vld [vmem:[%s13660_s23 + $0xa8] sm:$0xff]  ;;  %v15775_v3 = vld [vmem:[#allocation40_spill] sm:$0xff] }
 0x9d5   : > { %v3797_v55 = vadd.f32 %v9515_v42, %v3765_v36  ;;  %v14728_v45 = vadd.f32 %v8785_v30, %v14700_v21  ;;  %v14731_v4 = vadd.f32 %v8788_v52, %v14700_v21  ;;  %v3847_v44 = vsel %vm3007_vm9, %v3815_v13, 0.0  ;;  %v15776_v0 = vld [vmem:[#allocation42_spill] sm:$0xff]  ;;  %v15777_v8 = vld [vmem:[#allocation25_spill] sm:$0xff] }
 0x9d6   : > { %v14686_v31 = vpop.permute.xlu1 %3668  ;;  %v14736_v16 = vadd.f32 %v9516_v25, %v3754_v17  ;;  %v3788_v11 = vadd.f32 %v9517_v20, %v3756_v47  ;;  %v3769_v2 = vmul.f32 %v14589_v23, %v15773_v61  ;;  %v8797_v36 = vadd.f32 %v14658_v40, %v3849_v32  ;;  %v15774_v47 = vld [vmem:[#allocation24_spill] sm:$0xff] }
 0x9d7   : > { %15765 = vst [vmem:[#allocation34_spill] sm:$0xff] %v14686_v31  ;;  %v14743_v30 = vadd.f32 %v9518_v10, %v3767_v63  ;;  %v14746_v52 = vadd.f32 %v8791_v22, %v14700_v21  ;;  %v14749_v19 = vadd.f32 %v8794_v12, %v14700_v21  ;;  %v14753_v17 = vmul.f32 %v14401_v26, %v15697_v35  ;;  %v15778_v35 = vld [vmem:[#allocation28_spill] sm:$0xff]  ;;  %v15781_v22 = vld [vmem:[#allocation23_spill] sm:$0xff] }
 0x9d8   : > { %v3734_v33 = vpop.permute.xlu0 %3733  ;;  %v3771_v13 = vmul.f32 %v14623_v57, %v15774_v47  ;;  %v8800_v32 = vadd.f32 %v14658_v40, %v3847_v44  ;;  %v3564_v63 = vsel %vm13198_vm3, %v3532_v43, %v15775_v3  ;;  %v3773_v26 = vmul.f32 %v3724_v7, %v15777_v8  ;;  %v9519_v43 = vld [vmem:[%s13660_s23 + $0xb8] sm:$0xff] }
 0x9d9   : > { %v14765_v12 = vpop.eup %9460  ;;  %v3775_v42 = vmul.f32 %v3734_v33, %v15778_v35  ;;  %v3541_v44 = vmul.f32 %v14506_v18, %v15712_v59  ;;  %v3539_v25 = vmul.f32 %v14492_v49, %v15711_v28  ;;  %v14774_v20 = vadd.f32 %v9519_v43, %v3769_v2  ;;  %v15779_v33 = vld [vmem:[#allocation48_spill] sm:$0xff]  ;;  %v15780_v59 = vld [vmem:[#allocation29_spill] sm:$0xff]  ;;  %v15783_v43 = vld [vmem:[#allocation2_spill] sm:$0xff] }
 0x9da   : > { %v14725_v48 = vpop.permute.xlu1 %3678  ;;  %v14777_v10 = vadd.f32 %v8797_v36, %v14700_v21  ;;  %v14781_v7 = vsel %vm14566_vm0, %v3788_v11, %v3564_v63  ;;  %v14785_v3 = vmul.f32 %v15779_v33, %v15696_v39  ;;  %v15782_v49 = vld [vmem:[#allocation41_spill] sm:$0xff]  ;;  %v9520_v11 = vld [vmem:[%s13660_s23 + $0xc8] sm:$0xff]  ;;  %v14802_v39 = vadd.f32 %v8800_v32, %v14700_v21 }
 0x9db   : > { %15772 = vst [vmem:[#allocation35_spill] sm:$0xff] %v14725_v48  ;;  %v3573_v36 = vsel %vm13198_vm3, %v3541_v44, %v15783_v43  ;;  %v14799_v63 = vadd.f32 %v9520_v11, %v3771_v13  ;;  %v9521_v2 = vld [vmem:[%s13660_s23 + $0xd8] sm:$0xff]  ;;  %v9522_v44 = vld [vmem:[%s13660_s23 + $0xe8] sm:$0xff] }
 0x9dc   : > { %v3744_v23 = vpop.permute.xlu0 %3743  ;;  %v14796_v31 = vpop.eup %9462  ;;  %v14810_v48 = vadd.f32 %v9521_v2, %v3773_v26  ;;  %v14813_v43 = vadd.f32 %v9522_v44, %v3775_v42  ;;  %v9523_v42 = vld [vmem:[%s13660_s23 + $0xf8] sm:$0xff] }
 0x9dd   : > { %v3777_v18 = vmul.f32 %v3744_v23, %v15780_v59  ;;  %v3829_v23 = vsel %vm14566_vm0, %v3797_v55, %v3573_v36 }
 0x9de   : > { %v3689_v57 = vpop.permute.xlu1 %3688  ;;  %v3861_v32 = vsel %vm3007_vm9, %v3829_v23, 0.0 }
 0x9df   : > { %v3766_v28 = vmul.f32 %v3689_v57, %v15781_v22  ;;  %v15784_v57 = vld [vmem:[#allocation44_spill] sm:$0xff]  ;;  %v8833_v36 = vadd.f32 %v14658_v40, %v3861_v32  ;;  %v14826_v2 = vadd.f32 %v9523_v42, %v3777_v18 }
 0x9e0   : > { %v3571_v33 = vsel %vm13198_vm3, %v3539_v25, %v15784_v57  ;;  %v3544_v25 = vmul.f32 %v14555_v54, %v15785_v56  ;;  %v9524_v57 = vld [vmem:[%s13660_s23 + $0xa0] sm:$0xff]  ;;  %v15786_v54 = vld [vmem:[#allocation5_spill] sm:$0xff] }
 0x9e1   : > { %v3827_v11 = vsel %vm14566_vm0, %v3795_v50, %v3571_v33  ;;  %v3798_v44 = vadd.f32 %v9524_v57, %v3766_v28  ;;  %v3542_v50 = vmul.f32 %v14510_v53, %v15781_v22  ;;  %v9525_v33 = vld [vmem:[%s13660_s23 + $0xb0] sm:$0xff] }
 0x9e2   : > { %v3699_v13 = vpop.permute.xlu1 %3698  ;;  %v3859_v26 = vsel %vm3007_vm9, %v3827_v11, 0.0  ;;  %v14835_v11 = vadd.f32 %v8833_v36, %v14700_v21  ;;  %v15787_v28 = vld [vmem:[#allocation4_spill] sm:$0xff]  ;;  %v3545_v36 = vmul.f32 %v14593_v41, %v15773_v61  ;;  %v9526_v61 = vld [vmem:[%s13660_s23 + $0xc0] sm:$0xff] }
 0x9e3   : > { %v3768_v55 = vmul.f32 %v3699_v13, %v15785_v56  ;;  %v8836_v51 = vadd.f32 %v14658_v40, %v3859_v26  ;;  %v3576_v56 = vsel %vm13198_vm3, %v3544_v25, %v15786_v54  ;;  %v15788_v25 = vld [vmem:[#allocation27_spill] sm:$0xff] }
 0x9e4   : > { %v8745_v23 = vpop.f32.mrb[80].mxu1 }
 0x9e5   : > { %v3800_v13 = vadd.f32 %v9525_v33, %v3768_v55  ;;  %v8780_v32 = vadd.f32 %v14667_v46, %v8745_v23  ;;  %v7573_v1 = vpop.f32.mrb[81].mxu1  ;;  %v14849_v18 = vadd.f32 %v8836_v51, %v14700_v21  ;;  %v3574_v55 = vsel %vm13198_vm3, %v3542_v50, %v15787_v28 }
 0x9e6   : > { %v8783_v53 = vadd.f32 %v14716_v29, %v7573_v1  ;;  %v3709_v22 = vpop.permute.xlu1 %3708  ;;  %v8746_v46 = vpop.f32.mrb[82].mxu1  ;;  %v3830_v41 = vsel %vm14566_vm0, %v3798_v44, %v3574_v55 }
 0x9e7   : > { %v8781_v26 = vadd.f32 %v8780_v32, %v14700_v21  ;;  %v3770_v42 = vmul.f32 %v3709_v22, %v15788_v25  ;;  %v8787_v1 = vadd.f32 %v14728_v45, %v8746_v46  ;;  %v7576_v29 = vpop.f32.mrb[83].mxu1  ;;  %v3832_v51 = vsel %vm14566_vm0, %v3800_v13, %v3576_v56  ;;  %v15789_v32 = vld [vmem:[#allocation3_spill] sm:$0xff]  ;;  %v15790_v22 = vld [vmem:[#allocation21_spill] sm:$0xff] }
 0x9e8   : > { %v8784_v57 = vadd.f32 %v8783_v53, %v14700_v21  ;;  %v8790_v23 = vadd.f32 %v14731_v4, %v7576_v29  ;;  %v3864_v50 = vsel %vm3007_vm9, %v3832_v51, 0.0  ;;  %v3862_v13 = vsel %vm3007_vm9, %v3830_v41, 0.0  ;;  %v9527_v29 = vld [vmem:[%s13660_s23 + $0xd0] sm:$0xff] }
 0x9e9   : > { %7766 = vst.msk [vmem:[%s14845_s12 + $0x10] sm:$0xff] %vm3073_vm4, %v8781_v26  ;;  %v3802_v33 = vadd.f32 %v9526_v61, %v3770_v42  ;;  %7767 = vst.msk [vmem:[%s14845_s12 + $0x18] sm:$0xff] %vm3073_vm4, %v8787_v1  ;;  %v8839_v45 = vadd.f32 %v14658_v40, %v3864_v50  ;;  %v3577_v4 = vsel %vm13198_vm3, %v3545_v36, %v15789_v32 }
 0x9ea   : > { %7764 = vst.msk [vmem:[%s14845_s12] sm:$0xff] %vm3073_vm4, %v8784_v57  ;;  %7765 = vst.msk [vmem:[%s14845_s12 + $0x8] sm:$0xff] %vm3073_vm4, %v8790_v23  ;;  %v3719_v44 = vpop.permute.xlu1 %3718  ;;  %v8842_v54 = vadd.f32 %v14658_v40, %v3862_v13  ;;  %v3833_v56 = vsel %vm14566_vm0, %v14774_v20, %v3577_v4  ;;  %v3543_v53 = vmul.f32 %v14523_v37, %v15769_v14  ;;  %v15791_v37 = vld [vmem:[#allocation6_spill] sm:$0xff]  ;;  %v15792_v14 = vld [vmem:[#allocation7_spill] sm:$0xff] }
 0x9eb   : > { %v3548_v46 = vmul.f32 %v14672_v58, %v15790_v22  ;;  %v3772_v28 = vmul.f32 %v3719_v44, %v15790_v22  ;;  %v14892_v55 = vadd.f32 %v8839_v45, %v14700_v21  ;;  %v3865_v36 = vsel %vm3007_vm9, %v3833_v56, 0.0  ;;  %v15794_v13 = vld [vmem:[#allocation30_spill] sm:$0xff]  ;;  %v15795_v56 = vld [vmem:[#allocation15_spill] sm:$0xff] }
 0x9ec   : > { %v3546_v26 = vmul.f32 %v14617_v15, %v15788_v25  ;;  %v14899_v42 = vadd.f32 %v8842_v54, %v14700_v21  ;;  %v8845_v20 = vadd.f32 %v14658_v40, %v3865_v36  ;;  %v3575_v58 = vsel %vm13198_vm3, %v3543_v53, %v15791_v37  ;;  %v15793_v15 = vld [vmem:[#allocation16_spill] sm:$0xff]  ;;  %v9528_v53 = vld [vmem:[%s13660_s23 + $0xe0] sm:$0xff] }
 0x9ed   : > { %v3580_v1 = vsel %vm13198_vm3, %v3548_v46, %v15792_v14  ;;  %v3804_v51 = vadd.f32 %v9527_v29, %v3772_v28  ;;  %v3831_v57 = vsel %vm14566_vm0, %v14743_v30, %v3575_v58  ;;  %v3549_v23 = vmul.f32 %v14682_v6, %v15777_v8  ;;  %v15797_v14 = vld [vmem:[#allocation26_spill] sm:$0xff] }
 0x9ee   : > { %v3578_v25 = vsel %vm13198_vm3, %v3546_v26, %v15793_v15  ;;  %v3729_v50 = vpop.permute.xlu1 %3728  ;;  %v14918_v41 = vadd.f32 %v8845_v20, %v14700_v21  ;;  %v3863_v61 = vsel %vm3007_vm9, %v3831_v57, 0.0  ;;  %v3547_v30 = vmul.f32 %v14631_v34, %v15774_v47  ;;  %v15796_v34 = vld [vmem:[#allocation8_spill] sm:$0xff] }
 0x9ef   : > { %v3834_v45 = vsel %vm14566_vm0, %v3802_v33, %v3578_v25  ;;  %v3774_v32 = vmul.f32 %v3729_v50, %v15794_v13  ;;  %v8848_v4 = vadd.f32 %v14658_v40, %v3863_v61  ;;  %v3836_v6 = vsel %vm14566_vm0, %v3804_v51, %v3580_v1  ;;  %v9529_v61 = vld [vmem:[%s13660_s23 + $0xf0] sm:$0xff] }
 0x9f0   : > { %v3866_v8 = vsel %vm3007_vm9, %v3834_v45, 0.0  ;;  %v3868_v44 = vsel %vm3007_vm9, %v3836_v6, 0.0  ;;  %v3581_v33 = vsel %vm13198_vm3, %v3549_v23, %v15795_v56  ;;  %v3579_v47 = vsel %vm13198_vm3, %v3547_v30, %v15796_v34  ;;  %v15798_v23 = vld [vmem:[#allocation10_spill] sm:$0xff] }
 0x9f1   : > { %v8854_v54 = vadd.f32 %v14658_v40, %v3866_v8  ;;  %v3806_v22 = vadd.f32 %v9528_v53, %v3774_v32  ;;  %v14943_v46 = vadd.f32 %v8848_v4, %v14700_v21  ;;  %v8851_v28 = vadd.f32 %v14658_v40, %v3868_v44 }
 0x9f2   : > { %v3837_v36 = vsel %vm14566_vm0, %v14810_v48, %v3581_v33  ;;  %v3739_v26 = vpop.permute.xlu1 %3738  ;;  %v3835_v58 = vsel %vm14566_vm0, %v14799_v63, %v3579_v47  ;;  %v3552_v1 = vmul.f32 %v14765_v12, %v15797_v14  ;;  %v3550_v12 = vmul.f32 %v14704_v27, %v15794_v13  ;;  %v15800_v13 = vld [vmem:[#allocation14_spill] sm:$0xff] }
 0x9f3   : > { %v14950_v20 = vadd.f32 %v8854_v54, %v14700_v21  ;;  %v3869_v37 = vsel %vm3007_vm9, %v3837_v36, 0.0  ;;  %v3776_v29 = vmul.f32 %v3739_v26, %v15797_v14  ;;  %v14961_v51 = vadd.f32 %v8851_v28, %v14700_v21  ;;  %v15801_v28 = vld [vmem:[#allocation47_spill] sm:$0xff] }
 0x9f4   : > { %v8857_v48 = vadd.f32 %v14658_v40, %v3869_v37  ;;  %v3867_v57 = vsel %vm3007_vm9, %v3835_v58, 0.0  ;;  %v8749_v15 = vpop.f32.mrb[84].mxu1  ;;  %v3584_v63 = vsel %vm13198_vm3, %v3552_v1, %v15798_v23  ;;  %v3553_v50 = vmul.f32 %v14796_v31, %v15780_v59  ;;  %v15799_v31 = vld [vmem:[#allocation17_spill] sm:$0xff]  ;;  %v15804_v14 = vld [vmem:[#allocation43_spill] sm:$0xff]  ;;  %v15808_v23 = vld [vmem:[#allocation12_spill] sm:$0xff] }
 0x9f5   : > { %v8860_v25 = vadd.f32 %v14658_v40, %v3867_v57  ;;  %v3808_v45 = vadd.f32 %v9529_v61, %v3776_v29  ;;  %v8793_v30 = vadd.f32 %v14746_v52, %v8749_v15  ;;  %v7589_v32 = vpop.f32.mrb[85].mxu1  ;;  %v3551_v6 = vmul.f32 %v14712_v62, %v15778_v35  ;;  %v15806_v29 = vld [vmem:[#allocation62_spill] sm:$0xff]  ;;  %v15807_v15 = vld [vmem:[#allocation56_spill] sm:$0xff] }
 0x9f6   : > { %v14977_v4 = vadd.f32 %v8857_v48, %v14700_v21  ;;  %v8796_v8 = vadd.f32 %v14749_v19, %v7589_v32  ;;  %v8750_v44 = vpop.f32.mrb[86].mxu1  ;;  %v3582_v59 = vsel %vm13198_vm3, %v3550_v12, %v15799_v31  ;;  %v3585_v52 = vsel %vm13198_vm3, %v3553_v50, %v15800_v13  ;;  %v9530_v57 = vld [vmem:[%s13660_s23 + $0x60] sm:$0xff]  ;;  %v9531_v13 = vld [vmem:[%s13660_s23 + $0x78] sm:$0xff] }
 0x9f7   : > { %v14983_v27 = vadd.f32 %v8860_v25, %v14700_v21  ;;  %7770 = vst.msk [vmem:[%s14845_s12 + $0x30] sm:$0xff] %vm3073_vm4, %v8793_v30  ;;  %v8799_v62 = vadd.f32 %v14777_v10, %v8750_v44  ;;  %v7592_v35 = vpop.f32.mrb[87].mxu1  ;;  %v3840_v19 = vsel %vm14566_vm0, %v3808_v45, %v3584_v63  ;;  %v3838_v54 = vsel %vm14566_vm0, %v3806_v22, %v3582_v59  ;;  %v15809_v63 = vld [vmem:[#allocation53_spill] sm:$0xff]  ;;  %v15810_v61 = vld [vmem:[#allocation54_spill] sm:$0xff] }
 0x9f8   : > { %v3841_v56 = vsel %vm14566_vm0, %v14826_v2, %v3585_v52  ;;  %7768 = vst.msk [vmem:[%s14845_s12 + $0x20] sm:$0xff] %vm3073_vm4, %v8796_v8  ;;  %v8802_v33 = vadd.f32 %v14802_v39, %v7592_v35  ;;  %v3872_v34 = vsel %vm3007_vm9, %v3840_v19, 0.0  ;;  %v3870_v10 = vsel %vm3007_vm9, %v3838_v54, 0.0  ;;  %v15811_v52 = vld [vmem:[#allocation59_spill] sm:$0xff]  ;;  %v15813_v54 = vld [vmem:[#allocation33_spill] sm:$0xff] }
 0x9f9   : > { %v3873_v47 = vsel %vm3007_vm9, %v3841_v56, 0.0  ;;  %7771 = vst.msk [vmem:[%s14845_s12 + $0x38] sm:$0xff] %vm3073_vm4, %v8799_v62  ;;  %v8863_v53 = vadd.f32 %v14658_v40, %v3872_v34  ;;  %v8866_v22 = vadd.f32 %v14658_v40, %v3870_v10  ;;  %v3583_v39 = vsel %vm13198_vm3, %v3551_v6, %v15801_v28  ;;  %v15812_v19 = vld [vmem:[#allocation55_spill] sm:$0xff]  ;;  %v15814_v10 = vld [vmem:[#allocation57_spill] sm:$0xff] }
 0x9fa   : > { %v8869_v2 = vadd.f32 %v14658_v40, %v3873_v47  ;;  %7769 = vst.msk [vmem:[%s14845_s12 + $0x28] sm:$0xff] %vm3073_vm4, %v8802_v33  ;;  %v15802_v36 = vsel %vm13198_vm3, %v14722_v24, %v15776_v0  ;;  %v15803_v37 = vsel %vm13198_vm3, %v14753_v17, %v15782_v49  ;;  %v3563_v1 = vsel %vm13198_vm3, %v14785_v3, %v15804_v14  ;;  %v15805_v49 = vld [vmem:[#allocation13_spill] sm:$0xff]  ;;  %v9532_v34 = vld [vmem:[%s13660_s23 + $0x68] sm:$0xff] }
 0x9fb   : > { %v3818_v26 = vsel %vm14566_vm0, %v14736_v16, %v15802_v36  ;;  %v3821_v58 = vsel %vm14566_vm0, %v14586_v9, %v15803_v37  ;;  %v3839_v24 = vsel %vm14566_vm0, %v14813_v43, %v3583_v39  ;;  %v15044_v16 = vadd.f32 %v8863_v53, %v14700_v21  ;;  %v15815_v53 = vld [vmem:[#allocation45_spill] sm:$0xff]  ;;  %v15817_v37 = vld [vmem:[#allocation31_spill] sm:$0xff] }
 0x9fc   : > { %v15047_v0 = vadd.f32 %v8866_v22, %v14700_v21  ;;  %v15050_v17 = vadd.f32 %v8869_v2, %v14700_v21  ;;  %v3871_v9 = vsel %vm3007_vm9, %v3839_v24, 0.0  ;;  %vm3298_vm1 = vcmp.eq.f32.partialorder %v15805_v49, inf  ;;  %v15816_v2 = vld [vmem:[#allocation46_spill] sm:$0xff]  ;;  %v15818_v24 = vld [vmem:[#allocation61_spill] sm:$0xff] }
 0x9fd   : > { %v3852_v3 = vsel %vm3007_vm9, %v14781_v7, 0.0  ;;  %v3819_v43 = vsel %vm14566_vm0, %v15806_v29, %v3563_v1  ;;  %v8872_v48 = vadd.f32 %v14658_v40, %v3871_v9  ;;  %v3470_v25 = vadd.f32 %v9530_v57, %v15807_v15  ;;  %v15819_v29 = vld [vmem:[#allocation9_spill] sm:$0xff] }
 0x9fe   : > { %vm3284_vm2 = vcmp.eq.f32.partialorder %v15808_v23, inf  ;;  %v3299_v12 = vsel %vm3298_vm1, %v15805_v49, %v15809_v63  ;;  %v3850_v50 = vsel %vm3007_vm9, %v3818_v26, 0.0  ;;  %v3301_v45 = vand.u32 2147483648, %v15805_v49 }
 0x9ff   : > { %v3285_v7 = vsel %vm3284_vm2, %v15808_v23, %v15810_v61  ;;  %v3853_v30 = vsel %vm3007_vm9, %v3821_v58, 0.0  ;;  %v15075_v32 = vadd.f32 %v8872_v48, %v14700_v21  ;;  %v3287_v6 = vand.u32 2147483648, %v15808_v23  ;;  %v9533_v48 = vld [vmem:[%s13660_s23 + $0x70] sm:$0xff] }
 0xa00   : > { %vm3300_vm6 = vcmp.eq.f32.partialorder %v15805_v49, 0.0  ;;  %v8803_v8 = vadd.f32 %v14658_v40, %v3852_v3  ;;  %v3851_v44 = vsel %vm3007_vm9, %v3819_v43, 0.0  ;;  %vm3286_vm7 = vcmp.eq.f32.partialorder %v15808_v23, 0.0 }
 0xa01   : > { %v3302_v31 = vsel %vm3300_vm6, %v3301_v45, %v3299_v12  ;;  %v8806_v59 = vadd.f32 %v14658_v40, %v3850_v50  ;;  %v3473_v62 = vadd.f32 %v9531_v13, %v15811_v52  ;;  %v3288_v35 = vsel %vm3286_vm7, %v3287_v6, %v3285_v7  ;;  %v15820_v50 = vld [vmem:[#allocation19_spill] sm:$0xff] }
 0xa02   : > { %v3760_v56 = vmul.f32 %v15813_v54, %v15812_v19  ;;  %v8809_v33 = vadd.f32 %v14658_v40, %v3853_v30  ;;  %v3471_v47 = vadd.f32 %v9532_v34, %v15814_v10  ;;  %v3504_v22 = vsel %vm3002_vm5, %v15815_v53, %v15812_v19 }
 0xa03   : > { %v3758_v28 = vmul.f32 %v15816_v2, %v15807_v15  ;;  %v8812_v39 = vadd.f32 %v14658_v40, %v3851_v44  ;;  %v3502_v36 = vsel %vm3002_vm5, %v3470_v25, %v15807_v15  ;;  %v3412_v26 = vmax.f32 %v3302_v31, 1e-12 }
 0xa04   : > { %v3761_v58 = vmul.f32 %v15817_v37, %v15811_v52  ;;  %v8804_v14 = vadd.f32 %v8803_v8, %v14700_v21  ;;  %v3410_v1 = vmax.f32 %v3288_v35, 1e-12  ;;  %v3759_v9 = vmul.f32 %v15818_v24, %v15814_v10  ;;  %v8753_v49 = vpop.f32.mrb[88].mxu1  ;;  %v15821_v8 = vld [vmem:[#allocation32_spill] sm:$0xff] }
 0xa05   : > { %v8807_v3 = vadd.f32 %v8806_v59, %v14700_v21  ;;  %v3536_v43 = vmul.f32 %v15819_v29, %v15812_v19  ;;  %v3792_v23 = vadd.f32 %v9533_v48, %v3760_v56  ;;  %v7605_v63 = vpop.f32.mrb[89].mxu1  ;;  %v8810_v12 = vadd.f32 %v8809_v33, %v14700_v21  ;;  %v15822_v19 = vld [vmem:[#allocation11_spill] sm:$0xff]  ;;  %v15826_v29 = vld [vmem:[#allocation34_spill] sm:$0xff] }
 0xa06   : > { %v8805_v25 = vadd.f32 %v8804_v14, %v8753_v49  ;;  %v3534_v61 = vmul.f32 %v15820_v50, %v15807_v15  ;;  %v3790_v7 = vadd.f32 %v9530_v57, %v3758_v28  ;;  %v8754_v30 = vpop.f32.mrb[90].mxu1  ;;  %v8813_v6 = vadd.f32 %v8812_v39, %v14700_v21  ;;  %v15823_v14 = vld [vmem:[#allocation58_spill] sm:$0xff] }
 0xa07   : > { %v8808_v45 = vadd.f32 %v8807_v3, %v7605_v63  ;;  %v3537_v44 = vmul.f32 %v15821_v8, %v15811_v52  ;;  %9464 = vrcp.f32 %v3412_v26  ;;  %v3793_v31 = vadd.f32 %v9531_v13, %v3761_v58  ;;  %v7608_v35 = vpop.f32.mrb[91].mxu1  ;;  %v15825_v3 = vld [vmem:[#allocation60_spill] sm:$0xff] }
 0xa08   : > { %7774 = vst.msk [vmem:[%s14845_s12 + $0x50] sm:$0xff] %vm3073_vm4, %v8805_v25  ;;  %v8811_v59 = vadd.f32 %v8810_v12, %v8754_v30  ;;  %v3535_v54 = vmul.f32 %v15822_v19, %v15814_v10  ;;  %9466 = vrcp.f32 %v3410_v1  ;;  %v3791_v57 = vadd.f32 %v9532_v34, %v3759_v9  ;;  %v15824_v1 = vld [vmem:[#allocation35_spill] sm:$0xff]  ;;  %v9535_v12 = vld [vmem:[%s13660_s23 + $0x80] sm:$0xff] }
 0xa09   : > { %7772 = vst.msk [vmem:[%s14845_s12 + $0x40] sm:$0xff] %vm3073_vm4, %v8808_v45  ;;  %v8814_v15 = vadd.f32 %v8813_v6, %v7608_v35  ;;  %v3568_v56 = vsel %vm13198_vm3, %v3536_v43, %v3504_v22  ;;  %v3505_v33 = vsel %vm3002_vm5, %v3473_v62, %v15811_v52  ;;  %v3566_v53 = vsel %vm13198_vm3, %v3534_v61, %v3502_v36 }
 0xa0a   : > { %7775 = vst.msk [vmem:[%s14845_s12 + $0x58] sm:$0xff] %vm3073_vm4, %v8811_v59  ;;  %v3824_v13 = vsel %vm14566_vm0, %v3792_v23, %v3568_v56  ;;  %v3503_v34 = vsel %vm3002_vm5, %v3471_v47, %v15814_v10  ;;  %v3822_v22 = vsel %vm14566_vm0, %v3790_v7, %v3566_v53  ;;  %v3569_v52 = vsel %vm13198_vm3, %v3537_v44, %v3505_v33  ;;  %v9534_v23 = vld [vmem:[%s13660_s23 + $0x90] sm:$0xff] }
 0xa0b   : > { %7773 = vst.msk [vmem:[%s14845_s12 + $0x48] sm:$0xff] %vm3073_vm4, %v8814_v15  ;;  %v3825_v62 = vsel %vm14566_vm0, %v3793_v31, %v3569_v52  ;;  %v3567_v2 = vsel %vm13198_vm3, %v3535_v54, %v3503_v34  ;;  %v3856_v28 = vsel %vm3007_vm9, %v3824_v13, 0.0  ;;  %v3854_v47 = vsel %vm3007_vm9, %v3822_v22, 0.0 }
 0xa0c   : > { %v3823_v10 = vsel %vm14566_vm0, %v3791_v57, %v3567_v2  ;;  %v3857_v39 = vsel %vm3007_vm9, %v3825_v62, 0.0  ;;  %v8815_v36 = vadd.f32 %v14658_v40, %v3856_v28  ;;  %v8818_v37 = vadd.f32 %v14658_v40, %v3854_v47 }
 0xa0d   : > { %v3855_v26 = vsel %vm3007_vm9, %v3823_v10, 0.0  ;;  %v3764_v24 = vmul.f32 %v15824_v1, %v15823_v14  ;;  %v8821_v9 = vadd.f32 %v14658_v40, %v3857_v39  ;;  %v3762_v43 = vmul.f32 %v15826_v29, %v15825_v3 }
 0xa0e   : > { %v8824_v48 = vadd.f32 %v14658_v40, %v3855_v26  ;;  %v3476_v25 = vadd.f32 %v9534_v23, %v15823_v14  ;;  %v8816_v63 = vadd.f32 %v8815_v36, %v14700_v21  ;;  %v3474_v50 = vadd.f32 %v9535_v12, %v15825_v3 }
 0xa0f   : > { %v8819_v7 = vadd.f32 %v8818_v37, %v14700_v21  ;;  %v3796_v30 = vadd.f32 %v9534_v23, %v3764_v24  ;;  %v8822_v44 = vadd.f32 %v8821_v9, %v14700_v21  ;;  %v3794_v59 = vadd.f32 %v9535_v12, %v3762_v43 }
 0xa10   : > { %v8825_v54 = vadd.f32 %v8824_v48, %v14700_v21  ;;  %v3508_v57 = vsel %vm3002_vm5, %v3476_v25, %v15823_v14  ;;  %v3506_v33 = vsel %vm3002_vm5, %v3474_v50, %v15825_v3 }
 0xa11   : > { %v9465_v58 = vpop.eup %9464 }
 0xa12   : > { %v9467_v49 = vpop.eup %9466  ;;  %v3540_v45 = vmul.f32 %v9465_v58, %v15823_v14 }
 0xa13   : > { %v3538_v31 = vmul.f32 %v9467_v49, %v15825_v3 }
 0xa14   : > { %v8757_v61 = vpop.f32.mrb[92].mxu1  ;;  %v3572_v53 = vsel %vm13198_vm3, %v3540_v45, %v3508_v57 }
 0xa15   : > { %v8817_v6 = vadd.f32 %v8816_v63, %v8757_v61  ;;  %v7621_v8 = vpop.f32.mrb[93].mxu1  ;;  %v3828_v34 = vsel %vm14566_vm0, %v3796_v30, %v3572_v53  ;;  %v3570_v22 = vsel %vm13198_vm3, %v3538_v31, %v3506_v33 }
 0xa16   : > { %v8820_v35 = vadd.f32 %v8819_v7, %v7621_v8  ;;  %v8758_v19 = vpop.f32.mrb[94].mxu1  ;;  %v3826_v52 = vsel %vm14566_vm0, %v3794_v59, %v3570_v22  ;;  %v3860_v62 = vsel %vm3007_vm9, %v3828_v34, 0.0 }
 0xa17   : > { %7778 = vst.msk [vmem:[%s14845_s12 + $0x70] sm:$0xff] %vm3073_vm4, %v8817_v6  ;;  %v8823_v15 = vadd.f32 %v8822_v44, %v8758_v19  ;;  %v7624_v56 = vpop.f32.mrb[95].mxu1  ;;  %v3858_v2 = vsel %vm3007_vm9, %v3826_v52, 0.0  ;;  %v8827_v28 = vadd.f32 %v14658_v40, %v3860_v62 }
 0xa18   : > { %7776 = vst.msk [vmem:[%s14845_s12 + $0x60] sm:$0xff] %vm3073_vm4, %v8820_v35  ;;  %v8826_v13 = vadd.f32 %v8825_v54, %v7624_v56  ;;  %v8830_v10 = vadd.f32 %v14658_v40, %v3858_v2 }
 0xa19   : > { %7779 = vst.msk [vmem:[%s14845_s12 + $0x78] sm:$0xff] %vm3073_vm4, %v8823_v15  ;;  %v8828_v5 = vadd.f32 %v8827_v28, %v14700_v21 }
 0xa1a   : > { %7777 = vst.msk [vmem:[%s14845_s12 + $0x68] sm:$0xff] %vm3073_vm4, %v8826_v13  ;;  %v8831_v39 = vadd.f32 %v8830_v10, %v14700_v21 }
 0xa24   : > { %v8761_v47 = vpop.f32.mrb[96].mxu1 }
 0xa25   : > { %v8829_v60 = vadd.f32 %v8828_v5, %v8761_v47  ;;  %v7637_v36 = vpop.f32.mrb[97].mxu1 }
 0xa26   : > { %v8832_v26 = vadd.f32 %v8831_v39, %v7637_v36  ;;  %v8762_v37 = vpop.f32.mrb[98].mxu1 }
 0xa27   : > { %7782 = vst.msk [vmem:[%s14845_s12 + $0x90] sm:$0xff] %vm3073_vm4, %v8829_v60  ;;  %v8835_v38 = vadd.f32 %v14835_v11, %v8762_v37  ;;  %v7640_v58 = vpop.f32.mrb[99].mxu1 }
 0xa28   : > { %7780 = vst.msk [vmem:[%s14845_s12 + $0x80] sm:$0xff] %vm3073_vm4, %v8832_v26  ;;  %v8838_v40 = vadd.f32 %v14849_v18, %v7640_v58 }
 0xa29   : > { %7783 = vst.msk [vmem:[%s14845_s12 + $0x98] sm:$0xff] %vm3073_vm4, %v8835_v38 }
 0xa2a   : > { %7781 = vst.msk [vmem:[%s14845_s12 + $0x88] sm:$0xff] %vm3073_vm4, %v8838_v40 }
 0xa34   : > { %v8765_v21 = vpop.f32.mrb[100].mxu1 }
 0xa35   : > { %v8841_v14 = vadd.f32 %v14892_v55, %v8765_v21  ;;  %v7653_v1 = vpop.f32.mrb[101].mxu1 }
 0xa36   : > { %v8844_v24 = vadd.f32 %v14899_v42, %v7653_v1  ;;  %v8766_v9 = vpop.f32.mrb[102].mxu1 }
 0xa37   : > { %7786 = vst.msk [vmem:[%s14845_s12 + $0xb0] sm:$0xff] %vm3073_vm4, %v8841_v14  ;;  %v8847_v11 = vadd.f32 %v14918_v41, %v8766_v9  ;;  %v7656_v49 = vpop.f32.mrb[103].mxu1 }
 0xa38   : > { %7784 = vst.msk [vmem:[%s14845_s12 + $0xa0] sm:$0xff] %vm3073_vm4, %v8844_v24  ;;  %v8850_v18 = vadd.f32 %v14943_v46, %v7656_v49 }
 0xa39   : > { %7787 = vst.msk [vmem:[%s14845_s12 + $0xb8] sm:$0xff] %vm3073_vm4, %v8847_v11 }
 0xa3a   : > { %7785 = vst.msk [vmem:[%s14845_s12 + $0xa8] sm:$0xff] %vm3073_vm4, %v8850_v18 }
 0xa44   : > { %v8769_v55 = vpop.f32.mrb[104].mxu1 }
 0xa45   : > { %v8853_v42 = vadd.f32 %v14961_v51, %v8769_v55  ;;  %v7669_v3 = vpop.f32.mrb[105].mxu1 }
 0xa46   : > { %v8856_v29 = vadd.f32 %v14950_v20, %v7669_v3  ;;  %v8770_v43 = vpop.f32.mrb[106].mxu1 }
 0xa47   : > { %7790 = vst.msk [vmem:[%s14845_s12 + $0xd0] sm:$0xff] %vm3073_vm4, %v8853_v42  ;;  %v8859_v41 = vadd.f32 %v14977_v4, %v8770_v43  ;;  %v7672_v48 = vpop.f32.mrb[107].mxu1 }
 0xa48   : > { %7788 = vst.msk [vmem:[%s14845_s12 + $0xc0] sm:$0xff] %vm3073_vm4, %v8856_v29  ;;  %v8862_v46 = vadd.f32 %v14983_v27, %v7672_v48 }
 0xa49   : > { %7791 = vst.msk [vmem:[%s14845_s12 + $0xd8] sm:$0xff] %vm3073_vm4, %v8859_v41 }
 0xa4a   : > { %7789 = vst.msk [vmem:[%s14845_s12 + $0xc8] sm:$0xff] %vm3073_vm4, %v8862_v46 }
 0xa5d   : > { %v8773_v51 = vpop.f32.mrb[108].mxu1 }
 0xa5e   : > { %v8865_v20 = vadd.f32 %v15044_v16, %v8773_v51  ;;  %v7685_v23 = vpop.f32.mrb[109].mxu1 }
 0xa5f   : > { %v8868_v25 = vadd.f32 %v15047_v0, %v7685_v23  ;;  %v8774_v63 = vpop.f32.mrb[110].mxu1 }
 0xa60   : > { %7794 = vst.msk [vmem:[%s14845_s12 + $0xf0] sm:$0xff] %vm3073_vm4, %v8865_v20  ;;  %v8871_v4 = vadd.f32 %v15050_v17, %v8774_v63  ;;  %v7688_v12 = vpop.f32.mrb[111].mxu1 }
 0xa61   : > { %7792 = vst.msk [vmem:[%s14845_s12 + $0xe0] sm:$0xff] %vm3073_vm4, %v8868_v25  ;;  %v8874_v27 = vadd.f32 %v15075_v32, %v7688_v12 }
 0xa62   : > { %7795 = vst.msk [vmem:[%s14845_s12 + $0xf8] sm:$0xff] %vm3073_vm4, %v8871_v4 }
 0xa63   : > { %7793 = vst.msk [vmem:[%s14845_s12 + $0xe8] sm:$0xff] %vm3073_vm4, %v8874_v27 }
 0xa64 PF: > { %s16_s21 = sadd.s32 1, %s9542_s21  }
 0xa65   : > { %p13_p4 = scmp.ge.s32.totalorder %s16_s21, 4  }
 0xa67   :  { %15 = sbr.rel (!%p13_p4) target bundleno = 1 (0x1), region = 89 }

</bundles_post_ra>
